<compile_context>
chip_gen: v7x
topology: tpu7x:2x2x1
jax: 0.10.0
libtpu: 0.0.40
codegen_flags: <defaults>
</compile_context>

<pallas_src>
import math

import jax
import jax.numpy as jnp
import numpy as np
from jax import lax
from jax.experimental import pallas as pl
from jax.experimental.pallas import tpu as pltpu


# ---------------------------------------------------------------------------
# Weight packing: per-direction torch weights -> fused block-diagonal matrices.
# Done once at "model load" time (tiny XLA ops), never inside the kernel.
# ---------------------------------------------------------------------------
def _scatter_gate_cols(w, H, direction):
    """w: (rows, 4H) in torch gate order [i, f, g, o].  Returns (rows, 8H) in the
    combined column order [i_f,i_b,f_f,f_b,o_f,o_b,g_f,g_b] with the other
    direction's blocks zeroed."""
    i, f, g, o = w[:, 0:H], w[:, H:2 * H], w[:, 2 * H:3 * H], w[:, 3 * H:4 * H]
    z = jnp.zeros_like(i)
    blocks = [i, z, f, z, o, z, g, z] if direction == 0 else [z, i, z, f, z, o, z, g]
    return jnp.concatenate(blocks, axis=-1)


def pack_bilstm_params(params):
    """params[l] = ((wih_f_T, whh_f_T, b_f), (wih_b_T, whh_b_T, b_b)) with
    wih_T (D_in, 4H), whh_T (H, 4H), b (1, 4H).  Returns per layer:
      W_ih_pair (2*D_in, 8H) bf16   rows 0:D_in -> fwd cols, D_in:2D_in -> bwd cols
      W_hh_pair (2H, 8H)     bf16   block-diagonal fwd/bwd
      b_pair    (1, 8H)      f32
    """
    packed = []
    for (wih_f, whh_f, b_f), (wih_b, whh_b, b_b) in params:
        H = whh_f.shape[0]
        wi = jnp.concatenate([_scatter_gate_cols(wih_f, H, 0),
                              _scatter_gate_cols(wih_b, H, 1)], axis=0)
        wh = jnp.concatenate([_scatter_gate_cols(whh_f, H, 0),
                              _scatter_gate_cols(whh_b, H, 1)], axis=0)
        b = _scatter_gate_cols(b_f, H, 0) + _scatter_gate_cols(b_b, H, 1)
        packed.append((wi.astype(jnp.bfloat16), wh.astype(jnp.bfloat16),
                       b.astype(jnp.float32)))
    return packed


# ---------------------------------------------------------------------------
# Fused kernel: all layers, both directions, one pallas_call.
# ---------------------------------------------------------------------------
def _make_fused_bilstm_kernel(T, B, H, L):
    H2, H4, H6 = 2 * H, 4 * H, 6 * H

    def kernel(*refs):
        x_ref = refs[0]                                     # (T*B, 2*D) time-paired input
        layer_refs = [refs[1 + 3 * l:4 + 3 * l] for l in range(L)]
        out_ref = refs[1 + 3 * L]                           # (T, B, 2H)
        gx_scrs = refs[2 + 3 * L:2 + 4 * L]                 # L x (T*B, 8H) f32
        act_scrs = refs[2 + 4 * L:]                         # (L-1) x (T*B, 4H) f32

        def fused_gates(gates, c):
            # gates: (B, 8H) in columns [i_f,i_b,f_f,f_b,o_f,o_b,g_f,g_b]
            sig = jax.nn.sigmoid(gates[:, :H6])             # one push: i,f,o both dirs
            g = jnp.tanh(gates[:, H6:])                     # one push: g both dirs
            c = sig[:, H2:H4] * c + sig[:, :H2] * g
            h = sig[:, H4:H6] * jnp.tanh(c)
            return h, c

        x_in = x_ref
        for l in range(L):
            wi_ref, wh_ref, b_ref = layer_refs[l]
            wh = wh_ref[...]                                # (2H, 8H) bf16, hoisted
            gx = gx_scrs[l]
            # Hoisted time-paired input projection: ONE big MXU matmul per layer.
            gx[...] = jnp.dot(x_in[...].astype(jnp.bfloat16), wi_ref[...],
                              preferred_element_type=jnp.float32) + b_ref[...]

            h = jnp.zeros((B, H2), jnp.float32)             # [:, :H]=fwd, [:, H:]=bwd
            c = jnp.zeros((B, H2), jnp.float32)
            last = (l == L - 1)
            for s in range(T):                              # fully unrolled, static offsets
                rs = T - 1 - s
                # Single fused recurrent matmul for both directions.
                gates = gx[s * B:(s + 1) * B, :] + jnp.dot(
                    h.astype(jnp.bfloat16), wh, preferred_element_type=jnp.float32)
                h, c = fused_gates(gates, c)
                h_f, h_b = h[:, :H], h[:, H:]
                if last:
                    out_ref[s, :, 0:H] = h_f                # fwd output at time s
                    out_ref[rs, :, H:] = h_b                # bwd output at time rs
                else:
                    a = act_scrs[l]
                    # Next layer's time-paired input: a[t] = [act(t) | act(T-1-t)]
                    a[s * B:(s + 1) * B, 0:H] = h_f         # fwd(t)       at t=s
                    a[rs * B:(rs + 1) * B, H:H2] = h_b      # bwd(t)       at t=rs
                    a[rs * B:(rs + 1) * B, H2:3 * H] = h_f  # fwd(T-1-t)   at t=rs
                    a[s * B:(s + 1) * B, 3 * H:H4] = h_b    # bwd(T-1-t)   at t=s
            if not last:
                x_in = act_scrs[l]

    return kernel


def lstmfc_forward(x_btd, packed_params):
    """Matches Lstmfc.forward: out, _ = lstm(x); return torch.flatten(out, 1)."""
    B, T, D = x_btd.shape
    L = len(packed_params)
    H = packed_params[0][1].shape[0] // 2
    # Time-major, time-paired layer-0 input: row (t*B+b) = [x(t,b) | x(T-1-t,b)].
    x_tbd = jnp.transpose(x_btd, (1, 0, 2))
    x_pair = jnp.concatenate([x_tbd, x_tbd[::-1]], axis=-1).reshape(T * B, 2 * D)

    vmem = pl.BlockSpec(memory_space=pltpu.MemorySpace.VMEM)
    flat_w = [w for layer in packed_params for w in layer]
    out_tb2h = pl.pallas_call(
        _make_fused_bilstm_kernel(T, B, H, L),
        out_shape=jax.ShapeDtypeStruct((T, B, 2 * H), jnp.float32),
        in_specs=[vmem] * (1 + 3 * L),
        out_specs=vmem,
        scratch_shapes=(
            [pltpu.VMEM((T * B, 8 * H), jnp.float32) for _ in range(L)]        # gx per layer
            + [pltpu.VMEM((T * B, 4 * H), jnp.float32) for _ in range(L - 1)]  # paired acts
        ),
    )(x_pair, *flat_w)
    out_bt2h = jnp.transpose(out_tb2h, (1, 0, 2))           # (B, T, 2H)
    return out_bt2h.reshape(B, -1)                          # (B, T*2H)


# ---------------------------------------------------------------------------
# Parameter init (PyTorch nn.LSTM default: U(-1/sqrt(H), 1/sqrt(H))).
# ---------------------------------------------------------------------------
def init_lstm_params(key, input_dim, hidden_dim, layers):
    k = 1.0 / math.sqrt(hidden_dim)
    params = []
    for layer in range(layers):
        d_in = input_dim if layer == 0 else 2 * hidden_dim
        layer_p = []
        for _direction in range(2):  # forward, backward
            key, k1, k2, k3, k4 = jax.random.split(key, 5)
            w_ih = jax.random.uniform(k1, (4 * hidden_dim, d_in), jnp.float32, -k, k)
            w_hh = jax.random.uniform(k2, (4 * hidden_dim, hidden_dim), jnp.float32, -k, k)
            b_ih = jax.random.uniform(k3, (4 * hidden_dim,), jnp.float32, -k, k)
            b_hh = jax.random.uniform(k4, (4 * hidden_dim,), jnp.float32, -k, k)
            layer_p.append((w_ih.T, w_hh.T, (b_ih + b_hh)[None, :]))
        params.append(tuple(layer_p))
    return params


# ---------------------------------------------------------------------------
# Pure-JAX f32 reference (lax.scan) for correctness checking.
# ---------------------------------------------------------------------------
def _ref_direction(x_tbd, w_ih_t, w_hh_t, bias):
    T, B, D = x_tbd.shape
    H = w_hh_t.shape[0]
    gx = (x_tbd.reshape(T * B, D) @ w_ih_t + bias).reshape(T, B, 4 * H)

    def step(carry, gx_t):
        h, c = carry
        gates = gx_t + h @ w_hh_t
        i = jax.nn.sigmoid(gates[:, 0:H])
        f = jax.nn.sigmoid(gates[:, H:2 * H])
        g = jnp.tanh(gates[:, 2 * H:3 * H])
        o = jax.nn.sigmoid(gates[:, 3 * H:4 * H])
        c = f * c + i * g
        h = o * jnp.tanh(c)
        return (h, c), h

    init = (jnp.zeros((B, H), jnp.float32), jnp.zeros((B, H), jnp.float32))
    _, hs = lax.scan(step, init, gx)
    return hs


def lstmfc_reference(x_btd, params):
    h = jnp.transpose(x_btd, (1, 0, 2))
    for (fwd_p, bwd_p) in params:
        h_f = _ref_direction(h, *fwd_p)
        h_b = _ref_direction(h[::-1], *bwd_p)[::-1]
        h = jnp.concatenate([h_f, h_b], axis=-1)
    out_btd = jnp.transpose(h, (1, 0, 2))
    return out_btd.reshape(out_btd.shape[0], -1)


if __name__ == "__main__":
    # fc expects 2*21*hidden input features, so the module implies seq_len = 21.
    B, T, D, H, L = 2, 21, 4, 32, 2

    key = jax.random.PRNGKey(0)
    kx, kp = jax.random.split(key)
    x = jax.random.normal(kx, (B, T, D), jnp.float32)
    params = init_lstm_params(kp, D, H, L)
    packed = pack_bilstm_params(params)          # once, at "model load" time

    out = jax.block_until_ready(jax.jit(lstmfc_forward)(x, packed))
    assert out.shape == (B, T * 2 * H), out.shape

    ref = jax.block_until_ready(lstmfc_reference(x, params))
    # bf16 MXU operands (f32 accumulate/state) per the perf review -> loosened
    # tolerance vs. the pure-f32 reference.
    np.testing.assert_allclose(np.asarray(out), np.asarray(ref), rtol=2e-2, atol=2e-2)

    print("KERNEL_OK")
</pallas_src>

<mosaic_0001>
module attributes {stable_mosaic.version = 11 : i64} {
  func.func @kernel(%arg0: memref<42x8xf32, #tpu.memory_space<vmem>>, %arg1: memref<8x256xbf16, #tpu.memory_space<vmem>>, %arg2: memref<64x256xbf16, #tpu.memory_space<vmem>>, %arg3: memref<1x256xf32, #tpu.memory_space<vmem>>, %arg4: memref<128x256xbf16, #tpu.memory_space<vmem>>, %arg5: memref<64x256xbf16, #tpu.memory_space<vmem>>, %arg6: memref<1x256xf32, #tpu.memory_space<vmem>>, %arg7: memref<21x2x64xf32, #tpu.memory_space<vmem>>, %arg8: memref<42x256xf32, #tpu.memory_space<vmem>>, %arg9: memref<42x256xf32, #tpu.memory_space<vmem>>, %arg10: memref<42x128xf32, #tpu.memory_space<vmem>>) attributes {dimension_semantics = [], scalar_prefetch = 0 : i64, scratch_operands = 3 : i64, tpu.core_type = #tpu.core_type<tc>} {
    %c0 = arith.constant 0 : index
    %c0_0 = arith.constant 0 : index
    %0 = vector.load %arg2[%c0, %c0_0] : memref<64x256xbf16, #tpu.memory_space<vmem>>, vector<64x256xbf16>
    %c0_1 = arith.constant 0 : index
    %c0_2 = arith.constant 0 : index
    %1 = vector.load %arg0[%c0_1, %c0_2] : memref<42x8xf32, #tpu.memory_space<vmem>>, vector<42x8xf32>
    %2 = arith.truncf %1 : vector<42x8xf32> to vector<42x8xbf16>
    %c0_3 = arith.constant 0 : index
    %c0_4 = arith.constant 0 : index
    %3 = vector.load %arg1[%c0_3, %c0_4] : memref<8x256xbf16, #tpu.memory_space<vmem>>, vector<8x256xbf16>
    %cst = arith.constant dense<0.000000e+00> : vector<42x256xf32>
    %4 = tpu.matmul %2, %3, %cst {dimension_numbers = #tpu.dot_dimension_numbers<[1], [0], [0], [1], [0, 0, 1, 1], [], []>} : vector<42x8xbf16>, vector<8x256xbf16>, vector<42x256xf32> -> vector<42x256xf32>
    %c0_5 = arith.constant 0 : index
    %c0_6 = arith.constant 0 : index
    %5 = vector.load %arg3[%c0_5, %c0_6] : memref<1x256xf32, #tpu.memory_space<vmem>>, vector<1x256xf32>
    %6 = vector.broadcast %5 : vector<1x256xf32> to vector<42x256xf32>
    %7 = arith.addf %4, %6 : vector<42x256xf32>
    %c0_7 = arith.constant 0 : index
    %c0_8 = arith.constant 0 : index
    %8 = vector.load %arg8[%c0_7, %c0_8] : memref<42x256xf32, #tpu.memory_space<vmem>>, vector<42x256xf32>
    tpu.vector_store %arg8[%c0_7, %c0_8], %7 {strides = array<i32>} : memref<42x256xf32, #tpu.memory_space<vmem>>, vector<42x256xf32>,
    %cst_9 = arith.constant 0.000000e+00 : f32
    %9 = vector.broadcast %cst_9 : f32 to vector<2x64xf32>
    %cst_10 = arith.constant 0.000000e+00 : f32
    %10 = vector.broadcast %cst_10 : f32 to vector<2x64xf32>
    %c0_11 = arith.constant 0 : index
    %c0_12 = arith.constant 0 : index
    %11 = vector.load %arg8[%c0_11, %c0_12] : memref<42x256xf32, #tpu.memory_space<vmem>>, vector<2x256xf32>
    %12 = arith.truncf %9 : vector<2x64xf32> to vector<2x64xbf16>
    %cst_13 = arith.constant dense<0.000000e+00> : vector<2x256xf32>
    %13 = tpu.matmul %12, %0, %cst_13 {dimension_numbers = #tpu.dot_dimension_numbers<[1], [0], [0], [1], [0, 0, 1, 1], [], []>} : vector<2x64xbf16>, vector<64x256xbf16>, vector<2x256xf32> -> vector<2x256xf32>
    %14 = arith.addf %11, %13 : vector<2x256xf32>
    %15 = vector.extract_strided_slice %14 {offsets = [0, 0], sizes = [2, 192], strides = [1, 1]} : vector<2x256xf32> to vector<2x192xf32>
    %16 = arith.negf %15 : vector<2x192xf32>
    %17 = math.exp %16 : vector<2x192xf32>
    %cst_14 = arith.constant 1.000000e+00 : f32
    %18 = vector.broadcast %cst_14 : f32 to vector<2x192xf32>
    %19 = arith.addf %18, %17 : vector<2x192xf32>
    %20 = arith.divf %18, %19 : vector<2x192xf32>
    %21 = vector.extract_strided_slice %14 {offsets = [0, 192], sizes = [2, 64], strides = [1, 1]} : vector<2x256xf32> to vector<2x64xf32>
    %22 = math.tanh %21 : vector<2x64xf32>
    %23 = vector.extract_strided_slice %20 {offsets = [0, 64], sizes = [2, 64], strides = [1, 1]} : vector<2x192xf32> to vector<2x64xf32>
    %24 = arith.mulf %23, %10 : vector<2x64xf32>
    %25 = vector.extract_strided_slice %20 {offsets = [0, 0], sizes = [2, 64], strides = [1, 1]} : vector<2x192xf32> to vector<2x64xf32>
    %26 = arith.mulf %25, %22 : vector<2x64xf32>
    %27 = arith.addf %24, %26 : vector<2x64xf32>
    %28 = vector.extract_strided_slice %20 {offsets = [0, 128], sizes = [2, 64], strides = [1, 1]} : vector<2x192xf32> to vector<2x64xf32>
    %29 = math.tanh %27 : vector<2x64xf32>
    %30 = arith.mulf %28, %29 : vector<2x64xf32>
    %31 = vector.extract_strided_slice %30 {offsets = [0, 0], sizes = [2, 32], strides = [1, 1]} : vector<2x64xf32> to vector<2x32xf32>
    %32 = vector.extract_strided_slice %30 {offsets = [0, 32], sizes = [2, 32], strides = [1, 1]} : vector<2x64xf32> to vector<2x32xf32>
    %c0_15 = arith.constant 0 : index
    %c0_16 = arith.constant 0 : index
    %33 = vector.load %arg10[%c0_15, %c0_16] : memref<42x128xf32, #tpu.memory_space<vmem>>, vector<2x32xf32>
    tpu.vector_store %arg10[%c0_15, %c0_16], %31 {strides = array<i32>} : memref<42x128xf32, #tpu.memory_space<vmem>>, vector<2x32xf32>,
    %c40 = arith.constant 40 : index
    %c32 = arith.constant 32 : index
    %34 = vector.load %arg10[%c40, %c32] : memref<42x128xf32, #tpu.memory_space<vmem>>, vector<2x32xf32>
    tpu.vector_store %arg10[%c40, %c32], %32 {strides = array<i32>} : memref<42x128xf32, #tpu.memory_space<vmem>>, vector<2x32xf32>,
    %c40_17 = arith.constant 40 : index
    %c64 = arith.constant 64 : index
    %35 = vector.load %arg10[%c40_17, %c64] : memref<42x128xf32, #tpu.memory_space<vmem>>, vector<2x32xf32>
    tpu.vector_store %arg10[%c40_17, %c64], %31 {strides = array<i32>} : memref<42x128xf32, #tpu.memory_space<vmem>>, vector<2x32xf32>,
    %c0_18 = arith.constant 0 : index
    %c96 = arith.constant 96 : index
    %36 = vector.load %arg10[%c0_18, %c96] : memref<42x128xf32, #tpu.memory_space<vmem>>, vector<2x32xf32>
    tpu.vector_store %arg10[%c0_18, %c96], %32 {strides = array<i32>} : memref<42x128xf32, #tpu.memory_space<vmem>>, vector<2x32xf32>,
    %c2 = arith.constant 2 : index
    %c0_19 = arith.constant 0 : index
    %37 = vector.load %arg8[%c2, %c0_19] : memref<42x256xf32, #tpu.memory_space<vmem>>, vector<2x256xf32>
    %38 = arith.truncf %30 : vector<2x64xf32> to vector<2x64xbf16>
    %cst_20 = arith.constant dense<0.000000e+00> : vector<2x256xf32>
    %39 = tpu.matmul %38, %0, %cst_20 {dimension_numbers = #tpu.dot_dimension_numbers<[1], [0], [0], [1], [0, 0, 1, 1], [], []>} : vector<2x64xbf16>, vector<64x256xbf16>, vector<2x256xf32> -> vector<2x256xf32>
    %40 = arith.addf %37, %39 : vector<2x256xf32>
    %41 = vector.extract_strided_slice %40 {offsets = [0, 0], sizes = [2, 192], strides = [1, 1]} : vector<2x256xf32> to vector<2x192xf32>
    %42 = arith.negf %41 : vector<2x192xf32>
    %43 = math.exp %42 : vector<2x192xf32>
    %cst_21 = arith.constant 1.000000e+00 : f32
    %44 = vector.broadcast %cst_21 : f32 to vector<2x192xf32>
    %45 = arith.addf %44, %43 : vector<2x192xf32>
    %46 = arith.divf %44, %45 : vector<2x192xf32>
    %47 = vector.extract_strided_slice %40 {offsets = [0, 192], sizes = [2, 64], strides = [1, 1]} : vector<2x256xf32> to vector<2x64xf32>
    %48 = math.tanh %47 : vector<2x64xf32>
    %49 = vector.extract_strided_slice %46 {offsets = [0, 64], sizes = [2, 64], strides = [1, 1]} : vector<2x192xf32> to vector<2x64xf32>
    %50 = arith.mulf %49, %27 : vector<2x64xf32>
    %51 = vector.extract_strided_slice %46 {offsets = [0, 0], sizes = [2, 64], strides = [1, 1]} : vector<2x192xf32> to vector<2x64xf32>
    %52 = arith.mulf %51, %48 : vector<2x64xf32>
    %53 = arith.addf %50, %52 : vector<2x64xf32>
    %54 = vector.extract_strided_slice %46 {offsets = [0, 128], sizes = [2, 64], strides = [1, 1]} : vector<2x192xf32> to vector<2x64xf32>
    %55 = math.tanh %53 : vector<2x64xf32>
    %56 = arith.mulf %54, %55 : vector<2x64xf32>
    %57 = vector.extract_strided_slice %56 {offsets = [0, 0], sizes = [2, 32], strides = [1, 1]} : vector<2x64xf32> to vector<2x32xf32>
    %58 = vector.extract_strided_slice %56 {offsets = [0, 32], sizes = [2, 32], strides = [1, 1]} : vector<2x64xf32> to vector<2x32xf32>
    %c2_22 = arith.constant 2 : index
    %c0_23 = arith.constant 0 : index
    %59 = vector.load %arg10[%c2_22, %c0_23] : memref<42x128xf32, #tpu.memory_space<vmem>>, vector<2x32xf32>
    tpu.vector_store %arg10[%c2_22, %c0_23], %57 {strides = array<i32>} : memref<42x128xf32, #tpu.memory_space<vmem>>, vector<2x32xf32>,
    %c38 = arith.constant 38 : index
    %c32_24 = arith.constant 32 : index
    %60 = vector.load %arg10[%c38, %c32_24] : memref<42x128xf32, #tpu.memory_space<vmem>>, vector<2x32xf32>
    tpu.vector_store %arg10[%c38, %c32_24], %58 {strides = array<i32>} : memref<42x128xf32, #tpu.memory_space<vmem>>, vector<2x32xf32>,
    %c38_25 = arith.constant 38 : index
    %c64_26 = arith.constant 64 : index
    %61 = vector.load %arg10[%c38_25, %c64_26] : memref<42x128xf32, #tpu.memory_space<vmem>>, vector<2x32xf32>
    tpu.vector_store %arg10[%c38_25, %c64_26], %57 {strides = array<i32>} : memref<42x128xf32, #tpu.memory_space<vmem>>, vector<2x32xf32>,
    %c2_27 = arith.constant 2 : index
    %c96_28 = arith.constant 96 : index
    %62 = vector.load %arg10[%c2_27, %c96_28] : memref<42x128xf32, #tpu.memory_space<vmem>>, vector<2x32xf32>
    tpu.vector_store %arg10[%c2_27, %c96_28], %58 {strides = array<i32>} : memref<42x128xf32, #tpu.memory_space<vmem>>, vector<2x32xf32>,
    %c4 = arith.constant 4 : index
    %c0_29 = arith.constant 0 : index
    %63 = vector.load %arg8[%c4, %c0_29] : memref<42x256xf32, #tpu.memory_space<vmem>>, vector<2x256xf32>
    %64 = arith.truncf %56 : vector<2x64xf32> to vector<2x64xbf16>
    %cst_30 = arith.constant dense<0.000000e+00> : vector<2x256xf32>
    %65 = tpu.matmul %64, %0, %cst_30 {dimension_numbers = #tpu.dot_dimension_numbers<[1], [0], [0], [1], [0, 0, 1, 1], [], []>} : vector<2x64xbf16>, vector<64x256xbf16>, vector<2x256xf32> -> vector<2x256xf32>
    %66 = arith.addf %63, %65 : vector<2x256xf32>
    %67 = vector.extract_strided_slice %66 {offsets = [0, 0], sizes = [2, 192], strides = [1, 1]} : vector<2x256xf32> to vector<2x192xf32>
    %68 = arith.negf %67 : vector<2x192xf32>
    %69 = math.exp %68 : vector<2x192xf32>
    %cst_31 = arith.constant 1.000000e+00 : f32
    %70 = vector.broadcast %cst_31 : f32 to vector<2x192xf32>
    %71 = arith.addf %70, %69 : vector<2x192xf32>
    %72 = arith.divf %70, %71 : vector<2x192xf32>
    %73 = vector.extract_strided_slice %66 {offsets = [0, 192], sizes = [2, 64], strides = [1, 1]} : vector<2x256xf32> to vector<2x64xf32>
    %74 = math.tanh %73 : vector<2x64xf32>
    %75 = vector.extract_strided_slice %72 {offsets = [0, 64], sizes = [2, 64], strides = [1, 1]} : vector<2x192xf32> to vector<2x64xf32>
    %76 = arith.mulf %75, %53 : vector<2x64xf32>
    %77 = vector.extract_strided_slice %72 {offsets = [0, 0], sizes = [2, 64], strides = [1, 1]} : vector<2x192xf32> to vector<2x64xf32>
    %78 = arith.mulf %77, %74 : vector<2x64xf32>
    %79 = arith.addf %76, %78 : vector<2x64xf32>
    %80 = vector.extract_strided_slice %72 {offsets = [0, 128], sizes = [2, 64], strides = [1, 1]} : vector<2x192xf32> to vector<2x64xf32>
    %81 = math.tanh %79 : vector<2x64xf32>
    %82 = arith.mulf %80, %81 : vector<2x64xf32>
    %83 = vector.extract_strided_slice %82 {offsets = [0, 0], sizes = [2, 32], strides = [1, 1]} : vector<2x64xf32> to vector<2x32xf32>
    %84 = vector.extract_strided_slice %82 {offsets = [0, 32], sizes = [2, 32], strides = [1, 1]} : vector<2x64xf32> to vector<2x32xf32>
    %c4_32 = arith.constant 4 : index
    %c0_33 = arith.constant 0 : index
    %85 = vector.load %arg10[%c4_32, %c0_33] : memref<42x128xf32, #tpu.memory_space<vmem>>, vector<2x32xf32>
    tpu.vector_store %arg10[%c4_32, %c0_33], %83 {strides = array<i32>} : memref<42x128xf32, #tpu.memory_space<vmem>>, vector<2x32xf32>,
    %c36 = arith.constant 36 : index
    %c32_34 = arith.constant 32 : index
    %86 = vector.load %arg10[%c36, %c32_34] : memref<42x128xf32, #tpu.memory_space<vmem>>, vector<2x32xf32>
    tpu.vector_store %arg10[%c36, %c32_34], %84 {strides = array<i32>} : memref<42x128xf32, #tpu.memory_space<vmem>>, vector<2x32xf32>,
    %c36_35 = arith.constant 36 : index
    %c64_36 = arith.constant 64 : index
    %87 = vector.load %arg10[%c36_35, %c64_36] : memref<42x128xf32, #tpu.memory_space<vmem>>, vector<2x32xf32>
    tpu.vector_store %arg10[%c36_35, %c64_36], %83 {strides = array<i32>} : memref<42x128xf32, #tpu.memory_space<vmem>>, vector<2x32xf32>,
    %c4_37 = arith.constant 4 : index
    %c96_38 = arith.constant 96 : index
    %88 = vector.load %arg10[%c4_37, %c96_38] : memref<42x128xf32, #tpu.memory_space<vmem>>, vector<2x32xf32>
    tpu.vector_store %arg10[%c4_37, %c96_38], %84 {strides = array<i32>} : memref<42x128xf32, #tpu.memory_space<vmem>>, vector<2x32xf32>,
    %c6 = arith.constant 6 : index
    %c0_39 = arith.constant 0 : index
    %89 = vector.load %arg8[%c6, %c0_39] : memref<42x256xf32, #tpu.memory_space<vmem>>, vector<2x256xf32>
    %90 = arith.truncf %82 : vector<2x64xf32> to vector<2x64xbf16>
    %cst_40 = arith.constant dense<0.000000e+00> : vector<2x256xf32>
    %91 = tpu.matmul %90, %0, %cst_40 {dimension_numbers = #tpu.dot_dimension_numbers<[1], [0], [0], [1], [0, 0, 1, 1], [], []>} : vector<2x64xbf16>, vector<64x256xbf16>, vector<2x256xf32> -> vector<2x256xf32>
    %92 = arith.addf %89, %91 : vector<2x256xf32>
    %93 = vector.extract_strided_slice %92 {offsets = [0, 0], sizes = [2, 192], strides = [1, 1]} : vector<2x256xf32> to vector<2x192xf32>
    %94 = arith.negf %93 : vector<2x192xf32>
    %95 = math.exp %94 : vector<2x192xf32>
    %cst_41 = arith.constant 1.000000e+00 : f32
    %96 = vector.broadcast %cst_41 : f32 to vector<2x192xf32>
    %97 = arith.addf %96, %95 : vector<2x192xf32>
    %98 = arith.divf %96, %97 : vector<2x192xf32>
    %99 = vector.extract_strided_slice %92 {offsets = [0, 192], sizes = [2, 64], strides = [1, 1]} : vector<2x256xf32> to vector<2x64xf32>
    %100 = math.tanh %99 : vector<2x64xf32>
    %101 = vector.extract_strided_slice %98 {offsets = [0, 64], sizes = [2, 64], strides = [1, 1]} : vector<2x192xf32> to vector<2x64xf32>
    %102 = arith.mulf %101, %79 : vector<2x64xf32>
    %103 = vector.extract_strided_slice %98 {offsets = [0, 0], sizes = [2, 64], strides = [1, 1]} : vector<2x192xf32> to vector<2x64xf32>
    %104 = arith.mulf %103, %100 : vector<2x64xf32>
    %105 = arith.addf %102, %104 : vector<2x64xf32>
    %106 = vector.extract_strided_slice %98 {offsets = [0, 128], sizes = [2, 64], strides = [1, 1]} : vector<2x192xf32> to vector<2x64xf32>
    %107 = math.tanh %105 : vector<2x64xf32>
    %108 = arith.mulf %106, %107 : vector<2x64xf32>
    %109 = vector.extract_strided_slice %108 {offsets = [0, 0], sizes = [2, 32], strides = [1, 1]} : vector<2x64xf32> to vector<2x32xf32>
    %110 = vector.extract_strided_slice %108 {offsets = [0, 32], sizes = [2, 32], strides = [1, 1]} : vector<2x64xf32> to vector<2x32xf32>
    %c6_42 = arith.constant 6 : index
    %c0_43 = arith.constant 0 : index
    %111 = vector.load %arg10[%c6_42, %c0_43] : memref<42x128xf32, #tpu.memory_space<vmem>>, vector<2x32xf32>
    tpu.vector_store %arg10[%c6_42, %c0_43], %109 {strides = array<i32>} : memref<42x128xf32, #tpu.memory_space<vmem>>, vector<2x32xf32>,
    %c34 = arith.constant 34 : index
    %c32_44 = arith.constant 32 : index
    %112 = vector.load %arg10[%c34, %c32_44] : memref<42x128xf32, #tpu.memory_space<vmem>>, vector<2x32xf32>
    tpu.vector_store %arg10[%c34, %c32_44], %110 {strides = array<i32>} : memref<42x128xf32, #tpu.memory_space<vmem>>, vector<2x32xf32>,
    %c34_45 = arith.constant 34 : index
    %c64_46 = arith.constant 64 : index
    %113 = vector.load %arg10[%c34_45, %c64_46] : memref<42x128xf32, #tpu.memory_space<vmem>>, vector<2x32xf32>
    tpu.vector_store %arg10[%c34_45, %c64_46], %109 {strides = array<i32>} : memref<42x128xf32, #tpu.memory_space<vmem>>, vector<2x32xf32>,
    %c6_47 = arith.constant 6 : index
    %c96_48 = arith.constant 96 : index
    %114 = vector.load %arg10[%c6_47, %c96_48] : memref<42x128xf32, #tpu.memory_space<vmem>>, vector<2x32xf32>
    tpu.vector_store %arg10[%c6_47, %c96_48], %110 {strides = array<i32>} : memref<42x128xf32, #tpu.memory_space<vmem>>, vector<2x32xf32>,
    %c8 = arith.constant 8 : index
    %c0_49 = arith.constant 0 : index
    %115 = vector.load %arg8[%c8, %c0_49] : memref<42x256xf32, #tpu.memory_space<vmem>>, vector<2x256xf32>
    %116 = arith.truncf %108 : vector<2x64xf32> to vector<2x64xbf16>
    %cst_50 = arith.constant dense<0.000000e+00> : vector<2x256xf32>
    %117 = tpu.matmul %116, %0, %cst_50 {dimension_numbers = #tpu.dot_dimension_numbers<[1], [0], [0], [1], [0, 0, 1, 1], [], []>} : vector<2x64xbf16>, vector<64x256xbf16>, vector<2x256xf32> -> vector<2x256xf32>
    %118 = arith.addf %115, %117 : vector<2x256xf32>
    %119 = vector.extract_strided_slice %118 {offsets = [0, 0], sizes = [2, 192], strides = [1, 1]} : vector<2x256xf32> to vector<2x192xf32>
    %120 = arith.negf %119 : vector<2x192xf32>
    %121 = math.exp %120 : vector<2x192xf32>
    %cst_51 = arith.constant 1.000000e+00 : f32
    %122 = vector.broadcast %cst_51 : f32 to vector<2x192xf32>
    %123 = arith.addf %122, %121 : vector<2x192xf32>
    %124 = arith.divf %122, %123 : vector<2x192xf32>
    %125 = vector.extract_strided_slice %118 {offsets = [0, 192], sizes = [2, 64], strides = [1, 1]} : vector<2x256xf32> to vector<2x64xf32>
    %126 = math.tanh %125 : vector<2x64xf32>
    %127 = vector.extract_strided_slice %124 {offsets = [0, 64], sizes = [2, 64], strides = [1, 1]} : vector<2x192xf32> to vector<2x64xf32>
    %128 = arith.mulf %127, %105 : vector<2x64xf32>
    %129 = vector.extract_strided_slice %124 {offsets = [0, 0], sizes = [2, 64], strides = [1, 1]} : vector<2x192xf32> to vector<2x64xf32>
    %130 = arith.mulf %129, %126 : vector<2x64xf32>
    %131 = arith.addf %128, %130 : vector<2x64xf32>
    %132 = vector.extract_strided_slice %124 {offsets = [0, 128], sizes = [2, 64], strides = [1, 1]} : vector<2x192xf32> to vector<2x64xf32>
    %133 = math.tanh %131 : vector<2x64xf32>
    %134 = arith.mulf %132, %133 : vector<2x64xf32>
    %135 = vector.extract_strided_slice %134 {offsets = [0, 0], sizes = [2, 32], strides = [1, 1]} : vector<2x64xf32> to vector<2x32xf32>
    %136 = vector.extract_strided_slice %134 {offsets = [0, 32], sizes = [2, 32], strides = [1, 1]} : vector<2x64xf32> to vector<2x32xf32>
    %c8_52 = arith.constant 8 : index
    %c0_53 = arith.constant 0 : index
    %137 = vector.load %arg10[%c8_52, %c0_53] : memref<42x128xf32, #tpu.memory_space<vmem>>, vector<2x32xf32>
    tpu.vector_store %arg10[%c8_52, %c0_53], %135 {strides = array<i32>} : memref<42x128xf32, #tpu.memory_space<vmem>>, vector<2x32xf32>,
    %c32_54 = arith.constant 32 : index
    %c32_55 = arith.constant 32 : index
    %138 = vector.load %arg10[%c32_54, %c32_55] : memref<42x128xf32, #tpu.memory_space<vmem>>, vector<2x32xf32>
    tpu.vector_store %arg10[%c32_54, %c32_55], %136 {strides = array<i32>} : memref<42x128xf32, #tpu.memory_space<vmem>>, vector<2x32xf32>,
    %c32_56 = arith.constant 32 : index
    %c64_57 = arith.constant 64 : index
    %139 = vector.load %arg10[%c32_56, %c64_57] : memref<42x128xf32, #tpu.memory_space<vmem>>, vector<2x32xf32>
    tpu.vector_store %arg10[%c32_56, %c64_57], %135 {strides = array<i32>} : memref<42x128xf32, #tpu.memory_space<vmem>>, vector<2x32xf32>,
    %c8_58 = arith.constant 8 : index
    %c96_59 = arith.constant 96 : index
    %140 = vector.load %arg10[%c8_58, %c96_59] : memref<42x128xf32, #tpu.memory_space<vmem>>, vector<2x32xf32>
    tpu.vector_store %arg10[%c8_58, %c96_59], %136 {strides = array<i32>} : memref<42x128xf32, #tpu.memory_space<vmem>>, vector<2x32xf32>,
    %c10 = arith.constant 10 : index
    %c0_60 = arith.constant 0 : index
    %141 = vector.load %arg8[%c10, %c0_60] : memref<42x256xf32, #tpu.memory_space<vmem>>, vector<2x256xf32>
    %142 = arith.truncf %134 : vector<2x64xf32> to vector<2x64xbf16>
    %cst_61 = arith.constant dense<0.000000e+00> : vector<2x256xf32>
    %143 = tpu.matmul %142, %0, %cst_61 {dimension_numbers = #tpu.dot_dimension_numbers<[1], [0], [0], [1], [0, 0, 1, 1], [], []>} : vector<2x64xbf16>, vector<64x256xbf16>, vector<2x256xf32> -> vector<2x256xf32>
    %144 = arith.addf %141, %143 : vector<2x256xf32>
    %145 = vector.extract_strided_slice %144 {offsets = [0, 0], sizes = [2, 192], strides = [1, 1]} : vector<2x256xf32> to vector<2x192xf32>
    %146 = arith.negf %145 : vector<2x192xf32>
    %147 = math.exp %146 : vector<2x192xf32>
    %cst_62 = arith.constant 1.000000e+00 : f32
    %148 = vector.broadcast %cst_62 : f32 to vector<2x192xf32>
    %149 = arith.addf %148, %147 : vector<2x192xf32>
    %150 = arith.divf %148, %149 : vector<2x192xf32>
    %151 = vector.extract_strided_slice %144 {offsets = [0, 192], sizes = [2, 64], strides = [1, 1]} : vector<2x256xf32> to vector<2x64xf32>
    %152 = math.tanh %151 : vector<2x64xf32>
    %153 = vector.extract_strided_slice %150 {offsets = [0, 64], sizes = [2, 64], strides = [1, 1]} : vector<2x192xf32> to vector<2x64xf32>
    %154 = arith.mulf %153, %131 : vector<2x64xf32>
    %155 = vector.extract_strided_slice %150 {offsets = [0, 0], sizes = [2, 64], strides = [1, 1]} : vector<2x192xf32> to vector<2x64xf32>
    %156 = arith.mulf %155, %152 : vector<2x64xf32>
    %157 = arith.addf %154, %156 : vector<2x64xf32>
    %158 = vector.extract_strided_slice %150 {offsets = [0, 128], sizes = [2, 64], strides = [1, 1]} : vector<2x192xf32> to vector<2x64xf32>
    %159 = math.tanh %157 : vector<2x64xf32>
    %160 = arith.mulf %158, %159 : vector<2x64xf32>
    %161 = vector.extract_strided_slice %160 {offsets = [0, 0], sizes = [2, 32], strides = [1, 1]} : vector<2x64xf32> to vector<2x32xf32>
    %162 = vector.extract_strided_slice %160 {offsets = [0, 32], sizes = [2, 32], strides = [1, 1]} : vector<2x64xf32> to vector<2x32xf32>
    %c10_63 = arith.constant 10 : index
    %c0_64 = arith.constant 0 : index
    %163 = vector.load %arg10[%c10_63, %c0_64] : memref<42x128xf32, #tpu.memory_space<vmem>>, vector<2x32xf32>
    tpu.vector_store %arg10[%c10_63, %c0_64], %161 {strides = array<i32>} : memref<42x128xf32, #tpu.memory_space<vmem>>, vector<2x32xf32>,
    %c30 = arith.constant 30 : index
    %c32_65 = arith.constant 32 : index
    %164 = vector.load %arg10[%c30, %c32_65] : memref<42x128xf32, #tpu.memory_space<vmem>>, vector<2x32xf32>
    tpu.vector_store %arg10[%c30, %c32_65], %162 {strides = array<i32>} : memref<42x128xf32, #tpu.memory_space<vmem>>, vector<2x32xf32>,
    %c30_66 = arith.constant 30 : index
    %c64_67 = arith.constant 64 : index
    %165 = vector.load %arg10[%c30_66, %c64_67] : memref<42x128xf32, #tpu.memory_space<vmem>>, vector<2x32xf32>
    tpu.vector_store %arg10[%c30_66, %c64_67], %161 {strides = array<i32>} : memref<42x128xf32, #tpu.memory_space<vmem>>, vector<2x32xf32>,
    %c10_68 = arith.constant 10 : index
    %c96_69 = arith.constant 96 : index
    %166 = vector.load %arg10[%c10_68, %c96_69] : memref<42x128xf32, #tpu.memory_space<vmem>>, vector<2x32xf32>
    tpu.vector_store %arg10[%c10_68, %c96_69], %162 {strides = array<i32>} : memref<42x128xf32, #tpu.memory_space<vmem>>, vector<2x32xf32>,
    %c12 = arith.constant 12 : index
    %c0_70 = arith.constant 0 : index
    %167 = vector.load %arg8[%c12, %c0_70] : memref<42x256xf32, #tpu.memory_space<vmem>>, vector<2x256xf32>
    %168 = arith.truncf %160 : vector<2x64xf32> to vector<2x64xbf16>
    %cst_71 = arith.constant dense<0.000000e+00> : vector<2x256xf32>
    %169 = tpu.matmul %168, %0, %cst_71 {dimension_numbers = #tpu.dot_dimension_numbers<[1], [0], [0], [1], [0, 0, 1, 1], [], []>} : vector<2x64xbf16>, vector<64x256xbf16>, vector<2x256xf32> -> vector<2x256xf32>
    %170 = arith.addf %167, %169 : vector<2x256xf32>
    %171 = vector.extract_strided_slice %170 {offsets = [0, 0], sizes = [2, 192], strides = [1, 1]} : vector<2x256xf32> to vector<2x192xf32>
    %172 = arith.negf %171 : vector<2x192xf32>
    %173 = math.exp %172 : vector<2x192xf32>
    %cst_72 = arith.constant 1.000000e+00 : f32
    %174 = vector.broadcast %cst_72 : f32 to vector<2x192xf32>
    %175 = arith.addf %174, %173 : vector<2x192xf32>
    %176 = arith.divf %174, %175 : vector<2x192xf32>
    %177 = vector.extract_strided_slice %170 {offsets = [0, 192], sizes = [2, 64], strides = [1, 1]} : vector<2x256xf32> to vector<2x64xf32>
    %178 = math.tanh %177 : vector<2x64xf32>
    %179 = vector.extract_strided_slice %176 {offsets = [0, 64], sizes = [2, 64], strides = [1, 1]} : vector<2x192xf32> to vector<2x64xf32>
    %180 = arith.mulf %179, %157 : vector<2x64xf32>
    %181 = vector.extract_strided_slice %176 {offsets = [0, 0], sizes = [2, 64], strides = [1, 1]} : vector<2x192xf32> to vector<2x64xf32>
    %182 = arith.mulf %181, %178 : vector<2x64xf32>
    %183 = arith.addf %180, %182 : vector<2x64xf32>
    %184 = vector.extract_strided_slice %176 {offsets = [0, 128], sizes = [2, 64], strides = [1, 1]} : vector<2x192xf32> to vector<2x64xf32>
    %185 = math.tanh %183 : vector<2x64xf32>
    %186 = arith.mulf %184, %185 : vector<2x64xf32>
    %187 = vector.extract_strided_slice %186 {offsets = [0, 0], sizes = [2, 32], strides = [1, 1]} : vector<2x64xf32> to vector<2x32xf32>
    %188 = vector.extract_strided_slice %186 {offsets = [0, 32], sizes = [2, 32], strides = [1, 1]} : vector<2x64xf32> to vector<2x32xf32>
    %c12_73 = arith.constant 12 : index
    %c0_74 = arith.constant 0 : index
    %189 = vector.load %arg10[%c12_73, %c0_74] : memref<42x128xf32, #tpu.memory_space<vmem>>, vector<2x32xf32>
    tpu.vector_store %arg10[%c12_73, %c0_74], %187 {strides = array<i32>} : memref<42x128xf32, #tpu.memory_space<vmem>>, vector<2x32xf32>,
    %c28 = arith.constant 28 : index
    %c32_75 = arith.constant 32 : index
    %190 = vector.load %arg10[%c28, %c32_75] : memref<42x128xf32, #tpu.memory_space<vmem>>, vector<2x32xf32>
    tpu.vector_store %arg10[%c28, %c32_75], %188 {strides = array<i32>} : memref<42x128xf32, #tpu.memory_space<vmem>>, vector<2x32xf32>,
    %c28_76 = arith.constant 28 : index
    %c64_77 = arith.constant 64 : index
    %191 = vector.load %arg10[%c28_76, %c64_77] : memref<42x128xf32, #tpu.memory_space<vmem>>, vector<2x32xf32>
    tpu.vector_store %arg10[%c28_76, %c64_77], %187 {strides = array<i32>} : memref<42x128xf32, #tpu.memory_space<vmem>>, vector<2x32xf32>,
    %c12_78 = arith.constant 12 : index
    %c96_79 = arith.constant 96 : index
    %192 = vector.load %arg10[%c12_78, %c96_79] : memref<42x128xf32, #tpu.memory_space<vmem>>, vector<2x32xf32>
    tpu.vector_store %arg10[%c12_78, %c96_79], %188 {strides = array<i32>} : memref<42x128xf32, #tpu.memory_space<vmem>>, vector<2x32xf32>,
    %c14 = arith.constant 14 : index
    %c0_80 = arith.constant 0 : index
    %193 = vector.load %arg8[%c14, %c0_80] : memref<42x256xf32, #tpu.memory_space<vmem>>, vector<2x256xf32>
    %194 = arith.truncf %186 : vector<2x64xf32> to vector<2x64xbf16>
    %cst_81 = arith.constant dense<0.000000e+00> : vector<2x256xf32>
    %195 = tpu.matmul %194, %0, %cst_81 {dimension_numbers = #tpu.dot_dimension_numbers<[1], [0], [0], [1], [0, 0, 1, 1], [], []>} : vector<2x64xbf16>, vector<64x256xbf16>, vector<2x256xf32> -> vector<2x256xf32>
    %196 = arith.addf %193, %195 : vector<2x256xf32>
    %197 = vector.extract_strided_slice %196 {offsets = [0, 0], sizes = [2, 192], strides = [1, 1]} : vector<2x256xf32> to vector<2x192xf32>
    %198 = arith.negf %197 : vector<2x192xf32>
    %199 = math.exp %198 : vector<2x192xf32>
    %cst_82 = arith.constant 1.000000e+00 : f32
    %200 = vector.broadcast %cst_82 : f32 to vector<2x192xf32>
    %201 = arith.addf %200, %199 : vector<2x192xf32>
    %202 = arith.divf %200, %201 : vector<2x192xf32>
    %203 = vector.extract_strided_slice %196 {offsets = [0, 192], sizes = [2, 64], strides = [1, 1]} : vector<2x256xf32> to vector<2x64xf32>
    %204 = math.tanh %203 : vector<2x64xf32>
    %205 = vector.extract_strided_slice %202 {offsets = [0, 64], sizes = [2, 64], strides = [1, 1]} : vector<2x192xf32> to vector<2x64xf32>
    %206 = arith.mulf %205, %183 : vector<2x64xf32>
    %207 = vector.extract_strided_slice %202 {offsets = [0, 0], sizes = [2, 64], strides = [1, 1]} : vector<2x192xf32> to vector<2x64xf32>
    %208 = arith.mulf %207, %204 : vector<2x64xf32>
    %209 = arith.addf %206, %208 : vector<2x64xf32>
    %210 = vector.extract_strided_slice %202 {offsets = [0, 128], sizes = [2, 64], strides = [1, 1]} : vector<2x192xf32> to vector<2x64xf32>
    %211 = math.tanh %209 : vector<2x64xf32>
    %212 = arith.mulf %210, %211 : vector<2x64xf32>
    %213 = vector.extract_strided_slice %212 {offsets = [0, 0], sizes = [2, 32], strides = [1, 1]} : vector<2x64xf32> to vector<2x32xf32>
    %214 = vector.extract_strided_slice %212 {offsets = [0, 32], sizes = [2, 32], strides = [1, 1]} : vector<2x64xf32> to vector<2x32xf32>
    %c14_83 = arith.constant 14 : index
    %c0_84 = arith.constant 0 : index
    %215 = vector.load %arg10[%c14_83, %c0_84] : memref<42x128xf32, #tpu.memory_space<vmem>>, vector<2x32xf32>
    tpu.vector_store %arg10[%c14_83, %c0_84], %213 {strides = array<i32>} : memref<42x128xf32, #tpu.memory_space<vmem>>, vector<2x32xf32>,
    %c26 = arith.constant 26 : index
    %c32_85 = arith.constant 32 : index
    %216 = vector.load %arg10[%c26, %c32_85] : memref<42x128xf32, #tpu.memory_space<vmem>>, vector<2x32xf32>
    tpu.vector_store %arg10[%c26, %c32_85], %214 {strides = array<i32>} : memref<42x128xf32, #tpu.memory_space<vmem>>, vector<2x32xf32>,
    %c26_86 = arith.constant 26 : index
    %c64_87 = arith.constant 64 : index
    %217 = vector.load %arg10[%c26_86, %c64_87] : memref<42x128xf32, #tpu.memory_space<vmem>>, vector<2x32xf32>
    tpu.vector_store %arg10[%c26_86, %c64_87], %213 {strides = array<i32>} : memref<42x128xf32, #tpu.memory_space<vmem>>, vector<2x32xf32>,
    %c14_88 = arith.constant 14 : index
    %c96_89 = arith.constant 96 : index
    %218 = vector.load %arg10[%c14_88, %c96_89] : memref<42x128xf32, #tpu.memory_space<vmem>>, vector<2x32xf32>
    tpu.vector_store %arg10[%c14_88, %c96_89], %214 {strides = array<i32>} : memref<42x128xf32, #tpu.memory_space<vmem>>, vector<2x32xf32>,
    %c16 = arith.constant 16 : index
    %c0_90 = arith.constant 0 : index
    %219 = vector.load %arg8[%c16, %c0_90] : memref<42x256xf32, #tpu.memory_space<vmem>>, vector<2x256xf32>
    %220 = arith.truncf %212 : vector<2x64xf32> to vector<2x64xbf16>
    %cst_91 = arith.constant dense<0.000000e+00> : vector<2x256xf32>
    %221 = tpu.matmul %220, %0, %cst_91 {dimension_numbers = #tpu.dot_dimension_numbers<[1], [0], [0], [1], [0, 0, 1, 1], [], []>} : vector<2x64xbf16>, vector<64x256xbf16>, vector<2x256xf32> -> vector<2x256xf32>
    %222 = arith.addf %219, %221 : vector<2x256xf32>
    %223 = vector.extract_strided_slice %222 {offsets = [0, 0], sizes = [2, 192], strides = [1, 1]} : vector<2x256xf32> to vector<2x192xf32>
    %224 = arith.negf %223 : vector<2x192xf32>
    %225 = math.exp %224 : vector<2x192xf32>
    %cst_92 = arith.constant 1.000000e+00 : f32
    %226 = vector.broadcast %cst_92 : f32 to vector<2x192xf32>
    %227 = arith.addf %226, %225 : vector<2x192xf32>
    %228 = arith.divf %226, %227 : vector<2x192xf32>
    %229 = vector.extract_strided_slice %222 {offsets = [0, 192], sizes = [2, 64], strides = [1, 1]} : vector<2x256xf32> to vector<2x64xf32>
    %230 = math.tanh %229 : vector<2x64xf32>
    %231 = vector.extract_strided_slice %228 {offsets = [0, 64], sizes = [2, 64], strides = [1, 1]} : vector<2x192xf32> to vector<2x64xf32>
    %232 = arith.mulf %231, %209 : vector<2x64xf32>
    %233 = vector.extract_strided_slice %228 {offsets = [0, 0], sizes = [2, 64], strides = [1, 1]} : vector<2x192xf32> to vector<2x64xf32>
    %234 = arith.mulf %233, %230 : vector<2x64xf32>
    %235 = arith.addf %232, %234 : vector<2x64xf32>
    %236 = vector.extract_strided_slice %228 {offsets = [0, 128], sizes = [2, 64], strides = [1, 1]} : vector<2x192xf32> to vector<2x64xf32>
    %237 = math.tanh %235 : vector<2x64xf32>
    %238 = arith.mulf %236, %237 : vector<2x64xf32>
    %239 = vector.extract_strided_slice %238 {offsets = [0, 0], sizes = [2, 32], strides = [1, 1]} : vector<2x64xf32> to vector<2x32xf32>
    %240 = vector.extract_strided_slice %238 {offsets = [0, 32], sizes = [2, 32], strides = [1, 1]} : vector<2x64xf32> to vector<2x32xf32>
    %c16_93 = arith.constant 16 : index
    %c0_94 = arith.constant 0 : index
    %241 = vector.load %arg10[%c16_93, %c0_94] : memref<42x128xf32, #tpu.memory_space<vmem>>, vector<2x32xf32>
    tpu.vector_store %arg10[%c16_93, %c0_94], %239 {strides = array<i32>} : memref<42x128xf32, #tpu.memory_space<vmem>>, vector<2x32xf32>,
    %c24 = arith.constant 24 : index
    %c32_95 = arith.constant 32 : index
    %242 = vector.load %arg10[%c24, %c32_95] : memref<42x128xf32, #tpu.memory_space<vmem>>, vector<2x32xf32>
    tpu.vector_store %arg10[%c24, %c32_95], %240 {strides = array<i32>} : memref<42x128xf32, #tpu.memory_space<vmem>>, vector<2x32xf32>,
    %c24_96 = arith.constant 24 : index
    %c64_97 = arith.constant 64 : index
    %243 = vector.load %arg10[%c24_96, %c64_97] : memref<42x128xf32, #tpu.memory_space<vmem>>, vector<2x32xf32>
    tpu.vector_store %arg10[%c24_96, %c64_97], %239 {strides = array<i32>} : memref<42x128xf32, #tpu.memory_space<vmem>>, vector<2x32xf32>,
    %c16_98 = arith.constant 16 : index
    %c96_99 = arith.constant 96 : index
    %244 = vector.load %arg10[%c16_98, %c96_99] : memref<42x128xf32, #tpu.memory_space<vmem>>, vector<2x32xf32>
    tpu.vector_store %arg10[%c16_98, %c96_99], %240 {strides = array<i32>} : memref<42x128xf32, #tpu.memory_space<vmem>>, vector<2x32xf32>,
    %c18 = arith.constant 18 : index
    %c0_100 = arith.constant 0 : index
    %245 = vector.load %arg8[%c18, %c0_100] : memref<42x256xf32, #tpu.memory_space<vmem>>, vector<2x256xf32>
    %246 = arith.truncf %238 : vector<2x64xf32> to vector<2x64xbf16>
    %cst_101 = arith.constant dense<0.000000e+00> : vector<2x256xf32>
    %247 = tpu.matmul %246, %0, %cst_101 {dimension_numbers = #tpu.dot_dimension_numbers<[1], [0], [0], [1], [0, 0, 1, 1], [], []>} : vector<2x64xbf16>, vector<64x256xbf16>, vector<2x256xf32> -> vector<2x256xf32>
    %248 = arith.addf %245, %247 : vector<2x256xf32>
    %249 = vector.extract_strided_slice %248 {offsets = [0, 0], sizes = [2, 192], strides = [1, 1]} : vector<2x256xf32> to vector<2x192xf32>
    %250 = arith.negf %249 : vector<2x192xf32>
    %251 = math.exp %250 : vector<2x192xf32>
    %cst_102 = arith.constant 1.000000e+00 : f32
    %252 = vector.broadcast %cst_102 : f32 to vector<2x192xf32>
    %253 = arith.addf %252, %251 : vector<2x192xf32>
    %254 = arith.divf %252, %253 : vector<2x192xf32>
    %255 = vector.extract_strided_slice %248 {offsets = [0, 192], sizes = [2, 64], strides = [1, 1]} : vector<2x256xf32> to vector<2x64xf32>
    %256 = math.tanh %255 : vector<2x64xf32>
    %257 = vector.extract_strided_slice %254 {offsets = [0, 64], sizes = [2, 64], strides = [1, 1]} : vector<2x192xf32> to vector<2x64xf32>
    %258 = arith.mulf %257, %235 : vector<2x64xf32>
    %259 = vector.extract_strided_slice %254 {offsets = [0, 0], sizes = [2, 64], strides = [1, 1]} : vector<2x192xf32> to vector<2x64xf32>
    %260 = arith.mulf %259, %256 : vector<2x64xf32>
    %261 = arith.addf %258, %260 : vector<2x64xf32>
    %262 = vector.extract_strided_slice %254 {offsets = [0, 128], sizes = [2, 64], strides = [1, 1]} : vector<2x192xf32> to vector<2x64xf32>
    %263 = math.tanh %261 : vector<2x64xf32>
    %264 = arith.mulf %262, %263 : vector<2x64xf32>
    %265 = vector.extract_strided_slice %264 {offsets = [0, 0], sizes = [2, 32], strides = [1, 1]} : vector<2x64xf32> to vector<2x32xf32>
    %266 = vector.extract_strided_slice %264 {offsets = [0, 32], sizes = [2, 32], strides = [1, 1]} : vector<2x64xf32> to vector<2x32xf32>
    %c18_103 = arith.constant 18 : index
    %c0_104 = arith.constant 0 : index
    %267 = vector.load %arg10[%c18_103, %c0_104] : memref<42x128xf32, #tpu.memory_space<vmem>>, vector<2x32xf32>
    tpu.vector_store %arg10[%c18_103, %c0_104], %265 {strides = array<i32>} : memref<42x128xf32, #tpu.memory_space<vmem>>, vector<2x32xf32>,
    %c22 = arith.constant 22 : index
    %c32_105 = arith.constant 32 : index
    %268 = vector.load %arg10[%c22, %c32_105] : memref<42x128xf32, #tpu.memory_space<vmem>>, vector<2x32xf32>
    tpu.vector_store %arg10[%c22, %c32_105], %266 {strides = array<i32>} : memref<42x128xf32, #tpu.memory_space<vmem>>, vector<2x32xf32>,
    %c22_106 = arith.constant 22 : index
    %c64_107 = arith.constant 64 : index
    %269 = vector.load %arg10[%c22_106, %c64_107] : memref<42x128xf32, #tpu.memory_space<vmem>>, vector<2x32xf32>
    tpu.vector_store %arg10[%c22_106, %c64_107], %265 {strides = array<i32>} : memref<42x128xf32, #tpu.memory_space<vmem>>, vector<2x32xf32>,
    %c18_108 = arith.constant 18 : index
    %c96_109 = arith.constant 96 : index
    %270 = vector.load %arg10[%c18_108, %c96_109] : memref<42x128xf32, #tpu.memory_space<vmem>>, vector<2x32xf32>
    tpu.vector_store %arg10[%c18_108, %c96_109], %266 {strides = array<i32>} : memref<42x128xf32, #tpu.memory_space<vmem>>, vector<2x32xf32>,
    %c20 = arith.constant 20 : index
    %c0_110 = arith.constant 0 : index
    %271 = vector.load %arg8[%c20, %c0_110] : memref<42x256xf32, #tpu.memory_space<vmem>>, vector<2x256xf32>
    %272 = arith.truncf %264 : vector<2x64xf32> to vector<2x64xbf16>
    %cst_111 = arith.constant dense<0.000000e+00> : vector<2x256xf32>
    %273 = tpu.matmul %272, %0, %cst_111 {dimension_numbers = #tpu.dot_dimension_numbers<[1], [0], [0], [1], [0, 0, 1, 1], [], []>} : vector<2x64xbf16>, vector<64x256xbf16>, vector<2x256xf32> -> vector<2x256xf32>
    %274 = arith.addf %271, %273 : vector<2x256xf32>
    %275 = vector.extract_strided_slice %274 {offsets = [0, 0], sizes = [2, 192], strides = [1, 1]} : vector<2x256xf32> to vector<2x192xf32>
    %276 = arith.negf %275 : vector<2x192xf32>
    %277 = math.exp %276 : vector<2x192xf32>
    %cst_112 = arith.constant 1.000000e+00 : f32
    %278 = vector.broadcast %cst_112 : f32 to vector<2x192xf32>
    %279 = arith.addf %278, %277 : vector<2x192xf32>
    %280 = arith.divf %278, %279 : vector<2x192xf32>
    %281 = vector.extract_strided_slice %274 {offsets = [0, 192], sizes = [2, 64], strides = [1, 1]} : vector<2x256xf32> to vector<2x64xf32>
    %282 = math.tanh %281 : vector<2x64xf32>
    %283 = vector.extract_strided_slice %280 {offsets = [0, 64], sizes = [2, 64], strides = [1, 1]} : vector<2x192xf32> to vector<2x64xf32>
    %284 = arith.mulf %283, %261 : vector<2x64xf32>
    %285 = vector.extract_strided_slice %280 {offsets = [0, 0], sizes = [2, 64], strides = [1, 1]} : vector<2x192xf32> to vector<2x64xf32>
    %286 = arith.mulf %285, %282 : vector<2x64xf32>
    %287 = arith.addf %284, %286 : vector<2x64xf32>
    %288 = vector.extract_strided_slice %280 {offsets = [0, 128], sizes = [2, 64], strides = [1, 1]} : vector<2x192xf32> to vector<2x64xf32>
    %289 = math.tanh %287 : vector<2x64xf32>
    %290 = arith.mulf %288, %289 : vector<2x64xf32>
    %291 = vector.extract_strided_slice %290 {offsets = [0, 0], sizes = [2, 32], strides = [1, 1]} : vector<2x64xf32> to vector<2x32xf32>
    %292 = vector.extract_strided_slice %290 {offsets = [0, 32], sizes = [2, 32], strides = [1, 1]} : vector<2x64xf32> to vector<2x32xf32>
    %c20_113 = arith.constant 20 : index
    %c0_114 = arith.constant 0 : index
    %293 = vector.load %arg10[%c20_113, %c0_114] : memref<42x128xf32, #tpu.memory_space<vmem>>, vector<2x32xf32>
    tpu.vector_store %arg10[%c20_113, %c0_114], %291 {strides = array<i32>} : memref<42x128xf32, #tpu.memory_space<vmem>>, vector<2x32xf32>,
    %c20_115 = arith.constant 20 : index
    %c32_116 = arith.constant 32 : index
    %294 = vector.load %arg10[%c20_115, %c32_116] : memref<42x128xf32, #tpu.memory_space<vmem>>, vector<2x32xf32>
    tpu.vector_store %arg10[%c20_115, %c32_116], %292 {strides = array<i32>} : memref<42x128xf32, #tpu.memory_space<vmem>>, vector<2x32xf32>,
    %c20_117 = arith.constant 20 : index
    %c64_118 = arith.constant 64 : index
    %295 = vector.load %arg10[%c20_117, %c64_118] : memref<42x128xf32, #tpu.memory_space<vmem>>, vector<2x32xf32>
    tpu.vector_store %arg10[%c20_117, %c64_118], %291 {strides = array<i32>} : memref<42x128xf32, #tpu.memory_space<vmem>>, vector<2x32xf32>,
    %c20_119 = arith.constant 20 : index
    %c96_120 = arith.constant 96 : index
    %296 = vector.load %arg10[%c20_119, %c96_120] : memref<42x128xf32, #tpu.memory_space<vmem>>, vector<2x32xf32>
    tpu.vector_store %arg10[%c20_119, %c96_120], %292 {strides = array<i32>} : memref<42x128xf32, #tpu.memory_space<vmem>>, vector<2x32xf32>,
    %c22_121 = arith.constant 22 : index
    %c0_122 = arith.constant 0 : index
    %297 = vector.load %arg8[%c22_121, %c0_122] : memref<42x256xf32, #tpu.memory_space<vmem>>, vector<2x256xf32>
    %298 = arith.truncf %290 : vector<2x64xf32> to vector<2x64xbf16>
    %cst_123 = arith.constant dense<0.000000e+00> : vector<2x256xf32>
    %299 = tpu.matmul %298, %0, %cst_123 {dimension_numbers = #tpu.dot_dimension_numbers<[1], [0], [0], [1], [0, 0, 1, 1], [], []>} : vector<2x64xbf16>, vector<64x256xbf16>, vector<2x256xf32> -> vector<2x256xf32>
    %300 = arith.addf %297, %299 : vector<2x256xf32>
    %301 = vector.extract_strided_slice %300 {offsets = [0, 0], sizes = [2, 192], strides = [1, 1]} : vector<2x256xf32> to vector<2x192xf32>
    %302 = arith.negf %301 : vector<2x192xf32>
    %303 = math.exp %302 : vector<2x192xf32>
    %cst_124 = arith.constant 1.000000e+00 : f32
    %304 = vector.broadcast %cst_124 : f32 to vector<2x192xf32>
    %305 = arith.addf %304, %303 : vector<2x192xf32>
    %306 = arith.divf %304, %305 : vector<2x192xf32>
    %307 = vector.extract_strided_slice %300 {offsets = [0, 192], sizes = [2, 64], strides = [1, 1]} : vector<2x256xf32> to vector<2x64xf32>
    %308 = math.tanh %307 : vector<2x64xf32>
    %309 = vector.extract_strided_slice %306 {offsets = [0, 64], sizes = [2, 64], strides = [1, 1]} : vector<2x192xf32> to vector<2x64xf32>
    %310 = arith.mulf %309, %287 : vector<2x64xf32>
    %311 = vector.extract_strided_slice %306 {offsets = [0, 0], sizes = [2, 64], strides = [1, 1]} : vector<2x192xf32> to vector<2x64xf32>
    %312 = arith.mulf %311, %308 : vector<2x64xf32>
    %313 = arith.addf %310, %312 : vector<2x64xf32>
    %314 = vector.extract_strided_slice %306 {offsets = [0, 128], sizes = [2, 64], strides = [1, 1]} : vector<2x192xf32> to vector<2x64xf32>
    %315 = math.tanh %313 : vector<2x64xf32>
    %316 = arith.mulf %314, %315 : vector<2x64xf32>
    %317 = vector.extract_strided_slice %316 {offsets = [0, 0], sizes = [2, 32], strides = [1, 1]} : vector<2x64xf32> to vector<2x32xf32>
    %318 = vector.extract_strided_slice %316 {offsets = [0, 32], sizes = [2, 32], strides = [1, 1]} : vector<2x64xf32> to vector<2x32xf32>
    %c22_125 = arith.constant 22 : index
    %c0_126 = arith.constant 0 : index
    %319 = vector.load %arg10[%c22_125, %c0_126] : memref<42x128xf32, #tpu.memory_space<vmem>>, vector<2x32xf32>
    tpu.vector_store %arg10[%c22_125, %c0_126], %317 {strides = array<i32>} : memref<42x128xf32, #tpu.memory_space<vmem>>, vector<2x32xf32>,
    %c18_127 = arith.constant 18 : index
    %c32_128 = arith.constant 32 : index
    %320 = vector.load %arg10[%c18_127, %c32_128] : memref<42x128xf32, #tpu.memory_space<vmem>>, vector<2x32xf32>
    tpu.vector_store %arg10[%c18_127, %c32_128], %318 {strides = array<i32>} : memref<42x128xf32, #tpu.memory_space<vmem>>, vector<2x32xf32>,
    %c18_129 = arith.constant 18 : index
    %c64_130 = arith.constant 64 : index
    %321 = vector.load %arg10[%c18_129, %c64_130] : memref<42x128xf32, #tpu.memory_space<vmem>>, vector<2x32xf32>
    tpu.vector_store %arg10[%c18_129, %c64_130], %317 {strides = array<i32>} : memref<42x128xf32, #tpu.memory_space<vmem>>, vector<2x32xf32>,
    %c22_131 = arith.constant 22 : index
    %c96_132 = arith.constant 96 : index
    %322 = vector.load %arg10[%c22_131, %c96_132] : memref<42x128xf32, #tpu.memory_space<vmem>>, vector<2x32xf32>
    tpu.vector_store %arg10[%c22_131, %c96_132], %318 {strides = array<i32>} : memref<42x128xf32, #tpu.memory_space<vmem>>, vector<2x32xf32>,
    %c24_133 = arith.constant 24 : index
    %c0_134 = arith.constant 0 : index
    %323 = vector.load %arg8[%c24_133, %c0_134] : memref<42x256xf32, #tpu.memory_space<vmem>>, vector<2x256xf32>
    %324 = arith.truncf %316 : vector<2x64xf32> to vector<2x64xbf16>
    %cst_135 = arith.constant dense<0.000000e+00> : vector<2x256xf32>
    %325 = tpu.matmul %324, %0, %cst_135 {dimension_numbers = #tpu.dot_dimension_numbers<[1], [0], [0], [1], [0, 0, 1, 1], [], []>} : vector<2x64xbf16>, vector<64x256xbf16>, vector<2x256xf32> -> vector<2x256xf32>
    %326 = arith.addf %323, %325 : vector<2x256xf32>
    %327 = vector.extract_strided_slice %326 {offsets = [0, 0], sizes = [2, 192], strides = [1, 1]} : vector<2x256xf32> to vector<2x192xf32>
    %328 = arith.negf %327 : vector<2x192xf32>
    %329 = math.exp %328 : vector<2x192xf32>
    %cst_136 = arith.constant 1.000000e+00 : f32
    %330 = vector.broadcast %cst_136 : f32 to vector<2x192xf32>
    %331 = arith.addf %330, %329 : vector<2x192xf32>
    %332 = arith.divf %330, %331 : vector<2x192xf32>
    %333 = vector.extract_strided_slice %326 {offsets = [0, 192], sizes = [2, 64], strides = [1, 1]} : vector<2x256xf32> to vector<2x64xf32>
    %334 = math.tanh %333 : vector<2x64xf32>
    %335 = vector.extract_strided_slice %332 {offsets = [0, 64], sizes = [2, 64], strides = [1, 1]} : vector<2x192xf32> to vector<2x64xf32>
    %336 = arith.mulf %335, %313 : vector<2x64xf32>
    %337 = vector.extract_strided_slice %332 {offsets = [0, 0], sizes = [2, 64], strides = [1, 1]} : vector<2x192xf32> to vector<2x64xf32>
    %338 = arith.mulf %337, %334 : vector<2x64xf32>
    %339 = arith.addf %336, %338 : vector<2x64xf32>
    %340 = vector.extract_strided_slice %332 {offsets = [0, 128], sizes = [2, 64], strides = [1, 1]} : vector<2x192xf32> to vector<2x64xf32>
    %341 = math.tanh %339 : vector<2x64xf32>
    %342 = arith.mulf %340, %341 : vector<2x64xf32>
    %343 = vector.extract_strided_slice %342 {offsets = [0, 0], sizes = [2, 32], strides = [1, 1]} : vector<2x64xf32> to vector<2x32xf32>
    %344 = vector.extract_strided_slice %342 {offsets = [0, 32], sizes = [2, 32], strides = [1, 1]} : vector<2x64xf32> to vector<2x32xf32>
    %c24_137 = arith.constant 24 : index
    %c0_138 = arith.constant 0 : index
    %345 = vector.load %arg10[%c24_137, %c0_138] : memref<42x128xf32, #tpu.memory_space<vmem>>, vector<2x32xf32>
    tpu.vector_store %arg10[%c24_137, %c0_138], %343 {strides = array<i32>} : memref<42x128xf32, #tpu.memory_space<vmem>>, vector<2x32xf32>,
    %c16_139 = arith.constant 16 : index
    %c32_140 = arith.constant 32 : index
    %346 = vector.load %arg10[%c16_139, %c32_140] : memref<42x128xf32, #tpu.memory_space<vmem>>, vector<2x32xf32>
    tpu.vector_store %arg10[%c16_139, %c32_140], %344 {strides = array<i32>} : memref<42x128xf32, #tpu.memory_space<vmem>>, vector<2x32xf32>,
    %c16_141 = arith.constant 16 : index
    %c64_142 = arith.constant 64 : index
    %347 = vector.load %arg10[%c16_141, %c64_142] : memref<42x128xf32, #tpu.memory_space<vmem>>, vector<2x32xf32>
    tpu.vector_store %arg10[%c16_141, %c64_142], %343 {strides = array<i32>} : memref<42x128xf32, #tpu.memory_space<vmem>>, vector<2x32xf32>,
    %c24_143 = arith.constant 24 : index
    %c96_144 = arith.constant 96 : index
    %348 = vector.load %arg10[%c24_143, %c96_144] : memref<42x128xf32, #tpu.memory_space<vmem>>, vector<2x32xf32>
    tpu.vector_store %arg10[%c24_143, %c96_144], %344 {strides = array<i32>} : memref<42x128xf32, #tpu.memory_space<vmem>>, vector<2x32xf32>,
    %c26_145 = arith.constant 26 : index
    %c0_146 = arith.constant 0 : index
    %349 = vector.load %arg8[%c26_145, %c0_146] : memref<42x256xf32, #tpu.memory_space<vmem>>, vector<2x256xf32>
    %350 = arith.truncf %342 : vector<2x64xf32> to vector<2x64xbf16>
    %cst_147 = arith.constant dense<0.000000e+00> : vector<2x256xf32>
    %351 = tpu.matmul %350, %0, %cst_147 {dimension_numbers = #tpu.dot_dimension_numbers<[1], [0], [0], [1], [0, 0, 1, 1], [], []>} : vector<2x64xbf16>, vector<64x256xbf16>, vector<2x256xf32> -> vector<2x256xf32>
    %352 = arith.addf %349, %351 : vector<2x256xf32>
    %353 = vector.extract_strided_slice %352 {offsets = [0, 0], sizes = [2, 192], strides = [1, 1]} : vector<2x256xf32> to vector<2x192xf32>
    %354 = arith.negf %353 : vector<2x192xf32>
    %355 = math.exp %354 : vector<2x192xf32>
    %cst_148 = arith.constant 1.000000e+00 : f32
    %356 = vector.broadcast %cst_148 : f32 to vector<2x192xf32>
    %357 = arith.addf %356, %355 : vector<2x192xf32>
    %358 = arith.divf %356, %357 : vector<2x192xf32>
    %359 = vector.extract_strided_slice %352 {offsets = [0, 192], sizes = [2, 64], strides = [1, 1]} : vector<2x256xf32> to vector<2x64xf32>
    %360 = math.tanh %359 : vector<2x64xf32>
    %361 = vector.extract_strided_slice %358 {offsets = [0, 64], sizes = [2, 64], strides = [1, 1]} : vector<2x192xf32> to vector<2x64xf32>
    %362 = arith.mulf %361, %339 : vector<2x64xf32>
    %363 = vector.extract_strided_slice %358 {offsets = [0, 0], sizes = [2, 64], strides = [1, 1]} : vector<2x192xf32> to vector<2x64xf32>
    %364 = arith.mulf %363, %360 : vector<2x64xf32>
    %365 = arith.addf %362, %364 : vector<2x64xf32>
    %366 = vector.extract_strided_slice %358 {offsets = [0, 128], sizes = [2, 64], strides = [1, 1]} : vector<2x192xf32> to vector<2x64xf32>
    %367 = math.tanh %365 : vector<2x64xf32>
    %368 = arith.mulf %366, %367 : vector<2x64xf32>
    %369 = vector.extract_strided_slice %368 {offsets = [0, 0], sizes = [2, 32], strides = [1, 1]} : vector<2x64xf32> to vector<2x32xf32>
    %370 = vector.extract_strided_slice %368 {offsets = [0, 32], sizes = [2, 32], strides = [1, 1]} : vector<2x64xf32> to vector<2x32xf32>
    %c26_149 = arith.constant 26 : index
    %c0_150 = arith.constant 0 : index
    %371 = vector.load %arg10[%c26_149, %c0_150] : memref<42x128xf32, #tpu.memory_space<vmem>>, vector<2x32xf32>
    tpu.vector_store %arg10[%c26_149, %c0_150], %369 {strides = array<i32>} : memref<42x128xf32, #tpu.memory_space<vmem>>, vector<2x32xf32>,
    %c14_151 = arith.constant 14 : index
    %c32_152 = arith.constant 32 : index
    %372 = vector.load %arg10[%c14_151, %c32_152] : memref<42x128xf32, #tpu.memory_space<vmem>>, vector<2x32xf32>
    tpu.vector_store %arg10[%c14_151, %c32_152], %370 {strides = array<i32>} : memref<42x128xf32, #tpu.memory_space<vmem>>, vector<2x32xf32>,
    %c14_153 = arith.constant 14 : index
    %c64_154 = arith.constant 64 : index
    %373 = vector.load %arg10[%c14_153, %c64_154] : memref<42x128xf32, #tpu.memory_space<vmem>>, vector<2x32xf32>
    tpu.vector_store %arg10[%c14_153, %c64_154], %369 {strides = array<i32>} : memref<42x128xf32, #tpu.memory_space<vmem>>, vector<2x32xf32>,
    %c26_155 = arith.constant 26 : index
    %c96_156 = arith.constant 96 : index
    %374 = vector.load %arg10[%c26_155, %c96_156] : memref<42x128xf32, #tpu.memory_space<vmem>>, vector<2x32xf32>
    tpu.vector_store %arg10[%c26_155, %c96_156], %370 {strides = array<i32>} : memref<42x128xf32, #tpu.memory_space<vmem>>, vector<2x32xf32>,
    %c28_157 = arith.constant 28 : index
    %c0_158 = arith.constant 0 : index
    %375 = vector.load %arg8[%c28_157, %c0_158] : memref<42x256xf32, #tpu.memory_space<vmem>>, vector<2x256xf32>
    %376 = arith.truncf %368 : vector<2x64xf32> to vector<2x64xbf16>
    %cst_159 = arith.constant dense<0.000000e+00> : vector<2x256xf32>
    %377 = tpu.matmul %376, %0, %cst_159 {dimension_numbers = #tpu.dot_dimension_numbers<[1], [0], [0], [1], [0, 0, 1, 1], [], []>} : vector<2x64xbf16>, vector<64x256xbf16>, vector<2x256xf32> -> vector<2x256xf32>
    %378 = arith.addf %375, %377 : vector<2x256xf32>
    %379 = vector.extract_strided_slice %378 {offsets = [0, 0], sizes = [2, 192], strides = [1, 1]} : vector<2x256xf32> to vector<2x192xf32>
    %380 = arith.negf %379 : vector<2x192xf32>
    %381 = math.exp %380 : vector<2x192xf32>
    %cst_160 = arith.constant 1.000000e+00 : f32
    %382 = vector.broadcast %cst_160 : f32 to vector<2x192xf32>
    %383 = arith.addf %382, %381 : vector<2x192xf32>
    %384 = arith.divf %382, %383 : vector<2x192xf32>
    %385 = vector.extract_strided_slice %378 {offsets = [0, 192], sizes = [2, 64], strides = [1, 1]} : vector<2x256xf32> to vector<2x64xf32>
    %386 = math.tanh %385 : vector<2x64xf32>
    %387 = vector.extract_strided_slice %384 {offsets = [0, 64], sizes = [2, 64], strides = [1, 1]} : vector<2x192xf32> to vector<2x64xf32>
    %388 = arith.mulf %387, %365 : vector<2x64xf32>
    %389 = vector.extract_strided_slice %384 {offsets = [0, 0], sizes = [2, 64], strides = [1, 1]} : vector<2x192xf32> to vector<2x64xf32>
    %390 = arith.mulf %389, %386 : vector<2x64xf32>
    %391 = arith.addf %388, %390 : vector<2x64xf32>
    %392 = vector.extract_strided_slice %384 {offsets = [0, 128], sizes = [2, 64], strides = [1, 1]} : vector<2x192xf32> to vector<2x64xf32>
    %393 = math.tanh %391 : vector<2x64xf32>
    %394 = arith.mulf %392, %393 : vector<2x64xf32>
    %395 = vector.extract_strided_slice %394 {offsets = [0, 0], sizes = [2, 32], strides = [1, 1]} : vector<2x64xf32> to vector<2x32xf32>
    %396 = vector.extract_strided_slice %394 {offsets = [0, 32], sizes = [2, 32], strides = [1, 1]} : vector<2x64xf32> to vector<2x32xf32>
    %c28_161 = arith.constant 28 : index
    %c0_162 = arith.constant 0 : index
    %397 = vector.load %arg10[%c28_161, %c0_162] : memref<42x128xf32, #tpu.memory_space<vmem>>, vector<2x32xf32>
    tpu.vector_store %arg10[%c28_161, %c0_162], %395 {strides = array<i32>} : memref<42x128xf32, #tpu.memory_space<vmem>>, vector<2x32xf32>,
    %c12_163 = arith.constant 12 : index
    %c32_164 = arith.constant 32 : index
    %398 = vector.load %arg10[%c12_163, %c32_164] : memref<42x128xf32, #tpu.memory_space<vmem>>, vector<2x32xf32>
    tpu.vector_store %arg10[%c12_163, %c32_164], %396 {strides = array<i32>} : memref<42x128xf32, #tpu.memory_space<vmem>>, vector<2x32xf32>,
    %c12_165 = arith.constant 12 : index
    %c64_166 = arith.constant 64 : index
    %399 = vector.load %arg10[%c12_165, %c64_166] : memref<42x128xf32, #tpu.memory_space<vmem>>, vector<2x32xf32>
    tpu.vector_store %arg10[%c12_165, %c64_166], %395 {strides = array<i32>} : memref<42x128xf32, #tpu.memory_space<vmem>>, vector<2x32xf32>,
    %c28_167 = arith.constant 28 : index
    %c96_168 = arith.constant 96 : index
    %400 = vector.load %arg10[%c28_167, %c96_168] : memref<42x128xf32, #tpu.memory_space<vmem>>, vector<2x32xf32>
    tpu.vector_store %arg10[%c28_167, %c96_168], %396 {strides = array<i32>} : memref<42x128xf32, #tpu.memory_space<vmem>>, vector<2x32xf32>,
    %c30_169 = arith.constant 30 : index
    %c0_170 = arith.constant 0 : index
    %401 = vector.load %arg8[%c30_169, %c0_170] : memref<42x256xf32, #tpu.memory_space<vmem>>, vector<2x256xf32>
    %402 = arith.truncf %394 : vector<2x64xf32> to vector<2x64xbf16>
    %cst_171 = arith.constant dense<0.000000e+00> : vector<2x256xf32>
    %403 = tpu.matmul %402, %0, %cst_171 {dimension_numbers = #tpu.dot_dimension_numbers<[1], [0], [0], [1], [0, 0, 1, 1], [], []>} : vector<2x64xbf16>, vector<64x256xbf16>, vector<2x256xf32> -> vector<2x256xf32>
    %404 = arith.addf %401, %403 : vector<2x256xf32>
    %405 = vector.extract_strided_slice %404 {offsets = [0, 0], sizes = [2, 192], strides = [1, 1]} : vector<2x256xf32> to vector<2x192xf32>
    %406 = arith.negf %405 : vector<2x192xf32>
    %407 = math.exp %406 : vector<2x192xf32>
    %cst_172 = arith.constant 1.000000e+00 : f32
    %408 = vector.broadcast %cst_172 : f32 to vector<2x192xf32>
    %409 = arith.addf %408, %407 : vector<2x192xf32>
    %410 = arith.divf %408, %409 : vector<2x192xf32>
    %411 = vector.extract_strided_slice %404 {offsets = [0, 192], sizes = [2, 64], strides = [1, 1]} : vector<2x256xf32> to vector<2x64xf32>
    %412 = math.tanh %411 : vector<2x64xf32>
    %413 = vector.extract_strided_slice %410 {offsets = [0, 64], sizes = [2, 64], strides = [1, 1]} : vector<2x192xf32> to vector<2x64xf32>
    %414 = arith.mulf %413, %391 : vector<2x64xf32>
    %415 = vector.extract_strided_slice %410 {offsets = [0, 0], sizes = [2, 64], strides = [1, 1]} : vector<2x192xf32> to vector<2x64xf32>
    %416 = arith.mulf %415, %412 : vector<2x64xf32>
    %417 = arith.addf %414, %416 : vector<2x64xf32>
    %418 = vector.extract_strided_slice %410 {offsets = [0, 128], sizes = [2, 64], strides = [1, 1]} : vector<2x192xf32> to vector<2x64xf32>
    %419 = math.tanh %417 : vector<2x64xf32>
    %420 = arith.mulf %418, %419 : vector<2x64xf32>
    %421 = vector.extract_strided_slice %420 {offsets = [0, 0], sizes = [2, 32], strides = [1, 1]} : vector<2x64xf32> to vector<2x32xf32>
    %422 = vector.extract_strided_slice %420 {offsets = [0, 32], sizes = [2, 32], strides = [1, 1]} : vector<2x64xf32> to vector<2x32xf32>
    %c30_173 = arith.constant 30 : index
    %c0_174 = arith.constant 0 : index
    %423 = vector.load %arg10[%c30_173, %c0_174] : memref<42x128xf32, #tpu.memory_space<vmem>>, vector<2x32xf32>
    tpu.vector_store %arg10[%c30_173, %c0_174], %421 {strides = array<i32>} : memref<42x128xf32, #tpu.memory_space<vmem>>, vector<2x32xf32>,
    %c10_175 = arith.constant 10 : index
    %c32_176 = arith.constant 32 : index
    %424 = vector.load %arg10[%c10_175, %c32_176] : memref<42x128xf32, #tpu.memory_space<vmem>>, vector<2x32xf32>
    tpu.vector_store %arg10[%c10_175, %c32_176], %422 {strides = array<i32>} : memref<42x128xf32, #tpu.memory_space<vmem>>, vector<2x32xf32>,
    %c10_177 = arith.constant 10 : index
    %c64_178 = arith.constant 64 : index
    %425 = vector.load %arg10[%c10_177, %c64_178] : memref<42x128xf32, #tpu.memory_space<vmem>>, vector<2x32xf32>
    tpu.vector_store %arg10[%c10_177, %c64_178], %421 {strides = array<i32>} : memref<42x128xf32, #tpu.memory_space<vmem>>, vector<2x32xf32>,
    %c30_179 = arith.constant 30 : index
    %c96_180 = arith.constant 96 : index
    %426 = vector.load %arg10[%c30_179, %c96_180] : memref<42x128xf32, #tpu.memory_space<vmem>>, vector<2x32xf32>
    tpu.vector_store %arg10[%c30_179, %c96_180], %422 {strides = array<i32>} : memref<42x128xf32, #tpu.memory_space<vmem>>, vector<2x32xf32>,
    %c32_181 = arith.constant 32 : index
    %c0_182 = arith.constant 0 : index
    %427 = vector.load %arg8[%c32_181, %c0_182] : memref<42x256xf32, #tpu.memory_space<vmem>>, vector<2x256xf32>
    %428 = arith.truncf %420 : vector<2x64xf32> to vector<2x64xbf16>
    %cst_183 = arith.constant dense<0.000000e+00> : vector<2x256xf32>
    %429 = tpu.matmul %428, %0, %cst_183 {dimension_numbers = #tpu.dot_dimension_numbers<[1], [0], [0], [1], [0, 0, 1, 1], [], []>} : vector<2x64xbf16>, vector<64x256xbf16>, vector<2x256xf32> -> vector<2x256xf32>
    %430 = arith.addf %427, %429 : vector<2x256xf32>
    %431 = vector.extract_strided_slice %430 {offsets = [0, 0], sizes = [2, 192], strides = [1, 1]} : vector<2x256xf32> to vector<2x192xf32>
    %432 = arith.negf %431 : vector<2x192xf32>
    %433 = math.exp %432 : vector<2x192xf32>
    %cst_184 = arith.constant 1.000000e+00 : f32
    %434 = vector.broadcast %cst_184 : f32 to vector<2x192xf32>
    %435 = arith.addf %434, %433 : vector<2x192xf32>
    %436 = arith.divf %434, %435 : vector<2x192xf32>
    %437 = vector.extract_strided_slice %430 {offsets = [0, 192], sizes = [2, 64], strides = [1, 1]} : vector<2x256xf32> to vector<2x64xf32>
    %438 = math.tanh %437 : vector<2x64xf32>
    %439 = vector.extract_strided_slice %436 {offsets = [0, 64], sizes = [2, 64], strides = [1, 1]} : vector<2x192xf32> to vector<2x64xf32>
    %440 = arith.mulf %439, %417 : vector<2x64xf32>
    %441 = vector.extract_strided_slice %436 {offsets = [0, 0], sizes = [2, 64], strides = [1, 1]} : vector<2x192xf32> to vector<2x64xf32>
    %442 = arith.mulf %441, %438 : vector<2x64xf32>
    %443 = arith.addf %440, %442 : vector<2x64xf32>
    %444 = vector.extract_strided_slice %436 {offsets = [0, 128], sizes = [2, 64], strides = [1, 1]} : vector<2x192xf32> to vector<2x64xf32>
    %445 = math.tanh %443 : vector<2x64xf32>
    %446 = arith.mulf %444, %445 : vector<2x64xf32>
    %447 = vector.extract_strided_slice %446 {offsets = [0, 0], sizes = [2, 32], strides = [1, 1]} : vector<2x64xf32> to vector<2x32xf32>
    %448 = vector.extract_strided_slice %446 {offsets = [0, 32], sizes = [2, 32], strides = [1, 1]} : vector<2x64xf32> to vector<2x32xf32>
    %c32_185 = arith.constant 32 : index
    %c0_186 = arith.constant 0 : index
    %449 = vector.load %arg10[%c32_185, %c0_186] : memref<42x128xf32, #tpu.memory_space<vmem>>, vector<2x32xf32>
    tpu.vector_store %arg10[%c32_185, %c0_186], %447 {strides = array<i32>} : memref<42x128xf32, #tpu.memory_space<vmem>>, vector<2x32xf32>,
    %c8_187 = arith.constant 8 : index
    %c32_188 = arith.constant 32 : index
    %450 = vector.load %arg10[%c8_187, %c32_188] : memref<42x128xf32, #tpu.memory_space<vmem>>, vector<2x32xf32>
    tpu.vector_store %arg10[%c8_187, %c32_188], %448 {strides = array<i32>} : memref<42x128xf32, #tpu.memory_space<vmem>>, vector<2x32xf32>,
    %c8_189 = arith.constant 8 : index
    %c64_190 = arith.constant 64 : index
    %451 = vector.load %arg10[%c8_189, %c64_190] : memref<42x128xf32, #tpu.memory_space<vmem>>, vector<2x32xf32>
    tpu.vector_store %arg10[%c8_189, %c64_190], %447 {strides = array<i32>} : memref<42x128xf32, #tpu.memory_space<vmem>>, vector<2x32xf32>,
    %c32_191 = arith.constant 32 : index
    %c96_192 = arith.constant 96 : index
    %452 = vector.load %arg10[%c32_191, %c96_192] : memref<42x128xf32, #tpu.memory_space<vmem>>, vector<2x32xf32>
    tpu.vector_store %arg10[%c32_191, %c96_192], %448 {strides = array<i32>} : memref<42x128xf32, #tpu.memory_space<vmem>>, vector<2x32xf32>,
    %c34_193 = arith.constant 34 : index
    %c0_194 = arith.constant 0 : index
    %453 = vector.load %arg8[%c34_193, %c0_194] : memref<42x256xf32, #tpu.memory_space<vmem>>, vector<2x256xf32>
    %454 = arith.truncf %446 : vector<2x64xf32> to vector<2x64xbf16>
    %cst_195 = arith.constant dense<0.000000e+00> : vector<2x256xf32>
    %455 = tpu.matmul %454, %0, %cst_195 {dimension_numbers = #tpu.dot_dimension_numbers<[1], [0], [0], [1], [0, 0, 1, 1], [], []>} : vector<2x64xbf16>, vector<64x256xbf16>, vector<2x256xf32> -> vector<2x256xf32>
    %456 = arith.addf %453, %455 : vector<2x256xf32>
    %457 = vector.extract_strided_slice %456 {offsets = [0, 0], sizes = [2, 192], strides = [1, 1]} : vector<2x256xf32> to vector<2x192xf32>
    %458 = arith.negf %457 : vector<2x192xf32>
    %459 = math.exp %458 : vector<2x192xf32>
    %cst_196 = arith.constant 1.000000e+00 : f32
    %460 = vector.broadcast %cst_196 : f32 to vector<2x192xf32>
    %461 = arith.addf %460, %459 : vector<2x192xf32>
    %462 = arith.divf %460, %461 : vector<2x192xf32>
    %463 = vector.extract_strided_slice %456 {offsets = [0, 192], sizes = [2, 64], strides = [1, 1]} : vector<2x256xf32> to vector<2x64xf32>
    %464 = math.tanh %463 : vector<2x64xf32>
    %465 = vector.extract_strided_slice %462 {offsets = [0, 64], sizes = [2, 64], strides = [1, 1]} : vector<2x192xf32> to vector<2x64xf32>
    %466 = arith.mulf %465, %443 : vector<2x64xf32>
    %467 = vector.extract_strided_slice %462 {offsets = [0, 0], sizes = [2, 64], strides = [1, 1]} : vector<2x192xf32> to vector<2x64xf32>
    %468 = arith.mulf %467, %464 : vector<2x64xf32>
    %469 = arith.addf %466, %468 : vector<2x64xf32>
    %470 = vector.extract_strided_slice %462 {offsets = [0, 128], sizes = [2, 64], strides = [1, 1]} : vector<2x192xf32> to vector<2x64xf32>
    %471 = math.tanh %469 : vector<2x64xf32>
    %472 = arith.mulf %470, %471 : vector<2x64xf32>
    %473 = vector.extract_strided_slice %472 {offsets = [0, 0], sizes = [2, 32], strides = [1, 1]} : vector<2x64xf32> to vector<2x32xf32>
    %474 = vector.extract_strided_slice %472 {offsets = [0, 32], sizes = [2, 32], strides = [1, 1]} : vector<2x64xf32> to vector<2x32xf32>
    %c34_197 = arith.constant 34 : index
    %c0_198 = arith.constant 0 : index
    %475 = vector.load %arg10[%c34_197, %c0_198] : memref<42x128xf32, #tpu.memory_space<vmem>>, vector<2x32xf32>
    tpu.vector_store %arg10[%c34_197, %c0_198], %473 {strides = array<i32>} : memref<42x128xf32, #tpu.memory_space<vmem>>, vector<2x32xf32>,
    %c6_199 = arith.constant 6 : index
    %c32_200 = arith.constant 32 : index
    %476 = vector.load %arg10[%c6_199, %c32_200] : memref<42x128xf32, #tpu.memory_space<vmem>>, vector<2x32xf32>
    tpu.vector_store %arg10[%c6_199, %c32_200], %474 {strides = array<i32>} : memref<42x128xf32, #tpu.memory_space<vmem>>, vector<2x32xf32>,
    %c6_201 = arith.constant 6 : index
    %c64_202 = arith.constant 64 : index
    %477 = vector.load %arg10[%c6_201, %c64_202] : memref<42x128xf32, #tpu.memory_space<vmem>>, vector<2x32xf32>
    tpu.vector_store %arg10[%c6_201, %c64_202], %473 {strides = array<i32>} : memref<42x128xf32, #tpu.memory_space<vmem>>, vector<2x32xf32>,
    %c34_203 = arith.constant 34 : index
    %c96_204 = arith.constant 96 : index
    %478 = vector.load %arg10[%c34_203, %c96_204] : memref<42x128xf32, #tpu.memory_space<vmem>>, vector<2x32xf32>
    tpu.vector_store %arg10[%c34_203, %c96_204], %474 {strides = array<i32>} : memref<42x128xf32, #tpu.memory_space<vmem>>, vector<2x32xf32>,
    %c36_205 = arith.constant 36 : index
    %c0_206 = arith.constant 0 : index
    %479 = vector.load %arg8[%c36_205, %c0_206] : memref<42x256xf32, #tpu.memory_space<vmem>>, vector<2x256xf32>
    %480 = arith.truncf %472 : vector<2x64xf32> to vector<2x64xbf16>
    %cst_207 = arith.constant dense<0.000000e+00> : vector<2x256xf32>
    %481 = tpu.matmul %480, %0, %cst_207 {dimension_numbers = #tpu.dot_dimension_numbers<[1], [0], [0], [1], [0, 0, 1, 1], [], []>} : vector<2x64xbf16>, vector<64x256xbf16>, vector<2x256xf32> -> vector<2x256xf32>
    %482 = arith.addf %479, %481 : vector<2x256xf32>
    %483 = vector.extract_strided_slice %482 {offsets = [0, 0], sizes = [2, 192], strides = [1, 1]} : vector<2x256xf32> to vector<2x192xf32>
    %484 = arith.negf %483 : vector<2x192xf32>
    %485 = math.exp %484 : vector<2x192xf32>
    %cst_208 = arith.constant 1.000000e+00 : f32
    %486 = vector.broadcast %cst_208 : f32 to vector<2x192xf32>
    %487 = arith.addf %486, %485 : vector<2x192xf32>
    %488 = arith.divf %486, %487 : vector<2x192xf32>
    %489 = vector.extract_strided_slice %482 {offsets = [0, 192], sizes = [2, 64], strides = [1, 1]} : vector<2x256xf32> to vector<2x64xf32>
    %490 = math.tanh %489 : vector<2x64xf32>
    %491 = vector.extract_strided_slice %488 {offsets = [0, 64], sizes = [2, 64], strides = [1, 1]} : vector<2x192xf32> to vector<2x64xf32>
    %492 = arith.mulf %491, %469 : vector<2x64xf32>
    %493 = vector.extract_strided_slice %488 {offsets = [0, 0], sizes = [2, 64], strides = [1, 1]} : vector<2x192xf32> to vector<2x64xf32>
    %494 = arith.mulf %493, %490 : vector<2x64xf32>
    %495 = arith.addf %492, %494 : vector<2x64xf32>
    %496 = vector.extract_strided_slice %488 {offsets = [0, 128], sizes = [2, 64], strides = [1, 1]} : vector<2x192xf32> to vector<2x64xf32>
    %497 = math.tanh %495 : vector<2x64xf32>
    %498 = arith.mulf %496, %497 : vector<2x64xf32>
    %499 = vector.extract_strided_slice %498 {offsets = [0, 0], sizes = [2, 32], strides = [1, 1]} : vector<2x64xf32> to vector<2x32xf32>
    %500 = vector.extract_strided_slice %498 {offsets = [0, 32], sizes = [2, 32], strides = [1, 1]} : vector<2x64xf32> to vector<2x32xf32>
    %c36_209 = arith.constant 36 : index
    %c0_210 = arith.constant 0 : index
    %501 = vector.load %arg10[%c36_209, %c0_210] : memref<42x128xf32, #tpu.memory_space<vmem>>, vector<2x32xf32>
    tpu.vector_store %arg10[%c36_209, %c0_210], %499 {strides = array<i32>} : memref<42x128xf32, #tpu.memory_space<vmem>>, vector<2x32xf32>,
    %c4_211 = arith.constant 4 : index
    %c32_212 = arith.constant 32 : index
    %502 = vector.load %arg10[%c4_211, %c32_212] : memref<42x128xf32, #tpu.memory_space<vmem>>, vector<2x32xf32>
    tpu.vector_store %arg10[%c4_211, %c32_212], %500 {strides = array<i32>} : memref<42x128xf32, #tpu.memory_space<vmem>>, vector<2x32xf32>,
    %c4_213 = arith.constant 4 : index
    %c64_214 = arith.constant 64 : index
    %503 = vector.load %arg10[%c4_213, %c64_214] : memref<42x128xf32, #tpu.memory_space<vmem>>, vector<2x32xf32>
    tpu.vector_store %arg10[%c4_213, %c64_214], %499 {strides = array<i32>} : memref<42x128xf32, #tpu.memory_space<vmem>>, vector<2x32xf32>,
    %c36_215 = arith.constant 36 : index
    %c96_216 = arith.constant 96 : index
    %504 = vector.load %arg10[%c36_215, %c96_216] : memref<42x128xf32, #tpu.memory_space<vmem>>, vector<2x32xf32>
    tpu.vector_store %arg10[%c36_215, %c96_216], %500 {strides = array<i32>} : memref<42x128xf32, #tpu.memory_space<vmem>>, vector<2x32xf32>,
    %c38_217 = arith.constant 38 : index
    %c0_218 = arith.constant 0 : index
    %505 = vector.load %arg8[%c38_217, %c0_218] : memref<42x256xf32, #tpu.memory_space<vmem>>, vector<2x256xf32>
    %506 = arith.truncf %498 : vector<2x64xf32> to vector<2x64xbf16>
    %cst_219 = arith.constant dense<0.000000e+00> : vector<2x256xf32>
    %507 = tpu.matmul %506, %0, %cst_219 {dimension_numbers = #tpu.dot_dimension_numbers<[1], [0], [0], [1], [0, 0, 1, 1], [], []>} : vector<2x64xbf16>, vector<64x256xbf16>, vector<2x256xf32> -> vector<2x256xf32>
    %508 = arith.addf %505, %507 : vector<2x256xf32>
    %509 = vector.extract_strided_slice %508 {offsets = [0, 0], sizes = [2, 192], strides = [1, 1]} : vector<2x256xf32> to vector<2x192xf32>
    %510 = arith.negf %509 : vector<2x192xf32>
    %511 = math.exp %510 : vector<2x192xf32>
    %cst_220 = arith.constant 1.000000e+00 : f32
    %512 = vector.broadcast %cst_220 : f32 to vector<2x192xf32>
    %513 = arith.addf %512, %511 : vector<2x192xf32>
    %514 = arith.divf %512, %513 : vector<2x192xf32>
    %515 = vector.extract_strided_slice %508 {offsets = [0, 192], sizes = [2, 64], strides = [1, 1]} : vector<2x256xf32> to vector<2x64xf32>
    %516 = math.tanh %515 : vector<2x64xf32>
    %517 = vector.extract_strided_slice %514 {offsets = [0, 64], sizes = [2, 64], strides = [1, 1]} : vector<2x192xf32> to vector<2x64xf32>
    %518 = arith.mulf %517, %495 : vector<2x64xf32>
    %519 = vector.extract_strided_slice %514 {offsets = [0, 0], sizes = [2, 64], strides = [1, 1]} : vector<2x192xf32> to vector<2x64xf32>
    %520 = arith.mulf %519, %516 : vector<2x64xf32>
    %521 = arith.addf %518, %520 : vector<2x64xf32>
    %522 = vector.extract_strided_slice %514 {offsets = [0, 128], sizes = [2, 64], strides = [1, 1]} : vector<2x192xf32> to vector<2x64xf32>
    %523 = math.tanh %521 : vector<2x64xf32>
    %524 = arith.mulf %522, %523 : vector<2x64xf32>
    %525 = vector.extract_strided_slice %524 {offsets = [0, 0], sizes = [2, 32], strides = [1, 1]} : vector<2x64xf32> to vector<2x32xf32>
    %526 = vector.extract_strided_slice %524 {offsets = [0, 32], sizes = [2, 32], strides = [1, 1]} : vector<2x64xf32> to vector<2x32xf32>
    %c38_221 = arith.constant 38 : index
    %c0_222 = arith.constant 0 : index
    %527 = vector.load %arg10[%c38_221, %c0_222] : memref<42x128xf32, #tpu.memory_space<vmem>>, vector<2x32xf32>
    tpu.vector_store %arg10[%c38_221, %c0_222], %525 {strides = array<i32>} : memref<42x128xf32, #tpu.memory_space<vmem>>, vector<2x32xf32>,
    %c2_223 = arith.constant 2 : index
    %c32_224 = arith.constant 32 : index
    %528 = vector.load %arg10[%c2_223, %c32_224] : memref<42x128xf32, #tpu.memory_space<vmem>>, vector<2x32xf32>
    tpu.vector_store %arg10[%c2_223, %c32_224], %526 {strides = array<i32>} : memref<42x128xf32, #tpu.memory_space<vmem>>, vector<2x32xf32>,
    %c2_225 = arith.constant 2 : index
    %c64_226 = arith.constant 64 : index
    %529 = vector.load %arg10[%c2_225, %c64_226] : memref<42x128xf32, #tpu.memory_space<vmem>>, vector<2x32xf32>
    tpu.vector_store %arg10[%c2_225, %c64_226], %525 {strides = array<i32>} : memref<42x128xf32, #tpu.memory_space<vmem>>, vector<2x32xf32>,
    %c38_227 = arith.constant 38 : index
    %c96_228 = arith.constant 96 : index
    %530 = vector.load %arg10[%c38_227, %c96_228] : memref<42x128xf32, #tpu.memory_space<vmem>>, vector<2x32xf32>
    tpu.vector_store %arg10[%c38_227, %c96_228], %526 {strides = array<i32>} : memref<42x128xf32, #tpu.memory_space<vmem>>, vector<2x32xf32>,
    %c40_229 = arith.constant 40 : index
    %c0_230 = arith.constant 0 : index
    %531 = vector.load %arg8[%c40_229, %c0_230] : memref<42x256xf32, #tpu.memory_space<vmem>>, vector<2x256xf32>
    %532 = arith.truncf %524 : vector<2x64xf32> to vector<2x64xbf16>
    %cst_231 = arith.constant dense<0.000000e+00> : vector<2x256xf32>
    %533 = tpu.matmul %532, %0, %cst_231 {dimension_numbers = #tpu.dot_dimension_numbers<[1], [0], [0], [1], [0, 0, 1, 1], [], []>} : vector<2x64xbf16>, vector<64x256xbf16>, vector<2x256xf32> -> vector<2x256xf32>
    %534 = arith.addf %531, %533 : vector<2x256xf32>
    %535 = vector.extract_strided_slice %534 {offsets = [0, 0], sizes = [2, 192], strides = [1, 1]} : vector<2x256xf32> to vector<2x192xf32>
    %536 = arith.negf %535 : vector<2x192xf32>
    %537 = math.exp %536 : vector<2x192xf32>
    %cst_232 = arith.constant 1.000000e+00 : f32
    %538 = vector.broadcast %cst_232 : f32 to vector<2x192xf32>
    %539 = arith.addf %538, %537 : vector<2x192xf32>
    %540 = arith.divf %538, %539 : vector<2x192xf32>
    %541 = vector.extract_strided_slice %534 {offsets = [0, 192], sizes = [2, 64], strides = [1, 1]} : vector<2x256xf32> to vector<2x64xf32>
    %542 = math.tanh %541 : vector<2x64xf32>
    %543 = vector.extract_strided_slice %540 {offsets = [0, 64], sizes = [2, 64], strides = [1, 1]} : vector<2x192xf32> to vector<2x64xf32>
    %544 = arith.mulf %543, %521 : vector<2x64xf32>
    %545 = vector.extract_strided_slice %540 {offsets = [0, 0], sizes = [2, 64], strides = [1, 1]} : vector<2x192xf32> to vector<2x64xf32>
    %546 = arith.mulf %545, %542 : vector<2x64xf32>
    %547 = arith.addf %544, %546 : vector<2x64xf32>
    %548 = vector.extract_strided_slice %540 {offsets = [0, 128], sizes = [2, 64], strides = [1, 1]} : vector<2x192xf32> to vector<2x64xf32>
    %549 = math.tanh %547 : vector<2x64xf32>
    %550 = arith.mulf %548, %549 : vector<2x64xf32>
    %551 = vector.extract_strided_slice %550 {offsets = [0, 0], sizes = [2, 32], strides = [1, 1]} : vector<2x64xf32> to vector<2x32xf32>
    %552 = vector.extract_strided_slice %550 {offsets = [0, 32], sizes = [2, 32], strides = [1, 1]} : vector<2x64xf32> to vector<2x32xf32>
    %c40_233 = arith.constant 40 : index
    %c0_234 = arith.constant 0 : index
    %553 = vector.load %arg10[%c40_233, %c0_234] : memref<42x128xf32, #tpu.memory_space<vmem>>, vector<2x32xf32>
    tpu.vector_store %arg10[%c40_233, %c0_234], %551 {strides = array<i32>} : memref<42x128xf32, #tpu.memory_space<vmem>>, vector<2x32xf32>,
    %c0_235 = arith.constant 0 : index
    %c32_236 = arith.constant 32 : index
    %554 = vector.load %arg10[%c0_235, %c32_236] : memref<42x128xf32, #tpu.memory_space<vmem>>, vector<2x32xf32>
    tpu.vector_store %arg10[%c0_235, %c32_236], %552 {strides = array<i32>} : memref<42x128xf32, #tpu.memory_space<vmem>>, vector<2x32xf32>,
    %c0_237 = arith.constant 0 : index
    %c64_238 = arith.constant 64 : index
    %555 = vector.load %arg10[%c0_237, %c64_238] : memref<42x128xf32, #tpu.memory_space<vmem>>, vector<2x32xf32>
    tpu.vector_store %arg10[%c0_237, %c64_238], %551 {strides = array<i32>} : memref<42x128xf32, #tpu.memory_space<vmem>>, vector<2x32xf32>,
    %c40_239 = arith.constant 40 : index
    %c96_240 = arith.constant 96 : index
    %556 = vector.load %arg10[%c40_239, %c96_240] : memref<42x128xf32, #tpu.memory_space<vmem>>, vector<2x32xf32>
    tpu.vector_store %arg10[%c40_239, %c96_240], %552 {strides = array<i32>} : memref<42x128xf32, #tpu.memory_space<vmem>>, vector<2x32xf32>,
    %c0_241 = arith.constant 0 : index
    %c0_242 = arith.constant 0 : index
    %557 = vector.load %arg5[%c0_241, %c0_242] : memref<64x256xbf16, #tpu.memory_space<vmem>>, vector<64x256xbf16>
    %c0_243 = arith.constant 0 : index
    %c0_244 = arith.constant 0 : index
    %558 = vector.load %arg10[%c0_243, %c0_244] : memref<42x128xf32, #tpu.memory_space<vmem>>, vector<42x128xf32>
    %559 = arith.truncf %558 : vector<42x128xf32> to vector<42x128xbf16>
    %c0_245 = arith.constant 0 : index
    %c0_246 = arith.constant 0 : index
    %560 = vector.load %arg4[%c0_245, %c0_246] : memref<128x256xbf16, #tpu.memory_space<vmem>>, vector<128x256xbf16>
    %cst_247 = arith.constant dense<0.000000e+00> : vector<42x256xf32>
    %561 = tpu.matmul %559, %560, %cst_247 {dimension_numbers = #tpu.dot_dimension_numbers<[1], [0], [0], [1], [0, 0, 1, 1], [], []>} : vector<42x128xbf16>, vector<128x256xbf16>, vector<42x256xf32> -> vector<42x256xf32>
    %c0_248 = arith.constant 0 : index
    %c0_249 = arith.constant 0 : index
    %562 = vector.load %arg6[%c0_248, %c0_249] : memref<1x256xf32, #tpu.memory_space<vmem>>, vector<1x256xf32>
    %563 = vector.broadcast %562 : vector<1x256xf32> to vector<42x256xf32>
    %564 = arith.addf %561, %563 : vector<42x256xf32>
    %c0_250 = arith.constant 0 : index
    %c0_251 = arith.constant 0 : index
    %565 = vector.load %arg9[%c0_250, %c0_251] : memref<42x256xf32, #tpu.memory_space<vmem>>, vector<42x256xf32>
    tpu.vector_store %arg9[%c0_250, %c0_251], %564 {strides = array<i32>} : memref<42x256xf32, #tpu.memory_space<vmem>>, vector<42x256xf32>,
    %cst_252 = arith.constant 0.000000e+00 : f32
    %566 = vector.broadcast %cst_252 : f32 to vector<2x64xf32>
    %cst_253 = arith.constant 0.000000e+00 : f32
    %567 = vector.broadcast %cst_253 : f32 to vector<2x64xf32>
    %c0_254 = arith.constant 0 : index
    %c0_255 = arith.constant 0 : index
    %568 = vector.load %arg9[%c0_254, %c0_255] : memref<42x256xf32, #tpu.memory_space<vmem>>, vector<2x256xf32>
    %569 = arith.truncf %566 : vector<2x64xf32> to vector<2x64xbf16>
    %cst_256 = arith.constant dense<0.000000e+00> : vector<2x256xf32>
    %570 = tpu.matmul %569, %557, %cst_256 {dimension_numbers = #tpu.dot_dimension_numbers<[1], [0], [0], [1], [0, 0, 1, 1], [], []>} : vector<2x64xbf16>, vector<64x256xbf16>, vector<2x256xf32> -> vector<2x256xf32>
    %571 = arith.addf %568, %570 : vector<2x256xf32>
    %572 = vector.extract_strided_slice %571 {offsets = [0, 0], sizes = [2, 192], strides = [1, 1]} : vector<2x256xf32> to vector<2x192xf32>
    %573 = arith.negf %572 : vector<2x192xf32>
    %574 = math.exp %573 : vector<2x192xf32>
    %cst_257 = arith.constant 1.000000e+00 : f32
    %575 = vector.broadcast %cst_257 : f32 to vector<2x192xf32>
    %576 = arith.addf %575, %574 : vector<2x192xf32>
    %577 = arith.divf %575, %576 : vector<2x192xf32>
    %578 = vector.extract_strided_slice %571 {offsets = [0, 192], sizes = [2, 64], strides = [1, 1]} : vector<2x256xf32> to vector<2x64xf32>
    %579 = math.tanh %578 : vector<2x64xf32>
    %580 = vector.extract_strided_slice %577 {offsets = [0, 64], sizes = [2, 64], strides = [1, 1]} : vector<2x192xf32> to vector<2x64xf32>
    %581 = arith.mulf %580, %567 : vector<2x64xf32>
    %582 = vector.extract_strided_slice %577 {offsets = [0, 0], sizes = [2, 64], strides = [1, 1]} : vector<2x192xf32> to vector<2x64xf32>
    %583 = arith.mulf %582, %579 : vector<2x64xf32>
    %584 = arith.addf %581, %583 : vector<2x64xf32>
    %585 = vector.extract_strided_slice %577 {offsets = [0, 128], sizes = [2, 64], strides = [1, 1]} : vector<2x192xf32> to vector<2x64xf32>
    %586 = math.tanh %584 : vector<2x64xf32>
    %587 = arith.mulf %585, %586 : vector<2x64xf32>
    %588 = vector.extract_strided_slice %587 {offsets = [0, 0], sizes = [2, 32], strides = [1, 1]} : vector<2x64xf32> to vector<2x32xf32>
    %589 = vector.extract_strided_slice %587 {offsets = [0, 32], sizes = [2, 32], strides = [1, 1]} : vector<2x64xf32> to vector<2x32xf32>
    %c0_258 = arith.constant 0 : index
    %c0_259 = arith.constant 0 : index
    %c0_260 = arith.constant 0 : index
    %590 = vector.load %arg7[%c0_258, %c0_259, %c0_260] : memref<21x2x64xf32, #tpu.memory_space<vmem>>, vector<1x2x32xf32>
    %591 = vector.shape_cast %590 : vector<1x2x32xf32> to vector<2x32xf32>
    %592 = vector.shape_cast %588 : vector<2x32xf32> to vector<1x2x32xf32>
    tpu.vector_store %arg7[%c0_258, %c0_259, %c0_260], %592 {strides = array<i32>} : memref<21x2x64xf32, #tpu.memory_space<vmem>>, vector<1x2x32xf32>,
    %c20_261 = arith.constant 20 : index
    %c0_262 = arith.constant 0 : index
    %c32_263 = arith.constant 32 : index
    %593 = vector.load %arg7[%c20_261, %c0_262, %c32_263] : memref<21x2x64xf32, #tpu.memory_space<vmem>>, vector<1x2x32xf32>
    %594 = vector.shape_cast %593 : vector<1x2x32xf32> to vector<2x32xf32>
    %595 = vector.shape_cast %589 : vector<2x32xf32> to vector<1x2x32xf32>
    tpu.vector_store %arg7[%c20_261, %c0_262, %c32_263], %595 {strides = array<i32>} : memref<21x2x64xf32, #tpu.memory_space<vmem>>, vector<1x2x32xf32>,
    %c2_264 = arith.constant 2 : index
    %c0_265 = arith.constant 0 : index
    %596 = vector.load %arg9[%c2_264, %c0_265] : memref<42x256xf32, #tpu.memory_space<vmem>>, vector<2x256xf32>
    %597 = arith.truncf %587 : vector<2x64xf32> to vector<2x64xbf16>
    %cst_266 = arith.constant dense<0.000000e+00> : vector<2x256xf32>
    %598 = tpu.matmul %597, %557, %cst_266 {dimension_numbers = #tpu.dot_dimension_numbers<[1], [0], [0], [1], [0, 0, 1, 1], [], []>} : vector<2x64xbf16>, vector<64x256xbf16>, vector<2x256xf32> -> vector<2x256xf32>
    %599 = arith.addf %596, %598 : vector<2x256xf32>
    %600 = vector.extract_strided_slice %599 {offsets = [0, 0], sizes = [2, 192], strides = [1, 1]} : vector<2x256xf32> to vector<2x192xf32>
    %601 = arith.negf %600 : vector<2x192xf32>
    %602 = math.exp %601 : vector<2x192xf32>
    %cst_267 = arith.constant 1.000000e+00 : f32
    %603 = vector.broadcast %cst_267 : f32 to vector<2x192xf32>
    %604 = arith.addf %603, %602 : vector<2x192xf32>
    %605 = arith.divf %603, %604 : vector<2x192xf32>
    %606 = vector.extract_strided_slice %599 {offsets = [0, 192], sizes = [2, 64], strides = [1, 1]} : vector<2x256xf32> to vector<2x64xf32>
    %607 = math.tanh %606 : vector<2x64xf32>
    %608 = vector.extract_strided_slice %605 {offsets = [0, 64], sizes = [2, 64], strides = [1, 1]} : vector<2x192xf32> to vector<2x64xf32>
    %609 = arith.mulf %608, %584 : vector<2x64xf32>
    %610 = vector.extract_strided_slice %605 {offsets = [0, 0], sizes = [2, 64], strides = [1, 1]} : vector<2x192xf32> to vector<2x64xf32>
    %611 = arith.mulf %610, %607 : vector<2x64xf32>
    %612 = arith.addf %609, %611 : vector<2x64xf32>
    %613 = vector.extract_strided_slice %605 {offsets = [0, 128], sizes = [2, 64], strides = [1, 1]} : vector<2x192xf32> to vector<2x64xf32>
    %614 = math.tanh %612 : vector<2x64xf32>
    %615 = arith.mulf %613, %614 : vector<2x64xf32>
    %616 = vector.extract_strided_slice %615 {offsets = [0, 0], sizes = [2, 32], strides = [1, 1]} : vector<2x64xf32> to vector<2x32xf32>
    %617 = vector.extract_strided_slice %615 {offsets = [0, 32], sizes = [2, 32], strides = [1, 1]} : vector<2x64xf32> to vector<2x32xf32>
    %c1 = arith.constant 1 : index
    %c0_268 = arith.constant 0 : index
    %c0_269 = arith.constant 0 : index
    %618 = vector.load %arg7[%c1, %c0_268, %c0_269] : memref<21x2x64xf32, #tpu.memory_space<vmem>>, vector<1x2x32xf32>
    %619 = vector.shape_cast %618 : vector<1x2x32xf32> to vector<2x32xf32>
    %620 = vector.shape_cast %616 : vector<2x32xf32> to vector<1x2x32xf32>
    tpu.vector_store %arg7[%c1, %c0_268, %c0_269], %620 {strides = array<i32>} : memref<21x2x64xf32, #tpu.memory_space<vmem>>, vector<1x2x32xf32>,
    %c19 = arith.constant 19 : index
    %c0_270 = arith.constant 0 : index
    %c32_271 = arith.constant 32 : index
    %621 = vector.load %arg7[%c19, %c0_270, %c32_271] : memref<21x2x64xf32, #tpu.memory_space<vmem>>, vector<1x2x32xf32>
    %622 = vector.shape_cast %621 : vector<1x2x32xf32> to vector<2x32xf32>
    %623 = vector.shape_cast %617 : vector<2x32xf32> to vector<1x2x32xf32>
    tpu.vector_store %arg7[%c19, %c0_270, %c32_271], %623 {strides = array<i32>} : memref<21x2x64xf32, #tpu.memory_space<vmem>>, vector<1x2x32xf32>,
    %c4_272 = arith.constant 4 : index
    %c0_273 = arith.constant 0 : index
    %624 = vector.load %arg9[%c4_272, %c0_273] : memref<42x256xf32, #tpu.memory_space<vmem>>, vector<2x256xf32>
    %625 = arith.truncf %615 : vector<2x64xf32> to vector<2x64xbf16>
    %cst_274 = arith.constant dense<0.000000e+00> : vector<2x256xf32>
    %626 = tpu.matmul %625, %557, %cst_274 {dimension_numbers = #tpu.dot_dimension_numbers<[1], [0], [0], [1], [0, 0, 1, 1], [], []>} : vector<2x64xbf16>, vector<64x256xbf16>, vector<2x256xf32> -> vector<2x256xf32>
    %627 = arith.addf %624, %626 : vector<2x256xf32>
    %628 = vector.extract_strided_slice %627 {offsets = [0, 0], sizes = [2, 192], strides = [1, 1]} : vector<2x256xf32> to vector<2x192xf32>
    %629 = arith.negf %628 : vector<2x192xf32>
    %630 = math.exp %629 : vector<2x192xf32>
    %cst_275 = arith.constant 1.000000e+00 : f32
    %631 = vector.broadcast %cst_275 : f32 to vector<2x192xf32>
    %632 = arith.addf %631, %630 : vector<2x192xf32>
    %633 = arith.divf %631, %632 : vector<2x192xf32>
    %634 = vector.extract_strided_slice %627 {offsets = [0, 192], sizes = [2, 64], strides = [1, 1]} : vector<2x256xf32> to vector<2x64xf32>
    %635 = math.tanh %634 : vector<2x64xf32>
    %636 = vector.extract_strided_slice %633 {offsets = [0, 64], sizes = [2, 64], strides = [1, 1]} : vector<2x192xf32> to vector<2x64xf32>
    %637 = arith.mulf %636, %612 : vector<2x64xf32>
    %638 = vector.extract_strided_slice %633 {offsets = [0, 0], sizes = [2, 64], strides = [1, 1]} : vector<2x192xf32> to vector<2x64xf32>
    %639 = arith.mulf %638, %635 : vector<2x64xf32>
    %640 = arith.addf %637, %639 : vector<2x64xf32>
    %641 = vector.extract_strided_slice %633 {offsets = [0, 128], sizes = [2, 64], strides = [1, 1]} : vector<2x192xf32> to vector<2x64xf32>
    %642 = math.tanh %640 : vector<2x64xf32>
    %643 = arith.mulf %641, %642 : vector<2x64xf32>
    %644 = vector.extract_strided_slice %643 {offsets = [0, 0], sizes = [2, 32], strides = [1, 1]} : vector<2x64xf32> to vector<2x32xf32>
    %645 = vector.extract_strided_slice %643 {offsets = [0, 32], sizes = [2, 32], strides = [1, 1]} : vector<2x64xf32> to vector<2x32xf32>
    %c2_276 = arith.constant 2 : index
    %c0_277 = arith.constant 0 : index
    %c0_278 = arith.constant 0 : index
    %646 = vector.load %arg7[%c2_276, %c0_277, %c0_278] : memref<21x2x64xf32, #tpu.memory_space<vmem>>, vector<1x2x32xf32>
    %647 = vector.shape_cast %646 : vector<1x2x32xf32> to vector<2x32xf32>
    %648 = vector.shape_cast %644 : vector<2x32xf32> to vector<1x2x32xf32>
    tpu.vector_store %arg7[%c2_276, %c0_277, %c0_278], %648 {strides = array<i32>} : memref<21x2x64xf32, #tpu.memory_space<vmem>>, vector<1x2x32xf32>,
    %c18_279 = arith.constant 18 : index
    %c0_280 = arith.constant 0 : index
    %c32_281 = arith.constant 32 : index
    %649 = vector.load %arg7[%c18_279, %c0_280, %c32_281] : memref<21x2x64xf32, #tpu.memory_space<vmem>>, vector<1x2x32xf32>
    %650 = vector.shape_cast %649 : vector<1x2x32xf32> to vector<2x32xf32>
    %651 = vector.shape_cast %645 : vector<2x32xf32> to vector<1x2x32xf32>
    tpu.vector_store %arg7[%c18_279, %c0_280, %c32_281], %651 {strides = array<i32>} : memref<21x2x64xf32, #tpu.memory_space<vmem>>, vector<1x2x32xf32>,
    %c6_282 = arith.constant 6 : index
    %c0_283 = arith.constant 0 : index
    %652 = vector.load %arg9[%c6_282, %c0_283] : memref<42x256xf32, #tpu.memory_space<vmem>>, vector<2x256xf32>
    %653 = arith.truncf %643 : vector<2x64xf32> to vector<2x64xbf16>
    %cst_284 = arith.constant dense<0.000000e+00> : vector<2x256xf32>
    %654 = tpu.matmul %653, %557, %cst_284 {dimension_numbers = #tpu.dot_dimension_numbers<[1], [0], [0], [1], [0, 0, 1, 1], [], []>} : vector<2x64xbf16>, vector<64x256xbf16>, vector<2x256xf32> -> vector<2x256xf32>
    %655 = arith.addf %652, %654 : vector<2x256xf32>
    %656 = vector.extract_strided_slice %655 {offsets = [0, 0], sizes = [2, 192], strides = [1, 1]} : vector<2x256xf32> to vector<2x192xf32>
    %657 = arith.negf %656 : vector<2x192xf32>
    %658 = math.exp %657 : vector<2x192xf32>
    %cst_285 = arith.constant 1.000000e+00 : f32
    %659 = vector.broadcast %cst_285 : f32 to vector<2x192xf32>
    %660 = arith.addf %659, %658 : vector<2x192xf32>
    %661 = arith.divf %659, %660 : vector<2x192xf32>
    %662 = vector.extract_strided_slice %655 {offsets = [0, 192], sizes = [2, 64], strides = [1, 1]} : vector<2x256xf32> to vector<2x64xf32>
    %663 = math.tanh %662 : vector<2x64xf32>
    %664 = vector.extract_strided_slice %661 {offsets = [0, 64], sizes = [2, 64], strides = [1, 1]} : vector<2x192xf32> to vector<2x64xf32>
    %665 = arith.mulf %664, %640 : vector<2x64xf32>
    %666 = vector.extract_strided_slice %661 {offsets = [0, 0], sizes = [2, 64], strides = [1, 1]} : vector<2x192xf32> to vector<2x64xf32>
    %667 = arith.mulf %666, %663 : vector<2x64xf32>
    %668 = arith.addf %665, %667 : vector<2x64xf32>
    %669 = vector.extract_strided_slice %661 {offsets = [0, 128], sizes = [2, 64], strides = [1, 1]} : vector<2x192xf32> to vector<2x64xf32>
    %670 = math.tanh %668 : vector<2x64xf32>
    %671 = arith.mulf %669, %670 : vector<2x64xf32>
    %672 = vector.extract_strided_slice %671 {offsets = [0, 0], sizes = [2, 32], strides = [1, 1]} : vector<2x64xf32> to vector<2x32xf32>
    %673 = vector.extract_strided_slice %671 {offsets = [0, 32], sizes = [2, 32], strides = [1, 1]} : vector<2x64xf32> to vector<2x32xf32>
    %c3 = arith.constant 3 : index
    %c0_286 = arith.constant 0 : index
    %c0_287 = arith.constant 0 : index
    %674 = vector.load %arg7[%c3, %c0_286, %c0_287] : memref<21x2x64xf32, #tpu.memory_space<vmem>>, vector<1x2x32xf32>
    %675 = vector.shape_cast %674 : vector<1x2x32xf32> to vector<2x32xf32>
    %676 = vector.shape_cast %672 : vector<2x32xf32> to vector<1x2x32xf32>
    tpu.vector_store %arg7[%c3, %c0_286, %c0_287], %676 {strides = array<i32>} : memref<21x2x64xf32, #tpu.memory_space<vmem>>, vector<1x2x32xf32>,
    %c17 = arith.constant 17 : index
    %c0_288 = arith.constant 0 : index
    %c32_289 = arith.constant 32 : index
    %677 = vector.load %arg7[%c17, %c0_288, %c32_289] : memref<21x2x64xf32, #tpu.memory_space<vmem>>, vector<1x2x32xf32>
    %678 = vector.shape_cast %677 : vector<1x2x32xf32> to vector<2x32xf32>
    %679 = vector.shape_cast %673 : vector<2x32xf32> to vector<1x2x32xf32>
    tpu.vector_store %arg7[%c17, %c0_288, %c32_289], %679 {strides = array<i32>} : memref<21x2x64xf32, #tpu.memory_space<vmem>>, vector<1x2x32xf32>,
    %c8_290 = arith.constant 8 : index
    %c0_291 = arith.constant 0 : index
    %680 = vector.load %arg9[%c8_290, %c0_291] : memref<42x256xf32, #tpu.memory_space<vmem>>, vector<2x256xf32>
    %681 = arith.truncf %671 : vector<2x64xf32> to vector<2x64xbf16>
    %cst_292 = arith.constant dense<0.000000e+00> : vector<2x256xf32>
    %682 = tpu.matmul %681, %557, %cst_292 {dimension_numbers = #tpu.dot_dimension_numbers<[1], [0], [0], [1], [0, 0, 1, 1], [], []>} : vector<2x64xbf16>, vector<64x256xbf16>, vector<2x256xf32> -> vector<2x256xf32>
    %683 = arith.addf %680, %682 : vector<2x256xf32>
    %684 = vector.extract_strided_slice %683 {offsets = [0, 0], sizes = [2, 192], strides = [1, 1]} : vector<2x256xf32> to vector<2x192xf32>
    %685 = arith.negf %684 : vector<2x192xf32>
    %686 = math.exp %685 : vector<2x192xf32>
    %cst_293 = arith.constant 1.000000e+00 : f32
    %687 = vector.broadcast %cst_293 : f32 to vector<2x192xf32>
    %688 = arith.addf %687, %686 : vector<2x192xf32>
    %689 = arith.divf %687, %688 : vector<2x192xf32>
    %690 = vector.extract_strided_slice %683 {offsets = [0, 192], sizes = [2, 64], strides = [1, 1]} : vector<2x256xf32> to vector<2x64xf32>
    %691 = math.tanh %690 : vector<2x64xf32>
    %692 = vector.extract_strided_slice %689 {offsets = [0, 64], sizes = [2, 64], strides = [1, 1]} : vector<2x192xf32> to vector<2x64xf32>
    %693 = arith.mulf %692, %668 : vector<2x64xf32>
    %694 = vector.extract_strided_slice %689 {offsets = [0, 0], sizes = [2, 64], strides = [1, 1]} : vector<2x192xf32> to vector<2x64xf32>
    %695 = arith.mulf %694, %691 : vector<2x64xf32>
    %696 = arith.addf %693, %695 : vector<2x64xf32>
    %697 = vector.extract_strided_slice %689 {offsets = [0, 128], sizes = [2, 64], strides = [1, 1]} : vector<2x192xf32> to vector<2x64xf32>
    %698 = math.tanh %696 : vector<2x64xf32>
    %699 = arith.mulf %697, %698 : vector<2x64xf32>
    %700 = vector.extract_strided_slice %699 {offsets = [0, 0], sizes = [2, 32], strides = [1, 1]} : vector<2x64xf32> to vector<2x32xf32>
    %701 = vector.extract_strided_slice %699 {offsets = [0, 32], sizes = [2, 32], strides = [1, 1]} : vector<2x64xf32> to vector<2x32xf32>
    %c4_294 = arith.constant 4 : index
    %c0_295 = arith.constant 0 : index
    %c0_296 = arith.constant 0 : index
    %702 = vector.load %arg7[%c4_294, %c0_295, %c0_296] : memref<21x2x64xf32, #tpu.memory_space<vmem>>, vector<1x2x32xf32>
    %703 = vector.shape_cast %702 : vector<1x2x32xf32> to vector<2x32xf32>
    %704 = vector.shape_cast %700 : vector<2x32xf32> to vector<1x2x32xf32>
    tpu.vector_store %arg7[%c4_294, %c0_295, %c0_296], %704 {strides = array<i32>} : memref<21x2x64xf32, #tpu.memory_space<vmem>>, vector<1x2x32xf32>,
    %c16_297 = arith.constant 16 : index
    %c0_298 = arith.constant 0 : index
    %c32_299 = arith.constant 32 : index
    %705 = vector.load %arg7[%c16_297, %c0_298, %c32_299] : memref<21x2x64xf32, #tpu.memory_space<vmem>>, vector<1x2x32xf32>
    %706 = vector.shape_cast %705 : vector<1x2x32xf32> to vector<2x32xf32>
    %707 = vector.shape_cast %701 : vector<2x32xf32> to vector<1x2x32xf32>
    tpu.vector_store %arg7[%c16_297, %c0_298, %c32_299], %707 {strides = array<i32>} : memref<21x2x64xf32, #tpu.memory_space<vmem>>, vector<1x2x32xf32>,
    %c10_300 = arith.constant 10 : index
    %c0_301 = arith.constant 0 : index
    %708 = vector.load %arg9[%c10_300, %c0_301] : memref<42x256xf32, #tpu.memory_space<vmem>>, vector<2x256xf32>
    %709 = arith.truncf %699 : vector<2x64xf32> to vector<2x64xbf16>
    %cst_302 = arith.constant dense<0.000000e+00> : vector<2x256xf32>
    %710 = tpu.matmul %709, %557, %cst_302 {dimension_numbers = #tpu.dot_dimension_numbers<[1], [0], [0], [1], [0, 0, 1, 1], [], []>} : vector<2x64xbf16>, vector<64x256xbf16>, vector<2x256xf32> -> vector<2x256xf32>
    %711 = arith.addf %708, %710 : vector<2x256xf32>
    %712 = vector.extract_strided_slice %711 {offsets = [0, 0], sizes = [2, 192], strides = [1, 1]} : vector<2x256xf32> to vector<2x192xf32>
    %713 = arith.negf %712 : vector<2x192xf32>
    %714 = math.exp %713 : vector<2x192xf32>
    %cst_303 = arith.constant 1.000000e+00 : f32
    %715 = vector.broadcast %cst_303 : f32 to vector<2x192xf32>
    %716 = arith.addf %715, %714 : vector<2x192xf32>
    %717 = arith.divf %715, %716 : vector<2x192xf32>
    %718 = vector.extract_strided_slice %711 {offsets = [0, 192], sizes = [2, 64], strides = [1, 1]} : vector<2x256xf32> to vector<2x64xf32>
    %719 = math.tanh %718 : vector<2x64xf32>
    %720 = vector.extract_strided_slice %717 {offsets = [0, 64], sizes = [2, 64], strides = [1, 1]} : vector<2x192xf32> to vector<2x64xf32>
    %721 = arith.mulf %720, %696 : vector<2x64xf32>
    %722 = vector.extract_strided_slice %717 {offsets = [0, 0], sizes = [2, 64], strides = [1, 1]} : vector<2x192xf32> to vector<2x64xf32>
    %723 = arith.mulf %722, %719 : vector<2x64xf32>
    %724 = arith.addf %721, %723 : vector<2x64xf32>
    %725 = vector.extract_strided_slice %717 {offsets = [0, 128], sizes = [2, 64], strides = [1, 1]} : vector<2x192xf32> to vector<2x64xf32>
    %726 = math.tanh %724 : vector<2x64xf32>
    %727 = arith.mulf %725, %726 : vector<2x64xf32>
    %728 = vector.extract_strided_slice %727 {offsets = [0, 0], sizes = [2, 32], strides = [1, 1]} : vector<2x64xf32> to vector<2x32xf32>
    %729 = vector.extract_strided_slice %727 {offsets = [0, 32], sizes = [2, 32], strides = [1, 1]} : vector<2x64xf32> to vector<2x32xf32>
    %c5 = arith.constant 5 : index
    %c0_304 = arith.constant 0 : index
    %c0_305 = arith.constant 0 : index
    %730 = vector.load %arg7[%c5, %c0_304, %c0_305] : memref<21x2x64xf32, #tpu.memory_space<vmem>>, vector<1x2x32xf32>
    %731 = vector.shape_cast %730 : vector<1x2x32xf32> to vector<2x32xf32>
    %732 = vector.shape_cast %728 : vector<2x32xf32> to vector<1x2x32xf32>
    tpu.vector_store %arg7[%c5, %c0_304, %c0_305], %732 {strides = array<i32>} : memref<21x2x64xf32, #tpu.memory_space<vmem>>, vector<1x2x32xf32>,
    %c15 = arith.constant 15 : index
    %c0_306 = arith.constant 0 : index
    %c32_307 = arith.constant 32 : index
    %733 = vector.load %arg7[%c15, %c0_306, %c32_307] : memref<21x2x64xf32, #tpu.memory_space<vmem>>, vector<1x2x32xf32>
    %734 = vector.shape_cast %733 : vector<1x2x32xf32> to vector<2x32xf32>
    %735 = vector.shape_cast %729 : vector<2x32xf32> to vector<1x2x32xf32>
    tpu.vector_store %arg7[%c15, %c0_306, %c32_307], %735 {strides = array<i32>} : memref<21x2x64xf32, #tpu.memory_space<vmem>>, vector<1x2x32xf32>,
    %c12_308 = arith.constant 12 : index
    %c0_309 = arith.constant 0 : index
    %736 = vector.load %arg9[%c12_308, %c0_309] : memref<42x256xf32, #tpu.memory_space<vmem>>, vector<2x256xf32>
    %737 = arith.truncf %727 : vector<2x64xf32> to vector<2x64xbf16>
    %cst_310 = arith.constant dense<0.000000e+00> : vector<2x256xf32>
    %738 = tpu.matmul %737, %557, %cst_310 {dimension_numbers = #tpu.dot_dimension_numbers<[1], [0], [0], [1], [0, 0, 1, 1], [], []>} : vector<2x64xbf16>, vector<64x256xbf16>, vector<2x256xf32> -> vector<2x256xf32>
    %739 = arith.addf %736, %738 : vector<2x256xf32>
    %740 = vector.extract_strided_slice %739 {offsets = [0, 0], sizes = [2, 192], strides = [1, 1]} : vector<2x256xf32> to vector<2x192xf32>
    %741 = arith.negf %740 : vector<2x192xf32>
    %742 = math.exp %741 : vector<2x192xf32>
    %cst_311 = arith.constant 1.000000e+00 : f32
    %743 = vector.broadcast %cst_311 : f32 to vector<2x192xf32>
    %744 = arith.addf %743, %742 : vector<2x192xf32>
    %745 = arith.divf %743, %744 : vector<2x192xf32>
    %746 = vector.extract_strided_slice %739 {offsets = [0, 192], sizes = [2, 64], strides = [1, 1]} : vector<2x256xf32> to vector<2x64xf32>
    %747 = math.tanh %746 : vector<2x64xf32>
    %748 = vector.extract_strided_slice %745 {offsets = [0, 64], sizes = [2, 64], strides = [1, 1]} : vector<2x192xf32> to vector<2x64xf32>
    %749 = arith.mulf %748, %724 : vector<2x64xf32>
    %750 = vector.extract_strided_slice %745 {offsets = [0, 0], sizes = [2, 64], strides = [1, 1]} : vector<2x192xf32> to vector<2x64xf32>
    %751 = arith.mulf %750, %747 : vector<2x64xf32>
    %752 = arith.addf %749, %751 : vector<2x64xf32>
    %753 = vector.extract_strided_slice %745 {offsets = [0, 128], sizes = [2, 64], strides = [1, 1]} : vector<2x192xf32> to vector<2x64xf32>
    %754 = math.tanh %752 : vector<2x64xf32>
    %755 = arith.mulf %753, %754 : vector<2x64xf32>
    %756 = vector.extract_strided_slice %755 {offsets = [0, 0], sizes = [2, 32], strides = [1, 1]} : vector<2x64xf32> to vector<2x32xf32>
    %757 = vector.extract_strided_slice %755 {offsets = [0, 32], sizes = [2, 32], strides = [1, 1]} : vector<2x64xf32> to vector<2x32xf32>
    %c6_312 = arith.constant 6 : index
    %c0_313 = arith.constant 0 : index
    %c0_314 = arith.constant 0 : index
    %758 = vector.load %arg7[%c6_312, %c0_313, %c0_314] : memref<21x2x64xf32, #tpu.memory_space<vmem>>, vector<1x2x32xf32>
    %759 = vector.shape_cast %758 : vector<1x2x32xf32> to vector<2x32xf32>
    %760 = vector.shape_cast %756 : vector<2x32xf32> to vector<1x2x32xf32>
    tpu.vector_store %arg7[%c6_312, %c0_313, %c0_314], %760 {strides = array<i32>} : memref<21x2x64xf32, #tpu.memory_space<vmem>>, vector<1x2x32xf32>,
    %c14_315 = arith.constant 14 : index
    %c0_316 = arith.constant 0 : index
    %c32_317 = arith.constant 32 : index
    %761 = vector.load %arg7[%c14_315, %c0_316, %c32_317] : memref<21x2x64xf32, #tpu.memory_space<vmem>>, vector<1x2x32xf32>
    %762 = vector.shape_cast %761 : vector<1x2x32xf32> to vector<2x32xf32>
    %763 = vector.shape_cast %757 : vector<2x32xf32> to vector<1x2x32xf32>
    tpu.vector_store %arg7[%c14_315, %c0_316, %c32_317], %763 {strides = array<i32>} : memref<21x2x64xf32, #tpu.memory_space<vmem>>, vector<1x2x32xf32>,
    %c14_318 = arith.constant 14 : index
    %c0_319 = arith.constant 0 : index
    %764 = vector.load %arg9[%c14_318, %c0_319] : memref<42x256xf32, #tpu.memory_space<vmem>>, vector<2x256xf32>
    %765 = arith.truncf %755 : vector<2x64xf32> to vector<2x64xbf16>
    %cst_320 = arith.constant dense<0.000000e+00> : vector<2x256xf32>
    %766 = tpu.matmul %765, %557, %cst_320 {dimension_numbers = #tpu.dot_dimension_numbers<[1], [0], [0], [1], [0, 0, 1, 1], [], []>} : vector<2x64xbf16>, vector<64x256xbf16>, vector<2x256xf32> -> vector<2x256xf32>
    %767 = arith.addf %764, %766 : vector<2x256xf32>
    %768 = vector.extract_strided_slice %767 {offsets = [0, 0], sizes = [2, 192], strides = [1, 1]} : vector<2x256xf32> to vector<2x192xf32>
    %769 = arith.negf %768 : vector<2x192xf32>
    %770 = math.exp %769 : vector<2x192xf32>
    %cst_321 = arith.constant 1.000000e+00 : f32
    %771 = vector.broadcast %cst_321 : f32 to vector<2x192xf32>
    %772 = arith.addf %771, %770 : vector<2x192xf32>
    %773 = arith.divf %771, %772 : vector<2x192xf32>
    %774 = vector.extract_strided_slice %767 {offsets = [0, 192], sizes = [2, 64], strides = [1, 1]} : vector<2x256xf32> to vector<2x64xf32>
    %775 = math.tanh %774 : vector<2x64xf32>
    %776 = vector.extract_strided_slice %773 {offsets = [0, 64], sizes = [2, 64], strides = [1, 1]} : vector<2x192xf32> to vector<2x64xf32>
    %777 = arith.mulf %776, %752 : vector<2x64xf32>
    %778 = vector.extract_strided_slice %773 {offsets = [0, 0], sizes = [2, 64], strides = [1, 1]} : vector<2x192xf32> to vector<2x64xf32>
    %779 = arith.mulf %778, %775 : vector<2x64xf32>
    %780 = arith.addf %777, %779 : vector<2x64xf32>
    %781 = vector.extract_strided_slice %773 {offsets = [0, 128], sizes = [2, 64], strides = [1, 1]} : vector<2x192xf32> to vector<2x64xf32>
    %782 = math.tanh %780 : vector<2x64xf32>
    %783 = arith.mulf %781, %782 : vector<2x64xf32>
    %784 = vector.extract_strided_slice %783 {offsets = [0, 0], sizes = [2, 32], strides = [1, 1]} : vector<2x64xf32> to vector<2x32xf32>
    %785 = vector.extract_strided_slice %783 {offsets = [0, 32], sizes = [2, 32], strides = [1, 1]} : vector<2x64xf32> to vector<2x32xf32>
    %c7 = arith.constant 7 : index
    %c0_322 = arith.constant 0 : index
    %c0_323 = arith.constant 0 : index
    %786 = vector.load %arg7[%c7, %c0_322, %c0_323] : memref<21x2x64xf32, #tpu.memory_space<vmem>>, vector<1x2x32xf32>
    %787 = vector.shape_cast %786 : vector<1x2x32xf32> to vector<2x32xf32>
    %788 = vector.shape_cast %784 : vector<2x32xf32> to vector<1x2x32xf32>
    tpu.vector_store %arg7[%c7, %c0_322, %c0_323], %788 {strides = array<i32>} : memref<21x2x64xf32, #tpu.memory_space<vmem>>, vector<1x2x32xf32>,
    %c13 = arith.constant 13 : index
    %c0_324 = arith.constant 0 : index
    %c32_325 = arith.constant 32 : index
    %789 = vector.load %arg7[%c13, %c0_324, %c32_325] : memref<21x2x64xf32, #tpu.memory_space<vmem>>, vector<1x2x32xf32>
    %790 = vector.shape_cast %789 : vector<1x2x32xf32> to vector<2x32xf32>
    %791 = vector.shape_cast %785 : vector<2x32xf32> to vector<1x2x32xf32>
    tpu.vector_store %arg7[%c13, %c0_324, %c32_325], %791 {strides = array<i32>} : memref<21x2x64xf32, #tpu.memory_space<vmem>>, vector<1x2x32xf32>,
    %c16_326 = arith.constant 16 : index
    %c0_327 = arith.constant 0 : index
    %792 = vector.load %arg9[%c16_326, %c0_327] : memref<42x256xf32, #tpu.memory_space<vmem>>, vector<2x256xf32>
    %793 = arith.truncf %783 : vector<2x64xf32> to vector<2x64xbf16>
    %cst_328 = arith.constant dense<0.000000e+00> : vector<2x256xf32>
    %794 = tpu.matmul %793, %557, %cst_328 {dimension_numbers = #tpu.dot_dimension_numbers<[1], [0], [0], [1], [0, 0, 1, 1], [], []>} : vector<2x64xbf16>, vector<64x256xbf16>, vector<2x256xf32> -> vector<2x256xf32>
    %795 = arith.addf %792, %794 : vector<2x256xf32>
    %796 = vector.extract_strided_slice %795 {offsets = [0, 0], sizes = [2, 192], strides = [1, 1]} : vector<2x256xf32> to vector<2x192xf32>
    %797 = arith.negf %796 : vector<2x192xf32>
    %798 = math.exp %797 : vector<2x192xf32>
    %cst_329 = arith.constant 1.000000e+00 : f32
    %799 = vector.broadcast %cst_329 : f32 to vector<2x192xf32>
    %800 = arith.addf %799, %798 : vector<2x192xf32>
    %801 = arith.divf %799, %800 : vector<2x192xf32>
    %802 = vector.extract_strided_slice %795 {offsets = [0, 192], sizes = [2, 64], strides = [1, 1]} : vector<2x256xf32> to vector<2x64xf32>
    %803 = math.tanh %802 : vector<2x64xf32>
    %804 = vector.extract_strided_slice %801 {offsets = [0, 64], sizes = [2, 64], strides = [1, 1]} : vector<2x192xf32> to vector<2x64xf32>
    %805 = arith.mulf %804, %780 : vector<2x64xf32>
    %806 = vector.extract_strided_slice %801 {offsets = [0, 0], sizes = [2, 64], strides = [1, 1]} : vector<2x192xf32> to vector<2x64xf32>
    %807 = arith.mulf %806, %803 : vector<2x64xf32>
    %808 = arith.addf %805, %807 : vector<2x64xf32>
    %809 = vector.extract_strided_slice %801 {offsets = [0, 128], sizes = [2, 64], strides = [1, 1]} : vector<2x192xf32> to vector<2x64xf32>
    %810 = math.tanh %808 : vector<2x64xf32>
    %811 = arith.mulf %809, %810 : vector<2x64xf32>
    %812 = vector.extract_strided_slice %811 {offsets = [0, 0], sizes = [2, 32], strides = [1, 1]} : vector<2x64xf32> to vector<2x32xf32>
    %813 = vector.extract_strided_slice %811 {offsets = [0, 32], sizes = [2, 32], strides = [1, 1]} : vector<2x64xf32> to vector<2x32xf32>
    %c8_330 = arith.constant 8 : index
    %c0_331 = arith.constant 0 : index
    %c0_332 = arith.constant 0 : index
    %814 = vector.load %arg7[%c8_330, %c0_331, %c0_332] : memref<21x2x64xf32, #tpu.memory_space<vmem>>, vector<1x2x32xf32>
    %815 = vector.shape_cast %814 : vector<1x2x32xf32> to vector<2x32xf32>
    %816 = vector.shape_cast %812 : vector<2x32xf32> to vector<1x2x32xf32>
    tpu.vector_store %arg7[%c8_330, %c0_331, %c0_332], %816 {strides = array<i32>} : memref<21x2x64xf32, #tpu.memory_space<vmem>>, vector<1x2x32xf32>,
    %c12_333 = arith.constant 12 : index
    %c0_334 = arith.constant 0 : index
    %c32_335 = arith.constant 32 : index
    %817 = vector.load %arg7[%c12_333, %c0_334, %c32_335] : memref<21x2x64xf32, #tpu.memory_space<vmem>>, vector<1x2x32xf32>
    %818 = vector.shape_cast %817 : vector<1x2x32xf32> to vector<2x32xf32>
    %819 = vector.shape_cast %813 : vector<2x32xf32> to vector<1x2x32xf32>
    tpu.vector_store %arg7[%c12_333, %c0_334, %c32_335], %819 {strides = array<i32>} : memref<21x2x64xf32, #tpu.memory_space<vmem>>, vector<1x2x32xf32>,
    %c18_336 = arith.constant 18 : index
    %c0_337 = arith.constant 0 : index
    %820 = vector.load %arg9[%c18_336, %c0_337] : memref<42x256xf32, #tpu.memory_space<vmem>>, vector<2x256xf32>
    %821 = arith.truncf %811 : vector<2x64xf32> to vector<2x64xbf16>
    %cst_338 = arith.constant dense<0.000000e+00> : vector<2x256xf32>
    %822 = tpu.matmul %821, %557, %cst_338 {dimension_numbers = #tpu.dot_dimension_numbers<[1], [0], [0], [1], [0, 0, 1, 1], [], []>} : vector<2x64xbf16>, vector<64x256xbf16>, vector<2x256xf32> -> vector<2x256xf32>
    %823 = arith.addf %820, %822 : vector<2x256xf32>
    %824 = vector.extract_strided_slice %823 {offsets = [0, 0], sizes = [2, 192], strides = [1, 1]} : vector<2x256xf32> to vector<2x192xf32>
    %825 = arith.negf %824 : vector<2x192xf32>
    %826 = math.exp %825 : vector<2x192xf32>
    %cst_339 = arith.constant 1.000000e+00 : f32
    %827 = vector.broadcast %cst_339 : f32 to vector<2x192xf32>
    %828 = arith.addf %827, %826 : vector<2x192xf32>
    %829 = arith.divf %827, %828 : vector<2x192xf32>
    %830 = vector.extract_strided_slice %823 {offsets = [0, 192], sizes = [2, 64], strides = [1, 1]} : vector<2x256xf32> to vector<2x64xf32>
    %831 = math.tanh %830 : vector<2x64xf32>
    %832 = vector.extract_strided_slice %829 {offsets = [0, 64], sizes = [2, 64], strides = [1, 1]} : vector<2x192xf32> to vector<2x64xf32>
    %833 = arith.mulf %832, %808 : vector<2x64xf32>
    %834 = vector.extract_strided_slice %829 {offsets = [0, 0], sizes = [2, 64], strides = [1, 1]} : vector<2x192xf32> to vector<2x64xf32>
    %835 = arith.mulf %834, %831 : vector<2x64xf32>
    %836 = arith.addf %833, %835 : vector<2x64xf32>
    %837 = vector.extract_strided_slice %829 {offsets = [0, 128], sizes = [2, 64], strides = [1, 1]} : vector<2x192xf32> to vector<2x64xf32>
    %838 = math.tanh %836 : vector<2x64xf32>
    %839 = arith.mulf %837, %838 : vector<2x64xf32>
    %840 = vector.extract_strided_slice %839 {offsets = [0, 0], sizes = [2, 32], strides = [1, 1]} : vector<2x64xf32> to vector<2x32xf32>
    %841 = vector.extract_strided_slice %839 {offsets = [0, 32], sizes = [2, 32], strides = [1, 1]} : vector<2x64xf32> to vector<2x32xf32>
    %c9 = arith.constant 9 : index
    %c0_340 = arith.constant 0 : index
    %c0_341 = arith.constant 0 : index
    %842 = vector.load %arg7[%c9, %c0_340, %c0_341] : memref<21x2x64xf32, #tpu.memory_space<vmem>>, vector<1x2x32xf32>
    %843 = vector.shape_cast %842 : vector<1x2x32xf32> to vector<2x32xf32>
    %844 = vector.shape_cast %840 : vector<2x32xf32> to vector<1x2x32xf32>
    tpu.vector_store %arg7[%c9, %c0_340, %c0_341], %844 {strides = array<i32>} : memref<21x2x64xf32, #tpu.memory_space<vmem>>, vector<1x2x32xf32>,
    %c11 = arith.constant 11 : index
    %c0_342 = arith.constant 0 : index
    %c32_343 = arith.constant 32 : index
    %845 = vector.load %arg7[%c11, %c0_342, %c32_343] : memref<21x2x64xf32, #tpu.memory_space<vmem>>, vector<1x2x32xf32>
    %846 = vector.shape_cast %845 : vector<1x2x32xf32> to vector<2x32xf32>
    %847 = vector.shape_cast %841 : vector<2x32xf32> to vector<1x2x32xf32>
    tpu.vector_store %arg7[%c11, %c0_342, %c32_343], %847 {strides = array<i32>} : memref<21x2x64xf32, #tpu.memory_space<vmem>>, vector<1x2x32xf32>,
    %c20_344 = arith.constant 20 : index
    %c0_345 = arith.constant 0 : index
    %848 = vector.load %arg9[%c20_344, %c0_345] : memref<42x256xf32, #tpu.memory_space<vmem>>, vector<2x256xf32>
    %849 = arith.truncf %839 : vector<2x64xf32> to vector<2x64xbf16>
    %cst_346 = arith.constant dense<0.000000e+00> : vector<2x256xf32>
    %850 = tpu.matmul %849, %557, %cst_346 {dimension_numbers = #tpu.dot_dimension_numbers<[1], [0], [0], [1], [0, 0, 1, 1], [], []>} : vector<2x64xbf16>, vector<64x256xbf16>, vector<2x256xf32> -> vector<2x256xf32>
    %851 = arith.addf %848, %850 : vector<2x256xf32>
    %852 = vector.extract_strided_slice %851 {offsets = [0, 0], sizes = [2, 192], strides = [1, 1]} : vector<2x256xf32> to vector<2x192xf32>
    %853 = arith.negf %852 : vector<2x192xf32>
    %854 = math.exp %853 : vector<2x192xf32>
    %cst_347 = arith.constant 1.000000e+00 : f32
    %855 = vector.broadcast %cst_347 : f32 to vector<2x192xf32>
    %856 = arith.addf %855, %854 : vector<2x192xf32>
    %857 = arith.divf %855, %856 : vector<2x192xf32>
    %858 = vector.extract_strided_slice %851 {offsets = [0, 192], sizes = [2, 64], strides = [1, 1]} : vector<2x256xf32> to vector<2x64xf32>
    %859 = math.tanh %858 : vector<2x64xf32>
    %860 = vector.extract_strided_slice %857 {offsets = [0, 64], sizes = [2, 64], strides = [1, 1]} : vector<2x192xf32> to vector<2x64xf32>
    %861 = arith.mulf %860, %836 : vector<2x64xf32>
    %862 = vector.extract_strided_slice %857 {offsets = [0, 0], sizes = [2, 64], strides = [1, 1]} : vector<2x192xf32> to vector<2x64xf32>
    %863 = arith.mulf %862, %859 : vector<2x64xf32>
    %864 = arith.addf %861, %863 : vector<2x64xf32>
    %865 = vector.extract_strided_slice %857 {offsets = [0, 128], sizes = [2, 64], strides = [1, 1]} : vector<2x192xf32> to vector<2x64xf32>
    %866 = math.tanh %864 : vector<2x64xf32>
    %867 = arith.mulf %865, %866 : vector<2x64xf32>
    %868 = vector.extract_strided_slice %867 {offsets = [0, 0], sizes = [2, 32], strides = [1, 1]} : vector<2x64xf32> to vector<2x32xf32>
    %869 = vector.extract_strided_slice %867 {offsets = [0, 32], sizes = [2, 32], strides = [1, 1]} : vector<2x64xf32> to vector<2x32xf32>
    %c10_348 = arith.constant 10 : index
    %c0_349 = arith.constant 0 : index
    %c0_350 = arith.constant 0 : index
    %870 = vector.load %arg7[%c10_348, %c0_349, %c0_350] : memref<21x2x64xf32, #tpu.memory_space<vmem>>, vector<1x2x32xf32>
    %871 = vector.shape_cast %870 : vector<1x2x32xf32> to vector<2x32xf32>
    %872 = vector.shape_cast %868 : vector<2x32xf32> to vector<1x2x32xf32>
    tpu.vector_store %arg7[%c10_348, %c0_349, %c0_350], %872 {strides = array<i32>} : memref<21x2x64xf32, #tpu.memory_space<vmem>>, vector<1x2x32xf32>,
    %c10_351 = arith.constant 10 : index
    %c0_352 = arith.constant 0 : index
    %c32_353 = arith.constant 32 : index
    %873 = vector.load %arg7[%c10_351, %c0_352, %c32_353] : memref<21x2x64xf32, #tpu.memory_space<vmem>>, vector<1x2x32xf32>
    %874 = vector.shape_cast %873 : vector<1x2x32xf32> to vector<2x32xf32>
    %875 = vector.shape_cast %869 : vector<2x32xf32> to vector<1x2x32xf32>
    tpu.vector_store %arg7[%c10_351, %c0_352, %c32_353], %875 {strides = array<i32>} : memref<21x2x64xf32, #tpu.memory_space<vmem>>, vector<1x2x32xf32>,
    %c22_354 = arith.constant 22 : index
    %c0_355 = arith.constant 0 : index
    %876 = vector.load %arg9[%c22_354, %c0_355] : memref<42x256xf32, #tpu.memory_space<vmem>>, vector<2x256xf32>
    %877 = arith.truncf %867 : vector<2x64xf32> to vector<2x64xbf16>
    %cst_356 = arith.constant dense<0.000000e+00> : vector<2x256xf32>
    %878 = tpu.matmul %877, %557, %cst_356 {dimension_numbers = #tpu.dot_dimension_numbers<[1], [0], [0], [1], [0, 0, 1, 1], [], []>} : vector<2x64xbf16>, vector<64x256xbf16>, vector<2x256xf32> -> vector<2x256xf32>
    %879 = arith.addf %876, %878 : vector<2x256xf32>
    %880 = vector.extract_strided_slice %879 {offsets = [0, 0], sizes = [2, 192], strides = [1, 1]} : vector<2x256xf32> to vector<2x192xf32>
    %881 = arith.negf %880 : vector<2x192xf32>
    %882 = math.exp %881 : vector<2x192xf32>
    %cst_357 = arith.constant 1.000000e+00 : f32
    %883 = vector.broadcast %cst_357 : f32 to vector<2x192xf32>
    %884 = arith.addf %883, %882 : vector<2x192xf32>
    %885 = arith.divf %883, %884 : vector<2x192xf32>
    %886 = vector.extract_strided_slice %879 {offsets = [0, 192], sizes = [2, 64], strides = [1, 1]} : vector<2x256xf32> to vector<2x64xf32>
    %887 = math.tanh %886 : vector<2x64xf32>
    %888 = vector.extract_strided_slice %885 {offsets = [0, 64], sizes = [2, 64], strides = [1, 1]} : vector<2x192xf32> to vector<2x64xf32>
    %889 = arith.mulf %888, %864 : vector<2x64xf32>
    %890 = vector.extract_strided_slice %885 {offsets = [0, 0], sizes = [2, 64], strides = [1, 1]} : vector<2x192xf32> to vector<2x64xf32>
    %891 = arith.mulf %890, %887 : vector<2x64xf32>
    %892 = arith.addf %889, %891 : vector<2x64xf32>
    %893 = vector.extract_strided_slice %885 {offsets = [0, 128], sizes = [2, 64], strides = [1, 1]} : vector<2x192xf32> to vector<2x64xf32>
    %894 = math.tanh %892 : vector<2x64xf32>
    %895 = arith.mulf %893, %894 : vector<2x64xf32>
    %896 = vector.extract_strided_slice %895 {offsets = [0, 0], sizes = [2, 32], strides = [1, 1]} : vector<2x64xf32> to vector<2x32xf32>
    %897 = vector.extract_strided_slice %895 {offsets = [0, 32], sizes = [2, 32], strides = [1, 1]} : vector<2x64xf32> to vector<2x32xf32>
    %c11_358 = arith.constant 11 : index
    %c0_359 = arith.constant 0 : index
    %c0_360 = arith.constant 0 : index
    %898 = vector.load %arg7[%c11_358, %c0_359, %c0_360] : memref<21x2x64xf32, #tpu.memory_space<vmem>>, vector<1x2x32xf32>
    %899 = vector.shape_cast %898 : vector<1x2x32xf32> to vector<2x32xf32>
    %900 = vector.shape_cast %896 : vector<2x32xf32> to vector<1x2x32xf32>
    tpu.vector_store %arg7[%c11_358, %c0_359, %c0_360], %900 {strides = array<i32>} : memref<21x2x64xf32, #tpu.memory_space<vmem>>, vector<1x2x32xf32>,
    %c9_361 = arith.constant 9 : index
    %c0_362 = arith.constant 0 : index
    %c32_363 = arith.constant 32 : index
    %901 = vector.load %arg7[%c9_361, %c0_362, %c32_363] : memref<21x2x64xf32, #tpu.memory_space<vmem>>, vector<1x2x32xf32>
    %902 = vector.shape_cast %901 : vector<1x2x32xf32> to vector<2x32xf32>
    %903 = vector.shape_cast %897 : vector<2x32xf32> to vector<1x2x32xf32>
    tpu.vector_store %arg7[%c9_361, %c0_362, %c32_363], %903 {strides = array<i32>} : memref<21x2x64xf32, #tpu.memory_space<vmem>>, vector<1x2x32xf32>,
    %c24_364 = arith.constant 24 : index
    %c0_365 = arith.constant 0 : index
    %904 = vector.load %arg9[%c24_364, %c0_365] : memref<42x256xf32, #tpu.memory_space<vmem>>, vector<2x256xf32>
    %905 = arith.truncf %895 : vector<2x64xf32> to vector<2x64xbf16>
    %cst_366 = arith.constant dense<0.000000e+00> : vector<2x256xf32>
    %906 = tpu.matmul %905, %557, %cst_366 {dimension_numbers = #tpu.dot_dimension_numbers<[1], [0], [0], [1], [0, 0, 1, 1], [], []>} : vector<2x64xbf16>, vector<64x256xbf16>, vector<2x256xf32> -> vector<2x256xf32>
    %907 = arith.addf %904, %906 : vector<2x256xf32>
    %908 = vector.extract_strided_slice %907 {offsets = [0, 0], sizes = [2, 192], strides = [1, 1]} : vector<2x256xf32> to vector<2x192xf32>
    %909 = arith.negf %908 : vector<2x192xf32>
    %910 = math.exp %909 : vector<2x192xf32>
    %cst_367 = arith.constant 1.000000e+00 : f32
    %911 = vector.broadcast %cst_367 : f32 to vector<2x192xf32>
    %912 = arith.addf %911, %910 : vector<2x192xf32>
    %913 = arith.divf %911, %912 : vector<2x192xf32>
    %914 = vector.extract_strided_slice %907 {offsets = [0, 192], sizes = [2, 64], strides = [1, 1]} : vector<2x256xf32> to vector<2x64xf32>
    %915 = math.tanh %914 : vector<2x64xf32>
    %916 = vector.extract_strided_slice %913 {offsets = [0, 64], sizes = [2, 64], strides = [1, 1]} : vector<2x192xf32> to vector<2x64xf32>
    %917 = arith.mulf %916, %892 : vector<2x64xf32>
    %918 = vector.extract_strided_slice %913 {offsets = [0, 0], sizes = [2, 64], strides = [1, 1]} : vector<2x192xf32> to vector<2x64xf32>
    %919 = arith.mulf %918, %915 : vector<2x64xf32>
    %920 = arith.addf %917, %919 : vector<2x64xf32>
    %921 = vector.extract_strided_slice %913 {offsets = [0, 128], sizes = [2, 64], strides = [1, 1]} : vector<2x192xf32> to vector<2x64xf32>
    %922 = math.tanh %920 : vector<2x64xf32>
    %923 = arith.mulf %921, %922 : vector<2x64xf32>
    %924 = vector.extract_strided_slice %923 {offsets = [0, 0], sizes = [2, 32], strides = [1, 1]} : vector<2x64xf32> to vector<2x32xf32>
    %925 = vector.extract_strided_slice %923 {offsets = [0, 32], sizes = [2, 32], strides = [1, 1]} : vector<2x64xf32> to vector<2x32xf32>
    %c12_368 = arith.constant 12 : index
    %c0_369 = arith.constant 0 : index
    %c0_370 = arith.constant 0 : index
    %926 = vector.load %arg7[%c12_368, %c0_369, %c0_370] : memref<21x2x64xf32, #tpu.memory_space<vmem>>, vector<1x2x32xf32>
    %927 = vector.shape_cast %926 : vector<1x2x32xf32> to vector<2x32xf32>
    %928 = vector.shape_cast %924 : vector<2x32xf32> to vector<1x2x32xf32>
    tpu.vector_store %arg7[%c12_368, %c0_369, %c0_370], %928 {strides = array<i32>} : memref<21x2x64xf32, #tpu.memory_space<vmem>>, vector<1x2x32xf32>,
    %c8_371 = arith.constant 8 : index
    %c0_372 = arith.constant 0 : index
    %c32_373 = arith.constant 32 : index
    %929 = vector.load %arg7[%c8_371, %c0_372, %c32_373] : memref<21x2x64xf32, #tpu.memory_space<vmem>>, vector<1x2x32xf32>
    %930 = vector.shape_cast %929 : vector<1x2x32xf32> to vector<2x32xf32>
    %931 = vector.shape_cast %925 : vector<2x32xf32> to vector<1x2x32xf32>
    tpu.vector_store %arg7[%c8_371, %c0_372, %c32_373], %931 {strides = array<i32>} : memref<21x2x64xf32, #tpu.memory_space<vmem>>, vector<1x2x32xf32>,
    %c26_374 = arith.constant 26 : index
    %c0_375 = arith.constant 0 : index
    %932 = vector.load %arg9[%c26_374, %c0_375] : memref<42x256xf32, #tpu.memory_space<vmem>>, vector<2x256xf32>
    %933 = arith.truncf %923 : vector<2x64xf32> to vector<2x64xbf16>
    %cst_376 = arith.constant dense<0.000000e+00> : vector<2x256xf32>
    %934 = tpu.matmul %933, %557, %cst_376 {dimension_numbers = #tpu.dot_dimension_numbers<[1], [0], [0], [1], [0, 0, 1, 1], [], []>} : vector<2x64xbf16>, vector<64x256xbf16>, vector<2x256xf32> -> vector<2x256xf32>
    %935 = arith.addf %932, %934 : vector<2x256xf32>
    %936 = vector.extract_strided_slice %935 {offsets = [0, 0], sizes = [2, 192], strides = [1, 1]} : vector<2x256xf32> to vector<2x192xf32>
    %937 = arith.negf %936 : vector<2x192xf32>
    %938 = math.exp %937 : vector<2x192xf32>
    %cst_377 = arith.constant 1.000000e+00 : f32
    %939 = vector.broadcast %cst_377 : f32 to vector<2x192xf32>
    %940 = arith.addf %939, %938 : vector<2x192xf32>
    %941 = arith.divf %939, %940 : vector<2x192xf32>
    %942 = vector.extract_strided_slice %935 {offsets = [0, 192], sizes = [2, 64], strides = [1, 1]} : vector<2x256xf32> to vector<2x64xf32>
    %943 = math.tanh %942 : vector<2x64xf32>
    %944 = vector.extract_strided_slice %941 {offsets = [0, 64], sizes = [2, 64], strides = [1, 1]} : vector<2x192xf32> to vector<2x64xf32>
    %945 = arith.mulf %944, %920 : vector<2x64xf32>
    %946 = vector.extract_strided_slice %941 {offsets = [0, 0], sizes = [2, 64], strides = [1, 1]} : vector<2x192xf32> to vector<2x64xf32>
    %947 = arith.mulf %946, %943 : vector<2x64xf32>
    %948 = arith.addf %945, %947 : vector<2x64xf32>
    %949 = vector.extract_strided_slice %941 {offsets = [0, 128], sizes = [2, 64], strides = [1, 1]} : vector<2x192xf32> to vector<2x64xf32>
    %950 = math.tanh %948 : vector<2x64xf32>
    %951 = arith.mulf %949, %950 : vector<2x64xf32>
    %952 = vector.extract_strided_slice %951 {offsets = [0, 0], sizes = [2, 32], strides = [1, 1]} : vector<2x64xf32> to vector<2x32xf32>
    %953 = vector.extract_strided_slice %951 {offsets = [0, 32], sizes = [2, 32], strides = [1, 1]} : vector<2x64xf32> to vector<2x32xf32>
    %c13_378 = arith.constant 13 : index
    %c0_379 = arith.constant 0 : index
    %c0_380 = arith.constant 0 : index
    %954 = vector.load %arg7[%c13_378, %c0_379, %c0_380] : memref<21x2x64xf32, #tpu.memory_space<vmem>>, vector<1x2x32xf32>
    %955 = vector.shape_cast %954 : vector<1x2x32xf32> to vector<2x32xf32>
    %956 = vector.shape_cast %952 : vector<2x32xf32> to vector<1x2x32xf32>
    tpu.vector_store %arg7[%c13_378, %c0_379, %c0_380], %956 {strides = array<i32>} : memref<21x2x64xf32, #tpu.memory_space<vmem>>, vector<1x2x32xf32>,
    %c7_381 = arith.constant 7 : index
    %c0_382 = arith.constant 0 : index
    %c32_383 = arith.constant 32 : index
    %957 = vector.load %arg7[%c7_381, %c0_382, %c32_383] : memref<21x2x64xf32, #tpu.memory_space<vmem>>, vector<1x2x32xf32>
    %958 = vector.shape_cast %957 : vector<1x2x32xf32> to vector<2x32xf32>
    %959 = vector.shape_cast %953 : vector<2x32xf32> to vector<1x2x32xf32>
    tpu.vector_store %arg7[%c7_381, %c0_382, %c32_383], %959 {strides = array<i32>} : memref<21x2x64xf32, #tpu.memory_space<vmem>>, vector<1x2x32xf32>,
    %c28_384 = arith.constant 28 : index
    %c0_385 = arith.constant 0 : index
    %960 = vector.load %arg9[%c28_384, %c0_385] : memref<42x256xf32, #tpu.memory_space<vmem>>, vector<2x256xf32>
    %961 = arith.truncf %951 : vector<2x64xf32> to vector<2x64xbf16>
    %cst_386 = arith.constant dense<0.000000e+00> : vector<2x256xf32>
    %962 = tpu.matmul %961, %557, %cst_386 {dimension_numbers = #tpu.dot_dimension_numbers<[1], [0], [0], [1], [0, 0, 1, 1], [], []>} : vector<2x64xbf16>, vector<64x256xbf16>, vector<2x256xf32> -> vector<2x256xf32>
    %963 = arith.addf %960, %962 : vector<2x256xf32>
    %964 = vector.extract_strided_slice %963 {offsets = [0, 0], sizes = [2, 192], strides = [1, 1]} : vector<2x256xf32> to vector<2x192xf32>
    %965 = arith.negf %964 : vector<2x192xf32>
    %966 = math.exp %965 : vector<2x192xf32>
    %cst_387 = arith.constant 1.000000e+00 : f32
    %967 = vector.broadcast %cst_387 : f32 to vector<2x192xf32>
    %968 = arith.addf %967, %966 : vector<2x192xf32>
    %969 = arith.divf %967, %968 : vector<2x192xf32>
    %970 = vector.extract_strided_slice %963 {offsets = [0, 192], sizes = [2, 64], strides = [1, 1]} : vector<2x256xf32> to vector<2x64xf32>
    %971 = math.tanh %970 : vector<2x64xf32>
    %972 = vector.extract_strided_slice %969 {offsets = [0, 64], sizes = [2, 64], strides = [1, 1]} : vector<2x192xf32> to vector<2x64xf32>
    %973 = arith.mulf %972, %948 : vector<2x64xf32>
    %974 = vector.extract_strided_slice %969 {offsets = [0, 0], sizes = [2, 64], strides = [1, 1]} : vector<2x192xf32> to vector<2x64xf32>
    %975 = arith.mulf %974, %971 : vector<2x64xf32>
    %976 = arith.addf %973, %975 : vector<2x64xf32>
    %977 = vector.extract_strided_slice %969 {offsets = [0, 128], sizes = [2, 64], strides = [1, 1]} : vector<2x192xf32> to vector<2x64xf32>
    %978 = math.tanh %976 : vector<2x64xf32>
    %979 = arith.mulf %977, %978 : vector<2x64xf32>
    %980 = vector.extract_strided_slice %979 {offsets = [0, 0], sizes = [2, 32], strides = [1, 1]} : vector<2x64xf32> to vector<2x32xf32>
    %981 = vector.extract_strided_slice %979 {offsets = [0, 32], sizes = [2, 32], strides = [1, 1]} : vector<2x64xf32> to vector<2x32xf32>
    %c14_388 = arith.constant 14 : index
    %c0_389 = arith.constant 0 : index
    %c0_390 = arith.constant 0 : index
    %982 = vector.load %arg7[%c14_388, %c0_389, %c0_390] : memref<21x2x64xf32, #tpu.memory_space<vmem>>, vector<1x2x32xf32>
    %983 = vector.shape_cast %982 : vector<1x2x32xf32> to vector<2x32xf32>
    %984 = vector.shape_cast %980 : vector<2x32xf32> to vector<1x2x32xf32>
    tpu.vector_store %arg7[%c14_388, %c0_389, %c0_390], %984 {strides = array<i32>} : memref<21x2x64xf32, #tpu.memory_space<vmem>>, vector<1x2x32xf32>,
    %c6_391 = arith.constant 6 : index
    %c0_392 = arith.constant 0 : index
    %c32_393 = arith.constant 32 : index
    %985 = vector.load %arg7[%c6_391, %c0_392, %c32_393] : memref<21x2x64xf32, #tpu.memory_space<vmem>>, vector<1x2x32xf32>
    %986 = vector.shape_cast %985 : vector<1x2x32xf32> to vector<2x32xf32>
    %987 = vector.shape_cast %981 : vector<2x32xf32> to vector<1x2x32xf32>
    tpu.vector_store %arg7[%c6_391, %c0_392, %c32_393], %987 {strides = array<i32>} : memref<21x2x64xf32, #tpu.memory_space<vmem>>, vector<1x2x32xf32>,
    %c30_394 = arith.constant 30 : index
    %c0_395 = arith.constant 0 : index
    %988 = vector.load %arg9[%c30_394, %c0_395] : memref<42x256xf32, #tpu.memory_space<vmem>>, vector<2x256xf32>
    %989 = arith.truncf %979 : vector<2x64xf32> to vector<2x64xbf16>
    %cst_396 = arith.constant dense<0.000000e+00> : vector<2x256xf32>
    %990 = tpu.matmul %989, %557, %cst_396 {dimension_numbers = #tpu.dot_dimension_numbers<[1], [0], [0], [1], [0, 0, 1, 1], [], []>} : vector<2x64xbf16>, vector<64x256xbf16>, vector<2x256xf32> -> vector<2x256xf32>
    %991 = arith.addf %988, %990 : vector<2x256xf32>
    %992 = vector.extract_strided_slice %991 {offsets = [0, 0], sizes = [2, 192], strides = [1, 1]} : vector<2x256xf32> to vector<2x192xf32>
    %993 = arith.negf %992 : vector<2x192xf32>
    %994 = math.exp %993 : vector<2x192xf32>
    %cst_397 = arith.constant 1.000000e+00 : f32
    %995 = vector.broadcast %cst_397 : f32 to vector<2x192xf32>
    %996 = arith.addf %995, %994 : vector<2x192xf32>
    %997 = arith.divf %995, %996 : vector<2x192xf32>
    %998 = vector.extract_strided_slice %991 {offsets = [0, 192], sizes = [2, 64], strides = [1, 1]} : vector<2x256xf32> to vector<2x64xf32>
    %999 = math.tanh %998 : vector<2x64xf32>
    %1000 = vector.extract_strided_slice %997 {offsets = [0, 64], sizes = [2, 64], strides = [1, 1]} : vector<2x192xf32> to vector<2x64xf32>
    %1001 = arith.mulf %1000, %976 : vector<2x64xf32>
    %1002 = vector.extract_strided_slice %997 {offsets = [0, 0], sizes = [2, 64], strides = [1, 1]} : vector<2x192xf32> to vector<2x64xf32>
    %1003 = arith.mulf %1002, %999 : vector<2x64xf32>
    %1004 = arith.addf %1001, %1003 : vector<2x64xf32>
    %1005 = vector.extract_strided_slice %997 {offsets = [0, 128], sizes = [2, 64], strides = [1, 1]} : vector<2x192xf32> to vector<2x64xf32>
    %1006 = math.tanh %1004 : vector<2x64xf32>
    %1007 = arith.mulf %1005, %1006 : vector<2x64xf32>
    %1008 = vector.extract_strided_slice %1007 {offsets = [0, 0], sizes = [2, 32], strides = [1, 1]} : vector<2x64xf32> to vector<2x32xf32>
    %1009 = vector.extract_strided_slice %1007 {offsets = [0, 32], sizes = [2, 32], strides = [1, 1]} : vector<2x64xf32> to vector<2x32xf32>
    %c15_398 = arith.constant 15 : index
    %c0_399 = arith.constant 0 : index
    %c0_400 = arith.constant 0 : index
    %1010 = vector.load %arg7[%c15_398, %c0_399, %c0_400] : memref<21x2x64xf32, #tpu.memory_space<vmem>>, vector<1x2x32xf32>
    %1011 = vector.shape_cast %1010 : vector<1x2x32xf32> to vector<2x32xf32>
    %1012 = vector.shape_cast %1008 : vector<2x32xf32> to vector<1x2x32xf32>
    tpu.vector_store %arg7[%c15_398, %c0_399, %c0_400], %1012 {strides = array<i32>} : memref<21x2x64xf32, #tpu.memory_space<vmem>>, vector<1x2x32xf32>,
    %c5_401 = arith.constant 5 : index
    %c0_402 = arith.constant 0 : index
    %c32_403 = arith.constant 32 : index
    %1013 = vector.load %arg7[%c5_401, %c0_402, %c32_403] : memref<21x2x64xf32, #tpu.memory_space<vmem>>, vector<1x2x32xf32>
    %1014 = vector.shape_cast %1013 : vector<1x2x32xf32> to vector<2x32xf32>
    %1015 = vector.shape_cast %1009 : vector<2x32xf32> to vector<1x2x32xf32>
    tpu.vector_store %arg7[%c5_401, %c0_402, %c32_403], %1015 {strides = array<i32>} : memref<21x2x64xf32, #tpu.memory_space<vmem>>, vector<1x2x32xf32>,
    %c32_404 = arith.constant 32 : index
    %c0_405 = arith.constant 0 : index
    %1016 = vector.load %arg9[%c32_404, %c0_405] : memref<42x256xf32, #tpu.memory_space<vmem>>, vector<2x256xf32>
    %1017 = arith.truncf %1007 : vector<2x64xf32> to vector<2x64xbf16>
    %cst_406 = arith.constant dense<0.000000e+00> : vector<2x256xf32>
    %1018 = tpu.matmul %1017, %557, %cst_406 {dimension_numbers = #tpu.dot_dimension_numbers<[1], [0], [0], [1], [0, 0, 1, 1], [], []>} : vector<2x64xbf16>, vector<64x256xbf16>, vector<2x256xf32> -> vector<2x256xf32>
    %1019 = arith.addf %1016, %1018 : vector<2x256xf32>
    %1020 = vector.extract_strided_slice %1019 {offsets = [0, 0], sizes = [2, 192], strides = [1, 1]} : vector<2x256xf32> to vector<2x192xf32>
    %1021 = arith.negf %1020 : vector<2x192xf32>
    %1022 = math.exp %1021 : vector<2x192xf32>
    %cst_407 = arith.constant 1.000000e+00 : f32
    %1023 = vector.broadcast %cst_407 : f32 to vector<2x192xf32>
    %1024 = arith.addf %1023, %1022 : vector<2x192xf32>
    %1025 = arith.divf %1023, %1024 : vector<2x192xf32>
    %1026 = vector.extract_strided_slice %1019 {offsets = [0, 192], sizes = [2, 64], strides = [1, 1]} : vector<2x256xf32> to vector<2x64xf32>
    %1027 = math.tanh %1026 : vector<2x64xf32>
    %1028 = vector.extract_strided_slice %1025 {offsets = [0, 64], sizes = [2, 64], strides = [1, 1]} : vector<2x192xf32> to vector<2x64xf32>
    %1029 = arith.mulf %1028, %1004 : vector<2x64xf32>
    %1030 = vector.extract_strided_slice %1025 {offsets = [0, 0], sizes = [2, 64], strides = [1, 1]} : vector<2x192xf32> to vector<2x64xf32>
    %1031 = arith.mulf %1030, %1027 : vector<2x64xf32>
    %1032 = arith.addf %1029, %1031 : vector<2x64xf32>
    %1033 = vector.extract_strided_slice %1025 {offsets = [0, 128], sizes = [2, 64], strides = [1, 1]} : vector<2x192xf32> to vector<2x64xf32>
    %1034 = math.tanh %1032 : vector<2x64xf32>
    %1035 = arith.mulf %1033, %1034 : vector<2x64xf32>
    %1036 = vector.extract_strided_slice %1035 {offsets = [0, 0], sizes = [2, 32], strides = [1, 1]} : vector<2x64xf32> to vector<2x32xf32>
    %1037 = vector.extract_strided_slice %1035 {offsets = [0, 32], sizes = [2, 32], strides = [1, 1]} : vector<2x64xf32> to vector<2x32xf32>
    %c16_408 = arith.constant 16 : index
    %c0_409 = arith.constant 0 : index
    %c0_410 = arith.constant 0 : index
    %1038 = vector.load %arg7[%c16_408, %c0_409, %c0_410] : memref<21x2x64xf32, #tpu.memory_space<vmem>>, vector<1x2x32xf32>
    %1039 = vector.shape_cast %1038 : vector<1x2x32xf32> to vector<2x32xf32>
    %1040 = vector.shape_cast %1036 : vector<2x32xf32> to vector<1x2x32xf32>
    tpu.vector_store %arg7[%c16_408, %c0_409, %c0_410], %1040 {strides = array<i32>} : memref<21x2x64xf32, #tpu.memory_space<vmem>>, vector<1x2x32xf32>,
    %c4_411 = arith.constant 4 : index
    %c0_412 = arith.constant 0 : index
    %c32_413 = arith.constant 32 : index
    %1041 = vector.load %arg7[%c4_411, %c0_412, %c32_413] : memref<21x2x64xf32, #tpu.memory_space<vmem>>, vector<1x2x32xf32>
    %1042 = vector.shape_cast %1041 : vector<1x2x32xf32> to vector<2x32xf32>
    %1043 = vector.shape_cast %1037 : vector<2x32xf32> to vector<1x2x32xf32>
    tpu.vector_store %arg7[%c4_411, %c0_412, %c32_413], %1043 {strides = array<i32>} : memref<21x2x64xf32, #tpu.memory_space<vmem>>, vector<1x2x32xf32>,
    %c34_414 = arith.constant 34 : index
    %c0_415 = arith.constant 0 : index
    %1044 = vector.load %arg9[%c34_414, %c0_415] : memref<42x256xf32, #tpu.memory_space<vmem>>, vector<2x256xf32>
    %1045 = arith.truncf %1035 : vector<2x64xf32> to vector<2x64xbf16>
    %cst_416 = arith.constant dense<0.000000e+00> : vector<2x256xf32>
    %1046 = tpu.matmul %1045, %557, %cst_416 {dimension_numbers = #tpu.dot_dimension_numbers<[1], [0], [0], [1], [0, 0, 1, 1], [], []>} : vector<2x64xbf16>, vector<64x256xbf16>, vector<2x256xf32> -> vector<2x256xf32>
    %1047 = arith.addf %1044, %1046 : vector<2x256xf32>
    %1048 = vector.extract_strided_slice %1047 {offsets = [0, 0], sizes = [2, 192], strides = [1, 1]} : vector<2x256xf32> to vector<2x192xf32>
    %1049 = arith.negf %1048 : vector<2x192xf32>
    %1050 = math.exp %1049 : vector<2x192xf32>
    %cst_417 = arith.constant 1.000000e+00 : f32
    %1051 = vector.broadcast %cst_417 : f32 to vector<2x192xf32>
    %1052 = arith.addf %1051, %1050 : vector<2x192xf32>
    %1053 = arith.divf %1051, %1052 : vector<2x192xf32>
    %1054 = vector.extract_strided_slice %1047 {offsets = [0, 192], sizes = [2, 64], strides = [1, 1]} : vector<2x256xf32> to vector<2x64xf32>
    %1055 = math.tanh %1054 : vector<2x64xf32>
    %1056 = vector.extract_strided_slice %1053 {offsets = [0, 64], sizes = [2, 64], strides = [1, 1]} : vector<2x192xf32> to vector<2x64xf32>
    %1057 = arith.mulf %1056, %1032 : vector<2x64xf32>
    %1058 = vector.extract_strided_slice %1053 {offsets = [0, 0], sizes = [2, 64], strides = [1, 1]} : vector<2x192xf32> to vector<2x64xf32>
    %1059 = arith.mulf %1058, %1055 : vector<2x64xf32>
    %1060 = arith.addf %1057, %1059 : vector<2x64xf32>
    %1061 = vector.extract_strided_slice %1053 {offsets = [0, 128], sizes = [2, 64], strides = [1, 1]} : vector<2x192xf32> to vector<2x64xf32>
    %1062 = math.tanh %1060 : vector<2x64xf32>
    %1063 = arith.mulf %1061, %1062 : vector<2x64xf32>
    %1064 = vector.extract_strided_slice %1063 {offsets = [0, 0], sizes = [2, 32], strides = [1, 1]} : vector<2x64xf32> to vector<2x32xf32>
    %1065 = vector.extract_strided_slice %1063 {offsets = [0, 32], sizes = [2, 32], strides = [1, 1]} : vector<2x64xf32> to vector<2x32xf32>
    %c17_418 = arith.constant 17 : index
    %c0_419 = arith.constant 0 : index
    %c0_420 = arith.constant 0 : index
    %1066 = vector.load %arg7[%c17_418, %c0_419, %c0_420] : memref<21x2x64xf32, #tpu.memory_space<vmem>>, vector<1x2x32xf32>
    %1067 = vector.shape_cast %1066 : vector<1x2x32xf32> to vector<2x32xf32>
    %1068 = vector.shape_cast %1064 : vector<2x32xf32> to vector<1x2x32xf32>
    tpu.vector_store %arg7[%c17_418, %c0_419, %c0_420], %1068 {strides = array<i32>} : memref<21x2x64xf32, #tpu.memory_space<vmem>>, vector<1x2x32xf32>,
    %c3_421 = arith.constant 3 : index
    %c0_422 = arith.constant 0 : index
    %c32_423 = arith.constant 32 : index
    %1069 = vector.load %arg7[%c3_421, %c0_422, %c32_423] : memref<21x2x64xf32, #tpu.memory_space<vmem>>, vector<1x2x32xf32>
    %1070 = vector.shape_cast %1069 : vector<1x2x32xf32> to vector<2x32xf32>
    %1071 = vector.shape_cast %1065 : vector<2x32xf32> to vector<1x2x32xf32>
    tpu.vector_store %arg7[%c3_421, %c0_422, %c32_423], %1071 {strides = array<i32>} : memref<21x2x64xf32, #tpu.memory_space<vmem>>, vector<1x2x32xf32>,
    %c36_424 = arith.constant 36 : index
    %c0_425 = arith.constant 0 : index
    %1072 = vector.load %arg9[%c36_424, %c0_425] : memref<42x256xf32, #tpu.memory_space<vmem>>, vector<2x256xf32>
    %1073 = arith.truncf %1063 : vector<2x64xf32> to vector<2x64xbf16>
    %cst_426 = arith.constant dense<0.000000e+00> : vector<2x256xf32>
    %1074 = tpu.matmul %1073, %557, %cst_426 {dimension_numbers = #tpu.dot_dimension_numbers<[1], [0], [0], [1], [0, 0, 1, 1], [], []>} : vector<2x64xbf16>, vector<64x256xbf16>, vector<2x256xf32> -> vector<2x256xf32>
    %1075 = arith.addf %1072, %1074 : vector<2x256xf32>
    %1076 = vector.extract_strided_slice %1075 {offsets = [0, 0], sizes = [2, 192], strides = [1, 1]} : vector<2x256xf32> to vector<2x192xf32>
    %1077 = arith.negf %1076 : vector<2x192xf32>
    %1078 = math.exp %1077 : vector<2x192xf32>
    %cst_427 = arith.constant 1.000000e+00 : f32
    %1079 = vector.broadcast %cst_427 : f32 to vector<2x192xf32>
    %1080 = arith.addf %1079, %1078 : vector<2x192xf32>
    %1081 = arith.divf %1079, %1080 : vector<2x192xf32>
    %1082 = vector.extract_strided_slice %1075 {offsets = [0, 192], sizes = [2, 64], strides = [1, 1]} : vector<2x256xf32> to vector<2x64xf32>
    %1083 = math.tanh %1082 : vector<2x64xf32>
    %1084 = vector.extract_strided_slice %1081 {offsets = [0, 64], sizes = [2, 64], strides = [1, 1]} : vector<2x192xf32> to vector<2x64xf32>
    %1085 = arith.mulf %1084, %1060 : vector<2x64xf32>
    %1086 = vector.extract_strided_slice %1081 {offsets = [0, 0], sizes = [2, 64], strides = [1, 1]} : vector<2x192xf32> to vector<2x64xf32>
    %1087 = arith.mulf %1086, %1083 : vector<2x64xf32>
    %1088 = arith.addf %1085, %1087 : vector<2x64xf32>
    %1089 = vector.extract_strided_slice %1081 {offsets = [0, 128], sizes = [2, 64], strides = [1, 1]} : vector<2x192xf32> to vector<2x64xf32>
    %1090 = math.tanh %1088 : vector<2x64xf32>
    %1091 = arith.mulf %1089, %1090 : vector<2x64xf32>
    %1092 = vector.extract_strided_slice %1091 {offsets = [0, 0], sizes = [2, 32], strides = [1, 1]} : vector<2x64xf32> to vector<2x32xf32>
    %1093 = vector.extract_strided_slice %1091 {offsets = [0, 32], sizes = [2, 32], strides = [1, 1]} : vector<2x64xf32> to vector<2x32xf32>
    %c18_428 = arith.constant 18 : index
    %c0_429 = arith.constant 0 : index
    %c0_430 = arith.constant 0 : index
    %1094 = vector.load %arg7[%c18_428, %c0_429, %c0_430] : memref<21x2x64xf32, #tpu.memory_space<vmem>>, vector<1x2x32xf32>
    %1095 = vector.shape_cast %1094 : vector<1x2x32xf32> to vector<2x32xf32>
    %1096 = vector.shape_cast %1092 : vector<2x32xf32> to vector<1x2x32xf32>
    tpu.vector_store %arg7[%c18_428, %c0_429, %c0_430], %1096 {strides = array<i32>} : memref<21x2x64xf32, #tpu.memory_space<vmem>>, vector<1x2x32xf32>,
    %c2_431 = arith.constant 2 : index
    %c0_432 = arith.constant 0 : index
    %c32_433 = arith.constant 32 : index
    %1097 = vector.load %arg7[%c2_431, %c0_432, %c32_433] : memref<21x2x64xf32, #tpu.memory_space<vmem>>, vector<1x2x32xf32>
    %1098 = vector.shape_cast %1097 : vector<1x2x32xf32> to vector<2x32xf32>
    %1099 = vector.shape_cast %1093 : vector<2x32xf32> to vector<1x2x32xf32>
    tpu.vector_store %arg7[%c2_431, %c0_432, %c32_433], %1099 {strides = array<i32>} : memref<21x2x64xf32, #tpu.memory_space<vmem>>, vector<1x2x32xf32>,
    %c38_434 = arith.constant 38 : index
    %c0_435 = arith.constant 0 : index
    %1100 = vector.load %arg9[%c38_434, %c0_435] : memref<42x256xf32, #tpu.memory_space<vmem>>, vector<2x256xf32>
    %1101 = arith.truncf %1091 : vector<2x64xf32> to vector<2x64xbf16>
    %cst_436 = arith.constant dense<0.000000e+00> : vector<2x256xf32>
    %1102 = tpu.matmul %1101, %557, %cst_436 {dimension_numbers = #tpu.dot_dimension_numbers<[1], [0], [0], [1], [0, 0, 1, 1], [], []>} : vector<2x64xbf16>, vector<64x256xbf16>, vector<2x256xf32> -> vector<2x256xf32>
    %1103 = arith.addf %1100, %1102 : vector<2x256xf32>
    %1104 = vector.extract_strided_slice %1103 {offsets = [0, 0], sizes = [2, 192], strides = [1, 1]} : vector<2x256xf32> to vector<2x192xf32>
    %1105 = arith.negf %1104 : vector<2x192xf32>
    %1106 = math.exp %1105 : vector<2x192xf32>
    %cst_437 = arith.constant 1.000000e+00 : f32
    %1107 = vector.broadcast %cst_437 : f32 to vector<2x192xf32>
    %1108 = arith.addf %1107, %1106 : vector<2x192xf32>
    %1109 = arith.divf %1107, %1108 : vector<2x192xf32>
    %1110 = vector.extract_strided_slice %1103 {offsets = [0, 192], sizes = [2, 64], strides = [1, 1]} : vector<2x256xf32> to vector<2x64xf32>
    %1111 = math.tanh %1110 : vector<2x64xf32>
    %1112 = vector.extract_strided_slice %1109 {offsets = [0, 64], sizes = [2, 64], strides = [1, 1]} : vector<2x192xf32> to vector<2x64xf32>
    %1113 = arith.mulf %1112, %1088 : vector<2x64xf32>
    %1114 = vector.extract_strided_slice %1109 {offsets = [0, 0], sizes = [2, 64], strides = [1, 1]} : vector<2x192xf32> to vector<2x64xf32>
    %1115 = arith.mulf %1114, %1111 : vector<2x64xf32>
    %1116 = arith.addf %1113, %1115 : vector<2x64xf32>
    %1117 = vector.extract_strided_slice %1109 {offsets = [0, 128], sizes = [2, 64], strides = [1, 1]} : vector<2x192xf32> to vector<2x64xf32>
    %1118 = math.tanh %1116 : vector<2x64xf32>
    %1119 = arith.mulf %1117, %1118 : vector<2x64xf32>
    %1120 = vector.extract_strided_slice %1119 {offsets = [0, 0], sizes = [2, 32], strides = [1, 1]} : vector<2x64xf32> to vector<2x32xf32>
    %1121 = vector.extract_strided_slice %1119 {offsets = [0, 32], sizes = [2, 32], strides = [1, 1]} : vector<2x64xf32> to vector<2x32xf32>
    %c19_438 = arith.constant 19 : index
    %c0_439 = arith.constant 0 : index
    %c0_440 = arith.constant 0 : index
    %1122 = vector.load %arg7[%c19_438, %c0_439, %c0_440] : memref<21x2x64xf32, #tpu.memory_space<vmem>>, vector<1x2x32xf32>
    %1123 = vector.shape_cast %1122 : vector<1x2x32xf32> to vector<2x32xf32>
    %1124 = vector.shape_cast %1120 : vector<2x32xf32> to vector<1x2x32xf32>
    tpu.vector_store %arg7[%c19_438, %c0_439, %c0_440], %1124 {strides = array<i32>} : memref<21x2x64xf32, #tpu.memory_space<vmem>>, vector<1x2x32xf32>,
    %c1_441 = arith.constant 1 : index
    %c0_442 = arith.constant 0 : index
    %c32_443 = arith.constant 32 : index
    %1125 = vector.load %arg7[%c1_441, %c0_442, %c32_443] : memref<21x2x64xf32, #tpu.memory_space<vmem>>, vector<1x2x32xf32>
    %1126 = vector.shape_cast %1125 : vector<1x2x32xf32> to vector<2x32xf32>
    %1127 = vector.shape_cast %1121 : vector<2x32xf32> to vector<1x2x32xf32>
    tpu.vector_store %arg7[%c1_441, %c0_442, %c32_443], %1127 {strides = array<i32>} : memref<21x2x64xf32, #tpu.memory_space<vmem>>, vector<1x2x32xf32>,
    %c40_444 = arith.constant 40 : index
    %c0_445 = arith.constant 0 : index
    %1128 = vector.load %arg9[%c40_444, %c0_445] : memref<42x256xf32, #tpu.memory_space<vmem>>, vector<2x256xf32>
    %1129 = arith.truncf %1119 : vector<2x64xf32> to vector<2x64xbf16>
    %cst_446 = arith.constant dense<0.000000e+00> : vector<2x256xf32>
    %1130 = tpu.matmul %1129, %557, %cst_446 {dimension_numbers = #tpu.dot_dimension_numbers<[1], [0], [0], [1], [0, 0, 1, 1], [], []>} : vector<2x64xbf16>, vector<64x256xbf16>, vector<2x256xf32> -> vector<2x256xf32>
    %1131 = arith.addf %1128, %1130 : vector<2x256xf32>
    %1132 = vector.extract_strided_slice %1131 {offsets = [0, 0], sizes = [2, 192], strides = [1, 1]} : vector<2x256xf32> to vector<2x192xf32>
    %1133 = arith.negf %1132 : vector<2x192xf32>
    %1134 = math.exp %1133 : vector<2x192xf32>
    %cst_447 = arith.constant 1.000000e+00 : f32
    %1135 = vector.broadcast %cst_447 : f32 to vector<2x192xf32>
    %1136 = arith.addf %1135, %1134 : vector<2x192xf32>
    %1137 = arith.divf %1135, %1136 : vector<2x192xf32>
    %1138 = vector.extract_strided_slice %1131 {offsets = [0, 192], sizes = [2, 64], strides = [1, 1]} : vector<2x256xf32> to vector<2x64xf32>
    %1139 = math.tanh %1138 : vector<2x64xf32>
    %1140 = vector.extract_strided_slice %1137 {offsets = [0, 64], sizes = [2, 64], strides = [1, 1]} : vector<2x192xf32> to vector<2x64xf32>
    %1141 = arith.mulf %1140, %1116 : vector<2x64xf32>
    %1142 = vector.extract_strided_slice %1137 {offsets = [0, 0], sizes = [2, 64], strides = [1, 1]} : vector<2x192xf32> to vector<2x64xf32>
    %1143 = arith.mulf %1142, %1139 : vector<2x64xf32>
    %1144 = arith.addf %1141, %1143 : vector<2x64xf32>
    %1145 = vector.extract_strided_slice %1137 {offsets = [0, 128], sizes = [2, 64], strides = [1, 1]} : vector<2x192xf32> to vector<2x64xf32>
    %1146 = math.tanh %1144 : vector<2x64xf32>
    %1147 = arith.mulf %1145, %1146 : vector<2x64xf32>
    %1148 = vector.extract_strided_slice %1147 {offsets = [0, 0], sizes = [2, 32], strides = [1, 1]} : vector<2x64xf32> to vector<2x32xf32>
    %1149 = vector.extract_strided_slice %1147 {offsets = [0, 32], sizes = [2, 32], strides = [1, 1]} : vector<2x64xf32> to vector<2x32xf32>
    %c20_448 = arith.constant 20 : index
    %c0_449 = arith.constant 0 : index
    %c0_450 = arith.constant 0 : index
    %1150 = vector.load %arg7[%c20_448, %c0_449, %c0_450] : memref<21x2x64xf32, #tpu.memory_space<vmem>>, vector<1x2x32xf32>
    %1151 = vector.shape_cast %1150 : vector<1x2x32xf32> to vector<2x32xf32>
    %1152 = vector.shape_cast %1148 : vector<2x32xf32> to vector<1x2x32xf32>
    tpu.vector_store %arg7[%c20_448, %c0_449, %c0_450], %1152 {strides = array<i32>} : memref<21x2x64xf32, #tpu.memory_space<vmem>>, vector<1x2x32xf32>,
    %c0_451 = arith.constant 0 : index
    %c0_452 = arith.constant 0 : index
    %c32_453 = arith.constant 32 : index
    %1153 = vector.load %arg7[%c0_451, %c0_452, %c32_453] : memref<21x2x64xf32, #tpu.memory_space<vmem>>, vector<1x2x32xf32>
    %1154 = vector.shape_cast %1153 : vector<1x2x32xf32> to vector<2x32xf32>
    %1155 = vector.shape_cast %1149 : vector<2x32xf32> to vector<1x2x32xf32>
    tpu.vector_store %arg7[%c0_451, %c0_452, %c32_453], %1155 {strides = array<i32>} : memref<21x2x64xf32, #tpu.memory_space<vmem>>, vector<1x2x32xf32>,
    return
  }
}

</mosaic_0001>

<bundles_post_ra>
// kernel: lstmfc_forward.1
= control target key start
LH: loop header
LB: loop body
LE: loop exit
PB: predicated region body
PF: predicated region fallthrough
CT: control target
= control target key end

     0   :  { %12 = vsyncpa [#allocation6], 0  ;;  %s5176_s24 = smov [#allocation5]   ;;  %s6450_s0 = inlined_call_operand.vmem [shape: f32[42,8], index: 0, kind: input, shape index: {}]   ;;  %s6451_s1 = inlined_call_operand.vmem [shape: bf16[8,256], index: 1, kind: input, shape index: {}]   ;;  %s6452_s2 = inlined_call_operand.vmem [shape: bf16[64,256], index: 2, kind: input, shape index: {}]   ;;  %s6453_s3 = inlined_call_operand.vmem [shape: f32[1,256], index: 3, kind: input, shape index: {}]   ;;  %s6454_s4 = inlined_call_operand.vmem [shape: bf16[128,256], index: 4, kind: input, shape index: {}]   ;;  %s6455_s5 = inlined_call_operand.hbm [shape: bf16[64,256], index: 5, kind: input, shape index: {}]   ;;  %s6456_s6 = inlined_call_operand.vmem [shape: f32[1,256], index: 6, kind: input, shape index: {}]   ;;  %s6457_s7 = inlined_call_operand.vmem [shape: f32[21,2,64], index: 7, kind: output, shape index: {}]  }
   0x1   :  { %s28_s25 = sshll.u32 %s5176_s24, 4  ;;  %s5152_s28 = scalar_lea.hbm %s6455_s5, 1024  ;;  %s29_s25 = int_to_ptr.vmem [resolvable:$true] %s28_s25 }
   0x2   :  { %p5153_p0 = scmp.ne.s32.totalorder %s6455_s5, %s5152_s28  ;;  %p5156_p1 = scmp.lt.u32.totalorder %s5152_s28, %s6455_s5 }
   0x4   :  { %p5158_p2 = pnand %p5156_p1, %p5153_p0 }
   0x6   :  { %5161 = shalt.err (!%p5158_p2)
}
   0x7   :  { %s5162_s10 = scalar_lea.vmem %s29_s25, 1024  ;;  %p5167_p4 = scmp.lt.s32.totalorder %s29_s25, %s29_s25 }
   0x8   :  { %p5163_p3 = scmp.ne.s32.totalorder %s29_s25, %s5162_s10  ;;  %p5168_p5 = scmp.lt.s32.totalorder %s5162_s10, %s5162_s10 }
   0xa   :  { %p5169_p6 = por %p5168_p5, %p5167_p4 }
   0xc   :  { %p5170_p7 = pnand %p5169_p6, %p5163_p3 }
   0xe   :  { %5173 = shalt.err (!%p5170_p7)
}
   0xf   :  { %s5177_s11 = smov 128   ;;  %s5178_s12 = smov 8  }
  0x10   :  { %34 = dma.hbm_to_vmem [thread:$0]  %s6455_s5, 1024, %s29_s25, [#allocation6], %s5177_s11, %s5177_s11, %s5178_s12  }
  0x11   :  { %5174 = dma.done.wait [#allocation6], 1024  }
  0x12   :  { %5175 = vsyncadd [#allocation6], 4294966272  ;;  %v5179_v0 = vmov 0   ;;  %v58_v1 = vld [vmem:[%s6451_s1] sm:$0xff]  ;;  %vm86_vm0 = vcmask 1043456   ;;  %v50_v7 = vld [vmem:[%s6450_s0 + $0x8] sm:$0xff]  ;;  %v61_v16 = vlaneseq }
  0x13   :  { %125 = vmatprep.mubr.bf16.mxu0 %v5179_v0  ;;  %246 = vmatprep.mubr.bf16.mxu1 %v5179_v0  ;;  %v4374_v2 = vcombine.high %v58_v1, %v58_v1  ;;  %v5241_v3 = vld [vmem:[%s6452_s2 + $0x4] ss:$8 sps:$4 sm:$0xff]   ;;  %v4373_v4 = vcombine.low %v58_v1, %v58_v1  ;;  %v5246_v5 = vld [vmem:[%s6452_s2] ss:$8 sps:$4 sm:$0xff]   ;;  %v5258_v10 = vld [vmem:[%s6452_s2 + $0x14] ss:$8 sps:$4 sm:$0xff]  }
  0x14   :  { %v49_v6 = vld [vmem:[%s6450_s0] sm:$0xff]  ;;  %214 = vmatprep.subr.bf16.mxu1 %v5241_v3  ;;  %vm76_vm1 = vcmask 64512   ;;  %v5264_v11 = vld [vmem:[%s6452_s2 + $0x10] ss:$8 sps:$4 sm:$0xff]   ;;  %v5282_v14 = vld [vmem:[%s6452_s2 + $0x34] ss:$8 sps:$4 sm:$0xff]  }
  0x15   :  { %4375 = vmatprep.subr.msk.bf16.mxu0 %vm86_vm0, %v4374_v2  ;;  %v88_v8 = vsel %vm86_vm0, %v4373_v4, 0  ;;  %v55_v9 = vpack.c.bf16 %v50_v7, %v49_v6  ;;  %215 = vmatpush1.bf16.msra.mxu1 %v5246_v5  ;;  %v5270_v12 = vld [vmem:[%s6452_s2 + $0x24] ss:$8 sps:$4 sm:$0xff]   ;;  %v5276_v13 = vld [vmem:[%s6452_s2 + $0x20] ss:$8 sps:$4 sm:$0xff]   ;;  %v5314_v17 = vshrl.u32 %v61_v16, 7 }
  0x16   :  { %94 = vmatpush1.bf16.msra.mxu0 %v88_v8  ;;  %216 = vmatprep.subr.bf16.mxu1 %v5258_v10  ;;  %v5291_v15 = vld [vmem:[%s6452_s2 + $0x30] ss:$8 sps:$4 sm:$0xff]   ;;  %v59_v19 = vld [vmem:[%s6453_s3] sm:$0x3]  ;;  %s5180_s3 = smov 64   ;;  %vm287_vm2 = vcmask 254976  }
  0x17   :  { %305 = vmatprep.subr.bf16.mxu0 %v5241_v3  ;;  %v63_v18 = vsub.s32 0, %v5314_v17  ;;  %v67_v20 = vsub.s32 1, %v5314_v17  ;;  %v51_v46 = vld [vmem:[%s6450_s0 + $0x10] sm:$0xff]  ;;  %v52_v47 = vld [vmem:[%s6450_s0 + $0x18] sm:$0xff]  ;;  %v53_v49 = vld [vmem:[%s6450_s0 + $0x20] sm:$0xff]  ;;  %vm289_vm3 = vcmask 517376  }
  0x18   :  { %v56_v48 = vpack.c.bf16 %v52_v47, %v51_v46  ;;  %v54_v50 = vld [vmem:[%s6450_s0 + $0x28] sm:$0x3]  ;;  %vm210_vm4 = vcmask 523264   ;;  %vm387_vm5 = vcmask 257026   ;;  %vm389_vm6 = vcmask 519426  }
  0x19   :  { %4376 = vmatmul.mubr.msk.bf16.vlgmr.msra.gmra.mrb[0].mxu0 %vm76_vm1, %v55_v9  ;;  %217 = vmatpush1.bf16.msra.mxu1 %v5264_v11  ;;  %v5323_v21 = vrot.slane %v59_v19, %v63_v18  ;;  %v5327_v22 = vrot.slane %v59_v19, %v67_v20  ;;  %v57_v51 = vpack.c.bf16 %v54_v50, %v53_v49  ;;  %vm489_vm7 = vcmask 259076  }
  0x1a   :  { %306 = vmatpush1.bf16.msra.mxu0 %v5246_v5  ;;  %218 = vmatprep.subr.bf16.mxu1 %v5270_v12  ;;  %vm6458_vm8 = vcmask 521476   ;;  %vm591_vm9 = vcmask 261126   ;;  %vm593_vm10 = vcmask 523526   ;;  %vm295_vm11 = vcmask 779776  }
  0x1b   :  { %135 = vmatprep.mubr.bf16.mxu0 %v5179_v0  ;;  %307 = vmatprep.subr.bf16.mxu0 %v5258_v10  ;;  %vm297_vm12 = vcmask 1042176   ;;  %vm497_vm13 = vcmask 783876   ;;  %vm499_vm14 = vcmask 1046276   ;;  %vm395_vm15 = vcmask 781826  }
  0x1c   :  { %vm397_vm0 = vcmask 1044226  }
  0x1d   :  { %219 = vmatpush1.bf16.msra.mxu1 %v5276_v13 }
  0x1e   :  { %308 = vmatpush1.bf16.msra.mxu0 %v5264_v11  ;;  %220 = vmatprep.subr.bf16.mxu1 %v5282_v14 }
  0x1f   :  { %309 = vmatprep.subr.bf16.mxu0 %v5270_v12 }
  0x21   :  { %221 = vmatpush1.bf16.msra.mxu1 %v5291_v15  ;;  %4377 = vmatmul.mubr.msk.bf16.gmra.mrb[4].mxu0 %vm76_vm1, %v56_v48 }
  0x22   :  { %310 = vmatpush1.bf16.msra.mxu0 %v5276_v13  ;;  %407 = vmatprep.subr.bf16.mxu1 %v5241_v3 }
  0x23   :  { %311 = vmatprep.subr.bf16.mxu0 %v5282_v14  ;;  %145 = vmatprep.mubr.bf16.mxu0 %v5179_v0 }
  0x24   :  { %247 = vmatmul.mubr.bf16.vlgmr.msra.gmra.mrb[0].mxu1 %v5179_v0 }
  0x25   :  { %408 = vmatpush1.bf16.msra.mxu1 %v5246_v5  ;;  %439 = vmatprep.mubr.bf16.mxu1 %v5179_v0 }
  0x26   :  { %312 = vmatpush1.bf16.msra.mxu0 %v5291_v15  ;;  %409 = vmatprep.subr.bf16.mxu1 %v5258_v10 }
  0x27   :  { %509 = vmatprep.subr.bf16.mxu0 %v5241_v3 }
  0x29   :  { %410 = vmatpush1.bf16.msra.mxu1 %v5264_v11  ;;  %4378 = vmatmul.mubr.msk.bf16.gmra.mrb[8].mxu0 %vm76_vm1, %v57_v51  ;;  %vm599_vm1 = vcmask 785926  }
  0x2a   :  { %411 = vmatprep.subr.bf16.mxu1 %v5270_v12  ;;  %337 = vmatprep.mubr.bf16.mxu0 %v5179_v0 }
  0x2d   :  { %412 = vmatpush1.bf16.msra.mxu1 %v5276_v13 }
  0x2e   :  { %413 = vmatprep.subr.bf16.mxu1 %v5282_v14 }
  0x31   :  { %414 = vmatpush1.bf16.msra.mxu1 %v5291_v15 }
  0x32   :  { %611 = vmatprep.subr.bf16.mxu1 %v5241_v3 }
  0xec   :  { %v127_v23 = vpop.f32.mrb[0].mxu0 }
  0xed   :  { %v128_v24 = vadd.f32 %v127_v23, %v5323_v21  ;;  %v129_v25 = vpop.f32.mrb[1].mxu0 }
  0xee   :  { %v130_v26 = vadd.f32 %v129_v25, %v5327_v22  ;;  %v131_v27 = vpop.f32.mrb[2].mxu0 }
  0xef   :  { %156 = vst [vmem:[#allocation2] sm:$0xff] %v128_v24  ;;  %v132_v28 = vadd.f32 %v131_v27, %v5323_v21  ;;  %v133_v29 = vpop.f32.mrb[3].mxu0 }
  0xf0   :  { %157 = vst [vmem:[#allocation2 + $0x8] sm:$0xff] %v130_v26  ;;  %v134_v30 = vadd.f32 %v133_v29, %v5327_v22 }
  0xf1   :  { %158 = vst [vmem:[#allocation2 + $0x10] sm:$0xff] %v132_v28 }
  0xf2   :  { %159 = vst [vmem:[#allocation2 + $0x18] sm:$0xff] %v134_v30 }
  0xf4   :  { %v137_v57 = vpop.f32.mrb[4].mxu0 }
  0xf5   :  { %v138_v58 = vadd.f32 %v137_v57, %v5323_v21  ;;  %v139_v59 = vpop.f32.mrb[5].mxu0 }
  0xf6   :  { %v168_v38 = vld [vmem:[#allocation2] sm:$0x3]  ;;  %v140_v60 = vadd.f32 %v139_v59, %v5327_v22  ;;  %v141_v61 = vpop.f32.mrb[6].mxu0 }
  0xf7   :  { %v169_v31 = vld [vmem:[#allocation2 + $0x8] sm:$0x3]  ;;  %v248_v32 = vpop.f32.mrb[0].mxu1  ;;  %160 = vst [vmem:[#allocation2 + $0x20] sm:$0xff] %v138_v58  ;;  %v142_v62 = vadd.f32 %v141_v61, %v5323_v21  ;;  %v143_v63 = vpop.f32.mrb[7].mxu0 }
  0xf8   :  { %v250_v33 = vpop.f32.mrb[1].mxu1  ;;  %v255_v39 = vadd.f32 %v248_v32, %v168_v38  ;;  %161 = vst [vmem:[#allocation2 + $0x28] sm:$0xff] %v140_v60  ;;  %v144_v1 = vadd.f32 %v143_v63, %v5327_v22  ;;  %v400_v61 = vld [vmem:[#allocation2 + $0x8] sm:$0x30] }
  0xf9   :  { %v256_v34 = vadd.f32 %v250_v33, %v169_v31  ;;  %v252_v35 = vpop.f32.mrb[2].mxu1  ;;  %162 = vst [vmem:[#allocation2 + $0x30] sm:$0xff] %v142_v62  ;;  %v300_v31 = vld [vmem:[#allocation2 + $0x8] sm:$0xc] }
  0xfa   :  { %v253_v36 = vpop.f32.mrb[3].mxu1  ;;  %v4387_v40 = vmul.f32 -1.442695, %v255_v39  ;;  %163 = vst [vmem:[#allocation2 + $0x38] sm:$0xff] %v144_v1 }
  0xfb   :  { %4630 = vtanh.f32 %v256_v34  ;;  %v4388_v56 = vmul.f32 -1.442695, %v256_v34  ;;  %v299_v36 = vld [vmem:[#allocation2] sm:$0xc] }
  0xfc   :  { %4632 = vpow2.f32 %v4387_v40  ;;  %v147_v2 = vpop.f32.mrb[8].mxu0 }
  0xfd   :  { %v148_v4 = vadd.f32 %v147_v2, %v5323_v21  ;;  %v149_v6 = vpop.f32.mrb[9].mxu0 }
  0xfe   :  { %v150_v7 = vadd.f32 %v149_v6, %v5327_v22  ;;  %v151_v8 = vpop.f32.mrb[10].mxu0 }
  0xff   :  { %164 = vst [vmem:[#allocation2 + $0x40] sm:$0xff] %v148_v4  ;;  %v152_v16 = vadd.f32 %v151_v8, %v5323_v21  ;;  %v153_v19 = vpop.f32.mrb[11].mxu0  ;;  %v399_v4 = vld [vmem:[#allocation2] sm:$0x30] }
 0x100   :  { %165 = vst [vmem:[#allocation2 + $0x48] sm:$0xff] %v150_v7  ;;  %v154_v23 = vadd.f32 %v153_v19, %v5327_v22 }
 0x101   :  { %166 = vst [vmem:[#allocation2 + $0x50] sm:$0x3] %v152_v16 }
 0x102   :  { %167 = vst [vmem:[#allocation2 + $0x58] sm:$0x3] %v154_v23 }
 0x105   :  { %v4631_v37 = vpop.eup %4630 }
 0x106   :  { %272 = vrot.lane.b32.xlu0 %v4631_v37, %s5180_s3  ;;  %v4633_v41 = vpop.eup %4632 }
 0x107   :  { %v263_v42 = vadd.f32 1.0, %v4633_v41 }
 0x109   :  { %4634 = vrcp.f32 %v263_v42 }
 0x113   :  { %v4635_v43 = vpop.eup %4634 }
 0x114   :  { %v270_v52 = vmul.f32 0.0, %v4635_v43 }
 0x178   :  { %v273_v44 = vpop.permute.xlu0 %272 }
 0x179   :  { %v275_v45 = vmul.f32 %v4635_v43, %v273_v44 }
 0x17b   :  { %277 = vrot.lane.b32.xlu0 %v275_v45, %s5180_s3 }
 0x1ed   :  { %v278_v53 = vpop.permute.xlu0 %277 }
 0x1ee   :  { %v5351_v54 = vadd.f32 %v278_v53, %v270_v52 }
 0x1f0   :  { %4636 = vtanh.f32 %v5351_v54  ;;  %v368_v44 = vrot.slane %v5351_v54, 6 }
 0x1f1   :  { %4638 = vpow2.f32 %v4388_v56 }
 0x1fa   :  { %v4637_v55 = vpop.eup %4636 }
 0x1fb   :  { %283 = vrot.lane.b32.xlu1 %v4637_v55, %s5180_s3  ;;  %v4639_v9 = vpop.eup %4638 }
 0x1fc   :  { %v264_v24 = vadd.f32 1.0, %v4639_v9 }
 0x1fe   :  { %4640 = vrcp.f32 %v264_v24 }
 0x208   :  { %v4641_v25 = vpop.eup %4640 }
 0x26d   :  { %v284_v26 = vpop.permute.xlu1 %283 }
 0x26e   :  { %v5363_v27 = vmul.f32 %v4641_v25, %v284_v26 }
 0x270   :  { %v301_v28 = vpack.c.bf16 %v5363_v27, %v5363_v27  ;;  %288 = vst.msk [vmem:[#allocation4] sm:$0x3] %vm287_vm2, %v5363_v27 }
 0x271   :  { %290 = vst.msk [vmem:[#allocation4 + $0x28] sm:$0x3] %vm289_vm3, %v5363_v27 }
 0x272   :  { %4389 = vmatmul.mubr.msk.bf16.vlgmr.msra.gmra.mrb[12].mxu0 %vm210_vm4, %v301_v28 }
 0x273   :  { %510 = vmatpush1.bf16.msra.mxu0 %v5246_v5  ;;  %541 = vmatprep.mubr.bf16.mxu0 %v5179_v0 }
 0x274   :  { %511 = vmatprep.subr.bf16.mxu0 %v5258_v10 }
 0x277   :  { %512 = vmatpush1.bf16.msra.mxu0 %v5264_v11 }
 0x278   :  { %513 = vmatprep.subr.bf16.mxu0 %v5270_v12 }
 0x27b   :  { %514 = vmatpush1.bf16.msra.mxu0 %v5276_v13 }
 0x27c   :  { %515 = vmatprep.subr.bf16.mxu0 %v5282_v14 }
 0x27f   :  { %516 = vmatpush1.bf16.msra.mxu0 %v5291_v15 }
 0x280   :  { %701 = vmatprep.subr.bf16.mxu0 %v5241_v3 }
 0x345   :  { %v339_v21 = vpop.f32.mrb[12].mxu0 }
 0x346   :  { %v341_v22 = vpop.f32.mrb[13].mxu0  ;;  %v348_v35 = vrot.slane %v339_v21, 6 }
 0x347   :  { %v349_v29 = vrot.slane %v341_v22, 6  ;;  %v343_v30 = vpop.f32.mrb[14].mxu0 }
 0x348   :  { %v344_v32 = vpop.f32.mrb[15].mxu0  ;;  %v352_v37 = vadd.f32 %v348_v35, %v299_v36 }
 0x349   :  { %v353_v33 = vadd.f32 %v349_v29, %v300_v31 }
 0x34a   :  { %v4390_v38 = vmul.f32 -1.442695, %v352_v37 }
 0x34b   :  { %4642 = vtanh.f32 %v353_v33  ;;  %v4391_v49 = vmul.f32 -1.442695, %v353_v33 }
 0x34c   :  { %4644 = vpow2.f32 %v4390_v38 }
 0x355   :  { %v4643_v34 = vpop.eup %4642 }
 0x356   :  { %372 = vrot.lane.b32.xlu1 %v4643_v34, %s5180_s3  ;;  %v4645_v39 = vpop.eup %4644 }
 0x357   :  { %v360_v40 = vadd.f32 1.0, %v4645_v39 }
 0x359   :  { %4646 = vrcp.f32 %v360_v40  ;;  %v502_v40 = vld [vmem:[#allocation2 + $0x8] sm:$0xc0] }
 0x363   :  { %v4647_v41 = vpop.eup %4646 }
 0x364   :  { %v370_v45 = vmul.f32 %v4647_v41, %v368_v44 }
 0x3c8   :  { %v373_v42 = vpop.permute.xlu1 %372 }
 0x3c9   :  { %v375_v43 = vmul.f32 %v4647_v41, %v373_v42 }
 0x3cb   :  { %377 = vrot.lane.b32.xlu0 %v375_v43, %s5180_s3 }
 0x43d   :  { %v378_v46 = vpop.permute.xlu0 %377 }
 0x43e   :  { %v380_v47 = vadd.f32 %v378_v46, %v370_v45  ;;  %v501_v45 = vld [vmem:[#allocation2] sm:$0xc0] }
 0x440   :  { %4648 = vtanh.f32 %v380_v47  ;;  %v470_v24 = vrot.slane %v380_v47, 6 }
 0x441   :  { %4650 = vpow2.f32 %v4391_v49 }
 0x44a   :  { %v4649_v48 = vpop.eup %4648 }
 0x44b   :  { %383 = vrot.lane.b32.xlu1 %v4649_v48, %s5180_s3  ;;  %v4651_v50 = vpop.eup %4650 }
 0x44c   :  { %v361_v51 = vadd.f32 1.0, %v4651_v50 }
 0x44e   :  { %4652 = vrcp.f32 %v361_v51 }
 0x458   :  { %v4653_v52 = vpop.eup %4652 }
 0x4bd   :  { %v384_v53 = vpop.permute.xlu1 %383 }
 0x4be   :  { %v5385_v55 = vmul.f32 %v4653_v52, %v384_v53 }
 0x4c0   :  { %v401_v54 = vpack.c.bf16 %v5385_v55, %v5385_v55  ;;  %388 = vst.msk [vmem:[#allocation4] sm:$0xc] %vm387_vm5, %v5385_v55 }
 0x4c1   :  { %390 = vst.msk [vmem:[#allocation4 + $0x24] sm:$0xc] %vm389_vm6, %v5385_v55 }
 0x4c2   :  { %v403_v56 = vrot.slane %v401_v54, 1 }
 0x4c4   :  { %4392 = vmatmul.mubr.msk.bf16.vlgmr.msra.gmra.mrb[4].mxu1 %vm210_vm4, %v403_v56 }
 0x4c5   :  { %612 = vmatpush1.bf16.msra.mxu1 %v5246_v5  ;;  %643 = vmatprep.mubr.bf16.mxu1 %v5179_v0 }
 0x4c6   :  { %613 = vmatprep.subr.bf16.mxu1 %v5258_v10 }
 0x4c9   :  { %614 = vmatpush1.bf16.msra.mxu1 %v5264_v11 }
 0x4ca   :  { %615 = vmatprep.subr.bf16.mxu1 %v5270_v12 }
 0x4cd   :  { %616 = vmatpush1.bf16.msra.mxu1 %v5276_v13 }
 0x4ce   :  { %617 = vmatprep.subr.bf16.mxu1 %v5282_v14 }
 0x4d1   :  { %618 = vmatpush1.bf16.msra.mxu1 %v5291_v15 }
 0x4d2   :  { %799 = vmatprep.subr.bf16.mxu1 %v5241_v3 }
 0x597   :  { %v441_v57 = vpop.f32.mrb[4].mxu1 }
 0x598   :  { %v443_v58 = vpop.f32.mrb[5].mxu1  ;;  %v450_v2 = vrot.slane %v441_v57, 4 }
 0x599   :  { %v451_v59 = vrot.slane %v443_v58, 4  ;;  %v445_v60 = vpop.f32.mrb[6].mxu1 }
 0x59a   :  { %v446_v62 = vpop.f32.mrb[7].mxu1  ;;  %v454_v6 = vadd.f32 %v450_v2, %v399_v4 }
 0x59b   :  { %v455_v63 = vadd.f32 %v451_v59, %v400_v61 }
 0x59c   :  { %v4393_v7 = vmul.f32 -1.442695, %v454_v6 }
 0x59d   :  { %4654 = vtanh.f32 %v455_v63  ;;  %v4394_v22 = vmul.f32 -1.442695, %v455_v63 }
 0x59e   :  { %4656 = vpow2.f32 %v4393_v7  ;;  %v604_v7 = vld [vmem:[#allocation2 + $0x18] sm:$0x3] }
 0x5a7   :  { %v4655_v1 = vpop.eup %4654 }
 0x5a8   :  { %474 = vrot.lane.b32.xlu0 %v4655_v1, %s5180_s3  ;;  %v4657_v8 = vpop.eup %4656 }
 0x5a9   :  { %v462_v9 = vadd.f32 1.0, %v4657_v8 }
 0x5ab   :  { %4658 = vrcp.f32 %v462_v9 }
 0x5b5   :  { %v4659_v16 = vpop.eup %4658 }
 0x5b6   :  { %v472_v25 = vmul.f32 %v4659_v16, %v470_v24  ;;  %v603_v24 = vld [vmem:[#allocation2 + $0x10] sm:$0x3] }
 0x61a   :  { %v475_v19 = vpop.permute.xlu0 %474 }
 0x61b   :  { %v477_v23 = vmul.f32 %v4659_v16, %v475_v19 }
 0x61d   :  { %479 = vrot.lane.b32.xlu1 %v477_v23, %s5180_s3 }
 0x68f   :  { %v480_v26 = vpop.permute.xlu1 %479 }
 0x690   :  { %v482_v28 = vadd.f32 %v480_v26, %v472_v25 }
 0x692   :  { %4660 = vtanh.f32 %v482_v28  ;;  %v572_v53 = vrot.slane %v482_v28, 6 }
 0x693   :  { %4662 = vpow2.f32 %v4394_v22 }
 0x69c   :  { %v4661_v21 = vpop.eup %4660 }
 0x69d   :  { %485 = vrot.lane.b32.xlu0 %v4661_v21, %s5180_s3  ;;  %v4663_v29 = vpop.eup %4662 }
 0x69e   :  { %v463_v30 = vadd.f32 1.0, %v4663_v29 }
 0x6a0   :  { %4664 = vrcp.f32 %v463_v30 }
 0x6aa   :  { %v4665_v31 = vpop.eup %4664 }
 0x70f   :  { %v486_v32 = vpop.permute.xlu0 %485 }
 0x710   :  { %v5406_v33 = vmul.f32 %v4665_v31, %v486_v32 }
 0x712   :  { %v503_v34 = vpack.c.bf16 %v5406_v33, %v5406_v33  ;;  %490 = vst.msk [vmem:[#allocation4] sm:$0x30] %vm489_vm7, %v5406_v33 }
 0x713   :  { %492 = vst.msk [vmem:[#allocation4 + $0x20] sm:$0x30] %vm6458_vm8, %v5406_v33 }
 0x714   :  { %v505_v35 = vrot.slane %v503_v34, 2 }
 0x716   :  { %4395 = vmatmul.mubr.msk.bf16.vlgmr.msra.gmra.mrb[16].mxu0 %vm210_vm4, %v505_v35 }
 0x717   :  { %702 = vmatpush1.bf16.msra.mxu0 %v5246_v5  ;;  %733 = vmatprep.mubr.bf16.mxu0 %v5179_v0 }
 0x718   :  { %703 = vmatprep.subr.bf16.mxu0 %v5258_v10 }
 0x71b   :  { %704 = vmatpush1.bf16.msra.mxu0 %v5264_v11 }
 0x71c   :  { %705 = vmatprep.subr.bf16.mxu0 %v5270_v12 }
 0x71f   :  { %706 = vmatpush1.bf16.msra.mxu0 %v5276_v13 }
 0x720   :  { %707 = vmatprep.subr.bf16.mxu0 %v5282_v14 }
 0x723   :  { %708 = vmatpush1.bf16.msra.mxu0 %v5291_v15 }
 0x724   :  { %897 = vmatprep.subr.bf16.mxu0 %v5241_v3 }
 0x7e9   :  { %v543_v36 = vpop.f32.mrb[16].mxu0 }
 0x7ea   :  { %v545_v37 = vpop.f32.mrb[17].mxu0  ;;  %v552_v44 = vrot.slane %v543_v36, 2 }
 0x7eb   :  { %v553_v38 = vrot.slane %v545_v37, 2  ;;  %v547_v39 = vpop.f32.mrb[18].mxu0 }
 0x7ec   :  { %v548_v41 = vpop.f32.mrb[19].mxu0  ;;  %v556_v46 = vadd.f32 %v552_v44, %v501_v45 }
 0x7ed   :  { %v557_v42 = vadd.f32 %v553_v38, %v502_v40 }
 0x7ee   :  { %v4396_v47 = vmul.f32 -1.442695, %v556_v46 }
 0x7ef   :  { %4666 = vtanh.f32 %v557_v42  ;;  %v4397_v59 = vmul.f32 -1.442695, %v557_v42 }
 0x7f0   :  { %4668 = vpow2.f32 %v4396_v47 }
 0x7f9   :  { %v4667_v43 = vpop.eup %4666 }
 0x7fa   :  { %576 = vrot.lane.b32.xlu1 %v4667_v43, %s5180_s3  ;;  %v4669_v48 = vpop.eup %4668 }
 0x7fb   :  { %v564_v49 = vadd.f32 1.0, %v4669_v48  ;;  %v696_v48 = vld [vmem:[#allocation2 + $0x18] sm:$0xc] }
 0x7fd   :  { %4670 = vrcp.f32 %v564_v49 }
 0x807   :  { %v4671_v50 = vpop.eup %4670 }
 0x808   :  { %v574_v54 = vmul.f32 %v4671_v50, %v572_v53  ;;  %v695_v53 = vld [vmem:[#allocation2 + $0x10] sm:$0xc] }
 0x86c   :  { %v577_v51 = vpop.permute.xlu1 %576 }
 0x86d   :  { %v579_v52 = vmul.f32 %v4671_v50, %v577_v51 }
 0x86f   :  { %581 = vrot.lane.b32.xlu0 %v579_v52, %s5180_s3 }
 0x8e1   :  { %v582_v56 = vpop.permute.xlu0 %581 }
 0x8e2   :  { %v584_v57 = vadd.f32 %v582_v56, %v574_v54 }
 0x8e4   :  { %4672 = vtanh.f32 %v584_v57  ;;  %v668_v31 = vrot.slane %v584_v57, 6 }
 0x8e5   :  { %4674 = vpow2.f32 %v4397_v59 }
 0x8ee   :  { %v4673_v58 = vpop.eup %4672 }
 0x8ef   :  { %587 = vrot.lane.b32.xlu1 %v4673_v58, %s5180_s3  ;;  %v4675_v60 = vpop.eup %4674 }
 0x8f0   :  { %v565_v61 = vadd.f32 1.0, %v4675_v60 }
 0x8f2   :  { %4676 = vrcp.f32 %v565_v61 }
 0x8fc   :  { %v4677_v62 = vpop.eup %4676 }
 0x961   :  { %v588_v63 = vpop.permute.xlu1 %587 }
 0x962   :  { %v5427_v1 = vmul.f32 %v4677_v62, %v588_v63 }
 0x964   :  { %v605_v2 = vpack.c.bf16 %v5427_v1, %v5427_v1  ;;  %592 = vst.msk [vmem:[#allocation4] sm:$0xc0] %vm591_vm9, %v5427_v1 }
 0x965   :  { %594 = vst.msk [vmem:[#allocation4 + $0x1c] sm:$0xc0] %vm593_vm10, %v5427_v1 }
 0x966   :  { %v607_v4 = vrot.slane %v605_v2, 3 }
 0x968   :  { %4398 = vmatmul.mubr.msk.bf16.vlgmr.msra.gmra.mrb[8].mxu1 %vm210_vm4, %v607_v4 }
 0x969   :  { %800 = vmatpush1.bf16.msra.mxu1 %v5246_v5  ;;  %831 = vmatprep.mubr.bf16.mxu1 %v5179_v0 }
 0x96a   :  { %801 = vmatprep.subr.bf16.mxu1 %v5258_v10 }
 0x96d   :  { %802 = vmatpush1.bf16.msra.mxu1 %v5264_v11 }
 0x96e   :  { %803 = vmatprep.subr.bf16.mxu1 %v5270_v12 }
 0x971   :  { %804 = vmatpush1.bf16.msra.mxu1 %v5276_v13 }
 0x972   :  { %805 = vmatprep.subr.bf16.mxu1 %v5282_v14 }
 0x975   :  { %806 = vmatpush1.bf16.msra.mxu1 %v5291_v15 }
 0x976   :  { %995 = vmatprep.subr.bf16.mxu1 %v5241_v3 }
 0xa3b   :  { %v645_v6 = vpop.f32.mrb[8].mxu1 }
 0xa3c   :  { %v647_v8 = vpop.f32.mrb[9].mxu1  ;;  %v652_v25 = vadd.f32 %v645_v6, %v603_v24 }
 0xa3d   :  { %v653_v9 = vadd.f32 %v647_v8, %v604_v7  ;;  %v649_v16 = vpop.f32.mrb[10].mxu1 }
 0xa3e   :  { %v650_v19 = vpop.f32.mrb[11].mxu1  ;;  %v4399_v26 = vmul.f32 -1.442695, %v652_v25 }
 0xa3f   :  { %4678 = vtanh.f32 %v653_v9  ;;  %v4400_v37 = vmul.f32 -1.442695, %v653_v9 }
 0xa40   :  { %4680 = vpow2.f32 %v4399_v26 }
 0xa49   :  { %v4679_v23 = vpop.eup %4678 }
 0xa4a   :  { %672 = vrot.lane.b32.xlu0 %v4679_v23, %s5180_s3  ;;  %v4681_v28 = vpop.eup %4680 }
 0xa4b   :  { %v660_v21 = vadd.f32 1.0, %v4681_v28 }
 0xa4d   :  { %4682 = vrcp.f32 %v660_v21 }
 0xa57   :  { %v4683_v22 = vpop.eup %4682 }
 0xa58   :  { %v670_v32 = vmul.f32 %v4683_v22, %v668_v31 }
 0xabc   :  { %v673_v29 = vpop.permute.xlu0 %672 }
 0xabd   :  { %v675_v30 = vmul.f32 %v4683_v22, %v673_v29  ;;  %v792_v29 = vld [vmem:[#allocation2 + $0x18] sm:$0x30] }
 0xabf   :  { %677 = vrot.lane.b32.xlu1 %v675_v30, %s5180_s3 }
 0xb31   :  { %v678_v34 = vpop.permute.xlu1 %677 }
 0xb32   :  { %v680_v35 = vadd.f32 %v678_v34, %v670_v32 }
 0xb34   :  { %4684 = vtanh.f32 %v680_v35  ;;  %v764_v62 = vrot.slane %v680_v35, 6  ;;  %v791_v35 = vld [vmem:[#allocation2 + $0x10] sm:$0x30] }
 0xb35   :  { %4686 = vpow2.f32 %v4400_v37 }
 0xb3e   :  { %v4685_v36 = vpop.eup %4684 }
 0xb3f   :  { %683 = vrot.lane.b32.xlu0 %v4685_v36, %s5180_s3  ;;  %v4687_v38 = vpop.eup %4686 }
 0xb40   :  { %v661_v39 = vadd.f32 1.0, %v4687_v38 }
 0xb42   :  { %4688 = vrcp.f32 %v661_v39 }
 0xb4c   :  { %v4689_v40 = vpop.eup %4688 }
 0xbb1   :  { %v684_v41 = vpop.permute.xlu0 %683 }
 0xbb2   :  { %v5448_v42 = vmul.f32 %v4689_v40, %v684_v41 }
 0xbb4   :  { %v697_v43 = vpack.c.bf16 %v5448_v42, %v5448_v42  ;;  %687 = vst.msk [vmem:[#allocation4 + $0x8] sm:$0x3] %vm287_vm2, %v5448_v42 }
 0xbb5   :  { %688 = vst.msk [vmem:[#allocation4 + $0x20] sm:$0x3] %vm289_vm3, %v5448_v42 }
 0xbb6   :  { %4401 = vmatmul.mubr.msk.bf16.vlgmr.msra.gmra.mrb[20].mxu0 %vm210_vm4, %v697_v43 }
 0xbb7   :  { %898 = vmatpush1.bf16.msra.mxu0 %v5246_v5  ;;  %929 = vmatprep.mubr.bf16.mxu0 %v5179_v0 }
 0xbb8   :  { %899 = vmatprep.subr.bf16.mxu0 %v5258_v10 }
 0xbbb   :  { %900 = vmatpush1.bf16.msra.mxu0 %v5264_v11 }
 0xbbc   :  { %901 = vmatprep.subr.bf16.mxu0 %v5270_v12 }
 0xbbf   :  { %902 = vmatpush1.bf16.msra.mxu0 %v5276_v13 }
 0xbc0   :  { %903 = vmatprep.subr.bf16.mxu0 %v5282_v14 }
 0xbc3   :  { %904 = vmatpush1.bf16.msra.mxu0 %v5291_v15 }
 0xbc4   :  { %1085 = vmatprep.subr.bf16.mxu0 %v5241_v3 }
 0xc89   :  { %v735_v44 = vpop.f32.mrb[20].mxu0 }
 0xc8a   :  { %v737_v45 = vpop.f32.mrb[21].mxu0  ;;  %v744_v52 = vrot.slane %v735_v44, 6 }
 0xc8b   :  { %v745_v46 = vrot.slane %v737_v45, 6  ;;  %v739_v47 = vpop.f32.mrb[22].mxu0 }
 0xc8c   :  { %v740_v49 = vpop.f32.mrb[23].mxu0  ;;  %v748_v54 = vadd.f32 %v744_v52, %v695_v53 }
 0xc8d   :  { %v749_v50 = vadd.f32 %v745_v46, %v696_v48 }
 0xc8e   :  { %v4402_v56 = vmul.f32 -1.442695, %v748_v54 }
 0xc8f   :  { %4690 = vtanh.f32 %v749_v50  ;;  %v4403_v7 = vmul.f32 -1.442695, %v749_v50 }
 0xc90   :  { %4692 = vpow2.f32 %v4402_v56 }
 0xc99   :  { %v4691_v51 = vpop.eup %4690 }
 0xc9a   :  { %768 = vrot.lane.b32.xlu1 %v4691_v51, %s5180_s3  ;;  %v4693_v57 = vpop.eup %4692 }
 0xc9b   :  { %v756_v58 = vadd.f32 1.0, %v4693_v57 }
 0xc9d   :  { %4694 = vrcp.f32 %v756_v58 }
 0xca7   :  { %v4695_v59 = vpop.eup %4694 }
 0xca8   :  { %v766_v63 = vmul.f32 %v4695_v59, %v764_v62 }
 0xd0c   :  { %v769_v60 = vpop.permute.xlu1 %768 }
 0xd0d   :  { %v771_v61 = vmul.f32 %v4695_v59, %v769_v60 }
 0xd0f   :  { %773 = vrot.lane.b32.xlu0 %v771_v61, %s5180_s3  ;;  %v890_v61 = vld [vmem:[#allocation2 + $0x18] sm:$0xc0] }
 0xd81   :  { %v774_v2 = vpop.permute.xlu0 %773 }
 0xd82   :  { %v776_v4 = vadd.f32 %v774_v2, %v766_v63 }
 0xd84   :  { %4696 = vtanh.f32 %v776_v4  ;;  %v862_v44 = vrot.slane %v776_v4, 6 }
 0xd85   :  { %4698 = vpow2.f32 %v4403_v7 }
 0xd8e   :  { %v4697_v6 = vpop.eup %4696 }
 0xd8f   :  { %779 = vrot.lane.b32.xlu1 %v4697_v6, %s5180_s3  ;;  %v4699_v8 = vpop.eup %4698 }
 0xd90   :  { %v757_v9 = vadd.f32 1.0, %v4699_v8 }
 0xd92   :  { %4700 = vrcp.f32 %v757_v9 }
 0xd9c   :  { %v4701_v16 = vpop.eup %4700 }
 0xe01   :  { %v780_v19 = vpop.permute.xlu1 %779 }
 0xe02   :  { %v5469_v23 = vmul.f32 %v4701_v16, %v780_v19 }
 0xe04   :  { %v793_v24 = vpack.c.bf16 %v5469_v23, %v5469_v23  ;;  %783 = vst.msk [vmem:[#allocation4 + $0x8] sm:$0xc] %vm387_vm5, %v5469_v23 }
 0xe05   :  { %784 = vst.msk [vmem:[#allocation4 + $0x1c] sm:$0xc] %vm389_vm6, %v5469_v23 }
 0xe06   :  { %v795_v25 = vrot.slane %v793_v24, 1 }
 0xe08   :  { %4404 = vmatmul.mubr.msk.bf16.vlgmr.msra.gmra.mrb[12].mxu1 %vm210_vm4, %v795_v25 }
 0xe09   :  { %996 = vmatpush1.bf16.msra.mxu1 %v5246_v5  ;;  %1027 = vmatprep.mubr.bf16.mxu1 %v5179_v0 }
 0xe0a   :  { %997 = vmatprep.subr.bf16.mxu1 %v5258_v10 }
 0xe0d   :  { %998 = vmatpush1.bf16.msra.mxu1 %v5264_v11 }
 0xe0e   :  { %999 = vmatprep.subr.bf16.mxu1 %v5270_v12 }
 0xe11   :  { %1000 = vmatpush1.bf16.msra.mxu1 %v5276_v13 }
 0xe12   :  { %1001 = vmatprep.subr.bf16.mxu1 %v5282_v14 }
 0xe15   :  { %1002 = vmatpush1.bf16.msra.mxu1 %v5291_v15 }
 0xe16   :  { %1183 = vmatprep.subr.bf16.mxu1 %v5241_v3 }
 0xedb   :  { %v833_v26 = vpop.f32.mrb[12].mxu1 }
 0xedc   :  { %v835_v28 = vpop.f32.mrb[13].mxu1  ;;  %v842_v34 = vrot.slane %v833_v26, 4 }
 0xedd   :  { %v843_v21 = vrot.slane %v835_v28, 4  ;;  %v837_v22 = vpop.f32.mrb[14].mxu1 }
 0xede   :  { %v838_v30 = vpop.f32.mrb[15].mxu1  ;;  %v846_v36 = vadd.f32 %v842_v34, %v791_v35  ;;  %v5523_v34 = vld [vmem:[%s6452_s2] ss:$8 sps:$4 sm:$0xff]   ;;  %v5530_v35 = vld [vmem:[%s6452_s2 + $0x14] ss:$8 sps:$4 sm:$0xff]  }
 0xedf   :  { %v847_v31 = vadd.f32 %v843_v21, %v792_v29 }
 0xee0   :  { %v4405_v37 = vmul.f32 -1.442695, %v846_v36  ;;  %v5536_v36 = vld [vmem:[%s6452_s2 + $0x10] ss:$8 sps:$4 sm:$0xff]  }
 0xee1   :  { %4702 = vtanh.f32 %v847_v31  ;;  %v4406_v49 = vmul.f32 -1.442695, %v847_v31 }
 0xee2   :  { %4704 = vpow2.f32 %v4405_v37  ;;  %v5542_v37 = vld [vmem:[%s6452_s2 + $0x24] ss:$8 sps:$4 sm:$0xff]  }
 0xeeb   :  { %v4703_v32 = vpop.eup %4702 }
 0xeec   :  { %866 = vrot.lane.b32.xlu0 %v4703_v32, %s5180_s3  ;;  %v4705_v38 = vpop.eup %4704 }
 0xeed   :  { %v854_v39 = vadd.f32 1.0, %v4705_v38  ;;  %v5548_v38 = vld [vmem:[%s6452_s2 + $0x20] ss:$8 sps:$4 sm:$0xff]  }
 0xeef   :  { %4706 = vrcp.f32 %v854_v39  ;;  %v5556_v39 = vld [vmem:[%s6452_s2 + $0x4] ss:$8 sps:$4 sm:$0xff]  }
 0xef9   :  { %v4707_v40 = vpop.eup %4706 }
 0xefa   :  { %v864_v45 = vmul.f32 %v4707_v40, %v862_v44 }
 0xf5e   :  { %v867_v41 = vpop.permute.xlu0 %866 }
 0xf5f   :  { %v869_v43 = vmul.f32 %v4707_v40, %v867_v41  ;;  %v988_v41 = vld [vmem:[#allocation2 + $0x28] sm:$0x3] }
 0xf61   :  { %871 = vrot.lane.b32.xlu1 %v869_v43, %s5180_s3 }
 0xfd3   :  { %v872_v46 = vpop.permute.xlu1 %871 }
 0xfd4   :  { %v874_v47 = vadd.f32 %v872_v46, %v864_v45 }
 0xfd6   :  { %4708 = vtanh.f32 %v874_v47  ;;  %v960_v9 = vrot.slane %v874_v47, 6 }
 0xfd7   :  { %4710 = vpow2.f32 %v4406_v49 }
 0xfe0   :  { %v4709_v48 = vpop.eup %4708 }
 0xfe1   :  { %877 = vrot.lane.b32.xlu0 %v4709_v48, %s5180_s3  ;;  %v4711_v50 = vpop.eup %4710 }
 0xfe2   :  { %v855_v51 = vadd.f32 1.0, %v4711_v50 }
 0xfe4   :  { %4712 = vrcp.f32 %v855_v51 }
 0xfee   :  { %v4713_v52 = vpop.eup %4712 }
0x1053   :  { %v878_v53 = vpop.permute.xlu0 %877 }
0x1054   :  { %v5490_v54 = vmul.f32 %v4713_v52, %v878_v53 }
0x1056   :  { %v891_v56 = vpack.c.bf16 %v5490_v54, %v5490_v54  ;;  %881 = vst.msk [vmem:[#allocation4 + $0x8] sm:$0x30] %vm489_vm7, %v5490_v54 }
0x1057   :  { %882 = vst.msk [vmem:[#allocation4 + $0x18] sm:$0x30] %vm6458_vm8, %v5490_v54 }
0x1058   :  { %v893_v57 = vrot.slane %v891_v56, 2 }
0x105a   :  { %4407 = vmatmul.mubr.msk.bf16.vlgmr.msra.gmra.mrb[24].mxu0 %vm210_vm4, %v893_v57 }
0x105b   :  { %1086 = vmatpush1.bf16.msra.mxu0 %v5246_v5  ;;  %1117 = vmatprep.mubr.bf16.mxu0 %v5179_v0 }
0x105c   :  { %1087 = vmatprep.subr.bf16.mxu0 %v5258_v10 }
0x105f   :  { %1088 = vmatpush1.bf16.msra.mxu0 %v5264_v11 }
0x1060   :  { %1089 = vmatprep.subr.bf16.mxu0 %v5270_v12  ;;  %v889_v12 = vld [vmem:[#allocation2 + $0x10] sm:$0xc0] }
0x1063   :  { %1090 = vmatpush1.bf16.msra.mxu0 %v5276_v13 }
0x1064   :  { %1091 = vmatprep.subr.bf16.mxu0 %v5282_v14 }
0x1067   :  { %1092 = vmatpush1.bf16.msra.mxu0 %v5291_v15 }
0x1068   :  { %1281 = vmatprep.subr.bf16.mxu0 %v5241_v3 }
0x112d   :  { %v931_v58 = vpop.f32.mrb[24].mxu0 }
0x112e   :  { %v933_v59 = vpop.f32.mrb[25].mxu0  ;;  %v940_v11 = vrot.slane %v931_v58, 2 }
0x112f   :  { %v941_v60 = vrot.slane %v933_v59, 2  ;;  %v935_v5 = vpop.f32.mrb[26].mxu0 }
0x1130   :  { %v936_v62 = vpop.f32.mrb[27].mxu0  ;;  %v944_v13 = vadd.f32 %v940_v11, %v889_v12 }
0x1131   :  { %v945_v63 = vadd.f32 %v941_v60, %v890_v61 }
0x1132   :  { %v4408_v2 = vmul.f32 -1.442695, %v944_v13  ;;  %v5580_v13 = vld [vmem:[%s6452_s2 + $0x34] ss:$8 sps:$4 sm:$0xff]  }
0x1133   :  { %4714 = vtanh.f32 %v945_v63  ;;  %v4409_v26 = vmul.f32 -1.442695, %v945_v63 }
0x1134   :  { %4716 = vpow2.f32 %v4408_v2  ;;  %v5586_v2 = vld [vmem:[%s6452_s2 + $0x30] ss:$8 sps:$4 sm:$0xff]  }
0x113d   :  { %v4715_v10 = vpop.eup %4714 }
0x113e   :  { %964 = vrot.lane.b32.xlu1 %v4715_v10, %s5180_s3  ;;  %v4717_v4 = vpop.eup %4716 }
0x113f   :  { %v952_v6 = vadd.f32 1.0, %v4717_v4 }
0x1141   :  { %4718 = vrcp.f32 %v952_v6 }
0x114b   :  { %v4719_v3 = vpop.eup %4718 }
0x114c   :  { %v962_v16 = vmul.f32 %v4719_v3, %v960_v9 }
0x11b0   :  { %v965_v7 = vpop.permute.xlu1 %964 }
0x11b1   :  { %v967_v8 = vmul.f32 %v4719_v3, %v965_v7 }
0x11b3   :  { %969 = vrot.lane.b32.xlu0 %v967_v8, %s5180_s3  ;;  %v1080_v8 = vld [vmem:[#allocation2 + $0x28] sm:$0xc] }
0x1225   :  { %v970_v19 = vpop.permute.xlu0 %969 }
0x1226   :  { %v972_v24 = vadd.f32 %v970_v19, %v962_v16 }
0x1228   :  { %4720 = vtanh.f32 %v972_v24  ;;  %v1052_v56 = vrot.slane %v972_v24, 6 }
0x1229   :  { %4722 = vpow2.f32 %v4409_v26 }
0x1232   :  { %v4721_v25 = vpop.eup %4720 }
0x1233   :  { %975 = vrot.lane.b32.xlu1 %v4721_v25, %s5180_s3  ;;  %v4723_v28 = vpop.eup %4722  ;;  %v1079_v25 = vld [vmem:[#allocation2 + $0x20] sm:$0xc] }
0x1234   :  { %v953_v21 = vadd.f32 1.0, %v4723_v28 }
0x1236   :  { %4724 = vrcp.f32 %v953_v21 }
0x1240   :  { %v4725_v22 = vpop.eup %4724 }
0x12a5   :  { %v976_v29 = vpop.permute.xlu1 %975 }
0x12a6   :  { %v5511_v30 = vmul.f32 %v4725_v22, %v976_v29 }
0x12a8   :  { %v989_v31 = vpack.c.bf16 %v5511_v30, %v5511_v30  ;;  %979 = vst.msk [vmem:[#allocation4 + $0x8] sm:$0xc0] %vm591_vm9, %v5511_v30 }
0x12a9   :  { %980 = vst.msk [vmem:[#allocation4 + $0x14] sm:$0xc0] %vm593_vm10, %v5511_v30 }
0x12aa   :  { %v991_v32 = vrot.slane %v989_v31, 3 }
0x12ac   :  { %4410 = vmatmul.mubr.msk.bf16.vlgmr.msra.gmra.mrb[16].mxu1 %vm210_vm4, %v991_v32 }
0x12ad   :  { %1184 = vmatpush1.bf16.msra.mxu1 %v5523_v34  ;;  %1215 = vmatprep.mubr.bf16.mxu1 %v5179_v0 }
0x12ae   :  { %1185 = vmatprep.subr.bf16.mxu1 %v5530_v35 }
0x12b1   :  { %1186 = vmatpush1.bf16.msra.mxu1 %v5536_v36 }
0x12b2   :  { %1187 = vmatprep.subr.bf16.mxu1 %v5542_v37 }
0x12b5   :  { %1188 = vmatpush1.bf16.msra.mxu1 %v5548_v38 }
0x12b6   :  { %1189 = vmatprep.subr.bf16.mxu1 %v5282_v14  ;;  %v987_v14 = vld [vmem:[#allocation2 + $0x20] sm:$0x3] }
0x12b9   :  { %1190 = vmatpush1.bf16.msra.mxu1 %v5291_v15 }
0x12ba   :  { %1379 = vmatprep.subr.bf16.mxu1 %v5556_v39 }
0x137f   :  { %v1029_v40 = vpop.f32.mrb[16].mxu1 }
0x1380   :  { %v1031_v43 = vpop.f32.mrb[17].mxu1  ;;  %v1036_v48 = vadd.f32 %v1029_v40, %v987_v14 }
0x1381   :  { %v1037_v44 = vadd.f32 %v1031_v43, %v988_v41  ;;  %v1033_v45 = vpop.f32.mrb[18].mxu1 }
0x1382   :  { %v1034_v46 = vpop.f32.mrb[19].mxu1  ;;  %v4411_v15 = vmul.f32 -1.442695, %v1036_v48 }
0x1383   :  { %4726 = vtanh.f32 %v1037_v44  ;;  %v4412_v5 = vmul.f32 -1.442695, %v1037_v44 }
0x1384   :  { %4728 = vpow2.f32 %v4411_v15 }
0x138d   :  { %v4727_v47 = vpop.eup %4726 }
0x138e   :  { %1056 = vrot.lane.b32.xlu0 %v4727_v47, %s5180_s3  ;;  %v4729_v49 = vpop.eup %4728 }
0x138f   :  { %v1044_v50 = vadd.f32 1.0, %v4729_v49 }
0x1391   :  { %4730 = vrcp.f32 %v1044_v50 }
0x139b   :  { %v4731_v51 = vpop.eup %4730 }
0x139c   :  { %v1054_v57 = vmul.f32 %v4731_v51, %v1052_v56 }
0x1400   :  { %v1057_v52 = vpop.permute.xlu0 %1056 }
0x1401   :  { %v1059_v53 = vmul.f32 %v4731_v51, %v1057_v52 }
0x1403   :  { %1061 = vrot.lane.b32.xlu1 %v1059_v53, %s5180_s3 }
0x1475   :  { %v1062_v58 = vpop.permute.xlu1 %1061 }
0x1476   :  { %v1064_v59 = vadd.f32 %v1062_v58, %v1054_v57  ;;  %v1176_v58 = vld [vmem:[#allocation2 + $0x28] sm:$0x30] }
0x1478   :  { %4732 = vtanh.f32 %v1064_v59  ;;  %v1148_v40 = vrot.slane %v1064_v59, 6 }
0x1479   :  { %4734 = vpow2.f32 %v4412_v5 }
0x1482   :  { %v4733_v60 = vpop.eup %4732 }
0x1483   :  { %1067 = vrot.lane.b32.xlu0 %v4733_v60, %s5180_s3  ;;  %v4735_v61 = vpop.eup %4734 }
0x1484   :  { %v1045_v62 = vadd.f32 1.0, %v4735_v61 }
0x1486   :  { %4736 = vrcp.f32 %v1045_v62  ;;  %v1175_v62 = vld [vmem:[#allocation2 + $0x20] sm:$0x30] }
0x1490   :  { %v4737_v63 = vpop.eup %4736 }
0x14f5   :  { %v1068_v10 = vpop.permute.xlu0 %1067 }
0x14f6   :  { %v5562_v11 = vmul.f32 %v4737_v63, %v1068_v10 }
0x14f8   :  { %v1081_v12 = vpack.c.bf16 %v5562_v11, %v5562_v11  ;;  %1071 = vst.msk [vmem:[#allocation4 + $0x10] sm:$0x3] %vm287_vm2, %v5562_v11 }
0x14f9   :  { %1072 = vst.msk [vmem:[#allocation4 + $0x18] sm:$0x3] %vm289_vm3, %v5562_v11 }
0x14fa   :  { %4413 = vmatmul.mubr.msk.bf16.vlgmr.msra.gmra.mrb[28].mxu0 %vm210_vm4, %v1081_v12 }
0x14fb   :  { %1282 = vmatpush1.bf16.msra.mxu0 %v5523_v34  ;;  %1313 = vmatprep.mubr.bf16.mxu0 %v5179_v0 }
0x14fc   :  { %1283 = vmatprep.subr.bf16.mxu0 %v5530_v35 }
0x14ff   :  { %1284 = vmatpush1.bf16.msra.mxu0 %v5536_v36 }
0x1500   :  { %1285 = vmatprep.subr.bf16.mxu0 %v5542_v37 }
0x1503   :  { %1286 = vmatpush1.bf16.msra.mxu0 %v5548_v38 }
0x1504   :  { %1287 = vmatprep.subr.bf16.mxu0 %v5580_v13 }
0x1507   :  { %1288 = vmatpush1.bf16.msra.mxu0 %v5586_v2 }
0x1508   :  { %1469 = vmatprep.subr.bf16.mxu0 %v5556_v39 }
0x15cd   :  { %v1119_v4 = vpop.f32.mrb[28].mxu0 }
0x15ce   :  { %v1121_v6 = vpop.f32.mrb[29].mxu0  ;;  %v1128_v24 = vrot.slane %v1119_v4, 6 }
0x15cf   :  { %v1129_v3 = vrot.slane %v1121_v6, 6  ;;  %v1123_v7 = vpop.f32.mrb[30].mxu0 }
0x15d0   :  { %v1124_v9 = vpop.f32.mrb[31].mxu0  ;;  %v1132_v26 = vadd.f32 %v1128_v24, %v1079_v25 }
0x15d1   :  { %v1133_v16 = vadd.f32 %v1129_v3, %v1080_v8 }
0x15d2   :  { %v4414_v28 = vmul.f32 -1.442695, %v1132_v26 }
0x15d3   :  { %4738 = vtanh.f32 %v1133_v16  ;;  %v4415_v46 = vmul.f32 -1.442695, %v1133_v16 }
0x15d4   :  { %4740 = vpow2.f32 %v4414_v28 }
0x15dd   :  { %v4739_v19 = vpop.eup %4738 }
0x15de   :  { %1152 = vrot.lane.b32.xlu1 %v4739_v19, %s5180_s3  ;;  %v4741_v21 = vpop.eup %4740 }
0x15df   :  { %v1140_v22 = vadd.f32 1.0, %v4741_v21 }
0x15e1   :  { %4742 = vrcp.f32 %v1140_v22 }
0x15eb   :  { %v4743_v29 = vpop.eup %4742 }
0x15ec   :  { %v1150_v41 = vmul.f32 %v4743_v29, %v1148_v40 }
0x1650   :  { %v1153_v31 = vpop.permute.xlu1 %1152 }
0x1651   :  { %v1155_v32 = vmul.f32 %v4743_v29, %v1153_v31 }
0x1653   :  { %1157 = vrot.lane.b32.xlu0 %v1155_v32, %s5180_s3 }
0x16c5   :  { %v1158_v43 = vpop.permute.xlu0 %1157 }
0x16c6   :  { %v1160_v44 = vadd.f32 %v1158_v43, %v1150_v41 }
0x16c8   :  { %4744 = vtanh.f32 %v1160_v44  ;;  %v1246_v8 = vrot.slane %v1160_v44, 6 }
0x16c9   :  { %4746 = vpow2.f32 %v4415_v46 }
0x16d2   :  { %v4745_v45 = vpop.eup %4744 }
0x16d3   :  { %1163 = vrot.lane.b32.xlu1 %v4745_v45, %s5180_s3  ;;  %v4747_v47 = vpop.eup %4746  ;;  %v1274_v45 = vld [vmem:[#allocation2 + $0x28] sm:$0xc0] }
0x16d4   :  { %v1141_v14 = vadd.f32 1.0, %v4747_v47 }
0x16d6   :  { %4748 = vrcp.f32 %v1141_v14 }
0x16e0   :  { %v4749_v48 = vpop.eup %4748 }
0x1745   :  { %v1164_v15 = vpop.permute.xlu1 %1163 }
0x1746   :  { %v5593_v49 = vmul.f32 %v4749_v48, %v1164_v15  ;;  %v1273_v15 = vld [vmem:[#allocation2 + $0x20] sm:$0xc0] }
0x1748   :  { %v1177_v50 = vpack.c.bf16 %v5593_v49, %v5593_v49  ;;  %1167 = vst.msk [vmem:[#allocation4 + $0x10] sm:$0xc] %vm387_vm5, %v5593_v49 }
0x1749   :  { %1168 = vst.msk [vmem:[#allocation4 + $0x14] sm:$0xc] %vm389_vm6, %v5593_v49 }
0x174a   :  { %v1179_v51 = vrot.slane %v1177_v50, 1 }
0x174c   :  { %4416 = vmatmul.mubr.msk.bf16.vlgmr.msra.gmra.mrb[20].mxu1 %vm210_vm4, %v1179_v51 }
0x174d   :  { %1380 = vmatpush1.bf16.msra.mxu1 %v5523_v34  ;;  %1411 = vmatprep.mubr.bf16.mxu1 %v5179_v0 }
0x174e   :  { %1381 = vmatprep.subr.bf16.mxu1 %v5530_v35 }
0x1751   :  { %1382 = vmatpush1.bf16.msra.mxu1 %v5536_v36 }
0x1752   :  { %1383 = vmatprep.subr.bf16.mxu1 %v5542_v37 }
0x1755   :  { %1384 = vmatpush1.bf16.msra.mxu1 %v5548_v38 }
0x1756   :  { %1385 = vmatprep.subr.bf16.mxu1 %v5580_v13 }
0x1759   :  { %1386 = vmatpush1.bf16.msra.mxu1 %v5586_v2 }
0x175a   :  { %1567 = vmatprep.subr.bf16.mxu1 %v5556_v39 }
0x181f   :  { %v1217_v52 = vpop.f32.mrb[20].mxu1 }
0x1820   :  { %v1219_v53 = vpop.f32.mrb[21].mxu1  ;;  %v1226_v61 = vrot.slane %v1217_v52, 4 }
0x1821   :  { %v1227_v56 = vrot.slane %v1219_v53, 4  ;;  %v1221_v57 = vpop.f32.mrb[22].mxu1 }
0x1822   :  { %v1222_v59 = vpop.f32.mrb[23].mxu1  ;;  %v1230_v63 = vadd.f32 %v1226_v61, %v1175_v62 }
0x1823   :  { %v1231_v60 = vadd.f32 %v1227_v56, %v1176_v58 }
0x1824   :  { %v4417_v10 = vmul.f32 -1.442695, %v1230_v63 }
0x1825   :  { %4750 = vtanh.f32 %v1231_v60  ;;  %v4418_v25 = vmul.f32 -1.442695, %v1231_v60 }
0x1826   :  { %4752 = vpow2.f32 %v4417_v10 }
0x182f   :  { %v4751_v5 = vpop.eup %4750 }
0x1830   :  { %1250 = vrot.lane.b32.xlu0 %v4751_v5, %s5180_s3  ;;  %v4753_v12 = vpop.eup %4752 }
0x1831   :  { %v1238_v4 = vadd.f32 1.0, %v4753_v12 }
0x1833   :  { %4754 = vrcp.f32 %v1238_v4 }
0x183d   :  { %v4755_v6 = vpop.eup %4754 }
0x183e   :  { %v1248_v9 = vmul.f32 %v4755_v6, %v1246_v8 }
0x18a2   :  { %v1251_v3 = vpop.permute.xlu0 %1250 }
0x18a3   :  { %v1253_v7 = vmul.f32 %v4755_v6, %v1251_v3 }
0x18a5   :  { %1255 = vrot.lane.b32.xlu1 %v1253_v7, %s5180_s3 }
0x1917   :  { %v1256_v16 = vpop.permute.xlu1 %1255 }
0x1918   :  { %v1258_v19 = vadd.f32 %v1256_v16, %v1248_v9  ;;  %v1372_v16 = vld [vmem:[#allocation2 + $0x38] sm:$0x3] }
0x191a   :  { %4756 = vtanh.f32 %v1258_v19  ;;  %v1344_v59 = vrot.slane %v1258_v19, 6 }
0x191b   :  { %4758 = vpow2.f32 %v4418_v25 }
0x1924   :  { %v4757_v24 = vpop.eup %4756 }
0x1925   :  { %1261 = vrot.lane.b32.xlu0 %v4757_v24, %s5180_s3  ;;  %v4759_v26 = vpop.eup %4758 }
0x1926   :  { %v1239_v28 = vadd.f32 1.0, %v4759_v26 }
0x1928   :  { %4760 = vrcp.f32 %v1239_v28 }
0x1932   :  { %v4761_v21 = vpop.eup %4760 }
0x1997   :  { %v1262_v22 = vpop.permute.xlu0 %1261 }
0x1998   :  { %v5614_v29 = vmul.f32 %v4761_v21, %v1262_v22  ;;  %v1371_v21 = vld [vmem:[#allocation2 + $0x30] sm:$0x3] }
0x199a   :  { %1265 = vst.msk [vmem:[#allocation4 + $0x10] sm:$0x30] %vm489_vm7, %v5614_v29  ;;  %v1275_v31 = vpack.c.bf16 %v5614_v29, %v5614_v29 }
0x199b   :  { %1266 = vst.msk [vmem:[#allocation4 + $0x10] sm:$0x30] %vm6458_vm8, %v5614_v29 }
0x199c   :  { %v1277_v32 = vrot.slane %v1275_v31, 2 }
0x199e   :  { %4419 = vmatmul.mubr.msk.bf16.vlgmr.msra.gmra.mrb[32].mxu0 %vm210_vm4, %v1277_v32 }
0x199f   :  { %1470 = vmatpush1.bf16.msra.mxu0 %v5523_v34  ;;  %1501 = vmatprep.mubr.bf16.mxu0 %v5179_v0 }
0x19a0   :  { %1471 = vmatprep.subr.bf16.mxu0 %v5530_v35 }
0x19a3   :  { %1472 = vmatpush1.bf16.msra.mxu0 %v5536_v36 }
0x19a4   :  { %1473 = vmatprep.subr.bf16.mxu0 %v5542_v37 }
0x19a7   :  { %1474 = vmatpush1.bf16.msra.mxu0 %v5548_v38 }
0x19a8   :  { %1475 = vmatprep.subr.bf16.mxu0 %v5580_v13 }
0x19ab   :  { %1476 = vmatpush1.bf16.msra.mxu0 %v5586_v2 }
0x19ac   :  { %1665 = vmatprep.subr.bf16.mxu0 %v5556_v39 }
0x1a71   :  { %v1315_v40 = vpop.f32.mrb[32].mxu0 }
0x1a72   :  { %v1317_v41 = vpop.f32.mrb[33].mxu0  ;;  %v1324_v48 = vrot.slane %v1315_v40, 2 }
0x1a73   :  { %v1325_v43 = vrot.slane %v1317_v41, 2  ;;  %v1319_v44 = vpop.f32.mrb[34].mxu0 }
0x1a74   :  { %v1320_v46 = vpop.f32.mrb[35].mxu0  ;;  %v1328_v50 = vadd.f32 %v1324_v48, %v1273_v15 }
0x1a75   :  { %v1329_v47 = vadd.f32 %v1325_v43, %v1274_v45 }
0x1a76   :  { %v4420_v51 = vmul.f32 -1.442695, %v1328_v50 }
0x1a77   :  { %4762 = vtanh.f32 %v1329_v47  ;;  %v4421_v63 = vmul.f32 -1.442695, %v1329_v47 }
0x1a78   :  { %4764 = vpow2.f32 %v4420_v51 }
0x1a81   :  { %v4763_v14 = vpop.eup %4762 }
0x1a82   :  { %1348 = vrot.lane.b32.xlu1 %v4763_v14, %s5180_s3  ;;  %v4765_v52 = vpop.eup %4764 }
0x1a83   :  { %v1336_v53 = vadd.f32 1.0, %v4765_v52 }
0x1a85   :  { %4766 = vrcp.f32 %v1336_v53 }
0x1a8f   :  { %v4767_v56 = vpop.eup %4766 }
0x1a90   :  { %v1346_v60 = vmul.f32 %v4767_v56, %v1344_v59 }
0x1af4   :  { %v1349_v57 = vpop.permute.xlu1 %1348 }
0x1af5   :  { %v1351_v58 = vmul.f32 %v4767_v56, %v1349_v57 }
0x1af7   :  { %1353 = vrot.lane.b32.xlu0 %v1351_v58, %s5180_s3 }
0x1b69   :  { %v1354_v5 = vpop.permute.xlu0 %1353 }
0x1b6a   :  { %v1356_v61 = vadd.f32 %v1354_v5, %v1346_v60 }
0x1b6c   :  { %4768 = vtanh.f32 %v1356_v61  ;;  %v1436_v45 = vrot.slane %v1356_v61, 6  ;;  %v1464_v61 = vld [vmem:[#allocation2 + $0x38] sm:$0xc] }
0x1b6d   :  { %4770 = vpow2.f32 %v4421_v63 }
0x1b76   :  { %v4769_v62 = vpop.eup %4768 }
0x1b77   :  { %1359 = vrot.lane.b32.xlu1 %v4769_v62, %s5180_s3  ;;  %v4771_v10 = vpop.eup %4770 }
0x1b78   :  { %v1337_v12 = vadd.f32 1.0, %v4771_v10 }
0x1b7a   :  { %4772 = vrcp.f32 %v1337_v12 }
0x1b84   :  { %v4773_v4 = vpop.eup %4772 }
0x1be9   :  { %v1360_v6 = vpop.permute.xlu1 %1359 }
0x1bea   :  { %v5635_v3 = vmul.f32 %v4773_v4, %v1360_v6  ;;  %v1463_v4 = vld [vmem:[#allocation2 + $0x30] sm:$0xc] }
0x1bec   :  { %v1373_v7 = vpack.c.bf16 %v5635_v3, %v5635_v3 }
0x1bee   :  { %v1375_v8 = vrot.slane %v1373_v7, 3 }
0x1bf0   :  { %4422 = vmatmul.mubr.msk.bf16.vlgmr.msra.gmra.mrb[24].mxu1 %vm210_vm4, %v1375_v8 }
0x1bf1   :  { %1568 = vmatpush1.bf16.msra.mxu1 %v5523_v34  ;;  %1599 = vmatprep.mubr.bf16.mxu1 %v5179_v0 }
0x1bf2   :  { %1569 = vmatprep.subr.bf16.mxu1 %v5530_v35 }
0x1bf5   :  { %1570 = vmatpush1.bf16.msra.mxu1 %v5536_v36 }
0x1bf6   :  { %1571 = vmatprep.subr.bf16.mxu1 %v5542_v37 }
0x1bf9   :  { %1572 = vmatpush1.bf16.msra.mxu1 %v5548_v38 }
0x1bfa   :  { %1573 = vmatprep.subr.bf16.mxu1 %v5580_v13 }
0x1bfd   :  { %1574 = vmatpush1.bf16.msra.mxu1 %v5586_v2 }
0x1bfe   :  { %1763 = vmatprep.subr.bf16.mxu1 %v5556_v39 }
0x1cc3   :  { %v1413_v9 = vpop.f32.mrb[24].mxu1 }
0x1cc4   :  { %v1415_v19 = vpop.f32.mrb[25].mxu1  ;;  %v1420_v22 = vadd.f32 %v1413_v9, %v1371_v21 }
0x1cc5   :  { %v1421_v24 = vadd.f32 %v1415_v19, %v1372_v16  ;;  %v1417_v25 = vpop.f32.mrb[26].mxu1 }
0x1cc6   :  { %v1418_v26 = vpop.f32.mrb[27].mxu1  ;;  %v4423_v31 = vmul.f32 -1.442695, %v1420_v22 }
0x1cc7   :  { %4774 = vtanh.f32 %v1421_v24  ;;  %v4424_v15 = vmul.f32 -1.442695, %v1421_v24 }
0x1cc8   :  { %4776 = vpow2.f32 %v4423_v31 }
0x1cd1   :  { %v4775_v28 = vpop.eup %4774 }
0x1cd2   :  { %1440 = vrot.lane.b32.xlu0 %v4775_v28, %s5180_s3  ;;  %v4777_v32 = vpop.eup %4776 }
0x1cd3   :  { %v1428_v40 = vadd.f32 1.0, %v4777_v32 }
0x1cd5   :  { %4778 = vrcp.f32 %v1428_v40 }
0x1cdf   :  { %v4779_v41 = vpop.eup %4778 }
0x1ce0   :  { %v1438_v46 = vmul.f32 %v4779_v41, %v1436_v45 }
0x1d44   :  { %v1441_v43 = vpop.permute.xlu0 %1440 }
0x1d45   :  { %v1443_v44 = vmul.f32 %v4779_v41, %v1441_v43 }
0x1d47   :  { %1445 = vrot.lane.b32.xlu1 %v1443_v44, %s5180_s3 }
0x1db9   :  { %v1446_v47 = vpop.permute.xlu1 %1445 }
0x1dba   :  { %v1448_v14 = vadd.f32 %v1446_v47, %v1438_v46 }
0x1dbc   :  { %4780 = vtanh.f32 %v1448_v14  ;;  %v1532_v25 = vrot.slane %v1448_v14, 6 }
0x1dbd   :  { %4782 = vpow2.f32 %v4424_v15 }
0x1dc6   :  { %v4781_v48 = vpop.eup %4780 }
0x1dc7   :  { %1451 = vrot.lane.b32.xlu0 %v4781_v48, %s5180_s3  ;;  %v4783_v50 = vpop.eup %4782 }
0x1dc8   :  { %v1429_v51 = vadd.f32 1.0, %v4783_v50  ;;  %v1560_v50 = vld [vmem:[#allocation2 + $0x38] sm:$0x30] }
0x1dca   :  { %4784 = vrcp.f32 %v1429_v51 }
0x1dd4   :  { %v4785_v52 = vpop.eup %4784 }
0x1e39   :  { %v1452_v53 = vpop.permute.xlu0 %1451 }
0x1e3a   :  { %v5652_v56 = vmul.f32 %v4785_v52, %v1452_v53 }
0x1e3c   :  { %v1465_v57 = vpack.c.bf16 %v5652_v56, %v5652_v56 }
0x1e3e   :  { %4425 = vmatmul.mubr.msk.bf16.vlgmr.msra.gmra.mrb[36].mxu0 %vm210_vm4, %v1465_v57 }
0x1e3f   :  { %1666 = vmatpush1.bf16.msra.mxu0 %v5523_v34  ;;  %1697 = vmatprep.mubr.bf16.mxu0 %v5179_v0 }
0x1e40   :  { %1667 = vmatprep.subr.bf16.mxu0 %v5530_v35 }
0x1e43   :  { %1668 = vmatpush1.bf16.msra.mxu0 %v5536_v36 }
0x1e44   :  { %1669 = vmatprep.subr.bf16.mxu0 %v5542_v37 }
0x1e47   :  { %1670 = vmatpush1.bf16.msra.mxu0 %v5548_v38 }
0x1e48   :  { %1671 = vmatprep.subr.bf16.mxu0 %v5580_v13 }
0x1e4b   :  { %1672 = vmatpush1.bf16.msra.mxu0 %v5586_v2 }
0x1e4c   :  { %1853 = vmatprep.subr.bf16.mxu0 %v5556_v39 }
0x1f11   :  { %v1503_v58 = vpop.f32.mrb[36].mxu0 }
0x1f12   :  { %v1505_v59 = vpop.f32.mrb[37].mxu0  ;;  %v1512_v12 = vrot.slane %v1503_v58, 6  ;;  %v1559_v58 = vld [vmem:[#allocation2 + $0x30] sm:$0x30] }
0x1f13   :  { %v1513_v60 = vrot.slane %v1505_v59, 6  ;;  %v1507_v5 = vpop.f32.mrb[38].mxu0 }
0x1f14   :  { %v1508_v62 = vpop.f32.mrb[39].mxu0  ;;  %v1516_v6 = vadd.f32 %v1512_v12, %v1463_v4 }
0x1f15   :  { %v1517_v63 = vadd.f32 %v1513_v60, %v1464_v61 }
0x1f16   :  { %v4426_v7 = vmul.f32 -1.442695, %v1516_v6 }
0x1f17   :  { %4786 = vtanh.f32 %v1517_v63  ;;  %v4427_v31 = vmul.f32 -1.442695, %v1517_v63 }
0x1f18   :  { %4788 = vpow2.f32 %v4426_v7 }
0x1f21   :  { %v4787_v10 = vpop.eup %4786 }
0x1f22   :  { %1536 = vrot.lane.b32.xlu1 %v4787_v10, %s5180_s3  ;;  %v4789_v8 = vpop.eup %4788 }
0x1f23   :  { %v1524_v9 = vadd.f32 1.0, %v4789_v8 }
0x1f25   :  { %4790 = vrcp.f32 %v1524_v9 }
0x1f2f   :  { %v4791_v16 = vpop.eup %4790 }
0x1f30   :  { %v1534_v26 = vmul.f32 %v4791_v16, %v1532_v25 }
0x1f94   :  { %v1537_v19 = vpop.permute.xlu1 %1536 }
0x1f95   :  { %v1539_v24 = vmul.f32 %v4791_v16, %v1537_v19 }
0x1f97   :  { %1541 = vrot.lane.b32.xlu0 %v1539_v24, %s5180_s3 }
0x2009   :  { %v1542_v28 = vpop.permute.xlu0 %1541 }
0x200a   :  { %v1544_v21 = vadd.f32 %v1542_v28, %v1534_v26 }
0x200c   :  { %4792 = vtanh.f32 %v1544_v21  ;;  %v1630_v12 = vrot.slane %v1544_v21, 6 }
0x200d   :  { %4794 = vpow2.f32 %v4427_v31 }
0x2016   :  { %v4793_v22 = vpop.eup %4792 }
0x2017   :  { %1547 = vrot.lane.b32.xlu1 %v4793_v22, %s5180_s3  ;;  %v4795_v32 = vpop.eup %4794 }
0x2018   :  { %v1525_v40 = vadd.f32 1.0, %v4795_v32 }
0x201a   :  { %4796 = vrcp.f32 %v1525_v40 }
0x2024   :  { %v4797_v41 = vpop.eup %4796 }
0x2089   :  { %v1548_v43 = vpop.permute.xlu1 %1547 }
0x208a   :  { %v5669_v44 = vmul.f32 %v4797_v41, %v1548_v43  ;;  %v1658_v41 = vld [vmem:[#allocation2 + $0x38] sm:$0xc0] }
0x208c   :  { %v1561_v45 = vpack.c.bf16 %v5669_v44, %v5669_v44 }
0x208e   :  { %v1563_v46 = vrot.slane %v1561_v45, 1 }
0x2090   :  { %4428 = vmatmul.mubr.msk.bf16.vlgmr.msra.gmra.mrb[28].mxu1 %vm210_vm4, %v1563_v46 }
0x2091   :  { %1764 = vmatpush1.bf16.msra.mxu1 %v5523_v34  ;;  %1795 = vmatprep.mubr.bf16.mxu1 %v5179_v0 }
0x2092   :  { %1765 = vmatprep.subr.bf16.mxu1 %v5530_v35 }
0x2095   :  { %1766 = vmatpush1.bf16.msra.mxu1 %v5536_v36 }
0x2096   :  { %1767 = vmatprep.subr.bf16.mxu1 %v5542_v37 }
0x2099   :  { %1768 = vmatpush1.bf16.msra.mxu1 %v5548_v38 }
0x209a   :  { %1769 = vmatprep.subr.bf16.mxu1 %v5580_v13 }
0x209d   :  { %1770 = vmatpush1.bf16.msra.mxu1 %v5586_v2 }
0x209e   :  { %1951 = vmatprep.subr.bf16.mxu1 %v5556_v39 }
0x2163   :  { %v1601_v47 = vpop.f32.mrb[28].mxu1 }
0x2164   :  { %v1603_v14 = vpop.f32.mrb[29].mxu1  ;;  %v1610_v57 = vrot.slane %v1601_v47, 4 }
0x2165   :  { %v1611_v48 = vrot.slane %v1603_v14, 4  ;;  %v1605_v15 = vpop.f32.mrb[30].mxu1  ;;  %v1657_v14 = vld [vmem:[#allocation2 + $0x30] sm:$0xc0] }
0x2166   :  { %v1606_v51 = vpop.f32.mrb[31].mxu1  ;;  %v1614_v59 = vadd.f32 %v1610_v57, %v1559_v58 }
0x2167   :  { %v1615_v52 = vadd.f32 %v1611_v48, %v1560_v50 }
0x2168   :  { %v4429_v60 = vmul.f32 -1.442695, %v1614_v59 }
0x2169   :  { %4798 = vtanh.f32 %v1615_v52  ;;  %v4430_v9 = vmul.f32 -1.442695, %v1615_v52 }
0x216a   :  { %4800 = vpow2.f32 %v4429_v60 }
0x2173   :  { %v4799_v53 = vpop.eup %4798 }
0x2174   :  { %1634 = vrot.lane.b32.xlu0 %v4799_v53, %s5180_s3  ;;  %v4801_v5 = vpop.eup %4800 }
0x2175   :  { %v1622_v61 = vadd.f32 1.0, %v4801_v5 }
0x2177   :  { %4802 = vrcp.f32 %v1622_v61 }
0x2181   :  { %v4803_v62 = vpop.eup %4802 }
0x2182   :  { %v1632_v4 = vmul.f32 %v4803_v62, %v1630_v12 }
0x21e6   :  { %v1635_v63 = vpop.permute.xlu0 %1634 }
0x21e7   :  { %v1637_v10 = vmul.f32 %v4803_v62, %v1635_v63 }
0x21e9   :  { %1639 = vrot.lane.b32.xlu1 %v1637_v10, %s5180_s3 }
0x225b   :  { %v1640_v6 = vpop.permute.xlu1 %1639 }
0x225c   :  { %v1642_v7 = vadd.f32 %v1640_v6, %v1632_v4 }
0x225e   :  { %4804 = vtanh.f32 %v1642_v7  ;;  %v1728_v58 = vrot.slane %v1642_v7, 6 }
0x225f   :  { %4806 = vpow2.f32 %v4430_v9 }
0x2268   :  { %v4805_v8 = vpop.eup %4804 }
0x2269   :  { %1645 = vrot.lane.b32.xlu0 %v4805_v8, %s5180_s3  ;;  %v4807_v16 = vpop.eup %4806 }
0x226a   :  { %v1623_v19 = vadd.f32 1.0, %v4807_v16  ;;  %v1756_v16 = vld [vmem:[#allocation2 + $0x48] sm:$0x3] }
0x226c   :  { %4808 = vrcp.f32 %v1623_v19 }
0x2276   :  { %v4809_v24 = vpop.eup %4808 }
0x22db   :  { %v1646_v25 = vpop.permute.xlu0 %1645 }
0x22dc   :  { %v5686_v26 = vmul.f32 %v4809_v24, %v1646_v25 }
0x22de   :  { %v1659_v28 = vpack.c.bf16 %v5686_v26, %v5686_v26 }
0x22e0   :  { %v1661_v21 = vrot.slane %v1659_v28, 2 }
0x22e2   :  { %4431 = vmatmul.mubr.msk.bf16.vlgmr.msra.gmra.mrb[40].mxu0 %vm210_vm4, %v1661_v21 }
0x22e3   :  { %1854 = vmatpush1.bf16.msra.mxu0 %v5523_v34  ;;  %1885 = vmatprep.mubr.bf16.mxu0 %v5179_v0 }
0x22e4   :  { %1855 = vmatprep.subr.bf16.mxu0 %v5530_v35 }
0x22e7   :  { %1856 = vmatpush1.bf16.msra.mxu0 %v5536_v36 }
0x22e8   :  { %1857 = vmatprep.subr.bf16.mxu0 %v5542_v37 }
0x22eb   :  { %1858 = vmatpush1.bf16.msra.mxu0 %v5548_v38 }
0x22ec   :  { %1859 = vmatprep.subr.bf16.mxu0 %v5580_v13 }
0x22ef   :  { %1860 = vmatpush1.bf16.msra.mxu0 %v5586_v2 }
0x22f0   :  { %2049 = vmatprep.subr.bf16.mxu0 %v5556_v39 }
0x23b5   :  { %v1699_v22 = vpop.f32.mrb[40].mxu0 }
0x23b6   :  { %v1701_v31 = vpop.f32.mrb[41].mxu0  ;;  %v1708_v47 = vrot.slane %v1699_v22, 2  ;;  %v1755_v22 = vld [vmem:[#allocation2 + $0x40] sm:$0x3] }
0x23b7   :  { %v1709_v32 = vrot.slane %v1701_v31, 2  ;;  %v1703_v40 = vpop.f32.mrb[42].mxu0 }
0x23b8   :  { %v1704_v43 = vpop.f32.mrb[43].mxu0  ;;  %v1712_v48 = vadd.f32 %v1708_v47, %v1657_v14 }
0x23b9   :  { %v1713_v45 = vadd.f32 %v1709_v32, %v1658_v41 }
0x23ba   :  { %v4432_v15 = vmul.f32 -1.442695, %v1712_v48 }
0x23bb   :  { %4810 = vtanh.f32 %v1713_v45  ;;  %v4433_v62 = vmul.f32 -1.442695, %v1713_v45 }
0x23bc   :  { %4812 = vpow2.f32 %v4432_v15 }
0x23c5   :  { %v4811_v46 = vpop.eup %4810 }
0x23c6   :  { %1732 = vrot.lane.b32.xlu1 %v4811_v46, %s5180_s3  ;;  %v4813_v50 = vpop.eup %4812 }
0x23c7   :  { %v1720_v51 = vadd.f32 1.0, %v4813_v50 }
0x23c9   :  { %4814 = vrcp.f32 %v1720_v51 }
0x23d3   :  { %v4815_v52 = vpop.eup %4814 }
0x23d4   :  { %v1730_v59 = vmul.f32 %v4815_v52, %v1728_v58 }
0x2438   :  { %v1733_v53 = vpop.permute.xlu1 %1732 }
0x2439   :  { %v1735_v57 = vmul.f32 %v4815_v52, %v1733_v53 }
0x243b   :  { %1737 = vrot.lane.b32.xlu0 %v1735_v57, %s5180_s3 }
0x24ad   :  { %v1738_v60 = vpop.permute.xlu0 %1737 }
0x24ae   :  { %v1740_v5 = vadd.f32 %v1738_v60, %v1730_v59 }
0x24b0   :  { %4816 = vtanh.f32 %v1740_v5  ;;  %v1820_v46 = vrot.slane %v1740_v5, 6 }
0x24b1   :  { %4818 = vpow2.f32 %v4433_v62 }
0x24ba   :  { %v4817_v61 = vpop.eup %4816 }
0x24bb   :  { %1743 = vrot.lane.b32.xlu1 %v4817_v61, %s5180_s3  ;;  %v4819_v63 = vpop.eup %4818 }
0x24bc   :  { %v1721_v10 = vadd.f32 1.0, %v4819_v63  ;;  %v1848_v63 = vld [vmem:[#allocation2 + $0x48] sm:$0xc] }
0x24be   :  { %4820 = vrcp.f32 %v1721_v10 }
0x24c8   :  { %v4821_v12 = vpop.eup %4820 }
0x252d   :  { %v1744_v4 = vpop.permute.xlu1 %1743 }
0x252e   :  { %v5703_v6 = vmul.f32 %v4821_v12, %v1744_v4 }
0x2530   :  { %v1757_v8 = vpack.c.bf16 %v5703_v6, %v5703_v6 }
0x2532   :  { %v1759_v7 = vrot.slane %v1757_v8, 3 }
0x2534   :  { %4434 = vmatmul.mubr.msk.bf16.vlgmr.msra.gmra.mrb[32].mxu1 %vm210_vm4, %v1759_v7  ;;  %v1847_v7 = vld [vmem:[#allocation2 + $0x40] sm:$0xc] }
0x2535   :  { %1952 = vmatpush1.bf16.msra.mxu1 %v5523_v34  ;;  %1983 = vmatprep.mubr.bf16.mxu1 %v5179_v0 }
0x2536   :  { %1953 = vmatprep.subr.bf16.mxu1 %v5530_v35 }
0x2539   :  { %1954 = vmatpush1.bf16.msra.mxu1 %v5536_v36 }
0x253a   :  { %1955 = vmatprep.subr.bf16.mxu1 %v5542_v37 }
0x253d   :  { %1956 = vmatpush1.bf16.msra.mxu1 %v5548_v38 }
0x253e   :  { %1957 = vmatprep.subr.bf16.mxu1 %v5580_v13 }
0x2541   :  { %1958 = vmatpush1.bf16.msra.mxu1 %v5586_v2 }
0x2542   :  { %2147 = vmatprep.subr.bf16.mxu1 %v5556_v39 }
0x2607   :  { %v1797_v9 = vpop.f32.mrb[32].mxu1 }
0x2608   :  { %v1799_v19 = vpop.f32.mrb[33].mxu1  ;;  %v1804_v31 = vadd.f32 %v1797_v9, %v1755_v22 }
0x2609   :  { %v1805_v24 = vadd.f32 %v1799_v19, %v1756_v16  ;;  %v1801_v25 = vpop.f32.mrb[34].mxu1 }
0x260a   :  { %v1802_v28 = vpop.f32.mrb[35].mxu1  ;;  %v4435_v32 = vmul.f32 -1.442695, %v1804_v31 }
0x260b   :  { %4822 = vtanh.f32 %v1805_v24  ;;  %v4436_v50 = vmul.f32 -1.442695, %v1805_v24 }
0x260c   :  { %4824 = vpow2.f32 %v4435_v32 }
0x2615   :  { %v4823_v21 = vpop.eup %4822 }
0x2616   :  { %1824 = vrot.lane.b32.xlu0 %v4823_v21, %s5180_s3  ;;  %v4825_v40 = vpop.eup %4824 }
0x2617   :  { %v1812_v41 = vadd.f32 1.0, %v4825_v40 }
0x2619   :  { %4826 = vrcp.f32 %v1812_v41 }
0x2623   :  { %v4827_v43 = vpop.eup %4826 }
0x2624   :  { %v1822_v47 = vmul.f32 %v4827_v43, %v1820_v46 }
0x2688   :  { %v1825_v45 = vpop.permute.xlu0 %1824 }
0x2689   :  { %v1827_v39 = vmul.f32 %v4827_v43, %v1825_v45 }
0x268b   :  { %1829 = vrot.lane.b32.xlu1 %v1827_v39, %s5180_s3 }
0x26fd   :  { %v1830_v14 = vpop.permute.xlu1 %1829 }
0x26fe   :  { %v1832_v48 = vadd.f32 %v1830_v14, %v1822_v47 }
0x2700   :  { %4828 = vtanh.f32 %v1832_v48  ;;  %v1916_v22 = vrot.slane %v1832_v48, 6 }
0x2701   :  { %4830 = vpow2.f32 %v4436_v50 }
0x270a   :  { %v4829_v15 = vpop.eup %4828 }
0x270b   :  { %1835 = vrot.lane.b32.xlu0 %v4829_v15, %s5180_s3  ;;  %v4831_v51 = vpop.eup %4830 }
0x270c   :  { %v1813_v52 = vadd.f32 1.0, %v4831_v51 }
0x270e   :  { %4832 = vrcp.f32 %v1813_v52 }
0x2718   :  { %v4833_v53 = vpop.eup %4832 }
0x277d   :  { %v1836_v57 = vpop.permute.xlu0 %1835 }
0x277e   :  { %v5720_v58 = vmul.f32 %v4833_v53, %v1836_v57  ;;  %v1944_v57 = vld [vmem:[#allocation2 + $0x48] sm:$0x30] }
0x2780   :  { %v1849_v59 = vpack.c.bf16 %v5720_v58, %v5720_v58 }
0x2782   :  { %4437 = vmatmul.mubr.msk.bf16.vlgmr.msra.gmra.mrb[44].mxu0 %vm210_vm4, %v1849_v59 }
0x2783   :  { %2050 = vmatpush1.bf16.msra.mxu0 %v5523_v34  ;;  %2081 = vmatprep.mubr.bf16.mxu0 %v5179_v0 }
0x2784   :  { %2051 = vmatprep.subr.bf16.mxu0 %v5530_v35 }
0x2787   :  { %2052 = vmatpush1.bf16.msra.mxu0 %v5536_v36 }
0x2788   :  { %2053 = vmatprep.subr.bf16.mxu0 %v5542_v37 }
0x278b   :  { %2054 = vmatpush1.bf16.msra.mxu0 %v5548_v38 }
0x278c   :  { %2055 = vmatprep.subr.bf16.mxu0 %v5580_v13 }
0x278f   :  { %2056 = vmatpush1.bf16.msra.mxu0 %v5586_v2 }
0x2855   :  { %v1887_v60 = vpop.f32.mrb[44].mxu0 }
0x2856   :  { %v1889_v5 = vpop.f32.mrb[45].mxu0  ;;  %v1896_v8 = vrot.slane %v1887_v60, 6 }
0x2857   :  { %v1897_v61 = vrot.slane %v1889_v5, 6  ;;  %v1891_v62 = vpop.f32.mrb[46].mxu0 }
0x2858   :  { %v1892_v10 = vpop.f32.mrb[47].mxu0  ;;  %v1900_v9 = vadd.f32 %v1896_v8, %v1847_v7 }
0x2859   :  { %v1901_v12 = vadd.f32 %v1897_v61, %v1848_v63 }
0x285a   :  { %v4438_v16 = vmul.f32 -1.442695, %v1900_v9 }
0x285b   :  { %4834 = vtanh.f32 %v1901_v12  ;;  %v4439_v43 = vmul.f32 -1.442695, %v1901_v12 }
0x285c   :  { %4836 = vpow2.f32 %v4438_v16 }
0x2865   :  { %v4835_v4 = vpop.eup %4834 }
0x2866   :  { %1920 = vrot.lane.b32.xlu1 %v4835_v4, %s5180_s3  ;;  %v4837_v19 = vpop.eup %4836 }
0x2867   :  { %v1908_v24 = vadd.f32 1.0, %v4837_v19 }
0x2869   :  { %4838 = vrcp.f32 %v1908_v24 }
0x2873   :  { %v4839_v25 = vpop.eup %4838 }
0x2874   :  { %v1918_v31 = vmul.f32 %v4839_v25, %v1916_v22 }
0x28d8   :  { %v1921_v28 = vpop.permute.xlu1 %1920 }
0x28d9   :  { %v1923_v21 = vmul.f32 %v4839_v25, %v1921_v28 }
0x28db   :  { %1925 = vrot.lane.b32.xlu0 %v1923_v21, %s5180_s3 }
0x294d   :  { %v1926_v32 = vpop.permute.xlu0 %1925 }
0x294e   :  { %v1928_v40 = vadd.f32 %v1926_v32, %v1918_v31 }
0x2950   :  { %4840 = vtanh.f32 %v1928_v40  ;;  %v2014_v63 = vrot.slane %v1928_v40, 6 }
0x2951   :  { %4842 = vpow2.f32 %v4439_v43 }
0x295a   :  { %v4841_v41 = vpop.eup %4840 }
0x295b   :  { %1931 = vrot.lane.b32.xlu1 %v4841_v41, %s5180_s3  ;;  %v4843_v45 = vpop.eup %4842  ;;  %v2042_v41 = vld [vmem:[#allocation2 + $0x48] sm:$0xc0] }
0x295c   :  { %v1909_v39 = vadd.f32 1.0, %v4843_v45 }
0x295e   :  { %4844 = vrcp.f32 %v1909_v39 }
0x2968   :  { %v4845_v46 = vpop.eup %4844 }
0x29cd   :  { %v1932_v47 = vpop.permute.xlu1 %1931 }
0x29ce   :  { %v5736_v14 = vmul.f32 %v4845_v46, %v1932_v47  ;;  %v2041_v47 = vld [vmem:[#allocation2 + $0x40] sm:$0xc0] }
0x29d0   :  { %v1945_v15 = vpack.c.bf16 %v5736_v14, %v5736_v14 }
0x29d2   :  { %v1947_v48 = vrot.slane %v1945_v15, 1 }
0x29d4   :  { %4440 = vmatmul.mubr.msk.bf16.vlgmr.msra.gmra.mrb[36].mxu1 %vm210_vm4, %v1947_v48 }
0x29d5   :  { %2148 = vmatpush1.bf16.msra.mxu1 %v5523_v34  ;;  %2179 = vmatprep.mubr.bf16.mxu1 %v5179_v0 }
0x29d6   :  { %2149 = vmatprep.subr.bf16.mxu1 %v5530_v35 }
0x29d9   :  { %2150 = vmatpush1.bf16.msra.mxu1 %v5536_v36  ;;  %v1943_v36 = vld [vmem:[#allocation2 + $0x40] sm:$0x30] }
0x29da   :  { %2151 = vmatprep.subr.bf16.mxu1 %v5542_v37 }
0x29dd   :  { %2152 = vmatpush1.bf16.msra.mxu1 %v5548_v38 }
0x29de   :  { %2153 = vmatprep.subr.bf16.mxu1 %v5580_v13 }
0x29e1   :  { %2154 = vmatpush1.bf16.msra.mxu1 %v5586_v2 }
0x2aa7   :  { %v1985_v50 = vpop.f32.mrb[36].mxu1 }
0x2aa8   :  { %v1987_v51 = vpop.f32.mrb[37].mxu1  ;;  %v1994_v35 = vrot.slane %v1985_v50, 4 }
0x2aa9   :  { %v1995_v52 = vrot.slane %v1987_v51, 4  ;;  %v1989_v53 = vpop.f32.mrb[38].mxu1 }
0x2aaa   :  { %v1990_v34 = vpop.f32.mrb[39].mxu1  ;;  %v1998_v37 = vadd.f32 %v1994_v35, %v1943_v36 }
0x2aab   :  { %v1999_v59 = vadd.f32 %v1995_v52, %v1944_v57 }
0x2aac   :  { %v4441_v5 = vmul.f32 -1.442695, %v1998_v37 }
0x2aad   :  { %4846 = vtanh.f32 %v1999_v59  ;;  %v4442_v7 = vmul.f32 -1.442695, %v1999_v59 }
0x2aae   :  { %4848 = vpow2.f32 %v4441_v5 }
0x2ab7   :  { %v4847_v60 = vpop.eup %4846 }
0x2ab8   :  { %2018 = vrot.lane.b32.xlu0 %v4847_v60, %s5180_s3  ;;  %v4849_v38 = vpop.eup %4848 }
0x2ab9   :  { %v2006_v13 = vadd.f32 1.0, %v4849_v38 }
0x2abb   :  { %4850 = vrcp.f32 %v2006_v13 }
0x2ac5   :  { %v4851_v2 = vpop.eup %4850 }
0x2ac6   :  { %v2016_v10 = vmul.f32 %v4851_v2, %v2014_v63 }
0x2b2a   :  { %v2019_v61 = vpop.permute.xlu0 %2018 }
0x2b2b   :  { %v2021_v62 = vmul.f32 %v4851_v2, %v2019_v61 }
0x2b2d   :  { %2023 = vrot.lane.b32.xlu1 %v2021_v62, %s5180_s3 }
0x2b9f   :  { %v2024_v12 = vpop.permute.xlu1 %2023 }
0x2ba0   :  { %v2026_v4 = vadd.f32 %v2024_v12, %v2016_v10  ;;  %v2140_v12 = vld [vmem:[#allocation2 + $0x58] sm:$0x3] }
0x2ba2   :  { %4852 = vtanh.f32 %v2026_v4  ;;  %v2112_v34 = vrot.slane %v2026_v4, 6 }
0x2ba3   :  { %4854 = vpow2.f32 %v4442_v7 }
0x2bac   :  { %v4853_v8 = vpop.eup %4852 }
0x2bad   :  { %2029 = vrot.lane.b32.xlu0 %v4853_v8, %s5180_s3  ;;  %v4855_v9 = vpop.eup %4854 }
0x2bae   :  { %v2007_v16 = vadd.f32 1.0, %v4855_v9 }
0x2bb0   :  { %4856 = vrcp.f32 %v2007_v16 }
0x2bba   :  { %v4857_v19 = vpop.eup %4856 }
0x2c1f   :  { %v2030_v24 = vpop.permute.xlu0 %2029 }
0x2c20   :  { %v5752_v25 = vmul.f32 %v4857_v19, %v2030_v24  ;;  %v2139_v19 = vld [vmem:[#allocation2 + $0x50] sm:$0x3] }
0x2c22   :  { %v2043_v28 = vpack.c.bf16 %v5752_v25, %v5752_v25 }
0x2c24   :  { %v2045_v21 = vrot.slane %v2043_v28, 2 }
0x2c26   :  { %4443 = vmatmul.mubr.msk.bf16.vlgmr.msra.gmra.mrb[48].mxu0 %vm210_vm4, %v2045_v21 }
0x2c27   :  { %2388 = vmatprep.mubr.bf16.mxu0 %v5179_v0 }
0x2cf9   :  { %v2083_v22 = vpop.f32.mrb[48].mxu0 }
0x2cfa   :  { %v2085_v31 = vpop.f32.mrb[49].mxu0  ;;  %v2092_v46 = vrot.slane %v2083_v22, 2 }
0x2cfb   :  { %v2093_v32 = vrot.slane %v2085_v31, 2  ;;  %v2087_v40 = vpop.f32.mrb[50].mxu0 }
0x2cfc   :  { %v2088_v43 = vpop.f32.mrb[51].mxu0  ;;  %v2096_v15 = vadd.f32 %v2092_v46, %v2041_v47  ;;  %v4594_v47 = vld [vmem:[%s6454_s4] ss:$8 sps:$4 sm:$0xff]  }
0x2cfd   :  { %v2097_v45 = vadd.f32 %v2093_v32, %v2042_v41 }
0x2cfe   :  { %v4444_v48 = vmul.f32 -1.442695, %v2096_v15  ;;  %v4596_v15 = vld [vmem:[%s6454_s4 + $0x4] ss:$8 sps:$4 sm:$0xff]  }
0x2cff   :  { %4858 = vtanh.f32 %v2097_v45  ;;  %v4445_v37 = vmul.f32 -1.442695, %v2097_v45  ;;  %2356 = vmatprep.subr.bf16.mxu0 %v4596_v15 }
0x2d00   :  { %4860 = vpow2.f32 %v4444_v48  ;;  %2357 = vmatpush1.bf16.msra.mxu0 %v4594_v47  ;;  %v4605_v48 = vld [vmem:[%s6454_s4 + $0x34] ss:$8 sps:$4 sm:$0xff]  }
0x2d09   :  { %v4859_v39 = vpop.eup %4858 }
0x2d0a   :  { %2116 = vrot.lane.b32.xlu1 %v4859_v39, %s5180_s3  ;;  %v4861_v50 = vpop.eup %4860 }
0x2d0b   :  { %v2104_v51 = vadd.f32 1.0, %v4861_v50  ;;  %v4603_v50 = vld [vmem:[%s6454_s4 + $0x30] ss:$8 sps:$4 sm:$0xff]  }
0x2d0d   :  { %4862 = vrcp.f32 %v2104_v51  ;;  %v4606_v51 = vld [vmem:[%s6454_s4 + $0x40] ss:$8 sps:$4 sm:$0xff]  }
0x2d17   :  { %v4863_v52 = vpop.eup %4862 }
0x2d18   :  { %v2114_v59 = vmul.f32 %v4863_v52, %v2112_v34 }
0x2d7c   :  { %v2117_v53 = vpop.permute.xlu1 %2116 }
0x2d7d   :  { %v2119_v57 = vmul.f32 %v4863_v52, %v2117_v53  ;;  %v4609_v52 = vld [vmem:[%s6454_s4 + $0x50] ss:$8 sps:$4 sm:$0xff]  }
0x2d7f   :  { %2121 = vrot.lane.b32.xlu0 %v2119_v57, %s5180_s3 }
0x2df1   :  { %v2122_v60 = vpop.permute.xlu0 %2121 }
0x2df2   :  { %v2124_v35 = vadd.f32 %v2122_v60, %v2114_v59  ;;  %v5862_v59 = vld [vmem:[#allocation5 + $0x4] ss:$8 sps:$4 sm:$0xff]   ;;  %v4614_v60 = vld [vmem:[%s6454_s4 + $0x60] ss:$8 sps:$4 sm:$0xff]  }
0x2df3   :  { %2473 = vmatprep.subr.bf16.mxu1 %v5862_v59 }
0x2df4   :  { %4864 = vtanh.f32 %v2124_v35 }
0x2df5   :  { %4866 = vpow2.f32 %v4445_v37  ;;  %v5872_v37 = vld [vmem:[#allocation5 + $0x14] ss:$8 sps:$4 sm:$0xff]  }
0x2dfe   :  { %v4865_v36 = vpop.eup %4864 }
0x2dff   :  { %2127 = vrot.lane.b32.xlu1 %v4865_v36, %s5180_s3  ;;  %v4867_v5 = vpop.eup %4866  ;;  %v5870_v36 = vld [vmem:[#allocation5] ss:$8 sps:$4 sm:$0xff]  }
0x2e00   :  { %v2105_v38 = vadd.f32 1.0, %v4867_v5  ;;  %v4622_v5 = vld [vmem:[%s6454_s4 + $0x74] ss:$8 sps:$4 sm:$0xff]  }
0x2e02   :  { %4868 = vrcp.f32 %v2105_v38  ;;  %v4620_v38 = vld [vmem:[%s6454_s4 + $0x70] ss:$8 sps:$4 sm:$0xff]  }
0x2e0c   :  { %v4869_v13 = vpop.eup %4868 }
0x2e71   :  { %v2128_v2 = vpop.permute.xlu1 %2127 }
0x2e72   :  { %v5761_v61 = vmul.f32 %v4869_v13, %v2128_v2  ;;  %v5882_v13 = vld [vmem:[#allocation5 + $0x10] ss:$8 sps:$4 sm:$0xff]  }
0x2e74   :  { %v2141_v62 = vpack.c.bf16 %v5761_v61, %v5761_v61 }
0x2e76   :  { %v2143_v63 = vrot.slane %v2141_v62, 3  ;;  %v5885_v62 = vld [vmem:[#allocation5 + $0x24] ss:$8 sps:$4 sm:$0xff]  }
0x2e78   :  { %4446 = vmatmul.mubr.msk.bf16.vlgmr.msra.gmra.mrb[40].mxu1 %vm210_vm4, %v2143_v63 }
0x2e79   :  { %2505 = vmatprep.mubr.bf16.mxu1 %v5179_v0  ;;  %2474 = vmatpush1.bf16.msra.mxu1 %v5870_v36 }
0x2e7a   :  { %2475 = vmatprep.subr.bf16.mxu1 %v5872_v37 }
0x2e7d   :  { %2476 = vmatpush1.bf16.msra.mxu1 %v5882_v13 }
0x2e7e   :  { %2477 = vmatprep.subr.bf16.mxu1 %v5885_v62 }
0x2f4b   :  { %v2181_v10 = vpop.f32.mrb[40].mxu1 }
0x2f4c   :  { %v2183_v4 = vpop.f32.mrb[41].mxu1  ;;  %v2188_v24 = vadd.f32 %v2181_v10, %v2139_v19 }
0x2f4d   :  { %v5767_v8 = vadd.f32 %v2183_v4, %v2140_v12  ;;  %v2185_v7 = vpop.f32.mrb[42].mxu1  ;;  %v5890_v4 = vld [vmem:[#allocation5 + $0x20] ss:$8 sps:$4 sm:$0xff]  }
0x2f4e   :  { %v2186_v9 = vpop.f32.mrb[43].mxu1  ;;  %v4447_v28 = vmul.f32 -1.442695, %v2188_v24  ;;  %2478 = vmatpush1.bf16.msra.mxu1 %v5890_v4 }
0x2f4f   :  { %4870 = vtanh.f32 %v5767_v8  ;;  %v4448_v53 = vmul.f32 -1.442695, %v5767_v8  ;;  %v5892_v8 = vld [vmem:[#allocation5 + $0x34] ss:$8 sps:$4 sm:$0xff]   ;;  %v5895_v9 = vld [vmem:[#allocation5 + $0x30] ss:$8 sps:$4 sm:$0xff]  }
0x2f50   :  { %4872 = vpow2.f32 %v4447_v28  ;;  %2479 = vmatprep.subr.bf16.mxu1 %v5892_v8 }
0x2f52   :  { %2480 = vmatpush1.bf16.msra.mxu1 %v5895_v9 }
0x2f53   :  { %2555 = vmatprep.subr.bf16.mxu1 %v5862_v59 }
0x2f55   :  { %2506 = vmatmul.mubr.bf16.vlgmr.msra.gmra.mrb[44].mxu1 %v5179_v0 }
0x2f56   :  { %2556 = vmatpush1.bf16.msra.mxu1 %v5870_v36  ;;  %2587 = vmatprep.mubr.bf16.mxu1 %v5179_v0 }
0x2f57   :  { %2557 = vmatprep.subr.bf16.mxu1 %v5872_v37 }
0x2f59   :  { %v4871_v16 = vpop.eup %4870 }
0x2f5a   :  { %2208 = vrot.lane.b32.xlu0 %v4871_v16, %s5180_s3  ;;  %v4873_v21 = vpop.eup %4872  ;;  %2558 = vmatpush1.bf16.msra.mxu1 %v5882_v13 }
0x2f5b   :  { %v2196_v22 = vadd.f32 1.0, %v4873_v21  ;;  %2559 = vmatprep.subr.bf16.mxu1 %v5885_v62 }
0x2f5d   :  { %4874 = vrcp.f32 %v2196_v22 }
0x2f5e   :  { %2560 = vmatpush1.bf16.msra.mxu1 %v5890_v4 }
0x2f5f   :  { %2561 = vmatprep.subr.bf16.mxu1 %v5892_v8 }
0x2f62   :  { %2562 = vmatpush1.bf16.msra.mxu1 %v5895_v9 }
0x2f63   :  { %2649 = vmatprep.subr.bf16.mxu1 %v5862_v59 }
0x2f67   :  { %v4875_v31 = vpop.eup %4874 }
0x2fcc   :  { %v2209_v32 = vpop.permute.xlu0 %2208 }
0x2fcd   :  { %v2211_v40 = vmul.f32 %v4875_v31, %v2209_v32 }
0x2fcf   :  { %2213 = vrot.lane.b32.xlu1 %v2211_v40, %s5180_s3 }
0x2fd3   :  { %292 = vrot.lane.b32.xlu1 %v5363_v27, %s5180_s3  ;;  %v2204_v27 = vrot.slane %v2124_v35, 6  ;;  %v4616_v35 = vld [vmem:[%s6454_s4 + $0x64] ss:$8 sps:$4 sm:$0xff]  }
0x2fd7   :  { %494 = vrot.lane.b32.xlu1 %v5406_v33, %s5180_s3  ;;  %v2206_v33 = vmul.f32 %v4875_v31, %v2204_v27 }
0x2fdb   :  { %690 = vrot.lane.b32.xlu1 %v5448_v42, %s5180_s3 }
0x2fdf   :  { %884 = vrot.lane.b32.xlu1 %v5490_v54, %s5180_s3 }
0x2fe3   :  { %1554 = vrot.lane.b32.xlu1 %v5669_v44, %s5180_s3 }
0x2fe7   :  { %1750 = vrot.lane.b32.xlu1 %v5703_v6, %s5180_s3 }
0x2feb   :  { %1938 = vrot.lane.b32.xlu1 %v5736_v14, %s5180_s3 }
0x2fef   :  { %2134 = vrot.lane.b32.xlu1 %v5761_v61, %s5180_s3 }
0x3028   :  { %v2507_v40 = vpop.f32.mrb[44].mxu1 }
0x3029   :  { %v2509_v27 = vpop.f32.mrb[45].mxu1 }
0x3041   :  { %v2214_v41 = vpop.permute.xlu1 %2213 }
0x3042   :  { %v2216_v43 = vadd.f32 %v2214_v41, %v2206_v33  ;;  %v2511_v33 = vpop.f32.mrb[46].mxu1 }
0x3043   :  { %v2512_v41 = vpop.f32.mrb[47].mxu1 }
0x3044   :  { %4876 = vtanh.f32 %v2216_v43  ;;  %v2264_v43 = vld [vmem:[%s6456_s6] sm:$0x3] }
0x3045   :  { %v293_v42 = vpop.permute.xlu1 %292  ;;  %4878 = vpow2.f32 %v4448_v53 }
0x3046   :  { %296 = vst.msk [vmem:[#allocation4 + $0x28] sm:$0x3] %vm295_vm11, %v293_v42 }
0x3047   :  { %298 = vst.msk [vmem:[#allocation4] sm:$0x3] %vm297_vm12, %v293_v42  ;;  %v5969_v42 = vrot.slane %v2264_v43, %v63_v18 }
0x3049   :  { %v495_v54 = vpop.permute.xlu1 %494 }
0x304a   :  { %498 = vst.msk [vmem:[#allocation4 + $0x20] sm:$0x30] %vm497_vm13, %v495_v54 }
0x304b   :  { %500 = vst.msk [vmem:[#allocation4] sm:$0x30] %vm499_vm14, %v495_v54  ;;  %v5973_v54 = vrot.slane %v2264_v43, %v67_v20 }
0x304c   :  { %2033 = vst.msk [vmem:[#allocation4 + $0x20] sm:$0x30] %vm489_vm7, %v5752_v25 }
0x304d   :  { %2034 = vst.msk [vmem:[#allocation4] sm:$0x30] %vm6458_vm8, %v5752_v25  ;;  %v691_v45 = vpop.permute.xlu1 %690 }
0x304e   :  { %v4877_v39 = vpop.eup %4876  ;;  %693 = vst.msk [vmem:[#allocation4 + $0x20] sm:$0x3] %vm295_vm11, %v691_v45 }
0x304f   :  { %694 = vst.msk [vmem:[#allocation4 + $0x8] sm:$0x3] %vm297_vm12, %v691_v45  ;;  %2219 = vrot.lane.b32.xlu0 %v4877_v39, %s5180_s3 }
0x3050   :  { %1839 = vst.msk [vmem:[#allocation4 + $0x20] sm:$0x3] %vm287_vm2, %v5720_v58 }
0x3051   :  { %1840 = vst.msk [vmem:[#allocation4 + $0x8] sm:$0x3] %vm289_vm3, %v5720_v58  ;;  %v885_v46 = vpop.permute.xlu1 %884 }
0x3052   :  { %887 = vst.msk [vmem:[#allocation4 + $0x18] sm:$0x30] %vm497_vm13, %v885_v46 }
0x3053   :  { %888 = vst.msk [vmem:[#allocation4 + $0x8] sm:$0x30] %vm499_vm14, %v885_v46  ;;  %392 = vrot.lane.b32.xlu0 %v5385_v55, %s5180_s3  ;;  %v4599_v55 = vld [vmem:[%s6454_s4 + $0x14] ss:$8 sps:$4 sm:$0xff]  }
0x3054   :  { %1649 = vst.msk [vmem:[#allocation4 + $0x18] sm:$0x30] %vm489_vm7, %v5686_v26  ;;  %2358 = vmatprep.subr.bf16.mxu0 %v4599_v55 }
0x3055   :  { %1650 = vst.msk [vmem:[#allocation4 + $0x8] sm:$0x30] %vm6458_vm8, %v5686_v26  ;;  %v5860_v34 = vpop.permute.xlu1 %1554  ;;  %vm601_vm8 = vcmask 1048326  }
0x3057   :  { %596 = vrot.lane.b32.xlu0 %v5427_v1, %s5180_s3  ;;  %v4597_v1 = vld [vmem:[%s6454_s4 + $0x10] ss:$8 sps:$4 sm:$0xff]  }
0x3058   :  { %2359 = vmatpush1.bf16.msra.mxu0 %v4597_v1 }
0x3059   :  { %v1751_v2 = vpop.permute.xlu1 %1750 }
0x305b   :  { %786 = vrot.lane.b32.xlu0 %v5469_v23, %s5180_s3  ;;  %v4602_v23 = vld [vmem:[%s6454_s4 + $0x24] ss:$8 sps:$4 sm:$0xff]  }
0x305c   :  { %2360 = vmatprep.subr.bf16.mxu0 %v4602_v23 }
0x305d   :  { %v1939_v10 = vpop.permute.xlu1 %1938 }
0x305f   :  { %982 = vrot.lane.b32.xlu0 %v5511_v30, %s5180_s3  ;;  %v4600_v30 = vld [vmem:[%s6454_s4 + $0x20] ss:$8 sps:$4 sm:$0xff]  }
0x3060   :  { %2361 = vmatpush1.bf16.msra.mxu0 %v4600_v30 }
0x3061   :  { %2362 = vmatprep.subr.bf16.mxu0 %v4605_v48  ;;  %v2135_v19 = vpop.permute.xlu1 %2134 }
0x3063   :  { %1652 = vrot.lane.b32.xlu0 %v5686_v26, %s5180_s3  ;;  %v4608_v26 = vld [vmem:[%s6454_s4 + $0x44] ss:$8 sps:$4 sm:$0xff]  }
0x3064   :  { %2363 = vmatpush1.bf16.msra.mxu0 %v4603_v50 }
0x3065   :  { %2364 = vmatprep.subr.bf16.mxu0 %v4608_v26 }
0x3067   :  { %1842 = vrot.lane.b32.xlu0 %v5720_v58, %s5180_s3  ;;  %v4611_v58 = vld [vmem:[%s6454_s4 + $0x54] ss:$8 sps:$4 sm:$0xff]  }
0x3068   :  { %2365 = vmatpush1.bf16.msra.mxu0 %v4606_v51 }
0x3069   :  { %2366 = vmatprep.subr.bf16.mxu0 %v4611_v58 }
0x306b   :  { %2036 = vrot.lane.b32.xlu0 %v5752_v25, %s5180_s3  ;;  %v4879_v25 = vpop.eup %4878 }
0x306c   :  { %2367 = vmatpush1.bf16.msra.mxu0 %v4609_v52  ;;  %v2197_v57 = vadd.f32 1.0, %v4879_v25 }
0x306d   :  { %2368 = vmatprep.subr.bf16.mxu0 %v4616_v35 }
0x306e   :  { %4880 = vrcp.f32 %v2197_v57 }
0x3070   :  { %2369 = vmatpush1.bf16.msra.mxu0 %v4614_v60 }
0x3071   :  { %2370 = vmatprep.subr.bf16.mxu0 %v4622_v5 }
0x3074   :  { %2371 = vmatpush1.bf16.msra.mxu0 %v4620_v38 }
0x3075   :  { %2743 = vmatprep.subr.bf16.mxu0 %v5862_v59 }
0x3078   :  { %v4881_v63 = vpop.eup %4880 }
0x30c1   :  { %v2220_v12 = vpop.permute.xlu0 %2219 }
0x30c2   :  { %v2222_v7 = vmul.f32 %v4881_v63, %v2220_v12 }
0x30c4   :  { %2223 = vst.msk [vmem:[#allocation4 + $0x28] sm:$0x3] %vm287_vm2, %v2222_v7  ;;  %2226 = vrot.lane.b32.xlu0 %v2222_v7, %s5180_s3 }
0x30c5   :  { %2224 = vst.msk [vmem:[#allocation4] sm:$0x3] %vm289_vm3, %v2222_v7  ;;  %v393_v16 = vpop.permute.xlu0 %392 }
0x30c6   :  { %396 = vst.msk [vmem:[#allocation4 + $0x24] sm:$0xc] %vm395_vm15, %v393_v16 }
0x30c7   :  { %398 = vst.msk [vmem:[#allocation4] sm:$0xc] %vm397_vm0, %v393_v16 }
0x30c8   :  { %2131 = vst.msk [vmem:[#allocation4 + $0x20] sm:$0xc0] %vm591_vm9, %v5761_v61 }
0x30c9   :  { %2132 = vst.msk [vmem:[#allocation4 - $0x4] sm:$0xc0] %vm593_vm10, %v5761_v61  ;;  %v597_v24 = vpop.permute.xlu0 %596 }
0x30ca   :  { %2137 = vst.msk [vmem:[#allocation4 - $0x4] sm:$0xc0] %vm599_vm1, %v2135_v19  ;;  %600 = vst.msk [vmem:[#allocation4 + $0x1c] sm:$0xc0] %vm599_vm1, %v597_v24 }
0x30cb   :  { %2138 = vst.msk [vmem:[#allocation4 + $0x20] sm:$0xc0] %vm601_vm8, %v2135_v19  ;;  %602 = vst.msk [vmem:[#allocation4] sm:$0xc0] %vm601_vm8, %v597_v24 }
0x30cc   :  { %1935 = vst.msk [vmem:[#allocation4 + $0x20] sm:$0xc] %vm387_vm5, %v5736_v14 }
0x30cd   :  { %1936 = vst.msk [vmem:[#allocation4 + $0x4] sm:$0xc] %vm389_vm6, %v5736_v14  ;;  %v787_v61 = vpop.permute.xlu0 %786 }
0x30ce   :  { %1941 = vst.msk [vmem:[#allocation4 + $0x4] sm:$0xc] %vm395_vm15, %v1939_v10  ;;  %789 = vst.msk [vmem:[#allocation4 + $0x1c] sm:$0xc] %vm395_vm15, %v787_v61 }
0x30cf   :  { %1942 = vst.msk [vmem:[#allocation4 + $0x20] sm:$0xc] %vm397_vm0, %v1939_v10  ;;  %790 = vst.msk [vmem:[#allocation4 + $0x8] sm:$0xc] %vm397_vm0, %v787_v61 }
0x30d0   :  { %1747 = vst.msk [vmem:[#allocation4 + $0x18] sm:$0xc0] %vm591_vm9, %v5703_v6 }
0x30d1   :  { %1748 = vst.msk [vmem:[#allocation4 + $0x4] sm:$0xc0] %vm593_vm10, %v5703_v6  ;;  %v983_v14 = vpop.permute.xlu0 %982 }
0x30d2   :  { %1753 = vst.msk [vmem:[#allocation4 + $0x4] sm:$0xc0] %vm599_vm1, %v1751_v2  ;;  %985 = vst.msk [vmem:[#allocation4 + $0x14] sm:$0xc0] %vm599_vm1, %v983_v14 }
0x30d3   :  { %1754 = vst.msk [vmem:[#allocation4 + $0x18] sm:$0xc0] %vm601_vm8, %v1751_v2  ;;  %986 = vst.msk [vmem:[#allocation4 + $0x8] sm:$0xc0] %vm601_vm8, %v983_v14 }
0x30d4   :  { %1551 = vst.msk [vmem:[#allocation4 + $0x18] sm:$0xc] %vm387_vm5, %v5669_v44 }
0x30d5   :  { %1552 = vst.msk [vmem:[#allocation4 + $0xc] sm:$0xc] %vm389_vm6, %v5669_v44  ;;  %v1653_v6 = vpop.permute.xlu0 %1652 }
0x30d6   :  { %1557 = vst.msk [vmem:[#allocation4 + $0xc] sm:$0xc] %vm395_vm15, %v5860_v34 }
0x30d7   :  { %1558 = vst.msk [vmem:[#allocation4 + $0x18] sm:$0xc] %vm397_vm0, %v5860_v34 }
0x30d8   :  { %1655 = vst.msk [vmem:[#allocation4 + $0x8] sm:$0x30] %vm497_vm13, %v1653_v6 }
0x30d9   :  { %1656 = vst.msk [vmem:[#allocation4 + $0x18] sm:$0x30] %vm499_vm14, %v1653_v6  ;;  %v1843_v44 = vpop.permute.xlu0 %1842 }
0x30da   :  { %1845 = vst.msk [vmem:[#allocation4 + $0x8] sm:$0x3] %vm295_vm11, %v1843_v44 }
0x30db   :  { %1846 = vst.msk [vmem:[#allocation4 + $0x20] sm:$0x3] %vm297_vm12, %v1843_v44 }
0x30dd   :  { %v2037_v28 = vpop.permute.xlu0 %2036 }
0x30de   :  { %2039 = vst.msk [vmem:[#allocation4] sm:$0x30] %vm497_vm13, %v2037_v28 }
0x30df   :  { %2040 = vst.msk [vmem:[#allocation4 + $0x20] sm:$0x30] %vm499_vm14, %v2037_v28 }
0x30e1   :  { %v2240_v31 = vld [vmem:[#allocation4 + $0x8] sm:$0xff] }
0x3136   :  { %v2227_v21 = vpop.permute.xlu0 %2226 }
0x3137   :  { %2229 = vst.msk [vmem:[#allocation4] sm:$0x3] %vm295_vm11, %v2227_v21 }
0x3138   :  { %2230 = vst.msk [vmem:[#allocation4 + $0x28] sm:$0x3] %vm297_vm12, %v2227_v21 }
0x313e   :  { %v2239_v22 = vld [vmem:[#allocation4] sm:$0xff] }
0x313f   :  { %v2245_v32 = vpack.c.bf16 %v2240_v31, %v2239_v22 }
0x3141   :  { %2389 = vmatmul.mubr.bf16.vlgmr.msra.gmra.mrb[52].mxu0 %v2245_v32 }
0x3142   :  { %2398 = vmatprep.mubr.bf16.mxu0 %v5179_v0  ;;  %2744 = vmatpush1.bf16.msra.mxu0 %v5870_v36 }
0x3143   :  { %2745 = vmatprep.subr.bf16.mxu0 %v5872_v37 }
0x3146   :  { %2746 = vmatpush1.bf16.msra.mxu0 %v5882_v13 }
0x3147   :  { %2747 = vmatprep.subr.bf16.mxu0 %v5885_v62 }
0x314a   :  { %2748 = vmatpush1.bf16.msra.mxu0 %v5890_v4 }
0x314b   :  { %2749 = vmatprep.subr.bf16.mxu0 %v5892_v8 }
0x314e   :  { %2750 = vmatpush1.bf16.msra.mxu0 %v5895_v9 }
0x314f   :  { %2923 = vmatprep.subr.bf16.mxu0 %v5862_v59 }
0x3214   :  { %v2390_v45 = vpop.f32.mrb[52].mxu0 }
0x3215   :  { %v2391_v39 = vadd.f32 %v2390_v45, %v5969_v42  ;;  %v2392_v46 = vpop.f32.mrb[53].mxu0 }
0x3216   :  { %v2393_v47 = vadd.f32 %v2392_v46, %v5973_v54  ;;  %v2394_v15 = vpop.f32.mrb[54].mxu0 }
0x3217   :  { %2419 = vst [vmem:[#allocation3] sm:$0xff] %v2391_v39  ;;  %v2395_v55 = vadd.f32 %v2394_v15, %v5969_v42  ;;  %v2396_v1 = vpop.f32.mrb[55].mxu0 }
0x3218   :  { %2420 = vst [vmem:[#allocation3 + $0x8] sm:$0xff] %v2393_v47  ;;  %v2397_v23 = vadd.f32 %v2396_v1, %v5973_v54 }
0x3219   :  { %2421 = vst [vmem:[#allocation3 + $0x10] sm:$0xff] %v2395_v55 }
0x321a   :  { %2422 = vst [vmem:[#allocation3 + $0x18] sm:$0xff] %v2397_v23 }
0x321e   :  { %v2431_v30 = vld [vmem:[#allocation3] sm:$0x3]  ;;  %v2549_v21 = vld [vmem:[#allocation3] sm:$0xc] }
0x321f   :  { %v2432_v18 = vld [vmem:[#allocation3 + $0x8] sm:$0x3]  ;;  %v2514_v48 = vadd.f32 %v2507_v40, %v2431_v30  ;;  %v2550_v61 = vld [vmem:[#allocation3 + $0x8] sm:$0xc] }
0x3220   :  { %v2515_v17 = vadd.f32 %v2509_v27, %v2432_v18 }
0x3221   :  { %v4473_v50 = vmul.f32 -1.442695, %v2514_v48 }
0x3222   :  { %4882 = vtanh.f32 %v2515_v17  ;;  %v4474_v35 = vmul.f32 -1.442695, %v2515_v17 }
0x3223   :  { %4884 = vpow2.f32 %v4473_v50 }
0x322c   :  { %v4883_v20 = vpop.eup %4882 }
0x322d   :  { %2531 = vrot.lane.b32.xlu1 %v4883_v20, %s5180_s3  ;;  %v4885_v26 = vpop.eup %4884 }
0x322e   :  { %v2522_v51 = vadd.f32 1.0, %v4885_v26 }
0x3230   :  { %4886 = vrcp.f32 %v2522_v51 }
0x323a   :  { %v4887_v58 = vpop.eup %4886 }
0x323b   :  { %v2529_v25 = vmul.f32 0.0, %v4887_v58 }
0x329f   :  { %v2532_v52 = vpop.permute.xlu1 %2531 }
0x32a0   :  { %v2534_v53 = vmul.f32 %v4887_v58, %v2532_v52  ;;  %v2642_v58 = vld [vmem:[#allocation3 + $0x8] sm:$0x30] }
0x32a2   :  { %2536 = vrot.lane.b32.xlu0 %v2534_v53, %s5180_s3 }
0x3314   :  { %v2537_v57 = vpop.permute.xlu0 %2536 }
0x3315   :  { %v2539_v34 = vadd.f32 %v2537_v57, %v2529_v25 }
0x3317   :  { %4888 = vtanh.f32 %v2539_v34  ;;  %v2618_v43 = vrot.slane %v2539_v34, 6  ;;  %v2641_v34 = vld [vmem:[#allocation3] sm:$0x30] }
0x3318   :  { %4890 = vpow2.f32 %v4474_v35 }
0x3321   :  { %v4889_v60 = vpop.eup %4888 }
0x3322   :  { %2542 = vrot.lane.b32.xlu1 %v4889_v60, %s5180_s3  ;;  %v4891_v5 = vpop.eup %4890 }
0x3323   :  { %v2523_v38 = vadd.f32 1.0, %v4891_v5 }
0x3325   :  { %4892 = vrcp.f32 %v2523_v38 }
0x332f   :  { %v4893_v2 = vpop.eup %4892 }
0x3394   :  { %v2543_v63 = vpop.permute.xlu1 %2542 }
0x3395   :  { %v2545_v10 = vmul.f32 %v4893_v2, %v2543_v63 }
0x3397   :  { %2546 = vst.msk [vmem:[%s6457_s7] sm:$0x3] %vm287_vm2, %v2545_v10  ;;  %v2551_v12 = vpack.c.bf16 %v2545_v10, %v2545_v10 }
0x3398   :  { %4475 = vst.msk [vmem:[%s6457_s7 + $0x28] sm:$0x3] %vm289_vm3, %v2545_v10 }
0x3399   :  { %4476 = vmatmul.mubr.msk.bf16.vlgmr.msra.gmra.mrb[48].mxu1 %vm210_vm4, %v2551_v12 }
0x339a   :  { %2650 = vmatpush1.bf16.msra.mxu1 %v5870_v36  ;;  %2681 = vmatprep.mubr.bf16.mxu1 %v5179_v0 }
0x339b   :  { %2651 = vmatprep.subr.bf16.mxu1 %v5872_v37 }
0x339e   :  { %2652 = vmatpush1.bf16.msra.mxu1 %v5882_v13 }
0x339f   :  { %2653 = vmatprep.subr.bf16.mxu1 %v5885_v62 }
0x33a2   :  { %2654 = vmatpush1.bf16.msra.mxu1 %v5890_v4 }
0x33a3   :  { %2655 = vmatprep.subr.bf16.mxu1 %v5892_v8 }
0x33a6   :  { %2656 = vmatpush1.bf16.msra.mxu1 %v5895_v9 }
0x33a7   :  { %2837 = vmatprep.subr.bf16.mxu1 %v5862_v59 }
0x346c   :  { %v2589_v7 = vpop.f32.mrb[48].mxu1 }
0x346d   :  { %v2591_v16 = vpop.f32.mrb[49].mxu1  ;;  %v2598_v28 = vrot.slane %v2589_v7, 6 }
0x346e   :  { %v2599_v19 = vrot.slane %v2591_v16, 6  ;;  %v2593_v24 = vpop.f32.mrb[50].mxu1 }
0x346f   :  { %v2594_v14 = vpop.f32.mrb[51].mxu1  ;;  %v2602_v22 = vadd.f32 %v2598_v28, %v2549_v21  ;;  %v2244_v28 = vld [vmem:[#allocation4 + $0x28] sm:$0x3]  ;;  %v2243_v21 = vld [vmem:[#allocation4 + $0x20] sm:$0xff] }
0x3470   :  { %v2603_v6 = vadd.f32 %v2599_v19, %v2550_v61 }
0x3471   :  { %v4477_v31 = vmul.f32 -1.442695, %v2602_v22  ;;  %v2247_v22 = vpack.c.bf16 %v2244_v28, %v2243_v21 }
0x3472   :  { %4894 = vtanh.f32 %v2603_v6  ;;  %v4478_v15 = vmul.f32 -1.442695, %v2603_v6 }
0x3473   :  { %4896 = vpow2.f32 %v4477_v31 }
0x347c   :  { %v4895_v44 = vpop.eup %4894 }
0x347d   :  { %2622 = vrot.lane.b32.xlu0 %v4895_v44, %s5180_s3  ;;  %v4897_v32 = vpop.eup %4896 }
0x347e   :  { %v2610_v40 = vadd.f32 1.0, %v4897_v32 }
0x3480   :  { %4898 = vrcp.f32 %v2610_v40 }
0x348a   :  { %v4899_v27 = vpop.eup %4898 }
0x348b   :  { %v2620_v45 = vmul.f32 %v4899_v27, %v2618_v43 }
0x34ef   :  { %v2623_v33 = vpop.permute.xlu0 %2622 }
0x34f0   :  { %v2625_v41 = vmul.f32 %v4899_v27, %v2623_v33 }
0x34f2   :  { %2627 = vrot.lane.b32.xlu1 %v2625_v41, %s5180_s3 }
0x3564   :  { %v2628_v39 = vpop.permute.xlu1 %2627 }
0x3565   :  { %v6002_v46 = vadd.f32 %v2628_v39, %v2620_v45 }
0x3567   :  { %4900 = vtanh.f32 %v6002_v46  ;;  %v2712_v7 = vrot.slane %v6002_v46, 6 }
0x3568   :  { %4902 = vpow2.f32 %v4478_v15 }
0x3571   :  { %v4901_v47 = vpop.eup %4900 }
0x3572   :  { %2633 = vrot.lane.b32.xlu0 %v4901_v47, %s5180_s3  ;;  %v4903_v55 = vpop.eup %4902 }
0x3573   :  { %v2611_v1 = vadd.f32 1.0, %v4903_v55 }
0x3575   :  { %4904 = vrcp.f32 %v2611_v1 }
0x357f   :  { %v4905_v23 = vpop.eup %4904 }
0x35e4   :  { %v2634_v18 = vpop.permute.xlu0 %2633 }
0x35e5   :  { %v2636_v17 = vmul.f32 %v4905_v23, %v2634_v18 }
0x35e7   :  { %4479 = vst.msk [vmem:[%s6457_s7] sm:$0xc] %vm387_vm5, %v2636_v17  ;;  %v2643_v20 = vpack.c.bf16 %v2636_v17, %v2636_v17 }
0x35e8   :  { %4480 = vst.msk [vmem:[%s6457_s7 + $0x24] sm:$0xc] %vm389_vm6, %v2636_v17 }
0x35e9   :  { %v2645_v30 = vrot.slane %v2643_v20, 1 }
0x35eb   :  { %4481 = vmatmul.mubr.msk.bf16.vlgmr.msra.gmra.mrb[52].mxu1 %vm210_vm4, %v2645_v30 }
0x35ec   :  { %2838 = vmatpush1.bf16.msra.mxu1 %v5870_v36  ;;  %2869 = vmatprep.mubr.bf16.mxu1 %v5179_v0 }
0x35ed   :  { %2839 = vmatprep.subr.bf16.mxu1 %v5872_v37 }
0x35f0   :  { %2840 = vmatpush1.bf16.msra.mxu1 %v5882_v13 }
0x35f1   :  { %2841 = vmatprep.subr.bf16.mxu1 %v5885_v62 }
0x35f4   :  { %2842 = vmatpush1.bf16.msra.mxu1 %v5890_v4 }
0x35f5   :  { %2843 = vmatprep.subr.bf16.mxu1 %v5892_v8 }
0x35f8   :  { %2844 = vmatpush1.bf16.msra.mxu1 %v5895_v9 }
0x35f9   :  { %3017 = vmatprep.subr.bf16.mxu1 %v5862_v59 }
0x36be   :  { %v2683_v48 = vpop.f32.mrb[52].mxu1 }
0x36bf   :  { %v2685_v50 = vpop.f32.mrb[53].mxu1  ;;  %v2692_v57 = vrot.slane %v2683_v48, 4 }
0x36c0   :  { %v2693_v26 = vrot.slane %v2685_v50, 4  ;;  %v2687_v51 = vpop.f32.mrb[54].mxu1 }
0x36c1   :  { %v2688_v52 = vpop.f32.mrb[55].mxu1  ;;  %v2696_v60 = vadd.f32 %v2692_v57, %v2641_v34  ;;  %v2736_v57 = vld [vmem:[#allocation3 + $0x8] sm:$0xc0] }
0x36c2   :  { %v2697_v53 = vadd.f32 %v2693_v26, %v2642_v58 }
0x36c3   :  { %v4482_v35 = vmul.f32 -1.442695, %v2696_v60 }
0x36c4   :  { %4906 = vtanh.f32 %v2697_v53 }
0x36c5   :  { %4908 = vpow2.f32 %v4482_v35 }
0x36ce   :  { %v4907_v25 = vpop.eup %4906 }
0x36cf   :  { %2716 = vrot.lane.b32.xlu1 %v4907_v25, %s5180_s3  ;;  %v4909_v5 = vpop.eup %4908 }
0x36d0   :  { %v2704_v38 = vadd.f32 1.0, %v4909_v5 }
0x36d2   :  { %4910 = vrcp.f32 %v2704_v38  ;;  %v2735_v38 = vld [vmem:[#allocation3] sm:$0xc0] }
0x36d3   :  { %1074 = vrot.lane.b32.xlu1 %v5562_v11, %s5180_s3 }
0x36d7   :  { %1268 = vrot.lane.b32.xlu1 %v5614_v29, %s5180_s3 }
0x36db   :  { %1458 = vrot.lane.b32.xlu1 %v5652_v56, %s5180_s3 }
0x36dc   :  { %v4911_v2 = vpop.eup %4910 }
0x36dd   :  { %v2714_v16 = vmul.f32 %v4911_v2, %v2712_v7 }
0x3741   :  { %v2717_v63 = vpop.permute.xlu1 %2716 }
0x3742   :  { %v2719_v10 = vmul.f32 %v4911_v2, %v2717_v63 }
0x3744   :  { %2721 = vrot.lane.b32.xlu0 %v2719_v10, %s5180_s3 }
0x3745   :  { %v1075_v11 = vpop.permute.xlu1 %1074 }
0x3746   :  { %1077 = vst.msk [vmem:[#allocation4 + $0x18] sm:$0x3] %vm295_vm11, %v1075_v11 }
0x3747   :  { %1078 = vst.msk [vmem:[#allocation4 + $0x10] sm:$0x3] %vm297_vm12, %v1075_v11 }
0x3748   :  { %1455 = vst.msk [vmem:[#allocation4 + $0x18] sm:$0x3] %vm287_vm2, %v5652_v56  ;;  %1170 = vrot.lane.b32.xlu0 %v5593_v49, %s5180_s3 }
0x3749   :  { %1456 = vst.msk [vmem:[#allocation4 + $0x10] sm:$0x3] %vm289_vm3, %v5652_v56  ;;  %v1269_v29 = vpop.permute.xlu1 %1268 }
0x374a   :  { %1271 = vst.msk [vmem:[#allocation4 + $0x10] sm:$0x30] %vm497_vm13, %v1269_v29 }
0x374b   :  { %1272 = vst.msk [vmem:[#allocation4 + $0x10] sm:$0x30] %vm499_vm14, %v1269_v29 }
0x374c   :  { %1366 = vrot.lane.b32.xlu0 %v5635_v3, %s5180_s3 }
0x374d   :  { %v1459_v12 = vpop.permute.xlu1 %1458 }
0x374e   :  { %1461 = vst.msk [vmem:[#allocation4 + $0x10] sm:$0x3] %vm295_vm11, %v1459_v12 }
0x374f   :  { %1462 = vst.msk [vmem:[#allocation4 + $0x18] sm:$0x3] %vm297_vm12, %v1459_v12 }
0x3756   :  { %v2242_v6 = vld [vmem:[#allocation4 + $0x18] sm:$0xff] }
0x37b6   :  { %v2722_v56 = vpop.permute.xlu0 %2721 }
0x37b7   :  { %v6047_v19 = vadd.f32 %v2722_v56, %v2714_v16 }
0x37b9   :  { %4912 = vtanh.f32 %v6047_v19  ;;  %v2806_v12 = vrot.slane %v6047_v19, 6 }
0x37ba   :  { %v1171_v49 = vpop.permute.xlu0 %1170 }
0x37bb   :  { %1173 = vst.msk [vmem:[#allocation4 + $0x14] sm:$0xc] %vm395_vm15, %v1171_v49 }
0x37bc   :  { %1174 = vst.msk [vmem:[#allocation4 + $0x10] sm:$0xc] %vm397_vm0, %v1171_v49 }
0x37bd   :  { %1363 = vst.msk [vmem:[#allocation4 + $0x10] sm:$0xc0] %vm591_vm9, %v5635_v3 }
0x37be   :  { %1364 = vst.msk [vmem:[#allocation4 + $0xc] sm:$0xc0] %vm593_vm10, %v5635_v3  ;;  %v1367_v24 = vpop.permute.xlu0 %1366  ;;  %v4483_v3 = vmul.f32 -1.442695, %v2697_v53 }
0x37bf   :  { %1369 = vst.msk [vmem:[#allocation4 + $0xc] sm:$0xc0] %vm599_vm1, %v1367_v24 }
0x37c0   :  { %1370 = vst.msk [vmem:[#allocation4 + $0x10] sm:$0xc0] %vm601_vm8, %v1367_v24  ;;  %4914 = vpow2.f32 %v4483_v3  ;;  %vm6459_vm8 = vcmask 521476   ;;  %v2830_v3 = vld [vmem:[#allocation3 + $0x18] sm:$0x3] }
0x37c1   :  { %vm6460_vm11 = vmmov %vm6459_vm8 }
0x37c2   :  { %vm6461_vm12 = vmmov %vm6459_vm8 }
0x37c3   :  { %v4913_v61 = vpop.eup %4912  ;;  %vm6462_vm13 = vmmov %vm6459_vm8 }
0x37c4   :  { %2727 = vrot.lane.b32.xlu0 %v4913_v61, %s5180_s3 }
0x37c7   :  { %v2241_v14 = vld [vmem:[#allocation4 + $0x10] sm:$0xff] }
0x37c8   :  { %v2246_v44 = vpack.c.bf16 %v2242_v6, %v2241_v14 }
0x37ca   :  { %2399 = vmatmul.mubr.bf16.gmra.mrb[56].mxu0 %v2246_v44  ;;  %v4915_v31 = vpop.eup %4914 }
0x37cb   :  { %2408 = vmatprep.mubr.bf16.mxu0 %v5179_v0  ;;  %v2705_v32 = vadd.f32 1.0, %v4915_v31 }
0x37cd   :  { %4916 = vrcp.f32 %v2705_v32 }
0x37d2   :  { %2409 = vmatmul.mubr.bf16.gmra.mrb[60].mxu0 %v2247_v22 }
0x37d3   :  { %2775 = vmatprep.mubr.bf16.mxu0 %v5179_v0 }
0x37d7   :  { %v4917_v40 = vpop.eup %4916 }
0x3836   :  { %v2728_v27 = vpop.permute.xlu0 %2727 }
0x3837   :  { %v2730_v33 = vmul.f32 %v4917_v40, %v2728_v27 }
0x3839   :  { %4484 = vst.msk [vmem:[%s6457_s7] sm:$0x30] %vm489_vm7, %v2730_v33  ;;  %v2737_v41 = vpack.c.bf16 %v2730_v33, %v2730_v33 }
0x383a   :  { %4485 = vst.msk [vmem:[%s6457_s7 + $0x20] sm:$0x30] %vm6459_vm8, %v2730_v33 }
0x383b   :  { %v2739_v43 = vrot.slane %v2737_v41, 2  ;;  %v2829_v41 = vld [vmem:[#allocation3 + $0x10] sm:$0x3] }
0x383d   :  { %4486 = vmatmul.mubr.msk.bf16.vlgmr.msra.gmra.mrb[64].mxu0 %vm210_vm4, %v2739_v43 }
0x383e   :  { %2924 = vmatpush1.bf16.msra.mxu0 %v5870_v36  ;;  %2955 = vmatprep.mubr.bf16.mxu0 %v5179_v0 }
0x383f   :  { %2925 = vmatprep.subr.bf16.mxu0 %v5872_v37 }
0x3842   :  { %2926 = vmatpush1.bf16.msra.mxu0 %v5882_v13 }
0x3843   :  { %2927 = vmatprep.subr.bf16.mxu0 %v5885_v62 }
0x3846   :  { %2928 = vmatpush1.bf16.msra.mxu0 %v5890_v4 }
0x3847   :  { %2929 = vmatprep.subr.bf16.mxu0 %v5892_v8 }
0x384a   :  { %2930 = vmatpush1.bf16.msra.mxu0 %v5895_v9 }
0x384b   :  { %3111 = vmatprep.subr.bf16.mxu0 %v5862_v59 }
0x389d   :  { %v2400_v45 = vpop.f32.mrb[56].mxu0 }
0x389e   :  { %v2401_v39 = vadd.f32 %v2400_v45, %v5969_v42  ;;  %v2402_v46 = vpop.f32.mrb[57].mxu0 }
0x389f   :  { %v2403_v47 = vadd.f32 %v2402_v46, %v5973_v54  ;;  %v2404_v15 = vpop.f32.mrb[58].mxu0 }
0x38a0   :  { %2423 = vst [vmem:[#allocation3 + $0x20] sm:$0xff] %v2401_v39  ;;  %v2405_v55 = vadd.f32 %v2404_v15, %v5969_v42  ;;  %v2406_v1 = vpop.f32.mrb[59].mxu0 }
0x38a1   :  { %2424 = vst [vmem:[#allocation3 + $0x28] sm:$0xff] %v2403_v47  ;;  %v2407_v23 = vadd.f32 %v2406_v1, %v5973_v54 }
0x38a2   :  { %2425 = vst [vmem:[#allocation3 + $0x30] sm:$0xff] %v2405_v55 }
0x38a3   :  { %2426 = vst [vmem:[#allocation3 + $0x38] sm:$0xff] %v2407_v23 }
0x38a5   :  { %v2410_v18 = vpop.f32.mrb[60].mxu0 }
0x38a6   :  { %v2411_v17 = vadd.f32 %v2410_v18, %v5969_v42  ;;  %v2412_v20 = vpop.f32.mrb[61].mxu0 }
0x38a7   :  { %v2413_v30 = vadd.f32 %v2412_v20, %v5973_v54  ;;  %v2414_v48 = vpop.f32.mrb[62].mxu0 }
0x38a8   :  { %2427 = vst [vmem:[#allocation3 + $0x40] sm:$0xff] %v2411_v17  ;;  %v2415_v50 = vadd.f32 %v2414_v48, %v5969_v42  ;;  %v2416_v26 = vpop.f32.mrb[63].mxu0 }
0x38a9   :  { %2428 = vst [vmem:[#allocation3 + $0x48] sm:$0xff] %v2413_v30  ;;  %v2417_v51 = vadd.f32 %v2416_v26, %v5973_v54 }
0x38aa   :  { %2429 = vst [vmem:[#allocation3 + $0x50] sm:$0x3] %v2415_v50 }
0x38ab   :  { %2430 = vst [vmem:[#allocation3 + $0x58] sm:$0x3] %v2417_v51 }
0x3910   :  { %v2777_v58 = vpop.f32.mrb[64].mxu0 }
0x3911   :  { %v2779_v52 = vpop.f32.mrb[65].mxu0  ;;  %v2786_v5 = vrot.slane %v2777_v58, 2 }
0x3912   :  { %v2787_v53 = vrot.slane %v2779_v52, 2  ;;  %v2781_v25 = vpop.f32.mrb[66].mxu0 }
0x3913   :  { %v2782_v34 = vpop.f32.mrb[67].mxu0  ;;  %v2790_v42 = vadd.f32 %v2786_v5, %v2735_v38 }
0x3914   :  { %v2791_v60 = vadd.f32 %v2787_v53, %v2736_v57 }
0x3915   :  { %v4487_v2 = vmul.f32 -1.442695, %v2790_v42 }
0x3916   :  { %4918 = vtanh.f32 %v2791_v60  ;;  %v4488_v24 = vmul.f32 -1.442695, %v2791_v60  ;;  %v2918_v60 = vld [vmem:[#allocation3 + $0x18] sm:$0xc] }
0x3917   :  { %4920 = vpow2.f32 %v4487_v2  ;;  %v2917_v2 = vld [vmem:[#allocation3 + $0x10] sm:$0xc] }
0x3920   :  { %v4919_v35 = vpop.eup %4918 }
0x3921   :  { %2810 = vrot.lane.b32.xlu1 %v4919_v35, %s5180_s3  ;;  %v4921_v63 = vpop.eup %4920 }
0x3922   :  { %v2798_v54 = vadd.f32 1.0, %v4921_v63 }
0x3924   :  { %4922 = vrcp.f32 %v2798_v54 }
0x392e   :  { %v4923_v10 = vpop.eup %4922 }
0x392f   :  { %v2808_v7 = vmul.f32 %v4923_v10, %v2806_v12 }
0x3993   :  { %v2811_v11 = vpop.permute.xlu1 %2810 }
0x3994   :  { %v2813_v29 = vmul.f32 %v4923_v10, %v2811_v11 }
0x3996   :  { %2815 = vrot.lane.b32.xlu0 %v2813_v29, %s5180_s3 }
0x3a08   :  { %v2816_v16 = vpop.permute.xlu0 %2815 }
0x3a09   :  { %v2818_v56 = vadd.f32 %v2816_v16, %v2808_v7 }
0x3a0b   :  { %4924 = vtanh.f32 %v2818_v56  ;;  %v2894_v1 = vrot.slane %v2818_v56, 6 }
0x3a0c   :  { %4926 = vpow2.f32 %v4488_v24 }
0x3a15   :  { %v4925_v49 = vpop.eup %4924 }
0x3a16   :  { %2821 = vrot.lane.b32.xlu1 %v4925_v49, %s5180_s3  ;;  %v4927_v61 = vpop.eup %4926 }
0x3a17   :  { %v2799_v14 = vadd.f32 1.0, %v4927_v61 }
0x3a19   :  { %4928 = vrcp.f32 %v2799_v14 }
0x3a23   :  { %v4929_v6 = vpop.eup %4928 }
0x3a88   :  { %v2822_v44 = vpop.permute.xlu1 %2821 }
0x3a89   :  { %v2824_v28 = vmul.f32 %v4929_v6, %v2822_v44 }
0x3a8b   :  { %4489 = vst.msk [vmem:[%s6457_s7] sm:$0xc0] %vm591_vm9, %v2824_v28  ;;  %v2831_v19 = vpack.c.bf16 %v2824_v28, %v2824_v28 }
0x3a8c   :  { %4490 = vst.msk [vmem:[%s6457_s7 + $0x1c] sm:$0xc0] %vm593_vm10, %v2824_v28 }
0x3a8d   :  { %v2833_v21 = vrot.slane %v2831_v19, 3 }
0x3a8f   :  { %4491 = vmatmul.mubr.msk.bf16.vlgmr.msra.gmra.mrb[56].mxu1 %vm210_vm4, %v2833_v21 }
0x3a90   :  { %3018 = vmatpush1.bf16.msra.mxu1 %v5870_v36  ;;  %3049 = vmatprep.mubr.bf16.mxu1 %v5179_v0 }
0x3a91   :  { %3019 = vmatprep.subr.bf16.mxu1 %v5872_v37 }
0x3a94   :  { %3020 = vmatpush1.bf16.msra.mxu1 %v5882_v13 }
0x3a95   :  { %3021 = vmatprep.subr.bf16.mxu1 %v5885_v62 }
0x3a98   :  { %3022 = vmatpush1.bf16.msra.mxu1 %v5890_v4 }
0x3a99   :  { %3023 = vmatprep.subr.bf16.mxu1 %v5892_v8 }
0x3a9c   :  { %3024 = vmatpush1.bf16.msra.mxu1 %v5895_v9 }
0x3a9d   :  { %3205 = vmatprep.subr.bf16.mxu1 %v5862_v59 }
0x3b62   :  { %v2871_v22 = vpop.f32.mrb[56].mxu1 }
0x3b63   :  { %v2873_v31 = vpop.f32.mrb[57].mxu1  ;;  %v2878_v43 = vadd.f32 %v2871_v22, %v2829_v41 }
0x3b64   :  { %v2879_v32 = vadd.f32 %v2873_v31, %v2830_v3  ;;  %v2875_v40 = vpop.f32.mrb[58].mxu1 }
0x3b65   :  { %v2876_v27 = vpop.f32.mrb[59].mxu1  ;;  %v4492_v45 = vmul.f32 -1.442695, %v2878_v43 }
0x3b66   :  { %4930 = vtanh.f32 %v2879_v32  ;;  %v4493_v30 = vmul.f32 -1.442695, %v2879_v32  ;;  %v3010_v27 = vld [vmem:[#allocation3 + $0x18] sm:$0x30] }
0x3b67   :  { %4932 = vpow2.f32 %v4492_v45  ;;  %v3009_v45 = vld [vmem:[#allocation3 + $0x10] sm:$0x30] }
0x3b70   :  { %v4931_v33 = vpop.eup %4930 }
0x3b71   :  { %2898 = vrot.lane.b32.xlu0 %v4931_v33, %s5180_s3  ;;  %v4933_v39 = vpop.eup %4932 }
0x3b72   :  { %v2886_v46 = vadd.f32 1.0, %v4933_v39 }
0x3b74   :  { %4934 = vrcp.f32 %v2886_v46 }
0x3b7e   :  { %v4935_v47 = vpop.eup %4934 }
0x3b7f   :  { %v2896_v23 = vmul.f32 %v4935_v47, %v2894_v1 }
0x3be3   :  { %v2899_v15 = vpop.permute.xlu0 %2898 }
0x3be4   :  { %v2901_v55 = vmul.f32 %v4935_v47, %v2899_v15 }
0x3be6   :  { %2903 = vrot.lane.b32.xlu1 %v2901_v55, %s5180_s3 }
0x3c58   :  { %v2904_v18 = vpop.permute.xlu1 %2903 }
0x3c59   :  { %v2906_v17 = vadd.f32 %v2904_v18, %v2896_v23 }
0x3c5b   :  { %4936 = vtanh.f32 %v2906_v17  ;;  %v2986_v16 = vrot.slane %v2906_v17, 6 }
0x3c5c   :  { %4938 = vpow2.f32 %v4493_v30 }
0x3c65   :  { %v4937_v20 = vpop.eup %4936 }
0x3c66   :  { %2909 = vrot.lane.b32.xlu0 %v4937_v20, %s5180_s3  ;;  %v4939_v48 = vpop.eup %4938 }
0x3c67   :  { %v2887_v50 = vadd.f32 1.0, %v4939_v48 }
0x3c69   :  { %4940 = vrcp.f32 %v2887_v50 }
0x3c73   :  { %v4941_v26 = vpop.eup %4940 }
0x3cd8   :  { %v2910_v51 = vpop.permute.xlu0 %2909 }
0x3cd9   :  { %v2912_v58 = vmul.f32 %v4941_v26, %v2910_v51 }
0x3cdb   :  { %4494 = vst.msk [vmem:[%s6457_s7 + $0x8] sm:$0x3] %vm287_vm2, %v2912_v58  ;;  %v2919_v52 = vpack.c.bf16 %v2912_v58, %v2912_v58 }
0x3cdc   :  { %4495 = vst.msk [vmem:[%s6457_s7 + $0x20] sm:$0x3] %vm289_vm3, %v2912_v58 }
0x3cdd   :  { %4496 = vmatmul.mubr.msk.bf16.vlgmr.msra.gmra.mrb[68].mxu0 %vm210_vm4, %v2919_v52 }
0x3cde   :  { %3112 = vmatpush1.bf16.msra.mxu0 %v5870_v36  ;;  %3143 = vmatprep.mubr.bf16.mxu0 %v5179_v0 }
0x3cdf   :  { %3113 = vmatprep.subr.bf16.mxu0 %v5872_v37 }
0x3ce2   :  { %3114 = vmatpush1.bf16.msra.mxu0 %v5882_v13 }
0x3ce3   :  { %3115 = vmatprep.subr.bf16.mxu0 %v5885_v62 }
0x3ce6   :  { %3116 = vmatpush1.bf16.msra.mxu0 %v5890_v4 }
0x3ce7   :  { %3117 = vmatprep.subr.bf16.mxu0 %v5892_v8 }
0x3cea   :  { %3118 = vmatpush1.bf16.msra.mxu0 %v5895_v9 }
0x3ceb   :  { %3291 = vmatprep.subr.bf16.mxu0 %v5862_v59 }
0x3db0   :  { %v2957_v53 = vpop.f32.mrb[68].mxu0 }
0x3db1   :  { %v2959_v25 = vpop.f32.mrb[69].mxu0  ;;  %v2966_v42 = vrot.slane %v2957_v53, 6 }
0x3db2   :  { %v2967_v57 = vrot.slane %v2959_v25, 6  ;;  %v2961_v34 = vpop.f32.mrb[70].mxu0 }
0x3db3   :  { %v2962_v35 = vpop.f32.mrb[71].mxu0  ;;  %v2970_v63 = vadd.f32 %v2966_v42, %v2917_v2  ;;  %v6167_v34 = vld [vmem:[#allocation5 + $0x14] ss:$8 sps:$4 sm:$0xff]   ;;  %v3104_v2 = vld [vmem:[#allocation3 + $0x18] sm:$0xc0] }
0x3db4   :  { %v2971_v5 = vadd.f32 %v2967_v57, %v2918_v60  ;;  %v6163_v57 = vld [vmem:[#allocation5] ss:$8 sps:$4 sm:$0xff]   ;;  %v6175_v60 = vld [vmem:[#allocation5 + $0x4] ss:$8 sps:$4 sm:$0xff]  }
0x3db5   :  { %v4497_v54 = vmul.f32 -1.442695, %v2970_v63 }
0x3db6   :  { %4942 = vtanh.f32 %v2971_v5  ;;  %v4498_v14 = vmul.f32 -1.442695, %v2971_v5 }
0x3db7   :  { %4944 = vpow2.f32 %v4497_v54 }
0x3dc0   :  { %v4943_v38 = vpop.eup %4942 }
0x3dc1   :  { %2990 = vrot.lane.b32.xlu1 %v4943_v38, %s5180_s3  ;;  %v4945_v10 = vpop.eup %4944 }
0x3dc2   :  { %v2978_v11 = vadd.f32 1.0, %v4945_v10 }
0x3dc4   :  { %4946 = vrcp.f32 %v2978_v11 }
0x3dce   :  { %v4947_v29 = vpop.eup %4946 }
0x3dcf   :  { %v2988_v56 = vmul.f32 %v4947_v29, %v2986_v16 }
0x3e33   :  { %v2991_v12 = vpop.permute.xlu1 %2990 }
0x3e34   :  { %v2993_v7 = vmul.f32 %v4947_v29, %v2991_v12 }
0x3e36   :  { %2995 = vrot.lane.b32.xlu0 %v2993_v7, %s5180_s3 }
0x3ea8   :  { %v2996_v49 = vpop.permute.xlu0 %2995 }
0x3ea9   :  { %v2998_v24 = vadd.f32 %v2996_v49, %v2988_v56 }
0x3eab   :  { %4948 = vtanh.f32 %v2998_v24  ;;  %v3080_v23 = vrot.slane %v2998_v24, 6 }
0x3eac   :  { %4950 = vpow2.f32 %v4498_v14 }
0x3eb5   :  { %v4949_v61 = vpop.eup %4948 }
0x3eb6   :  { %3001 = vrot.lane.b32.xlu1 %v4949_v61, %s5180_s3  ;;  %v4951_v6 = vpop.eup %4950 }
0x3eb7   :  { %v2979_v44 = vadd.f32 1.0, %v4951_v6 }
0x3eb9   :  { %4952 = vrcp.f32 %v2979_v44 }
0x3ec3   :  { %v4953_v28 = vpop.eup %4952 }
0x3f28   :  { %v3002_v19 = vpop.permute.xlu1 %3001 }
0x3f29   :  { %v3004_v21 = vmul.f32 %v4953_v28, %v3002_v19 }
0x3f2b   :  { %4499 = vst.msk [vmem:[%s6457_s7 + $0x8] sm:$0xc] %vm387_vm5, %v3004_v21  ;;  %v3011_v22 = vpack.c.bf16 %v3004_v21, %v3004_v21 }
0x3f2c   :  { %4500 = vst.msk [vmem:[%s6457_s7 + $0x1c] sm:$0xc] %vm389_vm6, %v3004_v21 }
0x3f2d   :  { %v3013_v3 = vrot.slane %v3011_v22, 1 }
0x3f2f   :  { %4501 = vmatmul.mubr.msk.bf16.vlgmr.msra.gmra.mrb[60].mxu1 %vm210_vm4, %v3013_v3 }
0x3f30   :  { %3206 = vmatpush1.bf16.msra.mxu1 %v5870_v36  ;;  %3237 = vmatprep.mubr.bf16.mxu1 %v5179_v0 }
0x3f31   :  { %3207 = vmatprep.subr.bf16.mxu1 %v5872_v37 }
0x3f34   :  { %3208 = vmatpush1.bf16.msra.mxu1 %v5882_v13 }
0x3f35   :  { %3209 = vmatprep.subr.bf16.mxu1 %v5885_v62 }
0x3f38   :  { %3210 = vmatpush1.bf16.msra.mxu1 %v5890_v4 }
0x3f39   :  { %3211 = vmatprep.subr.bf16.mxu1 %v5892_v8 }
0x3f3c   :  { %3212 = vmatpush1.bf16.msra.mxu1 %v5895_v9 }
0x3f3d   :  { %3385 = vmatprep.subr.bf16.mxu1 %v5862_v59 }
0x4002   :  { %v3051_v31 = vpop.f32.mrb[60].mxu1 }
0x4003   :  { %v3053_v32 = vpop.f32.mrb[61].mxu1  ;;  %v3060_v43 = vrot.slane %v3051_v31, 4  ;;  %v6193_v31 = vld [vmem:[#allocation5 + $0x10] ss:$8 sps:$4 sm:$0xff]  }
0x4004   :  { %v3061_v40 = vrot.slane %v3053_v32, 4  ;;  %v3055_v36 = vpop.f32.mrb[62].mxu1  ;;  %v6196_v32 = vld [vmem:[#allocation5 + $0x24] ss:$8 sps:$4 sm:$0xff]  }
0x4005   :  { %v3056_v33 = vpop.f32.mrb[63].mxu1  ;;  %v3064_v39 = vadd.f32 %v3060_v43, %v3009_v45  ;;  %v6202_v36 = vld [vmem:[#allocation5 + $0x34] ss:$8 sps:$4 sm:$0xff]  }
0x4006   :  { %v3065_v41 = vadd.f32 %v3061_v40, %v3010_v27  ;;  %v6199_v40 = vld [vmem:[#allocation5 + $0x20] ss:$8 sps:$4 sm:$0xff]   ;;  %v6205_v27 = vld [vmem:[#allocation5 + $0x30] ss:$8 sps:$4 sm:$0xff]  }
0x4007   :  { %v4502_v46 = vmul.f32 -1.442695, %v3064_v39 }
0x4008   :  { %4954 = vtanh.f32 %v3065_v41  ;;  %v4503_v48 = vmul.f32 -1.442695, %v3065_v41  ;;  %v3198_v41 = vld [vmem:[#allocation3 + $0x28] sm:$0x3] }
0x4009   :  { %4956 = vpow2.f32 %v4502_v46 }
0x4012   :  { %v4955_v37 = vpop.eup %4954 }
0x4013   :  { %3084 = vrot.lane.b32.xlu0 %v4955_v37, %s5180_s3  ;;  %v4957_v47 = vpop.eup %4956 }
0x4014   :  { %v3072_v15 = vadd.f32 1.0, %v4957_v47  ;;  %v3197_v47 = vld [vmem:[#allocation3 + $0x20] sm:$0x3] }
0x4016   :  { %4958 = vrcp.f32 %v3072_v15 }
0x4020   :  { %v4959_v59 = vpop.eup %4958 }
0x4021   :  { %v3082_v18 = vmul.f32 %v4959_v59, %v3080_v23 }
0x4085   :  { %v3085_v55 = vpop.permute.xlu0 %3084 }
0x4086   :  { %v3087_v1 = vmul.f32 %v4959_v59, %v3085_v55 }
0x4088   :  { %3089 = vrot.lane.b32.xlu1 %v3087_v1, %s5180_s3 }
0x40fa   :  { %v3090_v17 = vpop.permute.xlu1 %3089 }
0x40fb   :  { %v3092_v20 = vadd.f32 %v3090_v17, %v3082_v18 }
0x40fd   :  { %4960 = vtanh.f32 %v3092_v20  ;;  %v3174_v16 = vrot.slane %v3092_v20, 6 }
0x40fe   :  { %4962 = vpow2.f32 %v4503_v48 }
0x4107   :  { %v4961_v30 = vpop.eup %4960 }
0x4108   :  { %3095 = vrot.lane.b32.xlu0 %v4961_v30, %s5180_s3  ;;  %v4963_v50 = vpop.eup %4962 }
0x4109   :  { %v3073_v26 = vadd.f32 1.0, %v4963_v50 }
0x410b   :  { %4964 = vrcp.f32 %v3073_v26 }
0x4115   :  { %v4965_v51 = vpop.eup %4964 }
0x417a   :  { %v3096_v58 = vpop.permute.xlu0 %3095 }
0x417b   :  { %v3098_v52 = vmul.f32 %v4965_v51, %v3096_v58 }
0x417d   :  { %4504 = vst.msk [vmem:[%s6457_s7 + $0x8] sm:$0x30] %vm489_vm7, %v3098_v52  ;;  %v3105_v53 = vpack.c.bf16 %v3098_v52, %v3098_v52 }
0x417e   :  { %4505 = vst.msk [vmem:[%s6457_s7 + $0x18] sm:$0x30] %vm6460_vm11, %v3098_v52 }
0x417f   :  { %v3107_v25 = vrot.slane %v3105_v53, 2 }
0x4181   :  { %4506 = vmatmul.mubr.msk.bf16.vlgmr.msra.gmra.mrb[72].mxu0 %vm210_vm4, %v3107_v25 }
0x4182   :  { %3292 = vmatpush1.bf16.msra.mxu0 %v6163_v57  ;;  %3323 = vmatprep.mubr.bf16.mxu0 %v5179_v0 }
0x4183   :  { %3293 = vmatprep.subr.bf16.mxu0 %v6167_v34 }
0x4186   :  { %3294 = vmatpush1.bf16.msra.mxu0 %v5882_v13 }
0x4187   :  { %3295 = vmatprep.subr.bf16.mxu0 %v5885_v62 }
0x418a   :  { %3296 = vmatpush1.bf16.msra.mxu0 %v5890_v4  ;;  %v3103_v4 = vld [vmem:[#allocation3 + $0x10] sm:$0xc0] }
0x418b   :  { %3297 = vmatprep.subr.bf16.mxu0 %v5892_v8 }
0x418e   :  { %3298 = vmatpush1.bf16.msra.mxu0 %v5895_v9 }
0x418f   :  { %3478 = vmatprep.subr.bf16.mxu0 %v6175_v60 }
0x4254   :  { %v3145_v35 = vpop.f32.mrb[72].mxu0 }
0x4255   :  { %v3147_v5 = vpop.f32.mrb[73].mxu0  ;;  %v3154_v62 = vrot.slane %v3145_v35, 2 }
0x4256   :  { %v3155_v38 = vrot.slane %v3147_v5, 2  ;;  %v3149_v42 = vpop.f32.mrb[74].mxu0 }
0x4257   :  { %v3150_v63 = vpop.f32.mrb[75].mxu0  ;;  %v3158_v8 = vadd.f32 %v3154_v62, %v3103_v4 }
0x4258   :  { %v3159_v54 = vadd.f32 %v3155_v38, %v3104_v2 }
0x4259   :  { %v4507_v10 = vmul.f32 -1.442695, %v3158_v8 }
0x425a   :  { %4966 = vtanh.f32 %v3159_v54  ;;  %v4508_v14 = vmul.f32 -1.442695, %v3159_v54  ;;  %v3286_v54 = vld [vmem:[#allocation3 + $0x28] sm:$0xc] }
0x425b   :  { %4968 = vpow2.f32 %v4507_v10  ;;  %v3285_v10 = vld [vmem:[#allocation3 + $0x20] sm:$0xc] }
0x4264   :  { %v4967_v13 = vpop.eup %4966 }
0x4265   :  { %3178 = vrot.lane.b32.xlu1 %v4967_v13, %s5180_s3  ;;  %v4969_v9 = vpop.eup %4968 }
0x4266   :  { %v3166_v11 = vadd.f32 1.0, %v4969_v9 }
0x4268   :  { %4970 = vrcp.f32 %v3166_v11 }
0x4272   :  { %v4971_v29 = vpop.eup %4970 }
0x4273   :  { %v3176_v56 = vmul.f32 %v4971_v29, %v3174_v16 }
0x42d7   :  { %v3179_v12 = vpop.permute.xlu1 %3178 }
0x42d8   :  { %v3181_v7 = vmul.f32 %v4971_v29, %v3179_v12 }
0x42da   :  { %3183 = vrot.lane.b32.xlu0 %v3181_v7, %s5180_s3 }
0x434c   :  { %v3184_v49 = vpop.permute.xlu0 %3183 }
0x434d   :  { %v3186_v24 = vadd.f32 %v3184_v49, %v3176_v56 }
0x434f   :  { %4972 = vtanh.f32 %v3186_v24  ;;  %v3262_v20 = vrot.slane %v3186_v24, 6 }
0x4350   :  { %4974 = vpow2.f32 %v4508_v14 }
0x4359   :  { %v4973_v61 = vpop.eup %4972 }
0x435a   :  { %3189 = vrot.lane.b32.xlu1 %v4973_v61, %s5180_s3  ;;  %v4975_v6 = vpop.eup %4974 }
0x435b   :  { %v3167_v44 = vadd.f32 1.0, %v4975_v6 }
0x435d   :  { %4976 = vrcp.f32 %v3167_v44 }
0x4367   :  { %v4977_v28 = vpop.eup %4976 }
0x43cc   :  { %v3190_v19 = vpop.permute.xlu1 %3189 }
0x43cd   :  { %v3192_v21 = vmul.f32 %v4977_v28, %v3190_v19 }
0x43cf   :  { %4509 = vst.msk [vmem:[%s6457_s7 + $0x8] sm:$0xc0] %vm591_vm9, %v3192_v21  ;;  %v3199_v22 = vpack.c.bf16 %v3192_v21, %v3192_v21 }
0x43d0   :  { %4510 = vst.msk [vmem:[%s6457_s7 + $0x14] sm:$0xc0] %vm593_vm10, %v3192_v21 }
0x43d1   :  { %v3201_v3 = vrot.slane %v3199_v22, 3 }
0x43d3   :  { %4511 = vmatmul.mubr.msk.bf16.vlgmr.msra.gmra.mrb[64].mxu1 %vm210_vm4, %v3201_v3 }
0x43d4   :  { %3386 = vmatpush1.bf16.msra.mxu1 %v6163_v57  ;;  %3417 = vmatprep.mubr.bf16.mxu1 %v5179_v0 }
0x43d5   :  { %3387 = vmatprep.subr.bf16.mxu1 %v6167_v34 }
0x43d8   :  { %3388 = vmatpush1.bf16.msra.mxu1 %v6193_v31 }
0x43d9   :  { %3389 = vmatprep.subr.bf16.mxu1 %v6196_v32 }
0x43dc   :  { %3390 = vmatpush1.bf16.msra.mxu1 %v6199_v40 }
0x43dd   :  { %3391 = vmatprep.subr.bf16.mxu1 %v6202_v36 }
0x43e0   :  { %3392 = vmatpush1.bf16.msra.mxu1 %v6205_v27 }
0x43e1   :  { %3570 = vmatprep.subr.bf16.mxu1 %v6175_v60 }
0x44a6   :  { %v3239_v33 = vpop.f32.mrb[64].mxu1 }
0x44a7   :  { %v3241_v37 = vpop.f32.mrb[65].mxu1  ;;  %v3246_v15 = vadd.f32 %v3239_v33, %v3197_v47 }
0x44a8   :  { %v3247_v43 = vadd.f32 %v3241_v37, %v3198_v41  ;;  %v3243_v45 = vpop.f32.mrb[66].mxu1 }
0x44a9   :  { %v3244_v39 = vpop.f32.mrb[67].mxu1  ;;  %v4512_v59 = vmul.f32 -1.442695, %v3246_v15 }
0x44aa   :  { %4978 = vtanh.f32 %v3247_v43  ;;  %v4513_v51 = vmul.f32 -1.442695, %v3247_v43 }
0x44ab   :  { %4980 = vpow2.f32 %v4512_v59 }
0x44b4   :  { %v4979_v46 = vpop.eup %4978 }
0x44b5   :  { %3266 = vrot.lane.b32.xlu0 %v4979_v46, %s5180_s3  ;;  %v4981_v55 = vpop.eup %4980  ;;  %v3378_v46 = vld [vmem:[#allocation3 + $0x28] sm:$0x30] }
0x44b6   :  { %v3254_v1 = vadd.f32 1.0, %v4981_v55 }
0x44b8   :  { %4982 = vrcp.f32 %v3254_v1  ;;  %v3377_v1 = vld [vmem:[#allocation3 + $0x20] sm:$0x30] }
0x44c2   :  { %v4983_v23 = vpop.eup %4982 }
0x44c3   :  { %v3264_v30 = vmul.f32 %v4983_v23, %v3262_v20 }
0x4527   :  { %v3267_v18 = vpop.permute.xlu0 %3266 }
0x4528   :  { %v3269_v17 = vmul.f32 %v4983_v23, %v3267_v18 }
0x452a   :  { %3271 = vrot.lane.b32.xlu1 %v3269_v17, %s5180_s3 }
0x459c   :  { %v3272_v48 = vpop.permute.xlu1 %3271 }
0x459d   :  { %v3274_v50 = vadd.f32 %v3272_v48, %v3264_v30 }
0x459f   :  { %4984 = vtanh.f32 %v3274_v50  ;;  %v3354_v49 = vrot.slane %v3274_v50, 6 }
0x45a0   :  { %4986 = vpow2.f32 %v4513_v51 }
0x45a9   :  { %v4985_v26 = vpop.eup %4984 }
0x45aa   :  { %3277 = vrot.lane.b32.xlu0 %v4985_v26, %s5180_s3  ;;  %v4987_v58 = vpop.eup %4986 }
0x45ab   :  { %v3255_v52 = vadd.f32 1.0, %v4987_v58 }
0x45ad   :  { %4988 = vrcp.f32 %v3255_v52 }
0x45b7   :  { %v4989_v53 = vpop.eup %4988 }
0x461c   :  { %v3278_v25 = vpop.permute.xlu0 %3277 }
0x461d   :  { %v3280_v35 = vmul.f32 %v4989_v53, %v3278_v25 }
0x461f   :  { %4514 = vst.msk [vmem:[%s6457_s7 + $0x10] sm:$0x3] %vm287_vm2, %v3280_v35  ;;  %v3287_v5 = vpack.c.bf16 %v3280_v35, %v3280_v35 }
0x4620   :  { %4515 = vst.msk [vmem:[%s6457_s7 + $0x18] sm:$0x3] %vm289_vm3, %v3280_v35 }
0x4621   :  { %4516 = vmatmul.mubr.msk.bf16.vlgmr.msra.gmra.mrb[76].mxu0 %vm210_vm4, %v3287_v5 }
0x4622   :  { %3479 = vmatpush1.bf16.msra.mxu0 %v6163_v57  ;;  %3510 = vmatprep.mubr.bf16.mxu0 %v5179_v0 }
0x4623   :  { %3480 = vmatprep.subr.bf16.mxu0 %v6167_v34 }
0x4626   :  { %3481 = vmatpush1.bf16.msra.mxu0 %v6193_v31 }
0x4627   :  { %3482 = vmatprep.subr.bf16.mxu0 %v6196_v32 }
0x462a   :  { %3483 = vmatpush1.bf16.msra.mxu0 %v6199_v40 }
0x462b   :  { %3484 = vmatprep.subr.bf16.mxu0 %v6202_v36 }
0x462e   :  { %3485 = vmatpush1.bf16.msra.mxu0 %v6205_v27 }
0x462f   :  { %3654 = vmatprep.subr.bf16.mxu0 %v6175_v60 }
0x46f4   :  { %v3325_v38 = vpop.f32.mrb[76].mxu0 }
0x46f5   :  { %v3327_v42 = vpop.f32.mrb[77].mxu0  ;;  %v3334_v8 = vrot.slane %v3325_v38, 6 }
0x46f6   :  { %v3335_v2 = vrot.slane %v3327_v42, 6  ;;  %v3329_v63 = vpop.f32.mrb[78].mxu0 }
0x46f7   :  { %v3330_v13 = vpop.f32.mrb[79].mxu0  ;;  %v3338_v9 = vadd.f32 %v3334_v8, %v3285_v10  ;;  %v3471_v10 = vld [vmem:[#allocation3 + $0x28] sm:$0xc0] }
0x46f8   :  { %v3339_v62 = vadd.f32 %v3335_v2, %v3286_v54 }
0x46f9   :  { %v4517_v11 = vmul.f32 -1.442695, %v3338_v9 }
0x46fa   :  { %4990 = vtanh.f32 %v3339_v62  ;;  %v4518_v44 = vmul.f32 -1.442695, %v3339_v62 }
0x46fb   :  { %4992 = vpow2.f32 %v4517_v11 }
0x4704   :  { %v4991_v4 = vpop.eup %4990 }
0x4705   :  { %3358 = vrot.lane.b32.xlu1 %v4991_v4, %s5180_s3  ;;  %v4993_v29 = vpop.eup %4992 }
0x4706   :  { %v3346_v12 = vadd.f32 1.0, %v4993_v29 }
0x4708   :  { %4994 = vrcp.f32 %v3346_v12 }
0x4712   :  { %v4995_v7 = vpop.eup %4994 }
0x4713   :  { %v3356_v24 = vmul.f32 %v4995_v7, %v3354_v49 }
0x4777   :  { %v3359_v16 = vpop.permute.xlu1 %3358 }
0x4778   :  { %v3361_v56 = vmul.f32 %v4995_v7, %v3359_v16  ;;  %v3470_v7 = vld [vmem:[#allocation3 + $0x20] sm:$0xc0] }
0x477a   :  { %3363 = vrot.lane.b32.xlu0 %v3361_v56, %s5180_s3 }
0x47ec   :  { %v3364_v61 = vpop.permute.xlu0 %3363 }
0x47ed   :  { %v3366_v14 = vadd.f32 %v3364_v61, %v3356_v24 }
0x47ef   :  { %4996 = vtanh.f32 %v3366_v14  ;;  %v3448_v26 = vrot.slane %v3366_v14, 6 }
0x47f0   :  { %4998 = vpow2.f32 %v4518_v44 }
0x47f9   :  { %v4997_v6 = vpop.eup %4996 }
0x47fa   :  { %3369 = vrot.lane.b32.xlu1 %v4997_v6, %s5180_s3  ;;  %v4999_v28 = vpop.eup %4998 }
0x47fb   :  { %v3347_v19 = vadd.f32 1.0, %v4999_v28 }
0x47fd   :  { %5000 = vrcp.f32 %v3347_v19 }
0x4807   :  { %v5001_v21 = vpop.eup %5000 }
0x486c   :  { %v3370_v22 = vpop.permute.xlu1 %3369 }
0x486d   :  { %v3372_v3 = vmul.f32 %v5001_v21, %v3370_v22 }
0x486f   :  { %4519 = vst.msk [vmem:[%s6457_s7 + $0x10] sm:$0xc] %vm387_vm5, %v3372_v3  ;;  %v3379_v33 = vpack.c.bf16 %v3372_v3, %v3372_v3 }
0x4870   :  { %4520 = vst.msk [vmem:[%s6457_s7 + $0x14] sm:$0xc] %vm389_vm6, %v3372_v3 }
0x4871   :  { %v3381_v41 = vrot.slane %v3379_v33, 1 }
0x4873   :  { %4521 = vmatmul.mubr.msk.bf16.vlgmr.msra.gmra.mrb[68].mxu1 %vm210_vm4, %v3381_v41 }
0x4874   :  { %3571 = vmatpush1.bf16.msra.mxu1 %v6163_v57  ;;  %3602 = vmatprep.mubr.bf16.mxu1 %v5179_v0 }
0x4875   :  { %3572 = vmatprep.subr.bf16.mxu1 %v6167_v34 }
0x4878   :  { %3573 = vmatpush1.bf16.msra.mxu1 %v6193_v31 }
0x4879   :  { %3574 = vmatprep.subr.bf16.mxu1 %v6196_v32 }
0x487c   :  { %3575 = vmatpush1.bf16.msra.mxu1 %v6199_v40 }
0x487d   :  { %3576 = vmatprep.subr.bf16.mxu1 %v6202_v36 }
0x4880   :  { %3577 = vmatpush1.bf16.msra.mxu1 %v6205_v27 }
0x4881   :  { %3746 = vmatprep.subr.bf16.mxu1 %v6175_v60 }
0x4946   :  { %v3419_v37 = vpop.f32.mrb[68].mxu1 }
0x4947   :  { %v3421_v43 = vpop.f32.mrb[69].mxu1  ;;  %v3428_v55 = vrot.slane %v3419_v37, 4 }
0x4948   :  { %v3429_v45 = vrot.slane %v3421_v43, 4  ;;  %v3423_v39 = vpop.f32.mrb[70].mxu1 }
0x4949   :  { %v3424_v47 = vpop.f32.mrb[71].mxu1  ;;  %v3432_v23 = vadd.f32 %v3428_v55, %v3377_v1 }
0x494a   :  { %v3433_v15 = vadd.f32 %v3429_v45, %v3378_v46 }
0x494b   :  { %v4522_v18 = vmul.f32 -1.442695, %v3432_v23 }
0x494c   :  { %5002 = vtanh.f32 %v3433_v15  ;;  %v4523_v25 = vmul.f32 -1.442695, %v3433_v15  ;;  %v3563_v15 = vld [vmem:[#allocation3 + $0x38] sm:$0x3] }
0x494d   :  { %5004 = vpow2.f32 %v4522_v18 }
0x4956   :  { %v5003_v59 = vpop.eup %5002 }
0x4957   :  { %3452 = vrot.lane.b32.xlu0 %v5003_v59, %s5180_s3  ;;  %v5005_v17 = vpop.eup %5004 }
0x4958   :  { %v3440_v20 = vadd.f32 1.0, %v5005_v17  ;;  %v3562_v17 = vld [vmem:[#allocation3 + $0x30] sm:$0x3] }
0x495a   :  { %5006 = vrcp.f32 %v3440_v20 }
0x4964   :  { %v5007_v30 = vpop.eup %5006 }
0x4965   :  { %v3450_v51 = vmul.f32 %v5007_v30, %v3448_v26 }
0x49c9   :  { %v3453_v48 = vpop.permute.xlu0 %3452 }
0x49ca   :  { %v3455_v50 = vmul.f32 %v5007_v30, %v3453_v48 }
0x49cc   :  { %3457 = vrot.lane.b32.xlu1 %v3455_v50, %s5180_s3 }
0x4a3e   :  { %v3458_v58 = vpop.permute.xlu1 %3457 }
0x4a3f   :  { %v3460_v52 = vadd.f32 %v3458_v58, %v3450_v51 }
0x4a41   :  { %5008 = vtanh.f32 %v3460_v52  ;;  %v3541_v44 = vrot.slane %v3460_v52, 6 }
0x4a42   :  { %5010 = vpow2.f32 %v4523_v25 }
0x4a4b   :  { %v5009_v53 = vpop.eup %5008 }
0x4a4c   :  { %3463 = vrot.lane.b32.xlu0 %v5009_v53, %s5180_s3  ;;  %v5011_v35 = vpop.eup %5010 }
0x4a4d   :  { %v3441_v5 = vadd.f32 1.0, %v5011_v35 }
0x4a4f   :  { %5012 = vrcp.f32 %v3441_v5 }
0x4a59   :  { %v5013_v38 = vpop.eup %5012 }
0x4abe   :  { %v3464_v42 = vpop.permute.xlu0 %3463 }
0x4abf   :  { %v3466_v2 = vmul.f32 %v5013_v38, %v3464_v42 }
0x4ac1   :  { %4524 = vst.msk [vmem:[%s6457_s7 + $0x10] sm:$0x30] %vm489_vm7, %v3466_v2  ;;  %v3472_v63 = vpack.c.bf16 %v3466_v2, %v3466_v2 }
0x4ac2   :  { %4525 = vst.msk [vmem:[%s6457_s7 + $0x10] sm:$0x30] %vm6461_vm12, %v3466_v2 }
0x4ac3   :  { %v3474_v54 = vrot.slane %v3472_v63, 2 }
0x4ac5   :  { %4526 = vmatmul.mubr.msk.bf16.vlgmr.msra.gmra.mrb[80].mxu0 %vm210_vm4, %v3474_v54 }
0x4ac6   :  { %3655 = vmatpush1.bf16.msra.mxu0 %v6163_v57  ;;  %3686 = vmatprep.mubr.bf16.mxu0 %v5179_v0 }
0x4ac7   :  { %3656 = vmatprep.subr.bf16.mxu0 %v6167_v34 }
0x4aca   :  { %3657 = vmatpush1.bf16.msra.mxu0 %v6193_v31 }
0x4acb   :  { %3658 = vmatprep.subr.bf16.mxu0 %v6196_v32 }
0x4ace   :  { %3659 = vmatpush1.bf16.msra.mxu0 %v6199_v40 }
0x4acf   :  { %3660 = vmatprep.subr.bf16.mxu0 %v6202_v36 }
0x4ad2   :  { %3661 = vmatpush1.bf16.msra.mxu0 %v6205_v27 }
0x4ad3   :  { %3838 = vmatprep.subr.bf16.mxu0 %v6175_v60 }
0x4b98   :  { %v3512_v13 = vpop.f32.mrb[80].mxu0 }
0x4b99   :  { %v3514_v62 = vpop.f32.mrb[81].mxu0  ;;  %v3521_v12 = vrot.slane %v3512_v13, 2 }
0x4b9a   :  { %v3522_v4 = vrot.slane %v3514_v62, 2  ;;  %v3516_v8 = vpop.f32.mrb[82].mxu0 }
0x4b9b   :  { %v3517_v9 = vpop.f32.mrb[83].mxu0  ;;  %v3525_v16 = vadd.f32 %v3521_v12, %v3470_v7 }
0x4b9c   :  { %v3526_v11 = vadd.f32 %v3522_v4, %v3471_v10 }
0x4b9d   :  { %v4527_v56 = vmul.f32 -1.442695, %v3525_v16 }
0x4b9e   :  { %5014 = vtanh.f32 %v3526_v11  ;;  %v4528_v3 = vmul.f32 -1.442695, %v3526_v11  ;;  %v3649_v11 = vld [vmem:[#allocation3 + $0x38] sm:$0xc] }
0x4b9f   :  { %5016 = vpow2.f32 %v4527_v56  ;;  %v3648_v56 = vld [vmem:[#allocation3 + $0x30] sm:$0xc] }
0x4ba8   :  { %v5015_v29 = vpop.eup %5014 }
0x4ba9   :  { %3545 = vrot.lane.b32.xlu1 %v5015_v29, %s5180_s3  ;;  %v5017_v49 = vpop.eup %5016 }
0x4baa   :  { %v3533_v24 = vadd.f32 1.0, %v5017_v49 }
0x4bac   :  { %5018 = vrcp.f32 %v3533_v24 }
0x4bb6   :  { %v5019_v61 = vpop.eup %5018 }
0x4bb7   :  { %v3543_v28 = vmul.f32 %v5019_v61, %v3541_v44 }
0x4c1b   :  { %v3546_v14 = vpop.permute.xlu1 %3545 }
0x4c1c   :  { %v3548_v6 = vmul.f32 %v5019_v61, %v3546_v14 }
0x4c1e   :  { %3550 = vrot.lane.b32.xlu0 %v3548_v6, %s5180_s3 }
0x4c90   :  { %v3551_v19 = vpop.permute.xlu0 %3550 }
0x4c91   :  { %v3553_v21 = vadd.f32 %v3551_v19, %v3543_v28 }
0x4c93   :  { %5020 = vtanh.f32 %v3553_v21  ;;  %v3627_v52 = vrot.slane %v3553_v21, 6 }
0x4c94   :  { %5022 = vpow2.f32 %v4528_v3 }
0x4c9d   :  { %v5021_v22 = vpop.eup %5020 }
0x4c9e   :  { %3556 = vrot.lane.b32.xlu1 %v5021_v22, %s5180_s3  ;;  %v5023_v33 = vpop.eup %5022 }
0x4c9f   :  { %v3534_v41 = vadd.f32 1.0, %v5023_v33 }
0x4ca1   :  { %5024 = vrcp.f32 %v3534_v41 }
0x4cab   :  { %v5025_v37 = vpop.eup %5024 }
0x4d10   :  { %v3557_v43 = vpop.permute.xlu1 %3556 }
0x4d11   :  { %v3559_v45 = vmul.f32 %v5025_v37, %v3557_v43 }
0x4d13   :  { %4529 = vst.msk [vmem:[%s6457_s7 + $0x10] sm:$0xc0] %vm591_vm9, %v3559_v45  ;;  %v3564_v39 = vpack.c.bf16 %v3559_v45, %v3559_v45 }
0x4d14   :  { %4530 = vst.msk [vmem:[%s6457_s7 + $0xc] sm:$0xc0] %vm593_vm10, %v3559_v45 }
0x4d15   :  { %v3566_v46 = vrot.slane %v3564_v39, 3 }
0x4d17   :  { %4531 = vmatmul.mubr.msk.bf16.vlgmr.msra.gmra.mrb[72].mxu1 %vm210_vm4, %v3566_v46 }
0x4d18   :  { %3747 = vmatpush1.bf16.msra.mxu1 %v6163_v57  ;;  %3778 = vmatprep.mubr.bf16.mxu1 %v5179_v0 }
0x4d19   :  { %3748 = vmatprep.subr.bf16.mxu1 %v6167_v34 }
0x4d1c   :  { %3749 = vmatpush1.bf16.msra.mxu1 %v6193_v31 }
0x4d1d   :  { %3750 = vmatprep.subr.bf16.mxu1 %v6196_v32 }
0x4d20   :  { %3751 = vmatpush1.bf16.msra.mxu1 %v6199_v40 }
0x4d21   :  { %3752 = vmatprep.subr.bf16.mxu1 %v6202_v36 }
0x4d24   :  { %3753 = vmatpush1.bf16.msra.mxu1 %v6205_v27 }
0x4d25   :  { %3930 = vmatprep.subr.bf16.mxu1 %v6175_v60 }
0x4dea   :  { %v3604_v47 = vpop.f32.mrb[72].mxu1 }
0x4deb   :  { %v3606_v59 = vpop.f32.mrb[73].mxu1  ;;  %v3611_v20 = vadd.f32 %v3604_v47, %v3562_v17 }
0x4dec   :  { %v3612_v55 = vadd.f32 %v3606_v59, %v3563_v15  ;;  %v3608_v1 = vpop.f32.mrb[74].mxu1 }
0x4ded   :  { %v3609_v23 = vpop.f32.mrb[75].mxu1  ;;  %v4532_v30 = vmul.f32 -1.442695, %v3611_v20 }
0x4dee   :  { %5026 = vtanh.f32 %v3612_v55  ;;  %v4533_v38 = vmul.f32 -1.442695, %v3612_v55 }
0x4def   :  { %5028 = vpow2.f32 %v4532_v30 }
0x4df8   :  { %v5027_v18 = vpop.eup %5026 }
0x4df9   :  { %3631 = vrot.lane.b32.xlu0 %v5027_v18, %s5180_s3  ;;  %v5029_v48 = vpop.eup %5028  ;;  %v3739_v18 = vld [vmem:[#allocation3 + $0x38] sm:$0x30] }
0x4dfa   :  { %v3619_v50 = vadd.f32 1.0, %v5029_v48 }
0x4dfc   :  { %5030 = vrcp.f32 %v3619_v50  ;;  %v3738_v50 = vld [vmem:[#allocation3 + $0x30] sm:$0x30] }
0x4e06   :  { %v5031_v26 = vpop.eup %5030 }
0x4e07   :  { %v3629_v53 = vmul.f32 %v5031_v26, %v3627_v52 }
0x4e6b   :  { %v3632_v51 = vpop.permute.xlu0 %3631 }
0x4e6c   :  { %v3634_v58 = vmul.f32 %v5031_v26, %v3632_v51 }
0x4e6e   :  { %3636 = vrot.lane.b32.xlu1 %v3634_v58, %s5180_s3 }
0x4ee0   :  { %v3637_v25 = vpop.permute.xlu1 %3636 }
0x4ee1   :  { %v3639_v35 = vadd.f32 %v3637_v25, %v3629_v53 }
0x4ee3   :  { %5032 = vtanh.f32 %v3639_v35  ;;  %v3717_v19 = vrot.slane %v3639_v35, 6 }
0x4ee4   :  { %5034 = vpow2.f32 %v4533_v38 }
0x4eed   :  { %v5033_v5 = vpop.eup %5032 }
0x4eee   :  { %3642 = vrot.lane.b32.xlu0 %v5033_v5, %s5180_s3  ;;  %v5035_v42 = vpop.eup %5034 }
0x4eef   :  { %v3620_v2 = vadd.f32 1.0, %v5035_v42 }
0x4ef1   :  { %5036 = vrcp.f32 %v3620_v2 }
0x4efb   :  { %v5037_v63 = vpop.eup %5036 }
0x4f60   :  { %v3643_v54 = vpop.permute.xlu0 %3642 }
0x4f61   :  { %v3645_v13 = vmul.f32 %v5037_v63, %v3643_v54 }
0x4f63   :  { %4534 = vst.msk [vmem:[%s6457_s7 + $0x18] sm:$0x3] %vm287_vm2, %v3645_v13  ;;  %v3650_v62 = vpack.c.bf16 %v3645_v13, %v3645_v13 }
0x4f64   :  { %4535 = vst.msk [vmem:[%s6457_s7 + $0x10] sm:$0x3] %vm289_vm3, %v3645_v13 }
0x4f65   :  { %4536 = vmatmul.mubr.msk.bf16.vlgmr.msra.gmra.mrb[84].mxu0 %vm210_vm4, %v3650_v62 }
0x4f66   :  { %3839 = vmatpush1.bf16.msra.mxu0 %v6163_v57  ;;  %3870 = vmatprep.mubr.bf16.mxu0 %v5179_v0 }
0x4f67   :  { %3840 = vmatprep.subr.bf16.mxu0 %v6167_v34 }
0x4f6a   :  { %3841 = vmatpush1.bf16.msra.mxu0 %v6193_v31 }
0x4f6b   :  { %3842 = vmatprep.subr.bf16.mxu0 %v6196_v32 }
0x4f6e   :  { %3843 = vmatpush1.bf16.msra.mxu0 %v6199_v40 }
0x4f6f   :  { %3844 = vmatprep.subr.bf16.mxu0 %v6202_v36 }
0x4f72   :  { %3845 = vmatpush1.bf16.msra.mxu0 %v6205_v27 }
0x4f73   :  { %4014 = vmatprep.subr.bf16.mxu0 %v6175_v60 }
0x5038   :  { %v3688_v4 = vpop.f32.mrb[84].mxu0 }
0x5039   :  { %v3690_v8 = vpop.f32.mrb[85].mxu0  ;;  %v3697_v16 = vrot.slane %v3688_v4, 6 }
0x503a   :  { %v3698_v10 = vrot.slane %v3690_v8, 6  ;;  %v3692_v9 = vpop.f32.mrb[86].mxu0 }
0x503b   :  { %v3693_v29 = vpop.f32.mrb[87].mxu0  ;;  %v3701_v49 = vadd.f32 %v3697_v16, %v3648_v56  ;;  %v3831_v56 = vld [vmem:[#allocation3 + $0x38] sm:$0xc0] }
0x503c   :  { %v3702_v12 = vadd.f32 %v3698_v10, %v3649_v11 }
0x503d   :  { %v4537_v24 = vmul.f32 -1.442695, %v3701_v49 }
0x503e   :  { %5038 = vtanh.f32 %v3702_v12  ;;  %v4538_v41 = vmul.f32 -1.442695, %v3702_v12 }
0x503f   :  { %5040 = vpow2.f32 %v4537_v24 }
0x5048   :  { %v5039_v7 = vpop.eup %5038 }
0x5049   :  { %3721 = vrot.lane.b32.xlu1 %v5039_v7, %s5180_s3  ;;  %v5041_v61 = vpop.eup %5040 }
0x504a   :  { %v3709_v14 = vadd.f32 1.0, %v5041_v61 }
0x504c   :  { %5042 = vrcp.f32 %v3709_v14 }
0x5056   :  { %v5043_v6 = vpop.eup %5042 }
0x5057   :  { %v3719_v21 = vmul.f32 %v5043_v6, %v3717_v19 }
0x50bb   :  { %v3722_v44 = vpop.permute.xlu1 %3721 }
0x50bc   :  { %v3724_v28 = vmul.f32 %v5043_v6, %v3722_v44  ;;  %v3830_v6 = vld [vmem:[#allocation3 + $0x30] sm:$0xc0] }
0x50be   :  { %3726 = vrot.lane.b32.xlu0 %v3724_v28, %s5180_s3 }
0x5130   :  { %v3727_v22 = vpop.permute.xlu0 %3726 }
0x5131   :  { %v3729_v3 = vadd.f32 %v3727_v22, %v3719_v21 }
0x5133   :  { %5044 = vtanh.f32 %v3729_v3  ;;  %v3809_v5 = vrot.slane %v3729_v3, 6 }
0x5134   :  { %5046 = vpow2.f32 %v4538_v41 }
0x513d   :  { %v5045_v33 = vpop.eup %5044 }
0x513e   :  { %3732 = vrot.lane.b32.xlu1 %v5045_v33, %s5180_s3  ;;  %v5047_v37 = vpop.eup %5046 }
0x513f   :  { %v3710_v43 = vadd.f32 1.0, %v5047_v37 }
0x5141   :  { %5048 = vrcp.f32 %v3710_v43 }
0x514b   :  { %v5049_v45 = vpop.eup %5048 }
0x51b0   :  { %v3733_v39 = vpop.permute.xlu1 %3732 }
0x51b1   :  { %v3735_v46 = vmul.f32 %v5049_v45, %v3733_v39 }
0x51b3   :  { %4539 = vst.msk [vmem:[%s6457_s7 + $0x18] sm:$0xc] %vm387_vm5, %v3735_v46  ;;  %v3740_v47 = vpack.c.bf16 %v3735_v46, %v3735_v46 }
0x51b4   :  { %4540 = vst.msk [vmem:[%s6457_s7 + $0xc] sm:$0xc] %vm389_vm6, %v3735_v46 }
0x51b5   :  { %v3742_v15 = vrot.slane %v3740_v47, 1 }
0x51b7   :  { %4541 = vmatmul.mubr.msk.bf16.vlgmr.msra.gmra.mrb[76].mxu1 %vm210_vm4, %v3742_v15 }
0x51b8   :  { %3931 = vmatpush1.bf16.msra.mxu1 %v6163_v57  ;;  %3962 = vmatprep.mubr.bf16.mxu1 %v5179_v0 }
0x51b9   :  { %3932 = vmatprep.subr.bf16.mxu1 %v6167_v34 }
0x51bc   :  { %3933 = vmatpush1.bf16.msra.mxu1 %v6193_v31 }
0x51bd   :  { %3934 = vmatprep.subr.bf16.mxu1 %v6196_v32 }
0x51c0   :  { %3935 = vmatpush1.bf16.msra.mxu1 %v6199_v40 }
0x51c1   :  { %3936 = vmatprep.subr.bf16.mxu1 %v6202_v36 }
0x51c4   :  { %3937 = vmatpush1.bf16.msra.mxu1 %v6205_v27 }
0x51c5   :  { %4106 = vmatprep.subr.bf16.mxu1 %v6175_v60 }
0x528a   :  { %v3780_v59 = vpop.f32.mrb[76].mxu1 }
0x528b   :  { %v3782_v55 = vpop.f32.mrb[77].mxu1  ;;  %v3789_v48 = vrot.slane %v3780_v59, 4 }
0x528c   :  { %v3790_v1 = vrot.slane %v3782_v55, 4  ;;  %v3784_v23 = vpop.f32.mrb[78].mxu1 }
0x528d   :  { %v3785_v17 = vpop.f32.mrb[79].mxu1  ;;  %v3793_v26 = vadd.f32 %v3789_v48, %v3738_v50 }
0x528e   :  { %v3794_v20 = vadd.f32 %v3790_v1, %v3739_v18 }
0x528f   :  { %v4542_v51 = vmul.f32 -1.442695, %v3793_v26 }
0x5290   :  { %5050 = vtanh.f32 %v3794_v20  ;;  %v4543_v54 = vmul.f32 -1.442695, %v3794_v20  ;;  %v3923_v20 = vld [vmem:[#allocation3 + $0x48] sm:$0x3] }
0x5291   :  { %5052 = vpow2.f32 %v4542_v51 }
0x529a   :  { %v5051_v30 = vpop.eup %5050 }
0x529b   :  { %3813 = vrot.lane.b32.xlu0 %v5051_v30, %s5180_s3  ;;  %v5053_v58 = vpop.eup %5052 }
0x529c   :  { %v3801_v52 = vadd.f32 1.0, %v5053_v58  ;;  %v3922_v58 = vld [vmem:[#allocation3 + $0x40] sm:$0x3] }
0x529e   :  { %5054 = vrcp.f32 %v3801_v52 }
0x52a8   :  { %v5055_v53 = vpop.eup %5054 }
0x52a9   :  { %v3811_v38 = vmul.f32 %v5055_v53, %v3809_v5 }
0x530d   :  { %v3814_v25 = vpop.permute.xlu0 %3813 }
0x530e   :  { %v3816_v35 = vmul.f32 %v5055_v53, %v3814_v25 }
0x5310   :  { %3818 = vrot.lane.b32.xlu1 %v3816_v35, %s5180_s3 }
0x5382   :  { %v3819_v42 = vpop.permute.xlu1 %3818 }
0x5383   :  { %v3821_v2 = vadd.f32 %v3819_v42, %v3811_v38 }
0x5385   :  { %5056 = vtanh.f32 %v3821_v2  ;;  %v3901_v41 = vrot.slane %v3821_v2, 6 }
0x5386   :  { %5058 = vpow2.f32 %v4543_v54 }
0x538f   :  { %v5057_v63 = vpop.eup %5056 }
0x5390   :  { %3824 = vrot.lane.b32.xlu0 %v5057_v63, %s5180_s3  ;;  %v5059_v13 = vpop.eup %5058 }
0x5391   :  { %v3802_v62 = vadd.f32 1.0, %v5059_v13 }
0x5393   :  { %5060 = vrcp.f32 %v3802_v62 }
0x539d   :  { %v5061_v4 = vpop.eup %5060 }
0x5402   :  { %v3825_v8 = vpop.permute.xlu0 %3824 }
0x5403   :  { %v3827_v10 = vmul.f32 %v5061_v4, %v3825_v8 }
0x5405   :  { %4544 = vst.msk [vmem:[%s6457_s7 + $0x18] sm:$0x30] %vm489_vm7, %v3827_v10  ;;  %v3832_v9 = vpack.c.bf16 %v3827_v10, %v3827_v10 }
0x5406   :  { %4545 = vst.msk [vmem:[%s6457_s7 + $0x8] sm:$0x30] %vm6462_vm13, %v3827_v10 }
0x5407   :  { %v3834_v11 = vrot.slane %v3832_v9, 2 }
0x5409   :  { %4546 = vmatmul.mubr.msk.bf16.vlgmr.msra.gmra.mrb[88].mxu0 %vm210_vm4, %v3834_v11 }
0x540a   :  { %4015 = vmatpush1.bf16.msra.mxu0 %v6163_v57  ;;  %4046 = vmatprep.mubr.bf16.mxu0 %v5179_v0 }
0x540b   :  { %4016 = vmatprep.subr.bf16.mxu0 %v6167_v34 }
0x540e   :  { %4017 = vmatpush1.bf16.msra.mxu0 %v6193_v31 }
0x540f   :  { %4018 = vmatprep.subr.bf16.mxu0 %v6196_v32 }
0x5412   :  { %4019 = vmatpush1.bf16.msra.mxu0 %v6199_v40 }
0x5413   :  { %4020 = vmatprep.subr.bf16.mxu0 %v6202_v36 }
0x5416   :  { %4021 = vmatpush1.bf16.msra.mxu0 %v6205_v27 }
0x5417   :  { %4198 = vmatprep.subr.bf16.mxu0 %v6175_v60 }
0x54dc   :  { %v3872_v29 = vpop.f32.mrb[88].mxu0 }
0x54dd   :  { %v3874_v12 = vpop.f32.mrb[89].mxu0  ;;  %v3881_v14 = vrot.slane %v3872_v29, 2 }
0x54de   :  { %v3882_v7 = vrot.slane %v3874_v12, 2  ;;  %v3876_v16 = vpop.f32.mrb[90].mxu0 }
0x54df   :  { %v3877_v49 = vpop.f32.mrb[91].mxu0  ;;  %v3885_v44 = vadd.f32 %v3881_v14, %v3830_v6  ;;  %v4008_v14 = vld [vmem:[#allocation3 + $0x40] sm:$0xc] }
0x54e0   :  { %v3886_v24 = vadd.f32 %v3882_v7, %v3831_v56  ;;  %v4009_v49 = vld [vmem:[#allocation3 + $0x48] sm:$0xc] }
0x54e1   :  { %v4547_v28 = vmul.f32 -1.442695, %v3885_v44 }
0x54e2   :  { %5062 = vtanh.f32 %v3886_v24  ;;  %v4548_v46 = vmul.f32 -1.442695, %v3886_v24 }
0x54e3   :  { %5064 = vpow2.f32 %v4547_v28 }
0x54ec   :  { %v5063_v61 = vpop.eup %5062 }
0x54ed   :  { %3905 = vrot.lane.b32.xlu1 %v5063_v61, %s5180_s3  ;;  %v5065_v19 = vpop.eup %5064 }
0x54ee   :  { %v3893_v21 = vadd.f32 1.0, %v5065_v19 }
0x54f0   :  { %5066 = vrcp.f32 %v3893_v21 }
0x54fa   :  { %v5067_v22 = vpop.eup %5066 }
0x54fb   :  { %v3903_v37 = vmul.f32 %v5067_v22, %v3901_v41 }
0x555f   :  { %v3906_v3 = vpop.permute.xlu1 %3905 }
0x5560   :  { %v3908_v33 = vmul.f32 %v5067_v22, %v3906_v3 }
0x5562   :  { %3910 = vrot.lane.b32.xlu0 %v3908_v33, %s5180_s3 }
0x55d4   :  { %v3911_v43 = vpop.permute.xlu0 %3910 }
0x55d5   :  { %v3913_v45 = vadd.f32 %v3911_v43, %v3903_v37 }
0x55d7   :  { %5068 = vtanh.f32 %v3913_v45  ;;  %v3987_v42 = vrot.slane %v3913_v45, 6 }
0x55d8   :  { %5070 = vpow2.f32 %v4548_v46 }
0x55e1   :  { %v5069_v39 = vpop.eup %5068 }
0x55e2   :  { %3916 = vrot.lane.b32.xlu1 %v5069_v39, %s5180_s3  ;;  %v5071_v47 = vpop.eup %5070 }
0x55e3   :  { %v3894_v15 = vadd.f32 1.0, %v5071_v47 }
0x55e5   :  { %5072 = vrcp.f32 %v3894_v15 }
0x55ef   :  { %v5073_v59 = vpop.eup %5072 }
0x5654   :  { %v3917_v55 = vpop.permute.xlu1 %3916 }
0x5655   :  { %v3919_v1 = vmul.f32 %v5073_v59, %v3917_v55 }
0x5657   :  { %4549 = vst.msk [vmem:[%s6457_s7 + $0x18] sm:$0xc0] %vm591_vm9, %v3919_v1  ;;  %v3924_v23 = vpack.c.bf16 %v3919_v1, %v3919_v1 }
0x5658   :  { %4550 = vst.msk [vmem:[%s6457_s7 + $0x4] sm:$0xc0] %vm593_vm10, %v3919_v1 }
0x5659   :  { %v3926_v18 = vrot.slane %v3924_v23, 3 }
0x565b   :  { %4551 = vmatmul.mubr.msk.bf16.vlgmr.msra.gmra.mrb[80].mxu1 %vm210_vm4, %v3926_v18  ;;  %v5150_v18 = vld [vmem:[#allocation5] ss:$8 sps:$4 sm:$0xff]  }
0x565c   :  { %4107 = vmatpush1.bf16.msra.mxu1 %v6163_v57  ;;  %4138 = vmatprep.mubr.bf16.mxu1 %v5179_v0 }
0x565d   :  { %4108 = vmatprep.subr.bf16.mxu1 %v6167_v34 }
0x5660   :  { %4109 = vmatpush1.bf16.msra.mxu1 %v6193_v31 }
0x5661   :  { %4110 = vmatprep.subr.bf16.mxu1 %v6196_v32 }
0x5664   :  { %4111 = vmatpush1.bf16.msra.mxu1 %v6199_v40 }
0x5665   :  { %4112 = vmatprep.subr.bf16.mxu1 %v6202_v36 }
0x5668   :  { %4113 = vmatpush1.bf16.msra.mxu1 %v6205_v27 }
0x5669   :  { %4290 = vmatprep.subr.bf16.mxu1 %v6175_v60 }
0x572e   :  { %v3964_v17 = vpop.f32.mrb[80].mxu1 }
0x572f   :  { %v3966_v30 = vpop.f32.mrb[81].mxu1  ;;  %v3971_v52 = vadd.f32 %v3964_v17, %v3922_v58  ;;  %v5151_v17 = vld [vmem:[#allocation5 + $0x14] ss:$8 sps:$4 sm:$0xff]  }
0x5730   :  { %v3972_v48 = vadd.f32 %v3966_v30, %v3923_v20  ;;  %v3968_v50 = vpop.f32.mrb[82].mxu1 }
0x5731   :  { %v3969_v26 = vpop.f32.mrb[83].mxu1  ;;  %v4552_v53 = vmul.f32 -1.442695, %v3971_v52  ;;  %v4098_v52 = vld [vmem:[#allocation3 + $0x40] sm:$0x30] }
0x5732   :  { %5074 = vtanh.f32 %v3972_v48  ;;  %v4553_v62 = vmul.f32 -1.442695, %v3972_v48  ;;  %v4099_v26 = vld [vmem:[#allocation3 + $0x48] sm:$0x30] }
0x5733   :  { %5076 = vpow2.f32 %v4552_v53 }
0x573c   :  { %v5075_v51 = vpop.eup %5074 }
0x573d   :  { %3991 = vrot.lane.b32.xlu0 %v5075_v51, %s5180_s3  ;;  %v5077_v25 = vpop.eup %5076 }
0x573e   :  { %v3979_v35 = vadd.f32 1.0, %v5077_v25 }
0x5740   :  { %5078 = vrcp.f32 %v3979_v35 }
0x574a   :  { %v5079_v5 = vpop.eup %5078 }
0x574b   :  { %v3989_v2 = vmul.f32 %v5079_v5, %v3987_v42 }
0x57af   :  { %v3992_v38 = vpop.permute.xlu0 %3991 }
0x57b0   :  { %v3994_v60 = vmul.f32 %v5079_v5, %v3992_v38 }
0x57b2   :  { %3996 = vrot.lane.b32.xlu1 %v3994_v60, %s5180_s3 }
0x5824   :  { %v3997_v63 = vpop.permute.xlu1 %3996 }
0x5825   :  { %v3999_v54 = vadd.f32 %v3997_v63, %v3989_v2 }
0x5827   :  { %5080 = vtanh.f32 %v3999_v54  ;;  %v4077_v33 = vrot.slane %v3999_v54, 6 }
0x5828   :  { %5082 = vpow2.f32 %v4553_v62 }
0x5831   :  { %v5081_v13 = vpop.eup %5080 }
0x5832   :  { %4002 = vrot.lane.b32.xlu0 %v5081_v13, %s5180_s3  ;;  %v5083_v4 = vpop.eup %5082 }
0x5833   :  { %v3980_v8 = vadd.f32 1.0, %v5083_v4 }
0x5835   :  { %5084 = vrcp.f32 %v3980_v8 }
0x583f   :  { %v5085_v10 = vpop.eup %5084 }
0x58a4   :  { %v4003_v9 = vpop.permute.xlu0 %4002 }
0x58a5   :  { %v4005_v11 = vmul.f32 %v5085_v10, %v4003_v9 }
0x58a7   :  { %4554 = vst.msk [vmem:[%s6457_s7 + $0x20] sm:$0x3] %vm287_vm2, %v4005_v11  ;;  %v4010_v29 = vpack.c.bf16 %v4005_v11, %v4005_v11 }
0x58a8   :  { %4555 = vst.msk [vmem:[%s6457_s7 + $0x8] sm:$0x3] %vm289_vm3, %v4005_v11 }
0x58a9   :  { %4556 = vmatmul.mubr.msk.bf16.vlgmr.msra.gmra.mrb[92].mxu0 %vm210_vm4, %v4010_v29 }
0x58aa   :  { %4199 = vmatpush1.bf16.msra.mxu0 %v6163_v57  ;;  %4230 = vmatprep.mubr.bf16.mxu0 %v5179_v0 }
0x58ab   :  { %4200 = vmatprep.subr.bf16.mxu0 %v6167_v34 }
0x58ae   :  { %4201 = vmatpush1.bf16.msra.mxu0 %v6193_v31 }
0x58af   :  { %4202 = vmatprep.subr.bf16.mxu0 %v6196_v32 }
0x58b2   :  { %4203 = vmatpush1.bf16.msra.mxu0 %v6199_v40 }
0x58b3   :  { %4204 = vmatprep.subr.bf16.mxu0 %v6202_v36 }
0x58b6   :  { %4205 = vmatpush1.bf16.msra.mxu0 %v6205_v27 }
0x597c   :  { %v4048_v12 = vpop.f32.mrb[92].mxu0 }
0x597d   :  { %v4050_v7 = vpop.f32.mrb[93].mxu0  ;;  %v4057_v34 = vrot.slane %v4048_v12, 6 }
0x597e   :  { %v4058_v16 = vrot.slane %v4050_v7, 6  ;;  %v4052_v56 = vpop.f32.mrb[94].mxu0 }
0x597f   :  { %v4053_v57 = vpop.f32.mrb[95].mxu0  ;;  %v4061_v6 = vadd.f32 %v4057_v34, %v4008_v14 }
0x5980   :  { %v4062_v24 = vadd.f32 %v4058_v16, %v4009_v49  ;;  %v4191_v16 = vld [vmem:[#allocation3 + $0x48] sm:$0xc0] }
0x5981   :  { %v4557_v44 = vmul.f32 -1.442695, %v4061_v6 }
0x5982   :  { %5086 = vtanh.f32 %v4062_v24  ;;  %v4558_v39 = vmul.f32 -1.442695, %v4062_v24 }
0x5983   :  { %5088 = vpow2.f32 %v4557_v44 }
0x598c   :  { %v5087_v61 = vpop.eup %5086 }
0x598d   :  { %4081 = vrot.lane.b32.xlu1 %v5087_v61, %s5180_s3  ;;  %v5089_v28 = vpop.eup %5088  ;;  %v4190_v61 = vld [vmem:[#allocation3 + $0x40] sm:$0xc0] }
0x598e   :  { %v4069_v19 = vadd.f32 1.0, %v5089_v28 }
0x5990   :  { %5090 = vrcp.f32 %v4069_v19 }
0x599a   :  { %v5091_v21 = vpop.eup %5090 }
0x599b   :  { %v4079_v41 = vmul.f32 %v5091_v21, %v4077_v33 }
0x59ff   :  { %v4082_v22 = vpop.permute.xlu1 %4081 }
0x5a00   :  { %v4084_v3 = vmul.f32 %v5091_v21, %v4082_v22 }
0x5a02   :  { %4086 = vrot.lane.b32.xlu0 %v4084_v3, %s5180_s3 }
0x5a74   :  { %v4087_v37 = vpop.permute.xlu0 %4086 }
0x5a75   :  { %v4089_v43 = vadd.f32 %v4087_v37, %v4079_v41 }
0x5a77   :  { %5092 = vtanh.f32 %v4089_v43  ;;  %v4169_v5 = vrot.slane %v4089_v43, 6 }
0x5a78   :  { %5094 = vpow2.f32 %v4558_v39 }
0x5a81   :  { %v5093_v45 = vpop.eup %5092 }
0x5a82   :  { %4092 = vrot.lane.b32.xlu1 %v5093_v45, %s5180_s3  ;;  %v5095_v46 = vpop.eup %5094 }
0x5a83   :  { %v4070_v47 = vadd.f32 1.0, %v5095_v46 }
0x5a85   :  { %5096 = vrcp.f32 %v4070_v47 }
0x5a8f   :  { %v5097_v15 = vpop.eup %5096 }
0x5af4   :  { %v4093_v59 = vpop.permute.xlu1 %4092 }
0x5af5   :  { %v4095_v55 = vmul.f32 %v5097_v15, %v4093_v59 }
0x5af7   :  { %4559 = vst.msk [vmem:[%s6457_s7 + $0x20] sm:$0xc] %vm387_vm5, %v4095_v55  ;;  %v4100_v1 = vpack.c.bf16 %v4095_v55, %v4095_v55  ;;  %vm6463_vm5 = vmmov %vm6459_vm8 }
0x5af8   :  { %4560 = vst.msk [vmem:[%s6457_s7 + $0x4] sm:$0xc] %vm389_vm6, %v4095_v55 }
0x5af9   :  { %v4102_v23 = vrot.slane %v4100_v1, 1 }
0x5afb   :  { %4561 = vmatmul.mubr.msk.bf16.vlgmr.msra.gmra.mrb[84].mxu1 %vm210_vm4, %v4102_v23  ;;  %v4283_v23 = vld [vmem:[#allocation3 + $0x58] sm:$0x3] }
0x5afc   :  { %4291 = vmatpush1.bf16.msra.mxu1 %v5150_v18  ;;  %4322 = vmatprep.mubr.bf16.mxu1 %v5179_v0 }
0x5afd   :  { %4292 = vmatprep.subr.bf16.mxu1 %v5151_v17 }
0x5b00   :  { %4293 = vmatpush1.bf16.msra.mxu1 %v6193_v31 }
0x5b01   :  { %4294 = vmatprep.subr.bf16.mxu1 %v6196_v32 }
0x5b04   :  { %4295 = vmatpush1.bf16.msra.mxu1 %v6199_v40 }
0x5b05   :  { %4296 = vmatprep.subr.bf16.mxu1 %v6202_v36 }
0x5b08   :  { %4297 = vmatpush1.bf16.msra.mxu1 %v6205_v27 }
0x5bce   :  { %v4140_v20 = vpop.f32.mrb[84].mxu1 }
0x5bcf   :  { %v4142_v30 = vpop.f32.mrb[85].mxu1  ;;  %v4149_v31 = vrot.slane %v4140_v20, 4 }
0x5bd0   :  { %v4150_v48 = vrot.slane %v4142_v30, 4  ;;  %v4144_v50 = vpop.f32.mrb[86].mxu1 }
0x5bd1   :  { %v4145_v51 = vpop.f32.mrb[87].mxu1  ;;  %v4153_v32 = vadd.f32 %v4149_v31, %v4098_v52  ;;  %v4282_v50 = vld [vmem:[#allocation3 + $0x50] sm:$0x3] }
0x5bd2   :  { %v4154_v58 = vadd.f32 %v4150_v48, %v4099_v26 }
0x5bd3   :  { %v4562_v53 = vmul.f32 -1.442695, %v4153_v32 }
0x5bd4   :  { %5098 = vtanh.f32 %v4154_v58  ;;  %v4563_v63 = vmul.f32 -1.442695, %v4154_v58 }
0x5bd5   :  { %5100 = vpow2.f32 %v4562_v53 }
0x5bde   :  { %v5099_v0 = vpop.eup %5098 }
0x5bdf   :  { %4173 = vrot.lane.b32.xlu0 %v5099_v0, %s5180_s3  ;;  %v5101_v40 = vpop.eup %5100 }
0x5be0   :  { %v4161_v36 = vadd.f32 1.0, %v5101_v40 }
0x5be2   :  { %5102 = vrcp.f32 %v4161_v36 }
0x5bec   :  { %v5103_v27 = vpop.eup %5102 }
0x5bed   :  { %v4171_v38 = vmul.f32 %v5103_v27, %v4169_v5 }
0x5c51   :  { %v4174_v25 = vpop.permute.xlu0 %4173 }
0x5c52   :  { %v4176_v35 = vmul.f32 %v5103_v27, %v4174_v25 }
0x5c54   :  { %4178 = vrot.lane.b32.xlu1 %v4176_v35, %s5180_s3 }
0x5cc6   :  { %v4179_v60 = vpop.permute.xlu1 %4178 }
0x5cc7   :  { %v4181_v42 = vadd.f32 %v4179_v60, %v4171_v38 }
0x5cc9   :  { %5104 = vtanh.f32 %v4181_v42  ;;  %v4261_v22 = vrot.slane %v4181_v42, 6 }
0x5cca   :  { %5106 = vpow2.f32 %v4563_v63 }
0x5cd3   :  { %v5105_v2 = vpop.eup %5104 }
0x5cd4   :  { %4184 = vrot.lane.b32.xlu0 %v5105_v2, %s5180_s3  ;;  %v5107_v54 = vpop.eup %5106 }
0x5cd5   :  { %v4162_v13 = vadd.f32 1.0, %v5107_v54 }
0x5cd7   :  { %5108 = vrcp.f32 %v4162_v13 }
0x5ce1   :  { %v5109_v62 = vpop.eup %5108 }
0x5d46   :  { %v4185_v4 = vpop.permute.xlu0 %4184 }
0x5d47   :  { %v4187_v8 = vmul.f32 %v5109_v62, %v4185_v4 }
0x5d49   :  { %4564 = vst.msk [vmem:[%s6457_s7 + $0x20] sm:$0x30] %vm489_vm7, %v4187_v8  ;;  %v4192_v10 = vpack.c.bf16 %v4187_v8, %v4187_v8 }
0x5d4a   :  { %4565 = vst.msk [vmem:[%s6457_s7] sm:$0x30] %vm6463_vm5, %v4187_v8 }
0x5d4b   :  { %v4194_v9 = vrot.slane %v4192_v10, 2 }
0x5d4d   :  { %4566 = vmatmul.mubr.msk.bf16.vlgmr.msra.gmra.mrb[96].mxu0 %vm210_vm4, %v4194_v9 }
0x5e20   :  { %v4232_v11 = vpop.f32.mrb[96].mxu0 }
0x5e21   :  { %v4234_v29 = vpop.f32.mrb[97].mxu0  ;;  %v4241_v24 = vrot.slane %v4232_v11, 2 }
0x5e22   :  { %v4242_v12 = vrot.slane %v4234_v29, 2  ;;  %v4236_v7 = vpop.f32.mrb[98].mxu0 }
0x5e23   :  { %v4237_v56 = vpop.f32.mrb[99].mxu0  ;;  %v4245_v34 = vadd.f32 %v4241_v24, %v4190_v61 }
0x5e24   :  { %v4246_v49 = vadd.f32 %v4242_v12, %v4191_v16 }
0x5e25   :  { %v4567_v14 = vmul.f32 -1.442695, %v4245_v34 }
0x5e26   :  { %5110 = vtanh.f32 %v4246_v49  ;;  %v4568_v43 = vmul.f32 -1.442695, %v4246_v49 }
0x5e27   :  { %5112 = vpow2.f32 %v4567_v14 }
0x5e30   :  { %v5111_v57 = vpop.eup %5110 }
0x5e31   :  { %4265 = vrot.lane.b32.xlu1 %v5111_v57, %s5180_s3  ;;  %v5113_v6 = vpop.eup %5112 }
0x5e32   :  { %v4253_v44 = vadd.f32 1.0, %v5113_v6 }
0x5e34   :  { %5114 = vrcp.f32 %v4253_v44 }
0x5e3e   :  { %v5115_v28 = vpop.eup %5114 }
0x5e3f   :  { %v4263_v3 = vmul.f32 %v5115_v28, %v4261_v22 }
0x5ea3   :  { %v4266_v19 = vpop.permute.xlu1 %4265 }
0x5ea4   :  { %v4268_v21 = vmul.f32 %v5115_v28, %v4266_v19 }
0x5ea6   :  { %4270 = vrot.lane.b32.xlu0 %v4268_v21, %s5180_s3 }
0x5f18   :  { %v4271_v33 = vpop.permute.xlu0 %4270 }
0x5f19   :  { %v4273_v41 = vadd.f32 %v4271_v33, %v4263_v3 }
0x5f1b   :  { %5116 = vtanh.f32 %v4273_v41  ;;  %v4347_v53 = vrot.slane %v4273_v41, 6 }
0x5f1c   :  { %5118 = vpow2.f32 %v4568_v43 }
0x5f25   :  { %v5117_v37 = vpop.eup %5116 }
0x5f26   :  { %4276 = vrot.lane.b32.xlu1 %v5117_v37, %s5180_s3  ;;  %v5119_v45 = vpop.eup %5118 }
0x5f27   :  { %v4254_v39 = vadd.f32 1.0, %v5119_v45 }
0x5f29   :  { %5120 = vrcp.f32 %v4254_v39 }
0x5f33   :  { %v5121_v46 = vpop.eup %5120 }
0x5f98   :  { %v4277_v47 = vpop.permute.xlu1 %4276 }
0x5f99   :  { %v4279_v15 = vmul.f32 %v5121_v46, %v4277_v47 }
0x5f9b   :  { %4569 = vst.msk [vmem:[%s6457_s7 + $0x20] sm:$0xc0] %vm591_vm9, %v4279_v15  ;;  %v4284_v59 = vpack.c.bf16 %v4279_v15, %v4279_v15 }
0x5f9c   :  { %4570 = vst.msk [vmem:[%s6457_s7 - $0x4] sm:$0xc0] %vm593_vm10, %v4279_v15 }
0x5f9d   :  { %v4286_v55 = vrot.slane %v4284_v59, 3 }
0x5f9f   :  { %4571 = vmatmul.mubr.msk.bf16.vlgmr.msra.gmra.mrb[88].mxu1 %vm210_vm4, %v4286_v55 }
0x6072   :  { %v4324_v1 = vpop.f32.mrb[88].mxu1 }
0x6073   :  { %v4326_v18 = vpop.f32.mrb[89].mxu1  ;;  %v4331_v26 = vadd.f32 %v4324_v1, %v4282_v50 }
0x6074   :  { %v4332_v17 = vadd.f32 %v4326_v18, %v4283_v23  ;;  %v4328_v20 = vpop.f32.mrb[90].mxu1 }
0x6075   :  { %v4329_v30 = vpop.f32.mrb[91].mxu1  ;;  %v4572_v51 = vmul.f32 -1.442695, %v4331_v26 }
0x6076   :  { %5122 = vtanh.f32 %v4332_v17  ;;  %v4573_v35 = vmul.f32 -1.442695, %v4332_v17 }
0x6077   :  { %5124 = vpow2.f32 %v4572_v51 }
0x6080   :  { %v5123_v48 = vpop.eup %5122 }
0x6081   :  { %4351 = vrot.lane.b32.xlu0 %v5123_v48, %s5180_s3  ;;  %v5125_v58 = vpop.eup %5124 }
0x6082   :  { %v4339_v0 = vadd.f32 1.0, %v5125_v58 }
0x6084   :  { %5126 = vrcp.f32 %v4339_v0 }
0x608e   :  { %v5127_v31 = vpop.eup %5126 }
0x608f   :  { %v4349_v40 = vmul.f32 %v5127_v31, %v4347_v53 }
0x60f3   :  { %v4352_v52 = vpop.permute.xlu0 %4351 }
0x60f4   :  { %v4354_v32 = vmul.f32 %v5127_v31, %v4352_v52 }
0x60f6   :  { %4356 = vrot.lane.b32.xlu1 %v4354_v32, %s5180_s3 }
0x6168   :  { %v4357_v36 = vpop.permute.xlu1 %4356 }
0x6169   :  { %v4359_v27 = vadd.f32 %v4357_v36, %v4349_v40 }
0x616b   :  { %5128 = vtanh.f32 %v4359_v27 }
0x616c   :  { %5130 = vpow2.f32 %v4573_v35 }
0x6175   :  { %v5129_v25 = vpop.eup %5128 }
0x6176   :  { %4362 = vrot.lane.b32.xlu0 %v5129_v25, %s5180_s3  ;;  %v5131_v5 = vpop.eup %5130 }
0x6177   :  { %v4340_v38 = vadd.f32 1.0, %v5131_v5 }
0x6179   :  { %5132 = vrcp.f32 %v4340_v38 }
0x6183   :  { %v5133_v60 = vpop.eup %5132 }
0x61e8   :  { %v4363_v42 = vpop.permute.xlu0 %4362 }
0x61e9   :  { %v4365_v2 = vmul.f32 %v5133_v60, %v4363_v42 }
0x61eb   :  { %4574 = vst.msk [vmem:[%s6457_s7 + $0x28] sm:$0x3] %vm287_vm2, %v4365_v2 }
0x61ec   :  { %4367 = vst.msk [vmem:[%s6457_s7] sm:$0x3] %vm289_vm3, %v4365_v2 }
0x61ed   :  { %4372 = vsyncpa [#allocation6], 1 }

</bundles_post_ra>
